<compile_context>
chip_gen: v7x
topology: tpu7x:2x2x1
jax: 0.10.0
libtpu: 0.0.40
codegen_flags: <defaults>
</compile_context>

<pallas_src>
import numpy as np
import jax
import jax.numpy as jnp
from jax.experimental import pallas as pl
from jax.experimental.pallas import tpu as pltpu


# ----------------------------------------------------------------------------
# Pallas kernel: one-shot matmul fused with per-output-channel bias + ReLU
# (BN scale is already folded into the weights; bias = beta - mean*scale).
# ----------------------------------------------------------------------------
def _matmul_bias_relu_kernel(x_ref, w_ref, b_ref, o_ref):
    # Full-K block: single MXU dot with f32 accumulation, then fused epilogue.
    acc = jnp.dot(x_ref[...], w_ref[...], preferred_element_type=jnp.float32)
    o_ref[...] = jnp.maximum(acc + b_ref[...], 0.0).astype(o_ref.dtype)


def _round_up(x, m):
    return ((x + m - 1) // m) * m


def _choose_m_tiling(M, max_tm=512, min_blocks=2):
    """>=2 M blocks (v7x dual-TC sharding), each as large as VMEM allows."""
    m_blocks = max(min_blocks, -(-M // max_tm))
    tm = _round_up(-(-M // m_blocks), 8)
    return tm, m_blocks * tm, m_blocks


def fused_matmul_bias_relu(cols, wmat, bias, out_dtype):
    """relu(cols @ wmat + bias).  cols/wmat are bf16; output dtype selectable."""
    M, K = cols.shape
    K2, N = wmat.shape
    assert K == K2

    tm, Mp, m_blocks = _choose_m_tiling(M)
    if Mp != M:
        cols = jnp.pad(cols, ((0, Mp - M), (0, 0)))
    bias2d = bias.reshape(1, N)

    out_size = jnp.dtype(out_dtype).itemsize
    cost = pl.CostEstimate(
        flops=2 * Mp * K * N,
        transcendentals=0,
        bytes_accessed=(Mp * K * cols.dtype.itemsize
                        + K * N * wmat.dtype.itemsize
                        + 4 * N + Mp * N * out_size))

    out = pl.pallas_call(
        _matmul_bias_relu_kernel,
        out_shape=jax.ShapeDtypeStruct((Mp, N), out_dtype),
        grid=(m_blocks,),
        in_specs=[
            pl.BlockSpec((tm, K), lambda i: (i, 0)),   # cols: full-K block
            pl.BlockSpec((K, N), lambda i: (0, 0)),    # weight: whole matrix
            pl.BlockSpec((1, N), lambda i: (0, 0)),    # folded BN bias row
        ],
        out_specs=pl.BlockSpec((tm, N), lambda i: (i, 0)),
        compiler_params=pltpu.CompilerParams(
            dimension_semantics=("parallel",),
            vmem_limit_bytes=32 * 1024 * 1024),
        cost_estimate=cost,
    )(cols, wmat, bias2d)

    return out[:M] if Mp != M else out


# ----------------------------------------------------------------------------
# Conv (NHWC, im2col with 1x1 fast path) + folded-BN + ReLU; pooling glue
# ----------------------------------------------------------------------------
def _im2col_nhwc(x, kh, kw, sh, sw, ph, pw):
    # TODO(synk): the (1,7)/(7,1)/3x3 convs could avoid this materialized
    # im2col via an implicit-GEMM kernel (taps as an extra reduction axis
    # offsetting into the pre-padded activation); kept as explicit im2col on
    # bf16 activations since it is correct and the buffers here are ~1.5 MB.
    n, h, w, c = x.shape
    xp = jnp.pad(x, ((0, 0), (ph, ph), (pw, pw), (0, 0)))
    oh = (h + 2 * ph - kh) // sh + 1
    ow = (w + 2 * pw - kw) // sw + 1
    taps = []
    for i in range(kh):
        for j in range(kw):
            patch = jax.lax.slice(
                xp, (0, i, j, 0),
                (n, i + (oh - 1) * sh + 1, j + (ow - 1) * sw + 1, c),
                (1, sh, sw, 1))                      # (n, oh, ow, c)
            taps.append(patch)
    col = jnp.concatenate(taps, axis=-1)             # (n, oh, ow, kh*kw*c)
    return col.reshape(n * oh * ow, kh * kw * c), oh, ow


def conv_bn_relu(x, p, out_dtype=jnp.bfloat16):
    """x is bf16 NHWC; returns NHWC in `out_dtype`."""
    kh, kw = p["ksize"]
    sh, sw = p["stride"]
    ph, pw = p["padding"]
    n, h, w, _ = x.shape
    if (kh, kw) == (1, 1) and (sh, sw) == (1, 1) and (ph, pw) == (0, 0):
        cols = x.reshape(n * h * w, x.shape[-1])     # 1x1 fast path: no im2col
        oh, ow = h, w
    else:
        cols, oh, ow = _im2col_nhwc(x, kh, kw, sh, sw, ph, pw)
    out = fused_matmul_bias_relu(cols, p["wmat"], p["bias"], out_dtype)
    return out.reshape(n, oh, ow, -1)


def max_pool2d_nhwc(x, k, s):
    return jax.lax.reduce_window(
        x, -jnp.inf, jax.lax.max, (1, k, k, 1), (1, s, s, 1), "VALID")


# ----------------------------------------------------------------------------
# Parameter construction (deterministic truncated normal, eval-mode BN folded)
# ----------------------------------------------------------------------------
_ROOT_KEY = jax.random.PRNGKey(42)
_KIDX = [0]


def _next_key():
    _KIDX[0] += 1
    return jax.random.fold_in(_ROOT_KEY, _KIDX[0])


def _pair(v):
    return (v, v) if isinstance(v, int) else tuple(v)


def make_basic_conv(cin, cout, kernel_size, stride=1, padding=0):
    kh, kw = _pair(kernel_size)
    sh, sw = _pair(stride)
    ph, pw = _pair(padding)
    w = 0.1 * jax.random.truncated_normal(
        _next_key(), -2.0, 2.0, (cout, cin, kh, kw), jnp.float32)
    # eval-mode BatchNorm with fresh stats: scale = 1/sqrt(var+eps), bias = 0.
    scale = jnp.full((cout,), 1.0 / np.sqrt(1.0 + 0.001), jnp.float32)
    bias = jnp.zeros((cout,), jnp.float32)
    # im2col K ordering is (kh, kw, cin) with cin fastest -> matching weight
    # matrix is (kh*kw*cin, cout); fold the BN scale in and pre-cast to bf16.
    wmat = w.transpose(2, 3, 1, 0).reshape(kh * kw * cin, cout)
    wmat = (wmat * scale[None, :]).astype(jnp.bfloat16)
    return dict(wmat=wmat, bias=bias,
                ksize=(kh, kw), stride=(sh, sw), padding=(ph, pw))


def make_inception_d(cin):
    return dict(
        b3_1=make_basic_conv(cin, 192, 1),
        b3_2=make_basic_conv(192, 320, 3, stride=2),
        b7_1=make_basic_conv(cin, 192, 1),
        b7_2=make_basic_conv(192, 192, (1, 7), padding=(0, 3)),
        b7_3=make_basic_conv(192, 192, (7, 1), padding=(3, 0)),
        b7_4=make_basic_conv(192, 192, 3, stride=2),
    )


# ----------------------------------------------------------------------------
# InceptionD forward (matches the PyTorch reference, NCHW in / NCHW out)
# ----------------------------------------------------------------------------
def inception_d_forward(p, x_nchw):
    x_f32 = jnp.transpose(x_nchw, (0, 2, 3, 1))        # NCHW -> NHWC once
    x = x_f32.astype(jnp.bfloat16)                     # conv branches in bf16

    b3 = conv_bn_relu(x, p["b3_1"], jnp.bfloat16)      # intermediates: bf16
    b3 = conv_bn_relu(b3, p["b3_2"], jnp.float32)      # branch output: f32

    b7 = conv_bn_relu(x, p["b7_1"], jnp.bfloat16)
    b7 = conv_bn_relu(b7, p["b7_2"], jnp.bfloat16)
    b7 = conv_bn_relu(b7, p["b7_3"], jnp.bfloat16)
    b7 = conv_bn_relu(b7, p["b7_4"], jnp.float32)

    bp = max_pool2d_nhwc(x_f32, 3, 2)                  # pool on f32 (exact)

    out = jnp.concatenate([b3, b7, bp], axis=-1)       # lane-dense concat
    return jnp.transpose(out, (0, 3, 1, 2))            # back to NCHW


if __name__ == "__main__":
    key = jax.random.PRNGKey(0)
    N, C, H, W = 2, 64, 17, 17                 # small channels, real 17x17 map
    x = jax.random.normal(key, (N, C, H, W), jnp.float32)

    params = make_inception_d(C)
    fwd = jax.jit(lambda xx: inception_d_forward(params, xx))

    out = jax.block_until_ready(fwd(x))
    oh = (H - 3) // 2 + 1
    assert out.shape == (N, 320 + 192 + C, oh, oh), out.shape
    assert out.dtype == jnp.float32
    assert bool(jnp.all(jnp.isfinite(out)))
    print("KERNEL_OK")
</pallas_src>

<mosaic_0001>
module attributes {stable_mosaic.version = 11 : i64} {
  func.func @_matmul_bias_relu_kernel(%arg0: i32, %arg1: memref<296x64xbf16, #tpu.memory_space<vmem>>, %arg2: memref<64x192xbf16, #tpu.memory_space<vmem>>, %arg3: memref<1x192xf32, #tpu.memory_space<vmem>>, %arg4: memref<296x192xbf16, #tpu.memory_space<vmem>>) attributes {dimension_semantics = [#tpu.dimension_semantics<parallel>], iteration_bounds = array<i64: 2>, scalar_prefetch = 0 : i64, scratch_operands = 0 : i64, tpu.core_type = #tpu.core_type<tc>, window_params = [{transform_indices = @transform_0, window_bounds = array<i64: 296, 64>}, {pipeline_mode = #tpu.pipeline_mode<synchronous>, transform_indices = @transform_1, window_bounds = array<i64: 64, 192>}, {pipeline_mode = #tpu.pipeline_mode<synchronous>, transform_indices = @transform_2, window_bounds = array<i64: 1, 192>}, {transform_indices = @transform_3, window_bounds = array<i64: 296, 192>}]} {
    %c0 = arith.constant 0 : index
    %c0_0 = arith.constant 0 : index
    %0 = vector.load %arg1[%c0, %c0_0] : memref<296x64xbf16, #tpu.memory_space<vmem>>, vector<296x64xbf16>
    %c0_1 = arith.constant 0 : index
    %c0_2 = arith.constant 0 : index
    %1 = vector.load %arg2[%c0_1, %c0_2] : memref<64x192xbf16, #tpu.memory_space<vmem>>, vector<64x192xbf16>
    %cst = arith.constant dense<0.000000e+00> : vector<296x192xf32>
    %2 = tpu.matmul %0, %1, %cst {dimension_numbers = #tpu.dot_dimension_numbers<[1], [0], [0], [1], [0, 0, 1, 1], [], []>} : vector<296x64xbf16>, vector<64x192xbf16>, vector<296x192xf32> -> vector<296x192xf32>
    %c0_3 = arith.constant 0 : index
    %c0_4 = arith.constant 0 : index
    %3 = vector.load %arg3[%c0_3, %c0_4] : memref<1x192xf32, #tpu.memory_space<vmem>>, vector<1x192xf32>
    %4 = vector.broadcast %3 : vector<1x192xf32> to vector<296x192xf32>
    %5 = arith.addf %2, %4 : vector<296x192xf32>
    %cst_5 = arith.constant 0.000000e+00 : f32
    %6 = vector.broadcast %cst_5 : f32 to vector<296x192xf32>
    %7 = arith.maximumf %5, %6 : vector<296x192xf32>
    %8 = arith.truncf %7 : vector<296x192xf32> to vector<296x192xbf16>
    %c0_6 = arith.constant 0 : index
    %c0_7 = arith.constant 0 : index
    %9 = vector.load %arg4[%c0_6, %c0_7] : memref<296x192xbf16, #tpu.memory_space<vmem>>, vector<296x192xbf16>
    tpu.vector_store %arg4[%c0_6, %c0_7], %8 {strides = array<i32>} : memref<296x192xbf16, #tpu.memory_space<vmem>>, vector<296x192xbf16>,
    return
  }
  func.func @transform_0(%arg0: i32) -> (i32, i32) {
    %c0_i32 = arith.constant 0 : i32
    %c0_i32_0 = arith.constant 0 : i32
    return %arg0, %c0_i32 : i32, i32
  }
  func.func @transform_1(%arg0: i32) -> (i32, i32) {
    %c0_i32 = arith.constant 0 : i32
    %c0_i32_0 = arith.constant 0 : i32
    %c0_i32_1 = arith.constant 0 : i32
    return %c0_i32, %c0_i32_0 : i32, i32
  }
  func.func @transform_2(%arg0: i32) -> (i32, i32) {
    %c0_i32 = arith.constant 0 : i32
    %c0_i32_0 = arith.constant 0 : i32
    %c0_i32_1 = arith.constant 0 : i32
    return %c0_i32, %c0_i32_0 : i32, i32
  }
  func.func @transform_3(%arg0: i32) -> (i32, i32) {
    %c0_i32 = arith.constant 0 : i32
    %c0_i32_0 = arith.constant 0 : i32
    return %arg0, %c0_i32 : i32, i32
  }
}

module attributes {stable_mosaic.version = 11 : i64} {
  func.func @_matmul_bias_relu_kernel(%arg0: i32, %arg1: memref<296x1344xbf16, #tpu.memory_space<vmem>>, %arg2: memref<1344x192xbf16, #tpu.memory_space<vmem>>, %arg3: memref<1x192xf32, #tpu.memory_space<vmem>>, %arg4: memref<296x192xbf16, #tpu.memory_space<vmem>>) attributes {dimension_semantics = [#tpu.dimension_semantics<parallel>], iteration_bounds = array<i64: 2>, scalar_prefetch = 0 : i64, scratch_operands = 0 : i64, tpu.core_type = #tpu.core_type<tc>, window_params = [{transform_indices = @transform_0, window_bounds = array<i64: 296, 1344>}, {pipeline_mode = #tpu.pipeline_mode<synchronous>, transform_indices = @transform_1, window_bounds = array<i64: 1344, 192>}, {pipeline_mode = #tpu.pipeline_mode<synchronous>, transform_indices = @transform_2, window_bounds = array<i64: 1, 192>}, {transform_indices = @transform_3, window_bounds = array<i64: 296, 192>}]} {
    %c0 = arith.constant 0 : index
    %c0_0 = arith.constant 0 : index
    %0 = vector.load %arg1[%c0, %c0_0] : memref<296x1344xbf16, #tpu.memory_space<vmem>>, vector<296x1344xbf16>
    %c0_1 = arith.constant 0 : index
    %c0_2 = arith.constant 0 : index
    %1 = vector.load %arg2[%c0_1, %c0_2] : memref<1344x192xbf16, #tpu.memory_space<vmem>>, vector<1344x192xbf16>
    %cst = arith.constant dense<0.000000e+00> : vector<296x192xf32>
    %2 = tpu.matmul %0, %1, %cst {dimension_numbers = #tpu.dot_dimension_numbers<[1], [0], [0], [1], [0, 0, 1, 1], [], []>} : vector<296x1344xbf16>, vector<1344x192xbf16>, vector<296x192xf32> -> vector<296x192xf32>
    %c0_3 = arith.constant 0 : index
    %c0_4 = arith.constant 0 : index
    %3 = vector.load %arg3[%c0_3, %c0_4] : memref<1x192xf32, #tpu.memory_space<vmem>>, vector<1x192xf32>
    %4 = vector.broadcast %3 : vector<1x192xf32> to vector<296x192xf32>
    %5 = arith.addf %2, %4 : vector<296x192xf32>
    %cst_5 = arith.constant 0.000000e+00 : f32
    %6 = vector.broadcast %cst_5 : f32 to vector<296x192xf32>
    %7 = arith.maximumf %5, %6 : vector<296x192xf32>
    %8 = arith.truncf %7 : vector<296x192xf32> to vector<296x192xbf16>
    %c0_6 = arith.constant 0 : index
    %c0_7 = arith.constant 0 : index
    %9 = vector.load %arg4[%c0_6, %c0_7] : memref<296x192xbf16, #tpu.memory_space<vmem>>, vector<296x192xbf16>
    tpu.vector_store %arg4[%c0_6, %c0_7], %8 {strides = array<i32>} : memref<296x192xbf16, #tpu.memory_space<vmem>>, vector<296x192xbf16>,
    return
  }
  func.func @transform_0(%arg0: i32) -> (i32, i32) {
    %c0_i32 = arith.constant 0 : i32
    %c0_i32_0 = arith.constant 0 : i32
    return %arg0, %c0_i32 : i32, i32
  }
  func.func @transform_1(%arg0: i32) -> (i32, i32) {
    %c0_i32 = arith.constant 0 : i32
    %c0_i32_0 = arith.constant 0 : i32
    %c0_i32_1 = arith.constant 0 : i32
    return %c0_i32, %c0_i32_0 : i32, i32
  }
  func.func @transform_2(%arg0: i32) -> (i32, i32) {
    %c0_i32 = arith.constant 0 : i32
    %c0_i32_0 = arith.constant 0 : i32
    %c0_i32_1 = arith.constant 0 : i32
    return %c0_i32, %c0_i32_0 : i32, i32
  }
  func.func @transform_3(%arg0: i32) -> (i32, i32) {
    %c0_i32 = arith.constant 0 : i32
    %c0_i32_0 = arith.constant 0 : i32
    return %arg0, %c0_i32 : i32, i32
  }
}

module attributes {stable_mosaic.version = 11 : i64} {
  func.func @_matmul_bias_relu_kernel(%arg0: i32, %arg1: memref<64x1728xbf16, #tpu.memory_space<vmem>>, %arg2: memref<1728x192xbf16, #tpu.memory_space<vmem>>, %arg3: memref<1x192xf32, #tpu.memory_space<vmem>>, %arg4: memref<64x192xf32, #tpu.memory_space<vmem>>) attributes {dimension_semantics = [#tpu.dimension_semantics<parallel>], iteration_bounds = array<i64: 2>, scalar_prefetch = 0 : i64, scratch_operands = 0 : i64, tpu.core_type = #tpu.core_type<tc>, window_params = [{transform_indices = @transform_0, window_bounds = array<i64: 64, 1728>}, {pipeline_mode = #tpu.pipeline_mode<synchronous>, transform_indices = @transform_1, window_bounds = array<i64: 1728, 192>}, {pipeline_mode = #tpu.pipeline_mode<synchronous>, transform_indices = @transform_2, window_bounds = array<i64: 1, 192>}, {transform_indices = @transform_3, window_bounds = array<i64: 64, 192>}]} {
    %c0 = arith.constant 0 : index
    %c0_0 = arith.constant 0 : index
    %0 = vector.load %arg1[%c0, %c0_0] : memref<64x1728xbf16, #tpu.memory_space<vmem>>, vector<64x1728xbf16>
    %c0_1 = arith.constant 0 : index
    %c0_2 = arith.constant 0 : index
    %1 = vector.load %arg2[%c0_1, %c0_2] : memref<1728x192xbf16, #tpu.memory_space<vmem>>, vector<1728x192xbf16>
    %cst = arith.constant dense<0.000000e+00> : vector<64x192xf32>
    %2 = tpu.matmul %0, %1, %cst {dimension_numbers = #tpu.dot_dimension_numbers<[1], [0], [0], [1], [0, 0, 1, 1], [], []>} : vector<64x1728xbf16>, vector<1728x192xbf16>, vector<64x192xf32> -> vector<64x192xf32>
    %c0_3 = arith.constant 0 : index
    %c0_4 = arith.constant 0 : index
    %3 = vector.load %arg3[%c0_3, %c0_4] : memref<1x192xf32, #tpu.memory_space<vmem>>, vector<1x192xf32>
    %4 = vector.broadcast %3 : vector<1x192xf32> to vector<64x192xf32>
    %5 = arith.addf %2, %4 : vector<64x192xf32>
    %cst_5 = arith.constant 0.000000e+00 : f32
    %6 = vector.broadcast %cst_5 : f32 to vector<64x192xf32>
    %7 = arith.maximumf %5, %6 : vector<64x192xf32>
    %c0_6 = arith.constant 0 : index
    %c0_7 = arith.constant 0 : index
    %8 = vector.load %arg4[%c0_6, %c0_7] : memref<64x192xf32, #tpu.memory_space<vmem>>, vector<64x192xf32>
    tpu.vector_store %arg4[%c0_6, %c0_7], %7 {strides = array<i32>} : memref<64x192xf32, #tpu.memory_space<vmem>>, vector<64x192xf32>,
    return
  }
  func.func @transform_0(%arg0: i32) -> (i32, i32) {
    %c0_i32 = arith.constant 0 : i32
    %c0_i32_0 = arith.constant 0 : i32
    return %arg0, %c0_i32 : i32, i32
  }
  func.func @transform_1(%arg0: i32) -> (i32, i32) {
    %c0_i32 = arith.constant 0 : i32
    %c0_i32_0 = arith.constant 0 : i32
    %c0_i32_1 = arith.constant 0 : i32
    return %c0_i32, %c0_i32_0 : i32, i32
  }
  func.func @transform_2(%arg0: i32) -> (i32, i32) {
    %c0_i32 = arith.constant 0 : i32
    %c0_i32_0 = arith.constant 0 : i32
    %c0_i32_1 = arith.constant 0 : i32
    return %c0_i32, %c0_i32_0 : i32, i32
  }
  func.func @transform_3(%arg0: i32) -> (i32, i32) {
    %c0_i32 = arith.constant 0 : i32
    %c0_i32_0 = arith.constant 0 : i32
    return %arg0, %c0_i32 : i32, i32
  }
}

module attributes {stable_mosaic.version = 11 : i64} {
  func.func @_matmul_bias_relu_kernel(%arg0: i32, %arg1: memref<64x1728xbf16, #tpu.memory_space<vmem>>, %arg2: memref<1728x320xbf16, #tpu.memory_space<vmem>>, %arg3: memref<1x320xf32, #tpu.memory_space<vmem>>, %arg4: memref<64x320xf32, #tpu.memory_space<vmem>>) attributes {dimension_semantics = [#tpu.dimension_semantics<parallel>], iteration_bounds = array<i64: 2>, scalar_prefetch = 0 : i64, scratch_operands = 0 : i64, tpu.core_type = #tpu.core_type<tc>, window_params = [{transform_indices = @transform_0, window_bounds = array<i64: 64, 1728>}, {pipeline_mode = #tpu.pipeline_mode<synchronous>, transform_indices = @transform_1, window_bounds = array<i64: 1728, 320>}, {pipeline_mode = #tpu.pipeline_mode<synchronous>, transform_indices = @transform_2, window_bounds = array<i64: 1, 320>}, {transform_indices = @transform_3, window_bounds = array<i64: 64, 320>}]} {
    %c0 = arith.constant 0 : index
    %c0_0 = arith.constant 0 : index
    %0 = vector.load %arg1[%c0, %c0_0] : memref<64x1728xbf16, #tpu.memory_space<vmem>>, vector<64x1728xbf16>
    %c0_1 = arith.constant 0 : index
    %c0_2 = arith.constant 0 : index
    %1 = vector.load %arg2[%c0_1, %c0_2] : memref<1728x320xbf16, #tpu.memory_space<vmem>>, vector<1728x320xbf16>
    %cst = arith.constant dense<0.000000e+00> : vector<64x320xf32>
    %2 = tpu.matmul %0, %1, %cst {dimension_numbers = #tpu.dot_dimension_numbers<[1], [0], [0], [1], [0, 0, 1, 1], [], []>} : vector<64x1728xbf16>, vector<1728x320xbf16>, vector<64x320xf32> -> vector<64x320xf32>
    %c0_3 = arith.constant 0 : index
    %c0_4 = arith.constant 0 : index
    %3 = vector.load %arg3[%c0_3, %c0_4] : memref<1x320xf32, #tpu.memory_space<vmem>>, vector<1x320xf32>
    %4 = vector.broadcast %3 : vector<1x320xf32> to vector<64x320xf32>
    %5 = arith.addf %2, %4 : vector<64x320xf32>
    %cst_5 = arith.constant 0.000000e+00 : f32
    %6 = vector.broadcast %cst_5 : f32 to vector<64x320xf32>
    %7 = arith.maximumf %5, %6 : vector<64x320xf32>
    %c0_6 = arith.constant 0 : index
    %c0_7 = arith.constant 0 : index
    %8 = vector.load %arg4[%c0_6, %c0_7] : memref<64x320xf32, #tpu.memory_space<vmem>>, vector<64x320xf32>
    tpu.vector_store %arg4[%c0_6, %c0_7], %7 {strides = array<i32>} : memref<64x320xf32, #tpu.memory_space<vmem>>, vector<64x320xf32>,
    return
  }
  func.func @transform_0(%arg0: i32) -> (i32, i32) {
    %c0_i32 = arith.constant 0 : i32
    %c0_i32_0 = arith.constant 0 : i32
    return %arg0, %c0_i32 : i32, i32
  }
  func.func @transform_1(%arg0: i32) -> (i32, i32) {
    %c0_i32 = arith.constant 0 : i32
    %c0_i32_0 = arith.constant 0 : i32
    %c0_i32_1 = arith.constant 0 : i32
    return %c0_i32, %c0_i32_0 : i32, i32
  }
  func.func @transform_2(%arg0: i32) -> (i32, i32) {
    %c0_i32 = arith.constant 0 : i32
    %c0_i32_0 = arith.constant 0 : i32
    %c0_i32_1 = arith.constant 0 : i32
    return %c0_i32, %c0_i32_0 : i32, i32
  }
  func.func @transform_3(%arg0: i32) -> (i32, i32) {
    %c0_i32 = arith.constant 0 : i32
    %c0_i32_0 = arith.constant 0 : i32
    return %arg0, %c0_i32 : i32, i32
  }
}

</mosaic_0001>

<bundles_post_ra>
// kernel: _lambda_.8
= control target key start
LH: loop header
LB: loop body
LE: loop exit
PB: predicated region body
PF: predicated region fallthrough
CT: control target
= control target key end

     0   :  { %s1250_s12 = smov 0   ;;  %s1554_s0 = inlined_call_operand.vmem [shape: bf16[592,64], index: 0, kind: input, shape index: {}]   ;;  %s1555_s1 = inlined_call_operand.vmem [shape: bf16[64,192], index: 1, kind: input, shape index: {}]   ;;  %s1556_s2 = inlined_call_operand.vmem [shape: f32[1,192], index: 2, kind: input, shape index: {}]   ;;  %s1557_s3 = inlined_call_operand.vmem [shape: bf16[592,192], index: 3, kind: output, shape index: {}]  }
   0x1 LB: > { %s1042_s13 = sadd.s32 4294967295, %s1227_s12   ;;  %p1046_p0 = scmp.ge.s32.totalorder %s1227_s12, 1  ;;  %s1227_s12 = sphi %s1250_s12, %s13_s12  }
   0x2   : > { %p138_p1 = scmp.lt.s32.totalorder %s1227_s12, 3 }
   0x4   : > { %p139_p2 = pnand %p1046_p0, %p138_p1 }
   0x5   : > { %v1190_v0 = vld [vmem:[%s1555_s1 + $0x4] ss:$8 sps:$4 sm:$0xff] (!%p139_p2)   ;;  %s163_s16 = smul.u32 (!%p139_p2), 37, %s1042_s13  ;;  %v1192_v1 = vld [vmem:[%s1555_s1] ss:$8 sps:$4 sm:$0xff] (!%p139_p2)   ;;  %v1229_v2 = vmov (!%p139_p2), 0   ;;  %v224_v28 = vlaneseq (!%p139_p2) }
   0x6   : > { %142 = sbr.rel (%p139_p2) target bundleno = 317 (0x13d), region = 32  ;;  %457 = vmatprep.mubr.bf16.mxu0 (!%p139_p2), %v1229_v2  ;;  %557 = vmatprep.mubr.bf16.mxu1 (!%p139_p2), %v1229_v2  ;;  %v1193_v3 = vld [vmem:[%s1555_s1 + $0x14] ss:$8 sps:$4 sm:$0xff] (!%p139_p2)   ;;  %v1195_v4 = vld [vmem:[%s1555_s1 + $0x10] ss:$8 sps:$4 sm:$0xff] (!%p139_p2)   ;;  %vm367_vm0 = vcmask (!%p139_p2), 523264  }
   0x7   : > { %425 = vmatprep.subr.bf16.mxu0 (!%p139_p2), %v1190_v0  ;;  %1173 = vmatprep.subr.bf16.mxu1 (!%p139_p2), %v1190_v0  ;;  %p164_p3 = scmp.lt.s32.totalorder (!%p139_p2), %s163_s16, 73  ;;  %v1196_v5 = vld [vmem:[%s1555_s1 + $0x24] ss:$8 sps:$4 sm:$0xff] (!%p139_p2)   ;;  %v1198_v6 = vld [vmem:[%s1555_s1 + $0x20] ss:$8 sps:$4 sm:$0xff] (!%p139_p2)   ;;  %v225_v29 = vshrl.u32 (!%p139_p2), %v224_v28, 7 }
   0x8   : > { %426 = vmatpush1.bf16.msra.mxu0 (!%p139_p2), %v1192_v1  ;;  %1177 = vmatpush1.bf16.msra.mxu1 (!%p139_p2), %v1192_v1  ;;  %v1199_v7 = vld [vmem:[%s1555_s1 + $0x34] ss:$8 sps:$4 sm:$0xff] (!%p139_p2)   ;;  %v1201_v8 = vld [vmem:[%s1555_s1 + $0x30] ss:$8 sps:$4 sm:$0xff] (!%p139_p2)   ;;  %v222_v31 = vld [vmem:[%s1556_s2] sm:$0x3] (!%p139_p2) }
   0x9   : > { %427 = vmatprep.subr.bf16.mxu0 (!%p139_p2), %v1193_v3  ;;  %1174 = vmatprep.subr.bf16.mxu1 (!%p139_p2), %v1193_v3  ;;  %v226_v30 = vsub.s32 (!%p139_p2), 0, %v225_v29  ;;  %v230_v32 = vsub.s32 (!%p139_p2), 1, %v225_v29  ;;  %vm944_vm1 = vcmask (!%p139_p2), 1043456   ;;  %vm945_vm2 = vcmask (!%p139_p2), 523268  }
   0xa   : > { %vm1370_vm3 = vmor (!%p139_p2), %vm945_vm2, %vm944_vm1 }
   0xb   : > { %v1350_v33 = vrot.slane (!%p139_p2), %v222_v31, %v226_v30  ;;  %v1352_v34 = vrot.slane (!%p139_p2), %v222_v31, %v230_v32 }
   0xc   : > { %428 = vmatpush1.bf16.msra.mxu0 (!%p139_p2), %v1195_v4  ;;  %1178 = vmatpush1.bf16.msra.mxu1 (!%p139_p2), %v1195_v4 }
   0xd   : > { %s1561_s16 = smov (!%p164_p3, %s163_s16), 73  ;;  %429 = vmatprep.subr.bf16.mxu0 %v1196_v5  ;;  %1175 = vmatprep.subr.bf16.mxu1 %v1196_v5 }
   0xe   : > { %s1047_s25 = sshll.u32 %s1561_s16, 2  ;;  %s1135_s10 = sshll.u32 %s1561_s16, 3 }
   0xf   : > { %s1284_s30 = scalar_lea.vmem %s1554_s0, %s1047_s25  ;;  %s1366_s14 = scalar_lea.vmem %s1557_s3, %s1135_s10 }
  0x10   : > { %430 = vmatpush1.bf16.msra.mxu0 %v1198_v6  ;;  %1179 = vmatpush1.bf16.msra.mxu1 %v1198_v6  ;;  %v1202_v9 = vld [vmem:[%s1284_s30] sm:$0xff]   ;;  %v1203_v10 = vld [vmem:[%s1284_s30 + $0x50] sm:$0xff]   ;;  %v1204_v11 = vld [vmem:[%s1284_s30 + $0x8] sm:$0xff]  }
  0x11   : > { %431 = vmatprep.subr.bf16.mxu0 %v1199_v7  ;;  %1176 = vmatprep.subr.bf16.mxu1 %v1199_v7  ;;  %v1205_v12 = vld [vmem:[%s1284_s30 + $0x58] sm:$0xff]   ;;  %v1206_v13 = vld [vmem:[%s1284_s30 + $0x10] sm:$0xff]   ;;  %v1207_v14 = vld [vmem:[%s1284_s30 + $0x60] sm:$0xff]  }
  0x12   : > { %v1208_v15 = vld [vmem:[%s1284_s30 + $0x18] sm:$0xff]   ;;  %v1209_v16 = vld [vmem:[%s1284_s30 + $0x68] sm:$0xff]   ;;  %v1210_v17 = vld [vmem:[%s1284_s30 + $0x20] sm:$0xff]  }
  0x13   : > { %v1211_v18 = vld [vmem:[%s1284_s30 + $0x70] sm:$0xff]   ;;  %v1212_v19 = vld [vmem:[%s1284_s30 + $0x28] sm:$0xff]   ;;  %v1213_v20 = vld [vmem:[%s1284_s30 + $0x78] sm:$0xff]  }
  0x14   : > { %432 = vmatpush1.bf16.msra.mxu0 %v1201_v8  ;;  %1180 = vmatpush1.bf16.msra.mxu1 %v1201_v8  ;;  %v1214_v21 = vld [vmem:[%s1284_s30 + $0x30] sm:$0xff]   ;;  %v1215_v22 = vld [vmem:[%s1284_s30 + $0x80] sm:$0xff]   ;;  %v1216_v23 = vld [vmem:[%s1284_s30 + $0x38] sm:$0xff]  }
  0x15   : > { %v1217_v24 = vld [vmem:[%s1284_s30 + $0x88] sm:$0xff]   ;;  %v1218_v25 = vld [vmem:[%s1284_s30 + $0x40] sm:$0xff]   ;;  %v1219_v26 = vld [vmem:[%s1284_s30 + $0x90] ss:$0 sps:$4 sm:$0xff]  }
  0x16   : > { %v1220_v27 = vld [vmem:[%s1284_s30 + $0x48] sm:$0xff]  }
  0x17   : > { %1077 = vmatmul.mubr.msk.bf16.vlgmr.msra.gmra.mrb[0].mxu0 %vm367_vm0, %v1202_v9  ;;  %1087 = vmatmul.mubr.msk.bf16.vlgmr.msra.gmra.mrb[0].mxu1 %vm367_vm0, %v1203_v10 }
  0x18   : > { %467 = vmatprep.mubr.bf16.mxu0 %v1229_v2  ;;  %567 = vmatprep.mubr.bf16.mxu1 %v1229_v2 }
  0x1f   : > { %1078 = vmatmul.mubr.msk.bf16.gmra.mrb[4].mxu0 %vm367_vm0, %v1204_v11  ;;  %1088 = vmatmul.mubr.msk.bf16.gmra.mrb[4].mxu1 %vm367_vm0, %v1205_v12 }
  0x20   : > { %477 = vmatprep.mubr.bf16.mxu0 %v1229_v2  ;;  %577 = vmatprep.mubr.bf16.mxu1 %v1229_v2 }
  0x27   : > { %1079 = vmatmul.mubr.msk.bf16.gmra.mrb[8].mxu0 %vm367_vm0, %v1206_v13  ;;  %1089 = vmatmul.mubr.msk.bf16.gmra.mrb[8].mxu1 %vm367_vm0, %v1207_v14 }
  0x28   : > { %487 = vmatprep.mubr.bf16.mxu0 %v1229_v2  ;;  %587 = vmatprep.mubr.bf16.mxu1 %v1229_v2 }
  0x2f   : > { %1080 = vmatmul.mubr.msk.bf16.gmra.mrb[12].mxu0 %vm367_vm0, %v1208_v15  ;;  %1090 = vmatmul.mubr.msk.bf16.gmra.mrb[12].mxu1 %vm367_vm0, %v1209_v16 }
  0x30   : > { %497 = vmatprep.mubr.bf16.mxu0 %v1229_v2  ;;  %597 = vmatprep.mubr.bf16.mxu1 %v1229_v2 }
  0x37   : > { %1081 = vmatmul.mubr.msk.bf16.gmra.mrb[16].mxu0 %vm367_vm0, %v1210_v17  ;;  %1091 = vmatmul.mubr.msk.bf16.gmra.mrb[16].mxu1 %vm367_vm0, %v1211_v18 }
  0x38   : > { %507 = vmatprep.mubr.bf16.mxu0 %v1229_v2  ;;  %607 = vmatprep.mubr.bf16.mxu1 %v1229_v2 }
  0x3f   : > { %1082 = vmatmul.mubr.msk.bf16.gmra.mrb[20].mxu0 %vm367_vm0, %v1212_v19  ;;  %1092 = vmatmul.mubr.msk.bf16.gmra.mrb[20].mxu1 %vm367_vm0, %v1213_v20 }
  0x40   : > { %517 = vmatprep.mubr.bf16.mxu0 %v1229_v2  ;;  %617 = vmatprep.mubr.bf16.mxu1 %v1229_v2 }
  0x47   : > { %1083 = vmatmul.mubr.msk.bf16.gmra.mrb[24].mxu0 %vm367_vm0, %v1214_v21  ;;  %1093 = vmatmul.mubr.msk.bf16.gmra.mrb[24].mxu1 %vm367_vm0, %v1215_v22 }
  0x48   : > { %527 = vmatprep.mubr.bf16.mxu0 %v1229_v2  ;;  %627 = vmatprep.mubr.bf16.mxu1 %v1229_v2 }
  0x4f   : > { %1084 = vmatmul.mubr.msk.bf16.gmra.mrb[28].mxu0 %vm367_vm0, %v1216_v23  ;;  %1094 = vmatmul.mubr.msk.bf16.gmra.mrb[28].mxu1 %vm367_vm0, %v1217_v24 }
  0x50   : > { %537 = vmatprep.mubr.bf16.mxu0 %v1229_v2  ;;  %637 = vmatprep.mubr.bf16.mxu1 %v1229_v2 }
  0x57   : > { %1085 = vmatmul.mubr.msk.bf16.gmra.mrb[32].mxu0 %vm367_vm0, %v1218_v25  ;;  %1095 = vmatmul.mubr.msk.bf16.gmra.mrb[32].mxu1 %vm367_vm0, %v1219_v26 }
  0x58   : > { %547 = vmatprep.mubr.bf16.mxu0 %v1229_v2 }
  0x5f   : > { %1086 = vmatmul.mubr.msk.bf16.gmra.mrb[36].mxu0 %vm367_vm0, %v1220_v27 }
  0xea   : > { %v459_v35 = vpop.f32.mrb[0].mxu0  ;;  %v559_v36 = vpop.f32.mrb[0].mxu1 }
  0xeb   : > { %v460_v37 = vadd.f32 %v459_v35, %v1350_v33  ;;  %v461_v38 = vpop.f32.mrb[1].mxu0  ;;  %v560_v39 = vadd.f32 %v559_v36, %v1350_v33  ;;  %v561_v40 = vpop.f32.mrb[1].mxu1 }
  0xec   : > { %v462_v41 = vadd.f32 %v461_v38, %v1352_v34  ;;  %v463_v42 = vpop.f32.mrb[2].mxu0  ;;  %v562_v43 = vadd.f32 %v561_v40, %v1352_v34  ;;  %v563_v44 = vpop.f32.mrb[2].mxu1 }
  0xed   : > { %v646_v45 = vmax.f32 %v460_v37, 0.0  ;;  %v464_v46 = vadd.f32 %v463_v42, %v1350_v33  ;;  %v465_v47 = vpop.f32.mrb[3].mxu0  ;;  %v686_v48 = vmax.f32 %v560_v39, 0.0  ;;  %v564_v49 = vadd.f32 %v563_v44, %v1350_v33  ;;  %v565_v50 = vpop.f32.mrb[3].mxu1 }
  0xee   : > { %v647_v51 = vmax.f32 %v462_v41, 0.0  ;;  %v466_v52 = vadd.f32 %v465_v47, %v1352_v34  ;;  %v687_v53 = vmax.f32 %v562_v43, 0.0  ;;  %v566_v54 = vadd.f32 %v565_v50, %v1352_v34 }
  0xef   : > { %v648_v56 = vmax.f32 %v464_v46, 0.0  ;;  %v688_v57 = vmax.f32 %v564_v49, 0.0 }
  0xf0   : > { %v1136_v58 = vpack.c.bf16 %v647_v51, %v646_v45  ;;  %v649_v59 = vmax.f32 %v466_v52, 0.0  ;;  %v1156_v60 = vpack.c.bf16 %v687_v53, %v686_v48  ;;  %v689_v61 = vmax.f32 %v566_v54, 0.0 }
  0xf2   : > { %947 = vst.msk [vmem:[%s1366_s14] sm:$0xff] %vm1370_vm3, %v1136_v58  ;;  %v1137_v62 = vpack.c.bf16 %v649_v59, %v648_v56  ;;  %v469_v63 = vpop.f32.mrb[4].mxu0  ;;  %967 = vst.msk [vmem:[%s1366_s14 + $0xa0] sm:$0xff] %vm1370_vm3, %v1156_v60  ;;  %v1157_v0 = vpack.c.bf16 %v689_v61, %v688_v57  ;;  %v569_v1 = vpop.f32.mrb[4].mxu1 }
  0xf3   : > { %v470_v2 = vadd.f32 %v469_v63, %v1350_v33  ;;  %v471_v3 = vpop.f32.mrb[5].mxu0  ;;  %v570_v4 = vadd.f32 %v569_v1, %v1350_v33  ;;  %v571_v5 = vpop.f32.mrb[5].mxu1 }
  0xf4   : > { %948 = vst.msk [vmem:[%s1366_s14 + $0x8] sm:$0xff] %vm1370_vm3, %v1137_v62  ;;  %v472_v6 = vadd.f32 %v471_v3, %v1352_v34  ;;  %v473_v7 = vpop.f32.mrb[6].mxu0  ;;  %968 = vst.msk [vmem:[%s1366_s14 + $0xa8] sm:$0xff] %vm1370_vm3, %v1157_v0  ;;  %v572_v8 = vadd.f32 %v571_v5, %v1352_v34  ;;  %v573_v9 = vpop.f32.mrb[6].mxu1 }
  0xf5   : > { %v650_v10 = vmax.f32 %v470_v2, 0.0  ;;  %v474_v11 = vadd.f32 %v473_v7, %v1350_v33  ;;  %v475_v12 = vpop.f32.mrb[7].mxu0  ;;  %v690_v13 = vmax.f32 %v570_v4, 0.0  ;;  %v574_v14 = vadd.f32 %v573_v9, %v1350_v33  ;;  %v575_v15 = vpop.f32.mrb[7].mxu1 }
  0xf6   : > { %v651_v16 = vmax.f32 %v472_v6, 0.0  ;;  %v476_v17 = vadd.f32 %v475_v12, %v1352_v34  ;;  %v691_v18 = vmax.f32 %v572_v8, 0.0  ;;  %v576_v19 = vadd.f32 %v575_v15, %v1352_v34 }
  0xf7   : > { %v652_v20 = vmax.f32 %v474_v11, 0.0  ;;  %v692_v21 = vmax.f32 %v574_v14, 0.0 }
  0xf8   : > { %v1138_v22 = vpack.c.bf16 %v651_v16, %v650_v10  ;;  %v653_v23 = vmax.f32 %v476_v17, 0.0  ;;  %v1158_v24 = vpack.c.bf16 %v691_v18, %v690_v13  ;;  %v693_v25 = vmax.f32 %v576_v19, 0.0 }
  0xfa   : > { %949 = vst.msk [vmem:[%s1366_s14 + $0x10] sm:$0xff] %vm1370_vm3, %v1138_v22  ;;  %v1139_v26 = vpack.c.bf16 %v653_v23, %v652_v20  ;;  %v479_v27 = vpop.f32.mrb[8].mxu0  ;;  %969 = vst.msk [vmem:[%s1366_s14 + $0xb0] sm:$0xff] %vm1370_vm3, %v1158_v24  ;;  %v1159_v28 = vpack.c.bf16 %v693_v25, %v692_v21  ;;  %v579_v29 = vpop.f32.mrb[8].mxu1 }
  0xfb   : > { %v480_v30 = vadd.f32 %v479_v27, %v1350_v33  ;;  %v481_v31 = vpop.f32.mrb[9].mxu0  ;;  %v580_v32 = vadd.f32 %v579_v29, %v1350_v33  ;;  %v581_v35 = vpop.f32.mrb[9].mxu1 }
  0xfc   : > { %950 = vst.msk [vmem:[%s1366_s14 + $0x18] sm:$0xff] %vm1370_vm3, %v1139_v26  ;;  %v482_v36 = vadd.f32 %v481_v31, %v1352_v34  ;;  %v483_v37 = vpop.f32.mrb[10].mxu0  ;;  %970 = vst.msk [vmem:[%s1366_s14 + $0xb8] sm:$0xff] %vm1370_vm3, %v1159_v28  ;;  %v582_v38 = vadd.f32 %v581_v35, %v1352_v34  ;;  %v583_v39 = vpop.f32.mrb[10].mxu1 }
  0xfd   : > { %v654_v40 = vmax.f32 %v480_v30, 0.0  ;;  %v484_v41 = vadd.f32 %v483_v37, %v1350_v33  ;;  %v485_v42 = vpop.f32.mrb[11].mxu0  ;;  %v694_v43 = vmax.f32 %v580_v32, 0.0  ;;  %v584_v44 = vadd.f32 %v583_v39, %v1350_v33  ;;  %v585_v45 = vpop.f32.mrb[11].mxu1 }
  0xfe   : > { %v655_v46 = vmax.f32 %v482_v36, 0.0  ;;  %v486_v47 = vadd.f32 %v485_v42, %v1352_v34  ;;  %v695_v48 = vmax.f32 %v582_v38, 0.0  ;;  %v586_v49 = vadd.f32 %v585_v45, %v1352_v34 }
  0xff   : > { %v656_v50 = vmax.f32 %v484_v41, 0.0  ;;  %v696_v51 = vmax.f32 %v584_v44, 0.0 }
 0x100   : > { %v1140_v52 = vpack.c.bf16 %v655_v46, %v654_v40  ;;  %v657_v53 = vmax.f32 %v486_v47, 0.0  ;;  %v1160_v54 = vpack.c.bf16 %v695_v48, %v694_v43  ;;  %v697_v56 = vmax.f32 %v586_v49, 0.0 }
 0x102   : > { %951 = vst.msk [vmem:[%s1366_s14 + $0x20] sm:$0xff] %vm1370_vm3, %v1140_v52  ;;  %v1141_v57 = vpack.c.bf16 %v657_v53, %v656_v50  ;;  %v489_v58 = vpop.f32.mrb[12].mxu0  ;;  %971 = vst.msk [vmem:[%s1366_s14 + $0xc0] sm:$0xff] %vm1370_vm3, %v1160_v54  ;;  %v1161_v59 = vpack.c.bf16 %v697_v56, %v696_v51  ;;  %v589_v60 = vpop.f32.mrb[12].mxu1 }
 0x103   : > { %v490_v61 = vadd.f32 %v489_v58, %v1350_v33  ;;  %v491_v62 = vpop.f32.mrb[13].mxu0  ;;  %v590_v63 = vadd.f32 %v589_v60, %v1350_v33  ;;  %v591_v0 = vpop.f32.mrb[13].mxu1 }
 0x104   : > { %952 = vst.msk [vmem:[%s1366_s14 + $0x28] sm:$0xff] %vm1370_vm3, %v1141_v57  ;;  %v492_v1 = vadd.f32 %v491_v62, %v1352_v34  ;;  %v493_v2 = vpop.f32.mrb[14].mxu0  ;;  %972 = vst.msk [vmem:[%s1366_s14 + $0xc8] sm:$0xff] %vm1370_vm3, %v1161_v59  ;;  %v592_v3 = vadd.f32 %v591_v0, %v1352_v34  ;;  %v593_v4 = vpop.f32.mrb[14].mxu1 }
 0x105   : > { %v658_v5 = vmax.f32 %v490_v61, 0.0  ;;  %v494_v6 = vadd.f32 %v493_v2, %v1350_v33  ;;  %v495_v7 = vpop.f32.mrb[15].mxu0  ;;  %v698_v8 = vmax.f32 %v590_v63, 0.0  ;;  %v594_v9 = vadd.f32 %v593_v4, %v1350_v33  ;;  %v595_v10 = vpop.f32.mrb[15].mxu1 }
 0x106   : > { %v659_v11 = vmax.f32 %v492_v1, 0.0  ;;  %v496_v12 = vadd.f32 %v495_v7, %v1352_v34  ;;  %v699_v13 = vmax.f32 %v592_v3, 0.0  ;;  %v596_v14 = vadd.f32 %v595_v10, %v1352_v34 }
 0x107   : > { %v660_v15 = vmax.f32 %v494_v6, 0.0  ;;  %v700_v16 = vmax.f32 %v594_v9, 0.0 }
 0x108   : > { %v1142_v17 = vpack.c.bf16 %v659_v11, %v658_v5  ;;  %v661_v18 = vmax.f32 %v496_v12, 0.0  ;;  %v1162_v19 = vpack.c.bf16 %v699_v13, %v698_v8  ;;  %v701_v20 = vmax.f32 %v596_v14, 0.0 }
 0x10a   : > { %953 = vst.msk [vmem:[%s1366_s14 + $0x30] sm:$0xff] %vm1370_vm3, %v1142_v17  ;;  %v1143_v21 = vpack.c.bf16 %v661_v18, %v660_v15  ;;  %v499_v22 = vpop.f32.mrb[16].mxu0  ;;  %973 = vst.msk [vmem:[%s1366_s14 + $0xd0] sm:$0xff] %vm1370_vm3, %v1162_v19  ;;  %v1163_v23 = vpack.c.bf16 %v701_v20, %v700_v16  ;;  %v599_v24 = vpop.f32.mrb[16].mxu1 }
 0x10b   : > { %v500_v25 = vadd.f32 %v499_v22, %v1350_v33  ;;  %v501_v26 = vpop.f32.mrb[17].mxu0  ;;  %v600_v27 = vadd.f32 %v599_v24, %v1350_v33  ;;  %v601_v28 = vpop.f32.mrb[17].mxu1 }
 0x10c   : > { %954 = vst.msk [vmem:[%s1366_s14 + $0x38] sm:$0xff] %vm1370_vm3, %v1143_v21  ;;  %v502_v29 = vadd.f32 %v501_v26, %v1352_v34  ;;  %v503_v30 = vpop.f32.mrb[18].mxu0  ;;  %974 = vst.msk [vmem:[%s1366_s14 + $0xd8] sm:$0xff] %vm1370_vm3, %v1163_v23  ;;  %v602_v31 = vadd.f32 %v601_v28, %v1352_v34  ;;  %v603_v32 = vpop.f32.mrb[18].mxu1 }
 0x10d   : > { %v662_v35 = vmax.f32 %v500_v25, 0.0  ;;  %v504_v36 = vadd.f32 %v503_v30, %v1350_v33  ;;  %v505_v37 = vpop.f32.mrb[19].mxu0  ;;  %v702_v38 = vmax.f32 %v600_v27, 0.0  ;;  %v604_v39 = vadd.f32 %v603_v32, %v1350_v33  ;;  %v605_v40 = vpop.f32.mrb[19].mxu1 }
 0x10e   : > { %v663_v41 = vmax.f32 %v502_v29, 0.0  ;;  %v506_v42 = vadd.f32 %v505_v37, %v1352_v34  ;;  %v703_v43 = vmax.f32 %v602_v31, 0.0  ;;  %v606_v44 = vadd.f32 %v605_v40, %v1352_v34 }
 0x10f   : > { %v664_v45 = vmax.f32 %v504_v36, 0.0  ;;  %v704_v46 = vmax.f32 %v604_v39, 0.0 }
 0x110   : > { %v1144_v47 = vpack.c.bf16 %v663_v41, %v662_v35  ;;  %v665_v48 = vmax.f32 %v506_v42, 0.0  ;;  %v1164_v49 = vpack.c.bf16 %v703_v43, %v702_v38  ;;  %v705_v50 = vmax.f32 %v606_v44, 0.0 }
 0x112   : > { %955 = vst.msk [vmem:[%s1366_s14 + $0x40] sm:$0xff] %vm1370_vm3, %v1144_v47  ;;  %v1145_v51 = vpack.c.bf16 %v665_v48, %v664_v45  ;;  %v509_v52 = vpop.f32.mrb[20].mxu0  ;;  %975 = vst.msk [vmem:[%s1366_s14 + $0xe0] sm:$0xff] %vm1370_vm3, %v1164_v49  ;;  %v1165_v53 = vpack.c.bf16 %v705_v50, %v704_v46  ;;  %v609_v54 = vpop.f32.mrb[20].mxu1 }
 0x113   : > { %v510_v56 = vadd.f32 %v509_v52, %v1350_v33  ;;  %v511_v57 = vpop.f32.mrb[21].mxu0  ;;  %v610_v58 = vadd.f32 %v609_v54, %v1350_v33  ;;  %v611_v59 = vpop.f32.mrb[21].mxu1 }
 0x114   : > { %956 = vst.msk [vmem:[%s1366_s14 + $0x48] sm:$0xff] %vm1370_vm3, %v1145_v51  ;;  %v512_v60 = vadd.f32 %v511_v57, %v1352_v34  ;;  %v513_v61 = vpop.f32.mrb[22].mxu0  ;;  %976 = vst.msk [vmem:[%s1366_s14 + $0xe8] sm:$0xff] %vm1370_vm3, %v1165_v53  ;;  %v612_v62 = vadd.f32 %v611_v59, %v1352_v34  ;;  %v613_v63 = vpop.f32.mrb[22].mxu1 }
 0x115   : > { %v666_v0 = vmax.f32 %v510_v56, 0.0  ;;  %v514_v1 = vadd.f32 %v513_v61, %v1350_v33  ;;  %v515_v2 = vpop.f32.mrb[23].mxu0  ;;  %v706_v3 = vmax.f32 %v610_v58, 0.0  ;;  %v614_v4 = vadd.f32 %v613_v63, %v1350_v33  ;;  %v615_v5 = vpop.f32.mrb[23].mxu1 }
 0x116   : > { %v667_v6 = vmax.f32 %v512_v60, 0.0  ;;  %v516_v7 = vadd.f32 %v515_v2, %v1352_v34  ;;  %v707_v8 = vmax.f32 %v612_v62, 0.0  ;;  %v616_v9 = vadd.f32 %v615_v5, %v1352_v34 }
 0x117   : > { %v668_v10 = vmax.f32 %v514_v1, 0.0  ;;  %v708_v11 = vmax.f32 %v614_v4, 0.0 }
 0x118   : > { %v1146_v12 = vpack.c.bf16 %v667_v6, %v666_v0  ;;  %v669_v13 = vmax.f32 %v516_v7, 0.0  ;;  %v1166_v14 = vpack.c.bf16 %v707_v8, %v706_v3  ;;  %v709_v15 = vmax.f32 %v616_v9, 0.0 }
 0x11a   : > { %957 = vst.msk [vmem:[%s1366_s14 + $0x50] sm:$0xff] %vm1370_vm3, %v1146_v12  ;;  %v1147_v16 = vpack.c.bf16 %v669_v13, %v668_v10  ;;  %v519_v17 = vpop.f32.mrb[24].mxu0  ;;  %977 = vst.msk [vmem:[%s1366_s14 + $0xf0] sm:$0xff] %vm1370_vm3, %v1166_v14  ;;  %v1167_v18 = vpack.c.bf16 %v709_v15, %v708_v11  ;;  %v619_v19 = vpop.f32.mrb[24].mxu1 }
 0x11b   : > { %v520_v20 = vadd.f32 %v519_v17, %v1350_v33  ;;  %v521_v21 = vpop.f32.mrb[25].mxu0  ;;  %v620_v22 = vadd.f32 %v619_v19, %v1350_v33  ;;  %v621_v23 = vpop.f32.mrb[25].mxu1 }
 0x11c   : > { %958 = vst.msk [vmem:[%s1366_s14 + $0x58] sm:$0xff] %vm1370_vm3, %v1147_v16  ;;  %v522_v24 = vadd.f32 %v521_v21, %v1352_v34  ;;  %v523_v25 = vpop.f32.mrb[26].mxu0  ;;  %978 = vst.msk [vmem:[%s1366_s14 + $0xf8] sm:$0xff] %vm1370_vm3, %v1167_v18  ;;  %v622_v26 = vadd.f32 %v621_v23, %v1352_v34  ;;  %v623_v27 = vpop.f32.mrb[26].mxu1 }
 0x11d   : > { %v670_v28 = vmax.f32 %v520_v20, 0.0  ;;  %v524_v29 = vadd.f32 %v523_v25, %v1350_v33  ;;  %v525_v30 = vpop.f32.mrb[27].mxu0  ;;  %v710_v31 = vmax.f32 %v620_v22, 0.0  ;;  %v624_v32 = vadd.f32 %v623_v27, %v1350_v33  ;;  %v625_v35 = vpop.f32.mrb[27].mxu1 }
 0x11e   : > { %v671_v36 = vmax.f32 %v522_v24, 0.0  ;;  %v526_v37 = vadd.f32 %v525_v30, %v1352_v34  ;;  %v711_v38 = vmax.f32 %v622_v26, 0.0  ;;  %v626_v39 = vadd.f32 %v625_v35, %v1352_v34 }
 0x11f   : > { %v672_v40 = vmax.f32 %v524_v29, 0.0  ;;  %v712_v41 = vmax.f32 %v624_v32, 0.0 }
 0x120   : > { %v1148_v42 = vpack.c.bf16 %v671_v36, %v670_v28  ;;  %v673_v43 = vmax.f32 %v526_v37, 0.0  ;;  %v1168_v44 = vpack.c.bf16 %v711_v38, %v710_v31  ;;  %v713_v45 = vmax.f32 %v626_v39, 0.0 }
 0x122   : > { %959 = vst.msk [vmem:[%s1366_s14 + $0x60] sm:$0xff] %vm1370_vm3, %v1148_v42  ;;  %v1149_v46 = vpack.c.bf16 %v673_v43, %v672_v40  ;;  %v529_v47 = vpop.f32.mrb[28].mxu0  ;;  %979 = vst.msk [vmem:[%s1366_s14 + $0x100] sm:$0xff] %vm1370_vm3, %v1168_v44  ;;  %v1169_v48 = vpack.c.bf16 %v713_v45, %v712_v41  ;;  %v629_v49 = vpop.f32.mrb[28].mxu1 }
 0x123   : > { %v530_v50 = vadd.f32 %v529_v47, %v1350_v33  ;;  %v531_v51 = vpop.f32.mrb[29].mxu0  ;;  %v630_v52 = vadd.f32 %v629_v49, %v1350_v33  ;;  %v631_v53 = vpop.f32.mrb[29].mxu1 }
 0x124   : > { %960 = vst.msk [vmem:[%s1366_s14 + $0x68] sm:$0xff] %vm1370_vm3, %v1149_v46  ;;  %v532_v54 = vadd.f32 %v531_v51, %v1352_v34  ;;  %v533_v56 = vpop.f32.mrb[30].mxu0  ;;  %980 = vst.msk [vmem:[%s1366_s14 + $0x108] sm:$0xff] %vm1370_vm3, %v1169_v48  ;;  %v632_v57 = vadd.f32 %v631_v53, %v1352_v34  ;;  %v633_v58 = vpop.f32.mrb[30].mxu1 }
 0x125   : > { %v674_v59 = vmax.f32 %v530_v50, 0.0  ;;  %v534_v60 = vadd.f32 %v533_v56, %v1350_v33  ;;  %v535_v61 = vpop.f32.mrb[31].mxu0  ;;  %v714_v62 = vmax.f32 %v630_v52, 0.0  ;;  %v634_v63 = vadd.f32 %v633_v58, %v1350_v33  ;;  %v635_v0 = vpop.f32.mrb[31].mxu1 }
 0x126   : > { %v675_v1 = vmax.f32 %v532_v54, 0.0  ;;  %v536_v2 = vadd.f32 %v535_v61, %v1352_v34  ;;  %v715_v3 = vmax.f32 %v632_v57, 0.0  ;;  %v636_v4 = vadd.f32 %v635_v0, %v1352_v34 }
 0x127   : > { %v676_v5 = vmax.f32 %v534_v60, 0.0  ;;  %v716_v6 = vmax.f32 %v634_v63, 0.0 }
 0x128   : > { %v1150_v7 = vpack.c.bf16 %v675_v1, %v674_v59  ;;  %v677_v8 = vmax.f32 %v536_v2, 0.0  ;;  %v1170_v9 = vpack.c.bf16 %v715_v3, %v714_v62  ;;  %v717_v10 = vmax.f32 %v636_v4, 0.0 }
 0x12a   : > { %961 = vst.msk [vmem:[%s1366_s14 + $0x70] sm:$0xff] %vm1370_vm3, %v1150_v7  ;;  %v1151_v11 = vpack.c.bf16 %v677_v8, %v676_v5  ;;  %v539_v12 = vpop.f32.mrb[32].mxu0  ;;  %981 = vst.msk [vmem:[%s1366_s14 + $0x110] sm:$0xff] %vm1370_vm3, %v1170_v9  ;;  %v1171_v13 = vpack.c.bf16 %v717_v10, %v716_v6  ;;  %v639_v14 = vpop.f32.mrb[32].mxu1 }
 0x12b   : > { %v540_v15 = vadd.f32 %v539_v12, %v1350_v33  ;;  %v541_v16 = vpop.f32.mrb[33].mxu0  ;;  %v640_v17 = vadd.f32 %v639_v14, %v1350_v33  ;;  %v641_v18 = vpop.f32.mrb[33].mxu1 }
 0x12c   : > { %962 = vst.msk [vmem:[%s1366_s14 + $0x78] sm:$0xff] %vm1370_vm3, %v1151_v11  ;;  %v542_v19 = vadd.f32 %v541_v16, %v1352_v34  ;;  %v543_v20 = vpop.f32.mrb[34].mxu0  ;;  %982 = vst.msk [vmem:[%s1366_s14 + $0x118] sm:$0xff] %vm1370_vm3, %v1171_v13  ;;  %v642_v21 = vadd.f32 %v641_v18, %v1352_v34  ;;  %v643_v22 = vpop.f32.mrb[34].mxu1 }
 0x12d   : > { %v678_v23 = vmax.f32 %v540_v15, 0.0  ;;  %v544_v24 = vadd.f32 %v543_v20, %v1350_v33  ;;  %v545_v25 = vpop.f32.mrb[35].mxu0  ;;  %v718_v26 = vmax.f32 %v640_v17, 0.0  ;;  %v644_v27 = vpop.f32.mrb[35].mxu1 }
 0x12e   : > { %v679_v28 = vmax.f32 %v542_v19, 0.0  ;;  %v546_v29 = vadd.f32 %v545_v25, %v1352_v34  ;;  %v719_v30 = vmax.f32 %v642_v21, 0.0 }
 0x12f   : > { %v680_v31 = vmax.f32 %v544_v24, 0.0 }
 0x130   : > { %v1152_v32 = vpack.c.bf16 %v679_v28, %v678_v23  ;;  %v681_v35 = vmax.f32 %v546_v29, 0.0  ;;  %v1172_v36 = vpack.c.bf16 %v719_v30, %v718_v26 }
 0x132   : > { %963 = vst.msk [vmem:[%s1366_s14 + $0x80] sm:$0xff] %vm1370_vm3, %v1152_v32  ;;  %v1153_v37 = vpack.c.bf16 %v681_v35, %v680_v31  ;;  %v549_v38 = vpop.f32.mrb[36].mxu0  ;;  %983 = vst.msk [vmem:[%s1366_s14 + $0x120] sm:$0xff] %vm1370_vm3, %v1172_v36 }
 0x133   : > { %v550_v39 = vadd.f32 %v549_v38, %v1350_v33  ;;  %v551_v40 = vpop.f32.mrb[37].mxu0 }
 0x134   : > { %964 = vst.msk [vmem:[%s1366_s14 + $0x88] sm:$0xff] %vm1370_vm3, %v1153_v37  ;;  %v552_v41 = vadd.f32 %v551_v40, %v1352_v34  ;;  %v553_v42 = vpop.f32.mrb[38].mxu0 }
 0x135   : > { %v682_v43 = vmax.f32 %v550_v39, 0.0  ;;  %v554_v44 = vadd.f32 %v553_v42, %v1350_v33  ;;  %v555_v45 = vpop.f32.mrb[39].mxu0 }
 0x136   : > { %v683_v46 = vmax.f32 %v552_v41, 0.0  ;;  %v556_v47 = vadd.f32 %v555_v45, %v1352_v34 }
 0x137   : > { %v684_v48 = vmax.f32 %v554_v44, 0.0 }
 0x138   : > { %v1154_v49 = vpack.c.bf16 %v683_v46, %v682_v43  ;;  %v685_v50 = vmax.f32 %v556_v47, 0.0 }
 0x13a   : > { %965 = vst.msk [vmem:[%s1366_s14 + $0x90] sm:$0xff] %vm1370_vm3, %v1154_v49  ;;  %v1155_v51 = vpack.c.bf16 %v685_v50, %v684_v48 }
 0x13c   : > { %966 = vst.msk [vmem:[%s1366_s14 + $0x98] sm:$0xff] %vm1370_vm3, %v1155_v51 }
 0x13d PF: > { %s13_s12 = sadd.s32 1, %s1227_s12  }
 0x13e   : > { %p10_p4 = scmp.ge.s32.totalorder %s13_s12, 4  }
 0x140   :  { %12 = sbr.rel (!%p10_p4) target bundleno = 1 (0x1), region = 62 }

// kernel: _lambda_.9
= control target key start
LH: loop header
LB: loop body
LE: loop exit
PB: predicated region body
PF: predicated region fallthrough
CT: control target
= control target key end

     0   :  { %s5753_s12 = smov 0   ;;  %s6722_s0 = inlined_call_operand.vmem [shape: bf16[592,1344], index: 0, kind: input, shape index: {}]   ;;  %s6723_s1 = inlined_call_operand.vmem [shape: bf16[1344,192], index: 1, kind: input, shape index: {}]   ;;  %s6724_s2 = inlined_call_operand.vmem [shape: f32[1,192], index: 2, kind: input, shape index: {}]   ;;  %s6725_s3 = inlined_call_operand.vmem [shape: bf16[592,192], index: 3, kind: output, shape index: {}]  }
   0x1 LB: > { %s4230_s13 = sadd.s32 4294967295, %s5730_s12   ;;  %p4234_p0 = scmp.ge.s32.totalorder %s5730_s12, 1  ;;  %s5730_s12 = sphi %s5753_s12, %s13_s12  }
   0x2   : > { %p139_p1 = scmp.lt.s32.totalorder %s5730_s12, 3 }
   0x4   : > { %p140_p2 = pnand %p4234_p0, %p139_p1 }
   0x5   : > { %v5173_v0 = vld [vmem:[%s6723_s1 + $0x4] ss:$8 sps:$4 sm:$0xff] (!%p140_p2)   ;;  %v5177_v2 = vld [vmem:[%s6723_s1] ss:$8 sps:$4 sm:$0xff] (!%p140_p2)   ;;  %v5179_v4 = vld [vmem:[%s6723_s1 + $0x14] ss:$8 sps:$4 sm:$0xff] (!%p140_p2)  }
   0x6   : > { %143 = sbr.rel (%p140_p2) target bundleno = 740 (0x2e4), region = 32  ;;  %v5175_v1 = vld [vmem:[%s6723_s1 + $0x304] ss:$8 sps:$4 sm:$0xff] (!%p140_p2)   ;;  %2508 = vmatprep.subr.bf16.mxu1 (!%p140_p2), %v5173_v0  ;;  %v5178_v3 = vld [vmem:[%s6723_s1 + $0x300] ss:$8 sps:$4 sm:$0xff] (!%p140_p2)   ;;  %vm2450_vm0 = vcmask (!%p140_p2), 523264  }
   0x7   : > { %3171 = vmatprep.subr.bf16.mxu0 (!%p140_p2), %v5175_v1  ;;  %2509 = vmatpush1.bf16.msra.mxu1 (!%p140_p2), %v5177_v2  ;;  %v5181_v5 = vld [vmem:[%s6723_s1 + $0x314] ss:$8 sps:$4 sm:$0xff] (!%p140_p2)   ;;  %v5183_v6 = vld [vmem:[%s6723_s1 + $0x10] ss:$8 sps:$4 sm:$0xff] (!%p140_p2)   ;;  %v5185_v8 = vld [vmem:[%s6723_s1 + $0x24] ss:$8 sps:$4 sm:$0xff] (!%p140_p2)  }
   0x8   : > { %3172 = vmatpush1.bf16.msra.mxu0 (!%p140_p2), %v5178_v3  ;;  %2510 = vmatprep.subr.bf16.mxu1 (!%p140_p2), %v5179_v4  ;;  %v5184_v7 = vld [vmem:[%s6723_s1 + $0x310] ss:$8 sps:$4 sm:$0xff] (!%p140_p2)   ;;  %v5187_v9 = vld [vmem:[%s6723_s1 + $0x324] ss:$8 sps:$4 sm:$0xff] (!%p140_p2)   ;;  %v5189_v10 = vld [vmem:[%s6723_s1 + $0x20] ss:$8 sps:$4 sm:$0xff] (!%p140_p2)  }
   0x9   : > { %3173 = vmatprep.subr.bf16.mxu0 (!%p140_p2), %v5181_v5  ;;  %v5190_v11 = vld [vmem:[%s6723_s1 + $0x320] ss:$8 sps:$4 sm:$0xff] (!%p140_p2)   ;;  %v5191_v12 = vld [vmem:[%s6723_s1 + $0x34] ss:$8 sps:$4 sm:$0xff] (!%p140_p2)   ;;  %v5195_v14 = vld [vmem:[%s6723_s1 + $0x30] ss:$8 sps:$4 sm:$0xff] (!%p140_p2)  }
   0xa   : > { %v5193_v13 = vld [vmem:[%s6723_s1 + $0x334] ss:$8 sps:$4 sm:$0xff] (!%p140_p2)   ;;  %v5196_v15 = vld [vmem:[%s6723_s1 + $0x330] ss:$8 sps:$4 sm:$0xff] (!%p140_p2)   ;;  %v5197_v16 = vld [vmem:[%s6723_s1 + $0x44] ss:$8 sps:$4 sm:$0xff] (!%p140_p2)  }
   0xb   : > { %2511 = vmatpush1.bf16.msra.mxu1 (!%p140_p2), %v5183_v6  ;;  %v5199_v17 = vld [vmem:[%s6723_s1 + $0x344] ss:$8 sps:$4 sm:$0xff] (!%p140_p2)   ;;  %v5201_v18 = vld [vmem:[%s6723_s1 + $0x40] ss:$8 sps:$4 sm:$0xff] (!%p140_p2)   ;;  %v5203_v20 = vld [vmem:[%s6723_s1 + $0x54] ss:$8 sps:$4 sm:$0xff] (!%p140_p2)  }
   0xc   : > { %3174 = vmatpush1.bf16.msra.mxu0 (!%p140_p2), %v5184_v7  ;;  %2512 = vmatprep.subr.bf16.mxu1 (!%p140_p2), %v5185_v8  ;;  %v5202_v19 = vld [vmem:[%s6723_s1 + $0x340] ss:$8 sps:$4 sm:$0xff] (!%p140_p2)   ;;  %v5205_v21 = vld [vmem:[%s6723_s1 + $0x354] ss:$8 sps:$4 sm:$0xff] (!%p140_p2)   ;;  %v5207_v22 = vld [vmem:[%s6723_s1 + $0x50] ss:$8 sps:$4 sm:$0xff] (!%p140_p2)  }
   0xd   : > { %3175 = vmatprep.subr.bf16.mxu0 %v5187_v9  ;;  %v5208_v23 = vld [vmem:[%s6723_s1 + $0x350] ss:$8 sps:$4 sm:$0xff]   ;;  %v5209_v24 = vld [vmem:[%s6723_s1 + $0x64] ss:$8 sps:$4 sm:$0xff]   ;;  %v5213_v26 = vld [vmem:[%s6723_s1 + $0x60] ss:$8 sps:$4 sm:$0xff]  }
   0xe   : > { %v5211_v25 = vld [vmem:[%s6723_s1 + $0x364] ss:$8 sps:$4 sm:$0xff]   ;;  %v5214_v27 = vld [vmem:[%s6723_s1 + $0x360] ss:$8 sps:$4 sm:$0xff]   ;;  %v5215_v28 = vld [vmem:[%s6723_s1 + $0x74] ss:$8 sps:$4 sm:$0xff]  }
   0xf   : > { %2513 = vmatpush1.bf16.msra.mxu1 %v5189_v10  ;;  %s165_s22 = smul.u32 37, %s4230_s13  ;;  %v5217_v29 = vld [vmem:[%s6723_s1 + $0x374] ss:$8 sps:$4 sm:$0xff]   ;;  %v5219_v30 = vld [vmem:[%s6723_s1 + $0x70] ss:$8 sps:$4 sm:$0xff]   ;;  %vm4132_vm1 = vcmask 1043456  }
  0x10   : > { %3176 = vmatpush1.bf16.msra.mxu0 %v5190_v11  ;;  %2514 = vmatprep.subr.bf16.mxu1 %v5191_v12  ;;  %v5220_v31 = vld [vmem:[%s6723_s1 + $0x370] ss:$8 sps:$4 sm:$0xff]   ;;  %v5221_v32 = vld [vmem:[%s6723_s1 + $0x84] ss:$8 sps:$4 sm:$0xff]   ;;  %v5225_v34 = vld [vmem:[%s6723_s1 + $0x80] ss:$8 sps:$4 sm:$0xff]  }
  0x11   : > { %3177 = vmatprep.subr.bf16.mxu0 %v5193_v13  ;;  %p166_p3 = scmp.lt.s32.totalorder %s165_s22, 73  ;;  %v5223_v33 = vld [vmem:[%s6723_s1 + $0x384] ss:$8 sps:$4 sm:$0xff]   ;;  %v5226_v35 = vld [vmem:[%s6723_s1 + $0x380] ss:$8 sps:$4 sm:$0xff]   ;;  %vm4133_vm2 = vcmask 523268  }
  0x12   : > { %v5227_v36 = vld [vmem:[%s6723_s1 + $0x94] ss:$8 sps:$4 sm:$0xff]   ;;  %v5231_v38 = vld [vmem:[%s6723_s1 + $0x90] ss:$8 sps:$4 sm:$0xff]   ;;  %v5233_v40 = vld [vmem:[%s6723_s1 + $0xa4] ss:$8 sps:$4 sm:$0xff]  }
  0x13   : > { %2515 = vmatpush1.bf16.msra.mxu1 %v5195_v14  ;;  %s6729_s22 = smov (!%p166_p3, %s165_s22), 73  ;;  %v5229_v37 = vld [vmem:[%s6723_s1 + $0x394] ss:$8 sps:$4 sm:$0xff]   ;;  %v5232_v39 = vld [vmem:[%s6723_s1 + $0x390] ss:$8 sps:$4 sm:$0xff]   ;;  %vm6534_vm3 = vmor %vm4133_vm2, %vm4132_vm1 }
  0x14   : > { %3178 = vmatpush1.bf16.msra.mxu0 %v5196_v15  ;;  %2516 = vmatprep.subr.bf16.mxu1 %v5197_v16  ;;  %s5163_s21 = smul.u32 44, %s6729_s22  ;;  %v5235_v41 = vld [vmem:[%s6723_s1 + $0x3a4] ss:$8 sps:$4 sm:$0xff]   ;;  %v5237_v42 = vld [vmem:[%s6723_s1 + $0xa0] ss:$8 sps:$4 sm:$0xff]  }
  0x15   : > { %3179 = vmatprep.subr.bf16.mxu0 %v5199_v17  ;;  %v5238_v43 = vld [vmem:[%s6723_s1 + $0x3a0] ss:$8 sps:$4 sm:$0xff]   ;;  %v5239_v44 = vld [vmem:[%s6723_s1 + $0xb4] ss:$8 sps:$4 sm:$0xff]   ;;  %v5243_v46 = vld [vmem:[%s6723_s1 + $0xb0] ss:$8 sps:$4 sm:$0xff]  }
  0x16   : > { %s5904_s5 = scalar_lea.vmem %s6722_s0, %s5163_s21  ;;  %v5241_v45 = vld [vmem:[%s6723_s1 + $0x3b4] ss:$8 sps:$4 sm:$0xff]   ;;  %v5244_v47 = vld [vmem:[%s6723_s1 + $0x3b0] ss:$8 sps:$4 sm:$0xff]   ;;  %v5245_v48 = vld [vmem:[%s6723_s1 + $0xc4] ss:$8 sps:$4 sm:$0xff]  }
  0x17   : > { %2517 = vmatpush1.bf16.msra.mxu1 %v5201_v18  ;;  %v5271_v49 = vld [vmem:[%s5904_s5 + $0x4] ss:$44 sps:$4 sm:$0xff]   ;;  %v5274_v51 = vld [vmem:[%s5904_s5 + $0x1c] ss:$44 sps:$4 sm:$0xff]   ;;  %v5269_v4 = vld [vmem:[%s5904_s5] ss:$44 sps:$4 sm:$0xff]  }
  0x18   : > { %3180 = vmatpush1.bf16.msra.mxu0 %v5202_v19  ;;  %2518 = vmatprep.subr.bf16.mxu1 %v5203_v20  ;;  %v5247_v50 = vld [vmem:[%s6723_s1 + $0x3c4] ss:$8 sps:$4 sm:$0xff]   ;;  %v5249_v52 = vld [vmem:[%s6723_s1 + $0xc0] ss:$8 sps:$4 sm:$0xff]   ;;  %v5251_v54 = vld [vmem:[%s6723_s1 + $0xd4] ss:$8 sps:$4 sm:$0xff]  }
  0x19   : > { %3181 = vmatprep.subr.bf16.mxu0 %v5205_v21  ;;  %2540 = vmatprep.mubr.bf16.mxu1 %v5271_v49  ;;  %v5250_v53 = vld [vmem:[%s6723_s1 + $0x3c0] ss:$8 sps:$4 sm:$0xff]   ;;  %v5253_v55 = vld [vmem:[%s6723_s1 + $0x3d4] ss:$8 sps:$4 sm:$0xff]   ;;  %v5255_v56 = vld [vmem:[%s6723_s1 + $0xd0] ss:$8 sps:$4 sm:$0xff]  }
  0x1a   : > { %3203 = vmatprep.mubr.bf16.mxu0 %v5274_v51  ;;  %v5256_v57 = vld [vmem:[%s6723_s1 + $0x3d0] ss:$8 sps:$4 sm:$0xff]   ;;  %v5257_v58 = vld [vmem:[%s6723_s1 + $0xe4] ss:$8 sps:$4 sm:$0xff]   ;;  %v5261_v60 = vld [vmem:[%s6723_s1 + $0xe0] ss:$8 sps:$4 sm:$0xff]  }
  0x1b   : > { %2519 = vmatpush1.bf16.msra.mxu1 %v5207_v22  ;;  %v5259_v59 = vld [vmem:[%s6723_s1 + $0x3e4] ss:$8 sps:$4 sm:$0xff]   ;;  %v5262_v61 = vld [vmem:[%s6723_s1 + $0x3e0] ss:$8 sps:$4 sm:$0xff]   ;;  %v5263_v62 = vld [vmem:[%s6723_s1 + $0xf4] ss:$8 sps:$4 sm:$0xff]  }
  0x1c   : > { %3182 = vmatpush1.bf16.msra.mxu0 %v5208_v23  ;;  %2520 = vmatprep.subr.bf16.mxu1 %v5209_v24  ;;  %v5265_v63 = vld [vmem:[%s6723_s1 + $0x3f4] ss:$8 sps:$4 sm:$0xff]   ;;  %v5267_v0 = vld [vmem:[%s6723_s1 + $0xf0] ss:$8 sps:$4 sm:$0xff]   ;;  %v5277_v2 = vld [vmem:[%s6723_s1 + $0x104] ss:$8 sps:$4 sm:$0xff]  }
  0x1d   : > { %3183 = vmatprep.subr.bf16.mxu0 %v5211_v25  ;;  %v5268_v1 = vld [vmem:[%s6723_s1 + $0x3f0] ss:$8 sps:$4 sm:$0xff]   ;;  %v5280_v3 = vld [vmem:[%s6723_s1 + $0x404] ss:$8 sps:$4 sm:$0xff]   ;;  %v5275_v6 = vld [vmem:[%s6723_s1 + $0x100] ss:$8 sps:$4 sm:$0xff]  }
  0x1e   : > { %v5272_v5 = vld [vmem:[%s5904_s5 + $0x18] ss:$44 sps:$4 sm:$0xff]   ;;  %v5278_v7 = vld [vmem:[%s6723_s1 + $0x400] ss:$8 sps:$4 sm:$0xff]   ;;  %v5289_v10 = vld [vmem:[%s6723_s1 + $0x114] ss:$8 sps:$4 sm:$0xff]  }
  0x1f   : > { %2521 = vmatpush1.bf16.msra.mxu1 %v5213_v26  ;;  %v5281_v8 = vld [vmem:[%s5904_s5 + $0x5c] ss:$44 sps:$4 sm:$0xff]   ;;  %v5283_v9 = vld [vmem:[%s5904_s5 + $0x74] ss:$44 sps:$4 sm:$0xff]   ;;  %v5287_v12 = vld [vmem:[%s6723_s1 + $0x110] ss:$8 sps:$4 sm:$0xff]  }
  0x20   : > { %3184 = vmatpush1.bf16.msra.mxu0 %v5214_v27  ;;  %2522 = vmatprep.subr.bf16.mxu1 %v5215_v28  ;;  %v5292_v11 = vld [vmem:[%s6723_s1 + $0x414] ss:$8 sps:$4 sm:$0xff]   ;;  %v5290_v13 = vld [vmem:[%s6723_s1 + $0x410] ss:$8 sps:$4 sm:$0xff]   ;;  %v5301_v14 = vld [vmem:[%s6723_s1 + $0x124] ss:$8 sps:$4 sm:$0xff]  }
  0x21   : > { %3185 = vmatprep.subr.bf16.mxu0 %v5217_v29  ;;  %v5285_v15 = vld [vmem:[%s5904_s5 + $0x58] ss:$44 sps:$4 sm:$0xff]   ;;  %v5286_v17 = vld [vmem:[%s5904_s5 + $0x70] ss:$44 sps:$4 sm:$0xff]   ;;  %v5293_v18 = vld [vmem:[%s5904_s5 + $0xb4] ss:$44 sps:$4 sm:$0xff]  }
  0x22   : > { %v5304_v16 = vld [vmem:[%s6723_s1 + $0x424] ss:$8 sps:$4 sm:$0xff]   ;;  %v5299_v20 = vld [vmem:[%s6723_s1 + $0x120] ss:$8 sps:$4 sm:$0xff]   ;;  %v5313_v22 = vld [vmem:[%s6723_s1 + $0x134] ss:$8 sps:$4 sm:$0xff]  }
  0x23   : > { %2523 = vmatpush1.bf16.msra.mxu1 %v5219_v30  ;;  %v5295_v19 = vld [vmem:[%s5904_s5 + $0xcc] ss:$44 sps:$4 sm:$0xff]   ;;  %v5302_v21 = vld [vmem:[%s6723_s1 + $0x420] ss:$8 sps:$4 sm:$0xff]   ;;  %v5320_v23 = vld [vmem:[%s6723_s1 + $0x434] ss:$8 sps:$4 sm:$0xff]  }
  0x24   : > { %3186 = vmatpush1.bf16.msra.mxu0 %v5220_v31  ;;  %2524 = vmatprep.subr.bf16.mxu1 %v5221_v32  ;;  %v5311_v24 = vld [vmem:[%s6723_s1 + $0x130] ss:$8 sps:$4 sm:$0xff]   ;;  %v5325_v27 = vld [vmem:[%s6723_s1 + $0x144] ss:$8 sps:$4 sm:$0xff]   ;;  %v5298_v29 = vld [vmem:[%s5904_s5 + $0xc8] ss:$44 sps:$4 sm:$0xff]  }
  0x25   : > { %3187 = vmatprep.subr.bf16.mxu0 %v5223_v33  ;;  %v5318_v25 = vld [vmem:[%s6723_s1 + $0x430] ss:$8 sps:$4 sm:$0xff]   ;;  %v5334_v28 = vld [vmem:[%s6723_s1 + $0x444] ss:$8 sps:$4 sm:$0xff]   ;;  %v5323_v32 = vld [vmem:[%s6723_s1 + $0x140] ss:$8 sps:$4 sm:$0xff]  }
  0x26   : > { %v5297_v26 = vld [vmem:[%s5904_s5 + $0xb0] ss:$44 sps:$4 sm:$0xff]   ;;  %v5305_v30 = vld [vmem:[%s5904_s5 + $0x10c] ss:$44 sps:$4 sm:$0xff]   ;;  %v5332_v33 = vld [vmem:[%s6723_s1 + $0x440] ss:$8 sps:$4 sm:$0xff]  }
  0x27   : > { %2525 = vmatpush1.bf16.msra.mxu1 %v5225_v34  ;;  %v5307_v31 = vld [vmem:[%s5904_s5 + $0x124] ss:$44 sps:$4 sm:$0xff]   ;;  %v5342_v34 = vld [vmem:[%s6723_s1 + $0x154] ss:$8 sps:$4 sm:$0xff]  }
  0x28   : > { %3188 = vmatpush1.bf16.msra.mxu0 %v5226_v35  ;;  %2526 = vmatprep.subr.bf16.mxu1 %v5227_v36  ;;  %v5346_v35 = vld [vmem:[%s6723_s1 + $0x454] ss:$8 sps:$4 sm:$0xff]   ;;  %v5340_v36 = vld [vmem:[%s6723_s1 + $0x150] ss:$8 sps:$4 sm:$0xff]   ;;  %v5379_v51 = vld [vmem:[%s6723_s1 + $0x184] ss:$8 sps:$4 sm:$0xff]  }
  0x29   : > { %3189 = vmatprep.subr.bf16.mxu0 %v5229_v37  ;;  %v5309_v37 = vld [vmem:[%s5904_s5 + $0x108] ss:$44 sps:$4 sm:$0xff]   ;;  %v5368_v49 = vld [vmem:[%s6723_s1 + $0x470] ss:$8 sps:$4 sm:$0xff]  }
  0x2b   : > { %2527 = vmatpush1.bf16.msra.mxu1 %v5231_v38  ;;  %v5310_v38 = vld [vmem:[%s5904_s5 + $0x120] ss:$44 sps:$4 sm:$0xff]  }
  0x2c   : > { %3190 = vmatpush1.bf16.msra.mxu0 %v5232_v39  ;;  %2528 = vmatprep.subr.bf16.mxu1 %v5233_v40  ;;  %v5344_v39 = vld [vmem:[%s6723_s1 + $0x450] ss:$8 sps:$4 sm:$0xff]   ;;  %v5355_v40 = vld [vmem:[%s6723_s1 + $0x164] ss:$8 sps:$4 sm:$0xff]  }
  0x2d   : > { %3191 = vmatprep.subr.bf16.mxu0 %v5235_v41  ;;  %v5358_v41 = vld [vmem:[%s6723_s1 + $0x464] ss:$8 sps:$4 sm:$0xff]  }
  0x2f   : > { %2529 = vmatpush1.bf16.msra.mxu1 %v5237_v42  ;;  %v5314_v42 = vld [vmem:[%s5904_s5 + $0x164] ss:$44 sps:$4 sm:$0xff]  }
  0x30   : > { %3192 = vmatpush1.bf16.msra.mxu0 %v5238_v43  ;;  %2530 = vmatprep.subr.bf16.mxu1 %v5239_v44  ;;  %v5316_v43 = vld [vmem:[%s5904_s5 + $0x17c] ss:$44 sps:$4 sm:$0xff]  }
  0x31   : > { %3193 = vmatprep.subr.bf16.mxu0 %v5241_v45  ;;  %v5353_v44 = vld [vmem:[%s6723_s1 + $0x160] ss:$8 sps:$4 sm:$0xff]  }
  0x32   : > { %v5356_v45 = vld [vmem:[%s6723_s1 + $0x460] ss:$8 sps:$4 sm:$0xff]  }
  0x33   : > { %2531 = vmatpush1.bf16.msra.mxu1 %v5243_v46  ;;  %v5367_v46 = vld [vmem:[%s6723_s1 + $0x174] ss:$8 sps:$4 sm:$0xff]  }
  0x34   : > { %3194 = vmatpush1.bf16.msra.mxu0 %v5244_v47  ;;  %2532 = vmatprep.subr.bf16.mxu1 %v5245_v48  ;;  %v5370_v47 = vld [vmem:[%s6723_s1 + $0x474] ss:$8 sps:$4 sm:$0xff]   ;;  %v5365_v48 = vld [vmem:[%s6723_s1 + $0x170] ss:$8 sps:$4 sm:$0xff]  }
  0x35   : > { %3195 = vmatprep.subr.bf16.mxu0 %v5247_v50  ;;  %v5321_v50 = vld [vmem:[%s5904_s5 + $0x160] ss:$44 sps:$4 sm:$0xff]  }
  0x37   : > { %2533 = vmatpush1.bf16.msra.mxu1 %v5249_v52  ;;  %v5382_v52 = vld [vmem:[%s6723_s1 + $0x484] ss:$8 sps:$4 sm:$0xff]  }
  0x38   : > { %3196 = vmatpush1.bf16.msra.mxu0 %v5250_v53  ;;  %2534 = vmatprep.subr.bf16.mxu1 %v5251_v54  ;;  %v5322_v53 = vld [vmem:[%s5904_s5 + $0x178] ss:$44 sps:$4 sm:$0xff]   ;;  %v5326_v54 = vld [vmem:[%s5904_s5 + $0x1bc] ss:$44 sps:$4 sm:$0xff]  }
  0x39   : > { %3197 = vmatprep.subr.bf16.mxu0 %v5253_v55  ;;  %v5328_v55 = vld [vmem:[%s5904_s5 + $0x1d4] ss:$44 sps:$4 sm:$0xff]  }
  0x3b   : > { %2535 = vmatpush1.bf16.msra.mxu1 %v5255_v56  ;;  %v5377_v56 = vld [vmem:[%s6723_s1 + $0x180] ss:$8 sps:$4 sm:$0xff]  }
  0x3c   : > { %3198 = vmatpush1.bf16.msra.mxu0 %v5256_v57  ;;  %2536 = vmatprep.subr.bf16.mxu1 %v5257_v58  ;;  %v5380_v57 = vld [vmem:[%s6723_s1 + $0x480] ss:$8 sps:$4 sm:$0xff]   ;;  %v5391_v58 = vld [vmem:[%s6723_s1 + $0x194] ss:$8 sps:$4 sm:$0xff]  }
  0x3d   : > { %3199 = vmatprep.subr.bf16.mxu0 %v5259_v59  ;;  %v5389_v59 = vld [vmem:[%s6723_s1 + $0x190] ss:$8 sps:$4 sm:$0xff]  }
  0x3f   : > { %2537 = vmatpush1.bf16.msra.mxu1 %v5261_v60  ;;  %v5398_v60 = vld [vmem:[%s6723_s1 + $0x490] ss:$8 sps:$4 sm:$0xff]  }
  0x40   : > { %3200 = vmatpush1.bf16.msra.mxu0 %v5262_v61  ;;  %2538 = vmatprep.subr.bf16.mxu1 %v5263_v62  ;;  %v5400_v61 = vld [vmem:[%s6723_s1 + $0x494] ss:$8 sps:$4 sm:$0xff]   ;;  %v5330_v62 = vld [vmem:[%s5904_s5 + $0x1b8] ss:$44 sps:$4 sm:$0xff]  }
  0x41   : > { %3201 = vmatprep.subr.bf16.mxu0 %v5265_v63  ;;  %v5331_v63 = vld [vmem:[%s5904_s5 + $0x1d0] ss:$44 sps:$4 sm:$0xff]  }
  0x43   : > { %2539 = vmatpush1.bf16.msra.mxu1 %v5267_v0  ;;  %v5405_v0 = vld [vmem:[%s6723_s1 + $0x1a4] ss:$8 sps:$4 sm:$0xff]  }
  0x44   : > { %3202 = vmatpush1.bf16.msra.mxu0 %v5268_v1  ;;  %2729 = vmatprep.subr.bf16.mxu1 %v5277_v2  ;;  %v5335_v1 = vld [vmem:[%s5904_s5 + $0x214] ss:$44 sps:$4 sm:$0xff]   ;;  %v5337_v2 = vld [vmem:[%s5904_s5 + $0x22c] ss:$44 sps:$4 sm:$0xff]  }
  0x45   : > { %3392 = vmatprep.subr.bf16.mxu0 %v5280_v3  ;;  %v5403_v3 = vld [vmem:[%s6723_s1 + $0x1a0] ss:$8 sps:$4 sm:$0xff]  }
  0x46   : > { %2541 = vmatmul.mubr.bf16.vlgmr.msra.gmra.mrb[0].mxu1 %v5269_v4  ;;  %v5410_v4 = vld [vmem:[%s6723_s1 + $0x4a0] ss:$8 sps:$4 sm:$0xff]  }
  0x47   : > { %3204 = vmatmul.mubr.bf16.vlgmr.msra.gmra.mrb[0].mxu0 %v5272_v5  ;;  %2730 = vmatpush1.bf16.msra.mxu1 %v5275_v6  ;;  %v5412_v5 = vld [vmem:[%s6723_s1 + $0x4a4] ss:$8 sps:$4 sm:$0xff]   ;;  %v5339_v6 = vld [vmem:[%s5904_s5 + $0x210] ss:$44 sps:$4 sm:$0xff]  }
  0x48   : > { %3393 = vmatpush1.bf16.msra.mxu0 %v5278_v7  ;;  %2550 = vmatprep.mubr.bf16.mxu1 %v5281_v8  ;;  %v5343_v7 = vld [vmem:[%s5904_s5 + $0x228] ss:$44 sps:$4 sm:$0xff]   ;;  %v5347_v8 = vld [vmem:[%s5904_s5 + $0x26c] ss:$44 sps:$4 sm:$0xff]  }
  0x49   : > { %3213 = vmatprep.mubr.bf16.mxu0 %v5283_v9  ;;  %2731 = vmatprep.subr.bf16.mxu1 %v5289_v10  ;;  %v5419_v9 = vld [vmem:[%s6723_s1 + $0x1b0] ss:$8 sps:$4 sm:$0xff]   ;;  %v5421_v10 = vld [vmem:[%s6723_s1 + $0x1b4] ss:$8 sps:$4 sm:$0xff]  }
  0x4a   : > { %3394 = vmatprep.subr.bf16.mxu0 %v5292_v11  ;;  %v5422_v11 = vld [vmem:[%s6723_s1 + $0x4b0] ss:$8 sps:$4 sm:$0xff]  }
  0x4b   : > { %2732 = vmatpush1.bf16.msra.mxu1 %v5287_v12  ;;  %v5424_v12 = vld [vmem:[%s6723_s1 + $0x4b4] ss:$8 sps:$4 sm:$0xff]  }
  0x4c   : > { %3395 = vmatpush1.bf16.msra.mxu0 %v5290_v13  ;;  %2733 = vmatprep.subr.bf16.mxu1 %v5301_v14  ;;  %v5349_v13 = vld [vmem:[%s5904_s5 + $0x284] ss:$44 sps:$4 sm:$0xff]   ;;  %v5431_v14 = vld [vmem:[%s6723_s1 + $0x1c0] ss:$8 sps:$4 sm:$0xff]  }
  0x4d   : > { %3396 = vmatprep.subr.bf16.mxu0 %v5304_v16  ;;  %v5434_v16 = vld [vmem:[%s6723_s1 + $0x4c0] ss:$8 sps:$4 sm:$0xff]  }
  0x4e   : > { %2551 = vmatmul.mubr.bf16.gmra.mrb[4].mxu1 %v5285_v15  ;;  %v5433_v15 = vld [vmem:[%s6723_s1 + $0x1c4] ss:$8 sps:$4 sm:$0xff]  }
  0x4f   : > { %3214 = vmatmul.mubr.bf16.gmra.mrb[4].mxu0 %v5286_v17  ;;  %2560 = vmatprep.mubr.bf16.mxu1 %v5293_v18  ;;  %v5436_v17 = vld [vmem:[%s6723_s1 + $0x4c4] ss:$8 sps:$4 sm:$0xff]   ;;  %v5351_v18 = vld [vmem:[%s5904_s5 + $0x268] ss:$44 sps:$4 sm:$0xff]  }
  0x50   : > { %3223 = vmatprep.mubr.bf16.mxu0 %v5295_v19  ;;  %2734 = vmatpush1.bf16.msra.mxu1 %v5299_v20  ;;  %v5352_v19 = vld [vmem:[%s5904_s5 + $0x280] ss:$44 sps:$4 sm:$0xff]   ;;  %v5359_v20 = vld [vmem:[%s5904_s5 + $0x2c4] ss:$44 sps:$4 sm:$0xff]  }
  0x51   : > { %3397 = vmatpush1.bf16.msra.mxu0 %v5302_v21  ;;  %2735 = vmatprep.subr.bf16.mxu1 %v5313_v22  ;;  %v5361_v21 = vld [vmem:[%s5904_s5 + $0x2dc] ss:$44 sps:$4 sm:$0xff]   ;;  %v5443_v22 = vld [vmem:[%s6723_s1 + $0x1d0] ss:$8 sps:$4 sm:$0xff]  }
  0x52   : > { %3398 = vmatprep.subr.bf16.mxu0 %v5320_v23  ;;  %v5445_v23 = vld [vmem:[%s6723_s1 + $0x1d4] ss:$8 sps:$4 sm:$0xff]  }
  0x54   : > { %2736 = vmatpush1.bf16.msra.mxu1 %v5311_v24  ;;  %v5446_v24 = vld [vmem:[%s6723_s1 + $0x4d0] ss:$8 sps:$4 sm:$0xff]  }
  0x55   : > { %3399 = vmatpush1.bf16.msra.mxu0 %v5318_v25  ;;  %2737 = vmatprep.subr.bf16.mxu1 %v5325_v27  ;;  %v5448_v25 = vld [vmem:[%s6723_s1 + $0x4d4] ss:$8 sps:$4 sm:$0xff]   ;;  %v5364_v27 = vld [vmem:[%s5904_s5 + $0x2d8] ss:$44 sps:$4 sm:$0xff]  }
  0x56   : > { %3400 = vmatprep.subr.bf16.mxu0 %v5334_v28  ;;  %2561 = vmatmul.mubr.bf16.gmra.mrb[8].mxu1 %v5297_v26  ;;  %v5363_v26 = vld [vmem:[%s5904_s5 + $0x2c0] ss:$44 sps:$4 sm:$0xff]  }
  0x57   : > { %3224 = vmatmul.mubr.bf16.gmra.mrb[8].mxu0 %v5298_v29  ;;  %2570 = vmatprep.mubr.bf16.mxu1 %v5305_v30  ;;  %v5455_v28 = vld [vmem:[%s6723_s1 + $0x1e0] ss:$8 sps:$4 sm:$0xff]   ;;  %v5457_v29 = vld [vmem:[%s6723_s1 + $0x1e4] ss:$8 sps:$4 sm:$0xff]  }
  0x58   : > { %3233 = vmatprep.mubr.bf16.mxu0 %v5307_v31  ;;  %2738 = vmatpush1.bf16.msra.mxu1 %v5323_v32  ;;  %v5371_v30 = vld [vmem:[%s5904_s5 + $0x31c] ss:$44 sps:$4 sm:$0xff]   ;;  %v5373_v31 = vld [vmem:[%s5904_s5 + $0x334] ss:$44 sps:$4 sm:$0xff]   ;;  %v5464_v32 = vld [vmem:[%s6723_s1 + $0x4e4] ss:$8 sps:$4 sm:$0xff]  }
  0x59   : > { %3401 = vmatpush1.bf16.msra.mxu0 %v5332_v33  ;;  %2739 = vmatprep.subr.bf16.mxu1 %v5342_v34  ;;  %v5462_v33 = vld [vmem:[%s6723_s1 + $0x4e0] ss:$8 sps:$4 sm:$0xff]   ;;  %v5468_v34 = vld [vmem:[%s6723_s1 + $0x1f0] ss:$8 sps:$4 sm:$0xff]  }
  0x5a   : > { %3402 = vmatprep.subr.bf16.mxu0 %v5346_v35  ;;  %v5470_v35 = vld [vmem:[%s6723_s1 + $0x1f4] ss:$8 sps:$4 sm:$0xff]  }
  0x5c   : > { %2740 = vmatpush1.bf16.msra.mxu1 %v5340_v36  ;;  %v5375_v36 = vld [vmem:[%s5904_s5 + $0x318] ss:$44 sps:$4 sm:$0xff]  }
  0x5d   : > { %3403 = vmatpush1.bf16.msra.mxu0 %v5344_v39  ;;  %2741 = vmatprep.subr.bf16.mxu1 %v5355_v40  ;;  %v5376_v39 = vld [vmem:[%s5904_s5 + $0x330] ss:$44 sps:$4 sm:$0xff]   ;;  %v5383_v40 = vld [vmem:[%s5904_s5 + $0x374] ss:$44 sps:$4 sm:$0xff]  }
  0x5e   : > { %3404 = vmatprep.subr.bf16.mxu0 %v5358_v41  ;;  %2571 = vmatmul.mubr.bf16.gmra.mrb[12].mxu1 %v5309_v37  ;;  %v5476_v37 = vld [vmem:[%s6723_s1 + $0x4f4] ss:$8 sps:$4 sm:$0xff]   ;;  %v5385_v41 = vld [vmem:[%s5904_s5 + $0x38c] ss:$44 sps:$4 sm:$0xff]  }
  0x5f   : > { %3234 = vmatmul.mubr.bf16.gmra.mrb[12].mxu0 %v5310_v38  ;;  %2580 = vmatprep.mubr.bf16.mxu1 %v5314_v42  ;;  %v5474_v38 = vld [vmem:[%s6723_s1 + $0x4f0] ss:$8 sps:$4 sm:$0xff]   ;;  %v5485_v42 = vld [vmem:[%s6723_s1 + $0x204] ss:$8 sps:$4 sm:$0xff]  }
  0x60   : > { %3243 = vmatprep.mubr.bf16.mxu0 %v5316_v43  ;;  %2742 = vmatpush1.bf16.msra.mxu1 %v5353_v44  ;;  %v5488_v43 = vld [vmem:[%s6723_s1 + $0x504] ss:$8 sps:$4 sm:$0xff]   ;;  %v5387_v44 = vld [vmem:[%s5904_s5 + $0x370] ss:$44 sps:$4 sm:$0xff]  }
  0x61   : > { %3405 = vmatpush1.bf16.msra.mxu0 %v5356_v45  ;;  %2743 = vmatprep.subr.bf16.mxu1 %v5367_v46  ;;  %v5388_v45 = vld [vmem:[%s5904_s5 + $0x388] ss:$44 sps:$4 sm:$0xff]   ;;  %v5392_v46 = vld [vmem:[%s5904_s5 + $0x3cc] ss:$44 sps:$4 sm:$0xff]  }
  0x62   : > { %3406 = vmatprep.subr.bf16.mxu0 %v5370_v47  ;;  %v5394_v47 = vld [vmem:[%s5904_s5 + $0x3e4] ss:$44 sps:$4 sm:$0xff]  }
  0x64   : > { %2744 = vmatpush1.bf16.msra.mxu1 %v5365_v48  ;;  %v5396_v48 = vld [vmem:[%s5904_s5 + $0x3c8] ss:$44 sps:$4 sm:$0xff]  }
  0x65   : > { %3407 = vmatpush1.bf16.msra.mxu0 %v5368_v49  ;;  %2745 = vmatprep.subr.bf16.mxu1 %v5379_v51  ;;  %v5397_v49 = vld [vmem:[%s5904_s5 + $0x3e0] ss:$44 sps:$4 sm:$0xff]   ;;  %v5406_v51 = vld [vmem:[%s5904_s5 + $0x43c] ss:$44 sps:$4 sm:$0xff]  }
  0x66   : > { %3408 = vmatprep.subr.bf16.mxu0 %v5382_v52  ;;  %2581 = vmatmul.mubr.bf16.gmra.mrb[16].mxu1 %v5321_v50  ;;  %v5401_v50 = vld [vmem:[%s5904_s5 + $0x424] ss:$44 sps:$4 sm:$0xff]   ;;  %v5408_v52 = vld [vmem:[%s5904_s5 + $0x420] ss:$44 sps:$4 sm:$0xff]  }
  0x67   : > { %3244 = vmatmul.mubr.bf16.gmra.mrb[16].mxu0 %v5322_v53  ;;  %2590 = vmatprep.mubr.bf16.mxu1 %v5326_v54  ;;  %v5409_v53 = vld [vmem:[%s5904_s5 + $0x438] ss:$44 sps:$4 sm:$0xff]   ;;  %v5413_v54 = vld [vmem:[%s5904_s5 + $0x47c] ss:$44 sps:$4 sm:$0xff]  }
  0x68   : > { %3253 = vmatprep.mubr.bf16.mxu0 %v5328_v55  ;;  %2746 = vmatpush1.bf16.msra.mxu1 %v5377_v56  ;;  %v5415_v55 = vld [vmem:[%s5904_s5 + $0x494] ss:$44 sps:$4 sm:$0xff]   ;;  %v5417_v56 = vld [vmem:[%s5904_s5 + $0x478] ss:$44 sps:$4 sm:$0xff]  }
  0x69   : > { %3409 = vmatpush1.bf16.msra.mxu0 %v5380_v57  ;;  %2747 = vmatprep.subr.bf16.mxu1 %v5391_v58  ;;  %v5418_v57 = vld [vmem:[%s5904_s5 + $0x490] ss:$44 sps:$4 sm:$0xff]   ;;  %v5425_v58 = vld [vmem:[%s5904_s5 + $0x4d4] ss:$44 sps:$4 sm:$0xff]  }
  0x6a   : > { %3410 = vmatprep.subr.bf16.mxu0 %v5400_v61  ;;  %v5430_v61 = vld [vmem:[%s5904_s5 + $0x4e8] ss:$44 sps:$4 sm:$0xff]  }
  0x6c   : > { %2748 = vmatpush1.bf16.msra.mxu1 %v5389_v59  ;;  %v5427_v59 = vld [vmem:[%s5904_s5 + $0x4ec] ss:$44 sps:$4 sm:$0xff]  }
  0x6d   : > { %3411 = vmatpush1.bf16.msra.mxu0 %v5398_v60  ;;  %2749 = vmatprep.subr.bf16.mxu1 %v5405_v0  ;;  %v5429_v60 = vld [vmem:[%s5904_s5 + $0x4d0] ss:$44 sps:$4 sm:$0xff]   ;;  %v5441_v0 = vld [vmem:[%s5904_s5 + $0x528] ss:$44 sps:$4 sm:$0xff]  }
  0x6e   : > { %2591 = vmatmul.mubr.bf16.gmra.mrb[20].mxu1 %v5330_v62  ;;  %3412 = vmatprep.subr.bf16.mxu0 %v5412_v5  ;;  %v5437_v62 = vld [vmem:[%s5904_s5 + $0x52c] ss:$44 sps:$4 sm:$0xff]  }
  0x6f   : > { %3254 = vmatmul.mubr.bf16.gmra.mrb[20].mxu0 %v5331_v63  ;;  %2600 = vmatprep.mubr.bf16.mxu1 %v5335_v1  ;;  %v5439_v63 = vld [vmem:[%s5904_s5 + $0x544] ss:$44 sps:$4 sm:$0xff]   ;;  %v5442_v1 = vld [vmem:[%s5904_s5 + $0x540] ss:$44 sps:$4 sm:$0xff]  }
  0x70   : > { %3263 = vmatprep.mubr.bf16.mxu0 %v5337_v2  ;;  %2750 = vmatpush1.bf16.msra.mxu1 %v5403_v3  ;;  %v5449_v2 = vld [vmem:[%s5904_s5 + $0x584] ss:$44 sps:$4 sm:$0xff]   ;;  %v5451_v3 = vld [vmem:[%s5904_s5 + $0x59c] ss:$44 sps:$4 sm:$0xff]  }
  0x71   : > { %3413 = vmatpush1.bf16.msra.mxu0 %v5410_v4  ;;  %2751 = vmatprep.subr.bf16.mxu1 %v5421_v10  ;;  %v5453_v4 = vld [vmem:[%s5904_s5 + $0x580] ss:$44 sps:$4 sm:$0xff]   ;;  %v5454_v5 = vld [vmem:[%s5904_s5 + $0x598] ss:$44 sps:$4 sm:$0xff]  }
  0x72   : > { %3414 = vmatprep.subr.bf16.mxu0 %v5424_v12  ;;  %v5465_v10 = vld [vmem:[%s5904_s5 + $0x5d8] ss:$44 sps:$4 sm:$0xff]  }
  0x74   : > { %2752 = vmatpush1.bf16.msra.mxu1 %v5419_v9  ;;  %v399_v9 = vld [vmem:[%s5904_s5 + $0x648] sm:$0xff] }
  0x75   : > { %3415 = vmatpush1.bf16.msra.mxu0 %v5422_v11  ;;  %2753 = vmatprep.subr.bf16.mxu1 %v5433_v15  ;;  %v5466_v11 = vld [vmem:[%s5904_s5 + $0x5f0] ss:$44 sps:$4 sm:$0xff]  }
  0x76   : > { %2601 = vmatmul.mubr.bf16.gmra.mrb[24].mxu1 %v5339_v6  ;;  %3416 = vmatprep.subr.bf16.mxu0 %v5436_v17  ;;  %v5458_v6 = vld [vmem:[%s5904_s5 + $0x5dc] ss:$44 sps:$4 sm:$0xff]   ;;  %v5482_v15 = vld [vmem:[%s5904_s5 + $0x24] ss:$44 sps:$4 sm:$0xff]   ;;  %v4442_v17 = vcombine.low %v399_v9, %v399_v9 }
  0x77   : > { %3264 = vmatmul.mubr.bf16.gmra.mrb[24].mxu0 %v5343_v7  ;;  %2610 = vmatprep.mubr.bf16.mxu1 %v5347_v8  ;;  %v5460_v7 = vld [vmem:[%s5904_s5 + $0x5f4] ss:$44 sps:$4 sm:$0xff]  }
  0x78   : > { %3273 = vmatprep.mubr.bf16.mxu0 %v5349_v13  ;;  %2754 = vmatpush1.bf16.msra.mxu1 %v5431_v14  ;;  %v396_v8 = vld [vmem:[%s5904_s5 + $0x630] sm:$0xff]  ;;  %v4443_v13 = vcombine.high %v399_v9, %v399_v9  ;;  %v5479_v14 = vld [vmem:[%s5904_s5 + $0xc] ss:$44 sps:$4 sm:$0xff]  }
  0x79   : > { %3417 = vmatpush1.bf16.msra.mxu0 %v5434_v16  ;;  %2755 = vmatprep.subr.bf16.mxu1 %v5445_v23  ;;  %v4437_v12 = vcombine.high %v396_v8, %v396_v8  ;;  %v4436_v16 = vcombine.low %v396_v8, %v396_v8  ;;  %v5491_v23 = vld [vmem:[%s5904_s5 + $0x7c] ss:$44 sps:$4 sm:$0xff]   ;;  %v5614_v8 = vld [vmem:[%s6723_s1 + $0x2c4] ss:$8 sps:$4 sm:$0xff]  }
  0x7a   : > { %3418 = vmatprep.subr.bf16.mxu0 %v5448_v25  ;;  %v5533_v25 = vld [vmem:[%s6723_s1 + $0x514] ss:$8 sps:$4 sm:$0xff]   ;;  %v5538_v9 = vld [vmem:[%s5904_s5 + $0x218] ss:$44 sps:$4 sm:$0xff]  }
  0x7c   : > { %2756 = vmatpush1.bf16.msra.mxu1 %v5443_v22  ;;  %v5489_v22 = vld [vmem:[%s5904_s5 + $0x64] ss:$44 sps:$4 sm:$0xff]  }
  0x7d   : > { %3419 = vmatpush1.bf16.msra.mxu0 %v5446_v24  ;;  %2757 = vmatprep.subr.bf16.mxu1 %v5457_v29  ;;  %v5497_v24 = vld [vmem:[%s6723_s1 + $0x214] ss:$8 sps:$4 sm:$0xff]   ;;  %v5572_v29 = vld [vmem:[%s6723_s1 + $0x524] ss:$8 sps:$4 sm:$0xff]  }
  0x7e   : > { %2611 = vmatmul.mubr.bf16.gmra.mrb[28].mxu1 %v5351_v18  ;;  %3420 = vmatprep.subr.bf16.mxu0 %v5464_v32  ;;  %v5477_v18 = vld [vmem:[%s5904_s5 + $0x8] ss:$44 sps:$4 sm:$0xff]  }
  0x7f   : > { %3274 = vmatmul.mubr.bf16.gmra.mrb[28].mxu0 %v5352_v19  ;;  %2620 = vmatprep.mubr.bf16.mxu1 %v5359_v20  ;;  %v5480_v19 = vld [vmem:[%s5904_s5 + $0x20] ss:$44 sps:$4 sm:$0xff]   ;;  %v5498_v32 = vld [vmem:[%s5904_s5 + $0xbc] ss:$44 sps:$4 sm:$0xff]  }
  0x80   : > { %3283 = vmatprep.mubr.bf16.mxu0 %v5361_v21  ;;  %2758 = vmatpush1.bf16.msra.mxu1 %v5455_v28  ;;  %v5483_v20 = vld [vmem:[%s6723_s1 + $0x200] ss:$8 sps:$4 sm:$0xff]   ;;  %v5531_v28 = vld [vmem:[%s6723_s1 + $0x510] ss:$8 sps:$4 sm:$0xff]  }
  0x81   : > { %3421 = vmatpush1.bf16.msra.mxu0 %v5462_v33  ;;  %2759 = vmatprep.subr.bf16.mxu1 %v5470_v35  ;;  %v5486_v21 = vld [vmem:[%s6723_s1 + $0x500] ss:$8 sps:$4 sm:$0xff]  }
  0x82   : > { %3422 = vmatprep.subr.bf16.mxu0 %v5476_v37  ;;  %v5500_v33 = vld [vmem:[%s5904_s5 + $0xd4] ss:$44 sps:$4 sm:$0xff]  }
  0x83   : > { %v5570_v35 = vld [vmem:[%s6723_s1 + $0x520] ss:$8 sps:$4 sm:$0xff]   ;;  %v5617_v37 = vld [vmem:[%s6723_s1 + $0x534] ss:$8 sps:$4 sm:$0xff]  }
  0x84   : > { %2760 = vmatpush1.bf16.msra.mxu1 %v5468_v34  ;;  %v5504_v34 = vld [vmem:[%s6723_s1 + $0x220] ss:$8 sps:$4 sm:$0xff]  }
  0x85   : > { %3423 = vmatpush1.bf16.msra.mxu0 %v5474_v38  ;;  %2950 = vmatprep.subr.bf16.mxu1 %v5485_v42  ;;  %v5513_v38 = vld [vmem:[%s6723_s1 + $0x230] ss:$8 sps:$4 sm:$0xff]  }
  0x86   : > { %2621 = vmatmul.mubr.bf16.gmra.mrb[32].mxu1 %v5363_v26  ;;  %3613 = vmatprep.subr.bf16.mxu0 %v5488_v43  ;;  %v5495_v26 = vld [vmem:[%s6723_s1 + $0x210] ss:$8 sps:$4 sm:$0xff]   ;;  %v5507_v43 = vld [vmem:[%s5904_s5 + $0x114] ss:$44 sps:$4 sm:$0xff]  }
  0x87   : > { %3284 = vmatmul.mubr.bf16.gmra.mrb[32].mxu0 %v5364_v27  ;;  %2630 = vmatprep.mubr.bf16.mxu1 %v5371_v30  ;;  %v5506_v27 = vld [vmem:[%s6723_s1 + $0x224] ss:$8 sps:$4 sm:$0xff]   ;;  %v5503_v42 = vld [vmem:[%s5904_s5 + $0xd0] ss:$44 sps:$4 sm:$0xff]  }
  0x88   : > { %3293 = vmatprep.mubr.bf16.mxu0 %v5373_v31  ;;  %v5493_v30 = vld [vmem:[%s5904_s5 + $0x60] ss:$44 sps:$4 sm:$0xff]   ;;  %v5494_v31 = vld [vmem:[%s5904_s5 + $0x78] ss:$44 sps:$4 sm:$0xff]  }
  0x8e   : > { %2631 = vmatmul.mubr.bf16.gmra.mrb[36].mxu1 %v5375_v36  ;;  %v5515_v36 = vld [vmem:[%s6723_s1 + $0x234] ss:$8 sps:$4 sm:$0xff]  }
  0x8f   : > { %3294 = vmatmul.mubr.bf16.gmra.mrb[36].mxu0 %v5376_v39  ;;  %2640 = vmatprep.mubr.bf16.mxu1 %v5383_v40  ;;  %v5524_v39 = vld [vmem:[%s6723_s1 + $0x244] ss:$8 sps:$4 sm:$0xff]   ;;  %v5615_v40 = vld [vmem:[%s6723_s1 + $0x530] ss:$8 sps:$4 sm:$0xff]  }
  0x90   : > { %3303 = vmatprep.mubr.bf16.mxu0 %v5385_v41  ;;  %v5502_v41 = vld [vmem:[%s5904_s5 + $0xb8] ss:$44 sps:$4 sm:$0xff]  }
  0x96   : > { %2641 = vmatmul.mubr.bf16.gmra.mrb[40].mxu1 %v5387_v44  ;;  %v5509_v44 = vld [vmem:[%s5904_s5 + $0x12c] ss:$44 sps:$4 sm:$0xff]  }
  0x97   : > { %3304 = vmatmul.mubr.bf16.gmra.mrb[40].mxu0 %v5388_v45  ;;  %2650 = vmatprep.mubr.bf16.mxu1 %v5392_v46  ;;  %v5522_v45 = vld [vmem:[%s6723_s1 + $0x240] ss:$8 sps:$4 sm:$0xff]   ;;  %v5541_v46 = vld [vmem:[%s6723_s1 + $0x254] ss:$8 sps:$4 sm:$0xff]  }
  0x98   : > { %3313 = vmatprep.mubr.bf16.mxu0 %v5394_v47  ;;  %v5539_v47 = vld [vmem:[%s6723_s1 + $0x250] ss:$8 sps:$4 sm:$0xff]  }
  0x9e   : > { %2651 = vmatmul.mubr.bf16.gmra.mrb[44].mxu1 %v5396_v48  ;;  %v5551_v48 = vld [vmem:[%s6723_s1 + $0x264] ss:$8 sps:$4 sm:$0xff]  }
  0x9f   : > { %3314 = vmatmul.mubr.bf16.gmra.mrb[44].mxu0 %v5397_v49  ;;  %2660 = vmatprep.mubr.bf16.mxu1 %v5401_v50  ;;  %v5511_v49 = vld [vmem:[%s5904_s5 + $0x110] ss:$44 sps:$4 sm:$0xff]   ;;  %v5512_v50 = vld [vmem:[%s5904_s5 + $0x128] ss:$44 sps:$4 sm:$0xff]  }
  0xa0   : > { %3323 = vmatprep.mubr.bf16.mxu0 %v5406_v51  ;;  %v5516_v51 = vld [vmem:[%s5904_s5 + $0x16c] ss:$44 sps:$4 sm:$0xff]  }
  0xa6   : > { %2661 = vmatmul.mubr.bf16.gmra.mrb[48].mxu1 %v5408_v52  ;;  %v5518_v52 = vld [vmem:[%s5904_s5 + $0x184] ss:$44 sps:$4 sm:$0xff]  }
  0xa7   : > { %3324 = vmatmul.mubr.bf16.gmra.mrb[48].mxu0 %v5409_v53  ;;  %2670 = vmatprep.mubr.bf16.mxu1 %v5413_v54  ;;  %v5549_v53 = vld [vmem:[%s6723_s1 + $0x260] ss:$8 sps:$4 sm:$0xff]   ;;  %v5560_v54 = vld [vmem:[%s6723_s1 + $0x274] ss:$8 sps:$4 sm:$0xff]  }
  0xa8   : > { %3333 = vmatprep.mubr.bf16.mxu0 %v5415_v55  ;;  %v5558_v55 = vld [vmem:[%s6723_s1 + $0x270] ss:$8 sps:$4 sm:$0xff]  }
  0xae   : > { %2671 = vmatmul.mubr.bf16.gmra.mrb[52].mxu1 %v5417_v56  ;;  %v5569_v56 = vld [vmem:[%s6723_s1 + $0x284] ss:$8 sps:$4 sm:$0xff]  }
  0xaf   : > { %3334 = vmatmul.mubr.bf16.gmra.mrb[52].mxu0 %v5418_v57  ;;  %2680 = vmatprep.mubr.bf16.mxu1 %v5425_v58  ;;  %v5520_v57 = vld [vmem:[%s5904_s5 + $0x168] ss:$44 sps:$4 sm:$0xff]   ;;  %v5521_v58 = vld [vmem:[%s5904_s5 + $0x180] ss:$44 sps:$4 sm:$0xff]  }
  0xb0   : > { %3343 = vmatprep.mubr.bf16.mxu0 %v5427_v59  ;;  %v5525_v59 = vld [vmem:[%s5904_s5 + $0x1c4] ss:$44 sps:$4 sm:$0xff]  }
  0xb6   : > { %2681 = vmatmul.mubr.bf16.gmra.mrb[56].mxu1 %v5429_v60  ;;  %v5527_v60 = vld [vmem:[%s5904_s5 + $0x1dc] ss:$44 sps:$4 sm:$0xff]  }
  0xb7   : > { %3344 = vmatmul.mubr.bf16.gmra.mrb[56].mxu0 %v5430_v61  ;;  %2690 = vmatprep.mubr.bf16.mxu1 %v5437_v62  ;;  %v5567_v61 = vld [vmem:[%s6723_s1 + $0x280] ss:$8 sps:$4 sm:$0xff]   ;;  %v5581_v62 = vld [vmem:[%s6723_s1 + $0x294] ss:$8 sps:$4 sm:$0xff]  }
  0xb8   : > { %3353 = vmatprep.mubr.bf16.mxu0 %v5439_v63  ;;  %v5579_v63 = vld [vmem:[%s6723_s1 + $0x290] ss:$8 sps:$4 sm:$0xff]  }
  0xbe   : > { %2691 = vmatmul.mubr.bf16.gmra.mrb[60].mxu1 %v5441_v0  ;;  %v5592_v0 = vld [vmem:[%s6723_s1 + $0x2a4] ss:$8 sps:$4 sm:$0xff]  }
  0xbf   : > { %3354 = vmatmul.mubr.bf16.gmra.mrb[60].mxu0 %v5442_v1  ;;  %2700 = vmatprep.mubr.bf16.mxu1 %v5449_v2  ;;  %v5529_v1 = vld [vmem:[%s5904_s5 + $0x1c0] ss:$44 sps:$4 sm:$0xff]   ;;  %v5530_v2 = vld [vmem:[%s5904_s5 + $0x1d8] ss:$44 sps:$4 sm:$0xff]  }
  0xc0   : > { %3363 = vmatprep.mubr.bf16.mxu0 %v5451_v3  ;;  %v5534_v3 = vld [vmem:[%s5904_s5 + $0x21c] ss:$44 sps:$4 sm:$0xff]  }
  0xc6   : > { %2701 = vmatmul.mubr.bf16.gmra.mrb[64].mxu1 %v5453_v4  ;;  %v5536_v4 = vld [vmem:[%s5904_s5 + $0x234] ss:$44 sps:$4 sm:$0xff]  }
  0xc7   : > { %3364 = vmatmul.mubr.bf16.gmra.mrb[64].mxu0 %v5454_v5  ;;  %2710 = vmatprep.mubr.bf16.mxu1 %v5458_v6  ;;  %v5590_v5 = vld [vmem:[%s6723_s1 + $0x2a0] ss:$8 sps:$4 sm:$0xff]   ;;  %v5605_v6 = vld [vmem:[%s6723_s1 + $0x2b4] ss:$8 sps:$4 sm:$0xff]  }
  0xc8   : > { %3373 = vmatprep.mubr.bf16.mxu0 %v5460_v7  ;;  %v5603_v7 = vld [vmem:[%s6723_s1 + $0x2b0] ss:$8 sps:$4 sm:$0xff]  }
  0xce   : > { %2711 = vmatmul.mubr.bf16.gmra.mrb[68].mxu1 %v5465_v10  ;;  %v5542_v10 = vld [vmem:[%s5904_s5 + $0x230] ss:$44 sps:$4 sm:$0xff]  }
  0xcf   : > { %3374 = vmatmul.mubr.bf16.gmra.mrb[68].mxu0 %v5466_v11  ;;  %2720 = vmatprep.mubr.bf16.mxu1 %v4437_v12  ;;  %v5543_v11 = vld [vmem:[%s5904_s5 + $0x274] ss:$44 sps:$4 sm:$0xff]   ;;  %v5545_v12 = vld [vmem:[%s5904_s5 + $0x28c] ss:$44 sps:$4 sm:$0xff]  }
  0xd0   : > { %3383 = vmatprep.mubr.bf16.mxu0 %v4443_v13  ;;  %v5612_v13 = vld [vmem:[%s6723_s1 + $0x2c0] ss:$8 sps:$4 sm:$0xff]  }
  0xd6   : > { %2721 = vmatmul.mubr.bf16.gmra.mrb[72].mxu1 %v4436_v16  ;;  %v5635_v16 = vld [vmem:[%s6723_s1 + $0x2e4] ss:$8 sps:$4 sm:$0xff]  }
  0xd7   : > { %3384 = vmatmul.mubr.bf16.gmra.mrb[72].mxu0 %v4442_v17  ;;  %2761 = vmatprep.mubr.bf16.mxu1 %v5479_v14  ;;  %v5626_v14 = vld [vmem:[%s6723_s1 + $0x2d4] ss:$8 sps:$4 sm:$0xff]  }
  0xd8   : > { %3424 = vmatprep.mubr.bf16.mxu0 %v5482_v15  ;;  %v5624_v15 = vld [vmem:[%s6723_s1 + $0x2d0] ss:$8 sps:$4 sm:$0xff]  }
  0xd9   : > { %v5547_v17 = vld [vmem:[%s5904_s5 + $0x270] ss:$44 sps:$4 sm:$0xff]  }
  0xde   : > { %2762 = vmatmul.mubr.bf16.vlgmr.msra.gmra.mrb[0].mxu1 %v5477_v18  ;;  %v5548_v18 = vld [vmem:[%s5904_s5 + $0x288] ss:$44 sps:$4 sm:$0xff]  }
  0xdf   : > { %3425 = vmatmul.mubr.bf16.vlgmr.msra.gmra.mrb[0].mxu0 %v5480_v19  ;;  %2951 = vmatpush1.bf16.msra.mxu1 %v5483_v20  ;;  %v5552_v19 = vld [vmem:[%s5904_s5 + $0x2cc] ss:$44 sps:$4 sm:$0xff]   ;;  %v5554_v20 = vld [vmem:[%s5904_s5 + $0x2e4] ss:$44 sps:$4 sm:$0xff]  }
  0xe0   : > { %3614 = vmatpush1.bf16.msra.mxu0 %v5486_v21  ;;  %2771 = vmatprep.mubr.bf16.mxu1 %v5489_v22  ;;  %v5633_v21 = vld [vmem:[%s6723_s1 + $0x2e0] ss:$8 sps:$4 sm:$0xff]   ;;  %v5645_v22 = vld [vmem:[%s6723_s1 + $0x2f4] ss:$8 sps:$4 sm:$0xff]  }
  0xe1   : > { %3434 = vmatprep.mubr.bf16.mxu0 %v5491_v23  ;;  %2952 = vmatprep.subr.bf16.mxu1 %v5497_v24  ;;  %v5643_v23 = vld [vmem:[%s6723_s1 + $0x2f0] ss:$8 sps:$4 sm:$0xff]   ;;  %v5556_v24 = vld [vmem:[%s5904_s5 + $0x2c8] ss:$44 sps:$4 sm:$0xff]  }
  0xe2   : > { %3615 = vmatprep.subr.bf16.mxu0 %v5533_v25  ;;  %v5557_v25 = vld [vmem:[%s5904_s5 + $0x2e0] ss:$44 sps:$4 sm:$0xff]  }
  0xe3   : > { %2953 = vmatpush1.bf16.msra.mxu1 %v5495_v26  ;;  %v5561_v26 = vld [vmem:[%s5904_s5 + $0x324] ss:$44 sps:$4 sm:$0xff]  }
  0xe4   : > { %3616 = vmatpush1.bf16.msra.mxu0 %v5531_v28  ;;  %2954 = vmatprep.subr.bf16.mxu1 %v5506_v27  ;;  %v5563_v27 = vld [vmem:[%s5904_s5 + $0x33c] ss:$44 sps:$4 sm:$0xff]   ;;  %v5565_v28 = vld [vmem:[%s5904_s5 + $0x320] ss:$44 sps:$4 sm:$0xff]  }
  0xe5   : > { %3617 = vmatprep.subr.bf16.mxu0 %v5572_v29  ;;  %v5566_v29 = vld [vmem:[%s5904_s5 + $0x338] ss:$44 sps:$4 sm:$0xff]  }
  0xe6   : > { %2772 = vmatmul.mubr.bf16.gmra.mrb[4].mxu1 %v5493_v30  ;;  %v5573_v30 = vld [vmem:[%s5904_s5 + $0x37c] ss:$44 sps:$4 sm:$0xff]  }
  0xe7   : > { %3435 = vmatmul.mubr.bf16.gmra.mrb[4].mxu0 %v5494_v31  ;;  %2781 = vmatprep.mubr.bf16.mxu1 %v5498_v32  ;;  %v5575_v31 = vld [vmem:[%s5904_s5 + $0x394] ss:$44 sps:$4 sm:$0xff]   ;;  %v5577_v32 = vld [vmem:[%s5904_s5 + $0x378] ss:$44 sps:$4 sm:$0xff]  }
  0xe8   : > { %3444 = vmatprep.mubr.bf16.mxu0 %v5500_v33  ;;  %2955 = vmatpush1.bf16.msra.mxu1 %v5504_v34  ;;  %v5578_v33 = vld [vmem:[%s5904_s5 + $0x390] ss:$44 sps:$4 sm:$0xff]   ;;  %v5582_v34 = vld [vmem:[%s5904_s5 + $0x3d4] ss:$44 sps:$4 sm:$0xff]  }
  0xe9   : > { %3618 = vmatpush1.bf16.msra.mxu0 %v5570_v35  ;;  %2956 = vmatprep.subr.bf16.mxu1 %v5515_v36  ;;  %v5584_v35 = vld [vmem:[%s5904_s5 + $0x3ec] ss:$44 sps:$4 sm:$0xff]   ;;  %v5586_v36 = vld [vmem:[%s5904_s5 + $0x3d0] ss:$44 sps:$4 sm:$0xff]  }
  0xea   : > { %3619 = vmatprep.subr.bf16.mxu0 %v5617_v37  ;;  %v5587_v37 = vld [vmem:[%s5904_s5 + $0x3e8] ss:$44 sps:$4 sm:$0xff]  }
  0xec   : > { %2957 = vmatpush1.bf16.msra.mxu1 %v5513_v38  ;;  %v5588_v38 = vld [vmem:[%s5904_s5 + $0x42c] ss:$44 sps:$4 sm:$0xff]  }
  0xed   : > { %3620 = vmatpush1.bf16.msra.mxu0 %v5615_v40  ;;  %2958 = vmatprep.subr.bf16.mxu1 %v5524_v39  ;;  %v5593_v39 = vld [vmem:[%s5904_s5 + $0x444] ss:$44 sps:$4 sm:$0xff]   ;;  %v5595_v40 = vld [vmem:[%s5904_s5 + $0x428] ss:$44 sps:$4 sm:$0xff]  }
  0xee   : > { %2782 = vmatmul.mubr.bf16.gmra.mrb[8].mxu1 %v5502_v41  ;;  %v5596_v41 = vld [vmem:[%s5904_s5 + $0x440] ss:$44 sps:$4 sm:$0xff]  }
  0xef   : > { %3445 = vmatmul.mubr.bf16.gmra.mrb[8].mxu0 %v5503_v42  ;;  %2791 = vmatprep.mubr.bf16.mxu1 %v5507_v43  ;;  %v5597_v42 = vld [vmem:[%s5904_s5 + $0x484] ss:$44 sps:$4 sm:$0xff]   ;;  %v5599_v43 = vld [vmem:[%s5904_s5 + $0x49c] ss:$44 sps:$4 sm:$0xff]  }
  0xf0   : > { %3454 = vmatprep.mubr.bf16.mxu0 %v5509_v44  ;;  %2959 = vmatpush1.bf16.msra.mxu1 %v5522_v45  ;;  %v5601_v44 = vld [vmem:[%s5904_s5 + $0x480] ss:$44 sps:$4 sm:$0xff]   ;;  %v5602_v45 = vld [vmem:[%s5904_s5 + $0x498] ss:$44 sps:$4 sm:$0xff]  }
  0xf1   : > { %2960 = vmatprep.subr.bf16.mxu1 %v5541_v46  ;;  %v5606_v46 = vld [vmem:[%s5904_s5 + $0x4dc] ss:$44 sps:$4 sm:$0xff]  }
  0xf4   : > { %2961 = vmatpush1.bf16.msra.mxu1 %v5539_v47  ;;  %v5608_v47 = vld [vmem:[%s5904_s5 + $0x4f4] ss:$44 sps:$4 sm:$0xff]  }
  0xf5   : > { %2962 = vmatprep.subr.bf16.mxu1 %v5551_v48  ;;  %v5610_v48 = vld [vmem:[%s5904_s5 + $0x4d8] ss:$44 sps:$4 sm:$0xff]  }
  0xf6   : > { %2792 = vmatmul.mubr.bf16.gmra.mrb[12].mxu1 %v5511_v49  ;;  %v5611_v49 = vld [vmem:[%s5904_s5 + $0x4f0] ss:$44 sps:$4 sm:$0xff]  }
  0xf7   : > { %3455 = vmatmul.mubr.bf16.gmra.mrb[12].mxu0 %v5512_v50  ;;  %2801 = vmatprep.mubr.bf16.mxu1 %v5516_v51  ;;  %v5618_v50 = vld [vmem:[%s5904_s5 + $0x534] ss:$44 sps:$4 sm:$0xff]   ;;  %v5620_v51 = vld [vmem:[%s5904_s5 + $0x54c] ss:$44 sps:$4 sm:$0xff]  }
  0xf8   : > { %3464 = vmatprep.mubr.bf16.mxu0 %v5518_v52  ;;  %2963 = vmatpush1.bf16.msra.mxu1 %v5549_v53  ;;  %v5622_v52 = vld [vmem:[%s5904_s5 + $0x530] ss:$44 sps:$4 sm:$0xff]   ;;  %v5623_v53 = vld [vmem:[%s5904_s5 + $0x548] ss:$44 sps:$4 sm:$0xff]  }
  0xf9   : > { %2964 = vmatprep.subr.bf16.mxu1 %v5560_v54  ;;  %v5627_v54 = vld [vmem:[%s5904_s5 + $0x58c] ss:$44 sps:$4 sm:$0xff]  }
  0xfc   : > { %2965 = vmatpush1.bf16.msra.mxu1 %v5558_v55  ;;  %v5629_v55 = vld [vmem:[%s5904_s5 + $0x5a4] ss:$44 sps:$4 sm:$0xff]  }
  0xfd   : > { %2966 = vmatprep.subr.bf16.mxu1 %v5569_v56  ;;  %v5631_v56 = vld [vmem:[%s5904_s5 + $0x588] ss:$44 sps:$4 sm:$0xff]  }
  0xfe   : > { %2802 = vmatmul.mubr.bf16.gmra.mrb[16].mxu1 %v5520_v57  ;;  %v5632_v57 = vld [vmem:[%s5904_s5 + $0x5a0] ss:$44 sps:$4 sm:$0xff]  }
  0xff   : > { %3465 = vmatmul.mubr.bf16.gmra.mrb[16].mxu0 %v5521_v58  ;;  %2811 = vmatprep.mubr.bf16.mxu1 %v5525_v59  ;;  %v5636_v58 = vld [vmem:[%s5904_s5 + $0x5e4] ss:$44 sps:$4 sm:$0xff]   ;;  %v5638_v59 = vld [vmem:[%s5904_s5 + $0x5fc] ss:$44 sps:$4 sm:$0xff]  }
 0x100   : > { %3474 = vmatprep.mubr.bf16.mxu0 %v5527_v60  ;;  %2967 = vmatpush1.bf16.msra.mxu1 %v5567_v61  ;;  %v397_v60 = vld [vmem:[%s5904_s5 + $0x638] sm:$0xff]  ;;  %v400_v61 = vld [vmem:[%s5904_s5 + $0x650] sm:$0xff] }
 0x101   : > { %2968 = vmatprep.subr.bf16.mxu1 %v5581_v62  ;;  %v5640_v62 = vld [vmem:[%s5904_s5 + $0x5e0] ss:$44 sps:$4 sm:$0xff]  }
 0x104   : > { %2969 = vmatpush1.bf16.msra.mxu1 %v5579_v63  ;;  %v5641_v63 = vld [vmem:[%s5904_s5 + $0x5f8] ss:$44 sps:$4 sm:$0xff]  }
 0x105   : > { %2970 = vmatprep.subr.bf16.mxu1 %v5592_v0  ;;  %v4439_v0 = vcombine.high %v397_v60, %v397_v60 }
 0x106   : > { %2812 = vmatmul.mubr.bf16.gmra.mrb[20].mxu1 %v5529_v1  ;;  %v4445_v1 = vcombine.high %v400_v61, %v400_v61 }
 0x107   : > { %3475 = vmatmul.mubr.bf16.gmra.mrb[20].mxu0 %v5530_v2  ;;  %2821 = vmatprep.mubr.bf16.mxu1 %v5534_v3  ;;  %v4438_v2 = vcombine.low %v397_v60, %v397_v60  ;;  %v4444_v3 = vcombine.low %v400_v61, %v400_v61 }
 0x108   : > { %3484 = vmatprep.mubr.bf16.mxu0 %v5536_v4  ;;  %2971 = vmatpush1.bf16.msra.mxu1 %v5590_v5  ;;  %v5651_v4 = vld [vmem:[%s5904_s5 + $0x14] ss:$44 sps:$4 sm:$0xff]   ;;  %v5732_v5 = vmov 0  }
 0x109   : > { %2972 = vmatprep.subr.bf16.mxu1 %v5605_v6  ;;  %v5649_v6 = vld [vmem:[%s5904_s5 + $0x10] ss:$44 sps:$4 sm:$0xff]  }
 0x10c   : > { %2973 = vmatpush1.bf16.msra.mxu1 %v5603_v7  ;;  %v5652_v7 = vld [vmem:[%s5904_s5 + $0x28] ss:$44 sps:$4 sm:$0xff]  }
 0x10d   : > { %2974 = vmatprep.subr.bf16.mxu1 %v5614_v8  ;;  %v5653_v8 = vld [vmem:[%s5904_s5 + $0x6c] ss:$44 sps:$4 sm:$0xff]  }
 0x10e   : > { %2822 = vmatmul.mubr.bf16.gmra.mrb[24].mxu1 %v5538_v9  ;;  %v5655_v9 = vld [vmem:[%s5904_s5 + $0x68] ss:$44 sps:$4 sm:$0xff]  }
 0x10f   : > { %3485 = vmatmul.mubr.bf16.gmra.mrb[24].mxu0 %v5542_v10  ;;  %2831 = vmatprep.mubr.bf16.mxu1 %v5543_v11  ;;  %v5656_v10 = vld [vmem:[%s5904_s5 + $0x80] ss:$44 sps:$4 sm:$0xff]   ;;  %v5657_v11 = vld [vmem:[%s5904_s5 + $0xc4] ss:$44 sps:$4 sm:$0xff]  }
 0x110   : > { %3494 = vmatprep.mubr.bf16.mxu0 %v5545_v12  ;;  %2975 = vmatpush1.bf16.msra.mxu1 %v5612_v13  ;;  %v5659_v12 = vld [vmem:[%s5904_s5 + $0xc0] ss:$44 sps:$4 sm:$0xff]   ;;  %v5660_v13 = vld [vmem:[%s5904_s5 + $0xd8] ss:$44 sps:$4 sm:$0xff]  }
 0x111   : > { %2976 = vmatprep.subr.bf16.mxu1 %v5626_v14  ;;  %v5661_v14 = vld [vmem:[%s5904_s5 + $0x11c] ss:$44 sps:$4 sm:$0xff]  }
 0x114   : > { %2977 = vmatpush1.bf16.msra.mxu1 %v5624_v15  ;;  %v5663_v15 = vld [vmem:[%s5904_s5 + $0x118] ss:$44 sps:$4 sm:$0xff]  }
 0x115   : > { %2978 = vmatprep.subr.bf16.mxu1 %v5635_v16  ;;  %v5664_v16 = vld [vmem:[%s5904_s5 + $0x130] ss:$44 sps:$4 sm:$0xff]  }
 0x116   : > { %2832 = vmatmul.mubr.bf16.gmra.mrb[28].mxu1 %v5547_v17  ;;  %v5665_v17 = vld [vmem:[%s5904_s5 + $0x174] ss:$44 sps:$4 sm:$0xff]  }
 0x117   : > { %3495 = vmatmul.mubr.bf16.gmra.mrb[28].mxu0 %v5548_v18  ;;  %2841 = vmatprep.mubr.bf16.mxu1 %v5552_v19  ;;  %v5667_v18 = vld [vmem:[%s5904_s5 + $0x170] ss:$44 sps:$4 sm:$0xff]   ;;  %v5668_v19 = vld [vmem:[%s5904_s5 + $0x188] ss:$44 sps:$4 sm:$0xff]  }
 0x118   : > { %3504 = vmatprep.mubr.bf16.mxu0 %v5554_v20  ;;  %2979 = vmatpush1.bf16.msra.mxu1 %v5633_v21  ;;  %v5669_v20 = vld [vmem:[%s5904_s5 + $0x1cc] ss:$44 sps:$4 sm:$0xff]   ;;  %v5671_v21 = vld [vmem:[%s5904_s5 + $0x1c8] ss:$44 sps:$4 sm:$0xff]  }
 0x119   : > { %2980 = vmatprep.subr.bf16.mxu1 %v5645_v22  ;;  %v5672_v22 = vld [vmem:[%s5904_s5 + $0x1e0] ss:$44 sps:$4 sm:$0xff]  }
 0x11c   : > { %2981 = vmatpush1.bf16.msra.mxu1 %v5643_v23  ;;  %v5673_v23 = vld [vmem:[%s5904_s5 + $0x224] ss:$44 sps:$4 sm:$0xff]  }
 0x11e   : > { %2842 = vmatmul.mubr.bf16.gmra.mrb[32].mxu1 %v5556_v24  ;;  %v5675_v24 = vld [vmem:[%s5904_s5 + $0x220] ss:$44 sps:$4 sm:$0xff]  }
 0x11f   : > { %3505 = vmatmul.mubr.bf16.gmra.mrb[32].mxu0 %v5557_v25  ;;  %2851 = vmatprep.mubr.bf16.mxu1 %v5561_v26  ;;  %v5676_v25 = vld [vmem:[%s5904_s5 + $0x238] ss:$44 sps:$4 sm:$0xff]   ;;  %v5677_v26 = vld [vmem:[%s5904_s5 + $0x27c] ss:$44 sps:$4 sm:$0xff]  }
 0x120   : > { %3514 = vmatprep.mubr.bf16.mxu0 %v5563_v27  ;;  %v5679_v27 = vld [vmem:[%s5904_s5 + $0x278] ss:$44 sps:$4 sm:$0xff]  }
 0x126   : > { %2852 = vmatmul.mubr.bf16.gmra.mrb[36].mxu1 %v5565_v28  ;;  %v5680_v28 = vld [vmem:[%s5904_s5 + $0x290] ss:$44 sps:$4 sm:$0xff]  }
 0x127   : > { %3515 = vmatmul.mubr.bf16.gmra.mrb[36].mxu0 %v5566_v29  ;;  %2861 = vmatprep.mubr.bf16.mxu1 %v5573_v30  ;;  %v5681_v29 = vld [vmem:[%s5904_s5 + $0x2d4] ss:$44 sps:$4 sm:$0xff]   ;;  %v5683_v30 = vld [vmem:[%s5904_s5 + $0x2d0] ss:$44 sps:$4 sm:$0xff]  }
 0x128   : > { %3524 = vmatprep.mubr.bf16.mxu0 %v5575_v31  ;;  %v5684_v31 = vld [vmem:[%s5904_s5 + $0x2e8] ss:$44 sps:$4 sm:$0xff]  }
 0x12e   : > { %2862 = vmatmul.mubr.bf16.gmra.mrb[40].mxu1 %v5577_v32  ;;  %v5685_v32 = vld [vmem:[%s5904_s5 + $0x32c] ss:$44 sps:$4 sm:$0xff]  }
 0x12f   : > { %3525 = vmatmul.mubr.bf16.gmra.mrb[40].mxu0 %v5578_v33  ;;  %2871 = vmatprep.mubr.bf16.mxu1 %v5582_v34  ;;  %v5687_v33 = vld [vmem:[%s5904_s5 + $0x328] ss:$44 sps:$4 sm:$0xff]   ;;  %v5688_v34 = vld [vmem:[%s5904_s5 + $0x340] ss:$44 sps:$4 sm:$0xff]  }
 0x130   : > { %3534 = vmatprep.mubr.bf16.mxu0 %v5584_v35  ;;  %v5689_v35 = vld [vmem:[%s5904_s5 + $0x384] ss:$44 sps:$4 sm:$0xff]  }
 0x136   : > { %2872 = vmatmul.mubr.bf16.gmra.mrb[44].mxu1 %v5586_v36  ;;  %v5691_v36 = vld [vmem:[%s5904_s5 + $0x380] ss:$44 sps:$4 sm:$0xff]  }
 0x137   : > { %3535 = vmatmul.mubr.bf16.gmra.mrb[44].mxu0 %v5587_v37  ;;  %2881 = vmatprep.mubr.bf16.mxu1 %v5588_v38  ;;  %v5692_v37 = vld [vmem:[%s5904_s5 + $0x398] ss:$44 sps:$4 sm:$0xff]   ;;  %v5693_v38 = vld [vmem:[%s5904_s5 + $0x3dc] ss:$44 sps:$4 sm:$0xff]  }
 0x138   : > { %3544 = vmatprep.mubr.bf16.mxu0 %v5593_v39  ;;  %v5695_v39 = vld [vmem:[%s5904_s5 + $0x3d8] ss:$44 sps:$4 sm:$0xff]  }
 0x13e   : > { %2882 = vmatmul.mubr.bf16.gmra.mrb[48].mxu1 %v5595_v40  ;;  %v5696_v40 = vld [vmem:[%s5904_s5 + $0x3f0] ss:$44 sps:$4 sm:$0xff]  }
 0x13f   : > { %3545 = vmatmul.mubr.bf16.gmra.mrb[48].mxu0 %v5596_v41  ;;  %2891 = vmatprep.mubr.bf16.mxu1 %v5597_v42  ;;  %v5697_v41 = vld [vmem:[%s5904_s5 + $0x434] ss:$44 sps:$4 sm:$0xff]   ;;  %v5699_v42 = vld [vmem:[%s5904_s5 + $0x430] ss:$44 sps:$4 sm:$0xff]  }
 0x140   : > { %3554 = vmatprep.mubr.bf16.mxu0 %v5599_v43  ;;  %v5700_v43 = vld [vmem:[%s5904_s5 + $0x448] ss:$44 sps:$4 sm:$0xff]  }
 0x146   : > { %2892 = vmatmul.mubr.bf16.gmra.mrb[52].mxu1 %v5601_v44  ;;  %v5701_v44 = vld [vmem:[%s5904_s5 + $0x48c] ss:$44 sps:$4 sm:$0xff]  }
 0x147   : > { %3555 = vmatmul.mubr.bf16.gmra.mrb[52].mxu0 %v5602_v45  ;;  %2901 = vmatprep.mubr.bf16.mxu1 %v5606_v46  ;;  %v5703_v45 = vld [vmem:[%s5904_s5 + $0x488] ss:$44 sps:$4 sm:$0xff]   ;;  %v5704_v46 = vld [vmem:[%s5904_s5 + $0x4a0] ss:$44 sps:$4 sm:$0xff]  }
 0x148   : > { %3564 = vmatprep.mubr.bf16.mxu0 %v5608_v47  ;;  %v5705_v47 = vld [vmem:[%s5904_s5 + $0x4e4] ss:$44 sps:$4 sm:$0xff]  }
 0x14e   : > { %2902 = vmatmul.mubr.bf16.gmra.mrb[56].mxu1 %v5610_v48  ;;  %v5707_v48 = vld [vmem:[%s5904_s5 + $0x4e0] ss:$44 sps:$4 sm:$0xff]  }
 0x14f   : > { %3565 = vmatmul.mubr.bf16.gmra.mrb[56].mxu0 %v5611_v49  ;;  %2911 = vmatprep.mubr.bf16.mxu1 %v5618_v50  ;;  %v5708_v49 = vld [vmem:[%s5904_s5 + $0x4f8] ss:$44 sps:$4 sm:$0xff]   ;;  %v5709_v50 = vld [vmem:[%s5904_s5 + $0x53c] ss:$44 sps:$4 sm:$0xff]  }
 0x150   : > { %3574 = vmatprep.mubr.bf16.mxu0 %v5620_v51  ;;  %v5711_v51 = vld [vmem:[%s5904_s5 + $0x538] ss:$44 sps:$4 sm:$0xff]  }
 0x156   : > { %2912 = vmatmul.mubr.bf16.gmra.mrb[60].mxu1 %v5622_v52  ;;  %v5712_v52 = vld [vmem:[%s5904_s5 + $0x550] ss:$44 sps:$4 sm:$0xff]  }
 0x157   : > { %3575 = vmatmul.mubr.bf16.gmra.mrb[60].mxu0 %v5623_v53  ;;  %2921 = vmatprep.mubr.bf16.mxu1 %v5627_v54  ;;  %v5713_v53 = vld [vmem:[%s5904_s5 + $0x594] ss:$44 sps:$4 sm:$0xff]   ;;  %v5715_v54 = vld [vmem:[%s5904_s5 + $0x590] ss:$44 sps:$4 sm:$0xff]  }
 0x158   : > { %3584 = vmatprep.mubr.bf16.mxu0 %v5629_v55  ;;  %v5716_v55 = vld [vmem:[%s5904_s5 + $0x5a8] ss:$44 sps:$4 sm:$0xff]  }
 0x15e   : > { %2922 = vmatmul.mubr.bf16.gmra.mrb[64].mxu1 %v5631_v56  ;;  %v5717_v56 = vld [vmem:[%s5904_s5 + $0x5ec] ss:$44 sps:$4 sm:$0xff]  }
 0x15f   : > { %3585 = vmatmul.mubr.bf16.gmra.mrb[64].mxu0 %v5632_v57  ;;  %2931 = vmatprep.mubr.bf16.mxu1 %v5636_v58  ;;  %v398_v57 = vld [vmem:[%s5904_s5 + $0x640] sm:$0xff]  ;;  %v5719_v58 = vld [vmem:[%s5904_s5 + $0x5e8] ss:$44 sps:$4 sm:$0xff]  }
 0x160   : > { %3594 = vmatprep.mubr.bf16.mxu0 %v5638_v59  ;;  %v5720_v59 = vld [vmem:[%s5904_s5 + $0x600] ss:$44 sps:$4 sm:$0xff]   ;;  %v4441_v60 = vcombine.high %v398_v57, %v398_v57  ;;  %v4440_v61 = vcombine.low %v398_v57, %v398_v57 }
 0x166   : > { %2932 = vmatmul.mubr.bf16.gmra.mrb[68].mxu1 %v5640_v62  ;;  %v5723_v62 = vld [vmem:[%s5904_s5 + $0x658] ss:$0 sps:$4 sm:$0xff]   ;;  %s4673_s5 = sshll.u32 %s6729_s22, 3 }
 0x167   : > { %3595 = vmatmul.mubr.bf16.gmra.mrb[68].mxu0 %v5641_v63  ;;  %2941 = vmatprep.mubr.bf16.mxu1 %v4439_v0  ;;  %v572_v63 = vlaneseq  ;;  %s6532_s18 = scalar_lea.vmem %s6725_s3, %s4673_s5 }
 0x168   : > { %3604 = vmatprep.mubr.bf16.mxu0 %v4445_v1 }
 0x169   : > { %v573_v0 = vshrl.u32 %v572_v63, 7 }
 0x16b   : > { %v574_v1 = vsub.s32 0, %v573_v0 }
 0x16e   : > { %2942 = vmatmul.mubr.bf16.gmra.mrb[72].mxu1 %v4438_v2  ;;  %v570_v2 = vld [vmem:[%s6724_s2] sm:$0x3] }
 0x16f   : > { %3605 = vmatmul.mubr.bf16.gmra.mrb[72].mxu0 %v4444_v3  ;;  %2982 = vmatprep.mubr.bf16.mxu1 %v5651_v4  ;;  %v578_v3 = vsub.s32 1, %v573_v0  ;;  %v6520_v4 = vrot.slane %v570_v2, %v574_v1 }
 0x170   : > { %3645 = vmatprep.mubr.bf16.mxu0 %v5732_v5 }
 0x176   : > { %2983 = vmatmul.mubr.bf16.vlgmr.msra.gmra.mrb[0].mxu1 %v5649_v6  ;;  %v6522_v6 = vrot.slane %v570_v2, %v578_v3 }
 0x177   : > { %4615 = vmatmul.mubr.msk.bf16.vlgmr.msra.gmra.mrb[0].mxu0 %vm2450_vm0, %v5652_v7  ;;  %2992 = vmatprep.mubr.bf16.mxu1 %v5653_v8 }
 0x178   : > { %3655 = vmatprep.mubr.bf16.mxu0 %v5732_v5 }
 0x17e   : > { %2993 = vmatmul.mubr.bf16.gmra.mrb[4].mxu1 %v5655_v9 }
 0x17f   : > { %4616 = vmatmul.mubr.msk.bf16.gmra.mrb[4].mxu0 %vm2450_vm0, %v5656_v10  ;;  %3002 = vmatprep.mubr.bf16.mxu1 %v5657_v11 }
 0x180   : > { %3665 = vmatprep.mubr.bf16.mxu0 %v5732_v5 }
 0x186   : > { %3003 = vmatmul.mubr.bf16.gmra.mrb[8].mxu1 %v5659_v12 }
 0x187   : > { %4617 = vmatmul.mubr.msk.bf16.gmra.mrb[8].mxu0 %vm2450_vm0, %v5660_v13  ;;  %3012 = vmatprep.mubr.bf16.mxu1 %v5661_v14 }
 0x188   : > { %3675 = vmatprep.mubr.bf16.mxu0 %v5732_v5 }
 0x18e   : > { %3013 = vmatmul.mubr.bf16.gmra.mrb[12].mxu1 %v5663_v15 }
 0x18f   : > { %4618 = vmatmul.mubr.msk.bf16.gmra.mrb[12].mxu0 %vm2450_vm0, %v5664_v16  ;;  %3022 = vmatprep.mubr.bf16.mxu1 %v5665_v17 }
 0x190   : > { %3685 = vmatprep.mubr.bf16.mxu0 %v5732_v5 }
 0x196   : > { %3023 = vmatmul.mubr.bf16.gmra.mrb[16].mxu1 %v5667_v18 }
 0x197   : > { %4619 = vmatmul.mubr.msk.bf16.gmra.mrb[16].mxu0 %vm2450_vm0, %v5668_v19  ;;  %3032 = vmatprep.mubr.bf16.mxu1 %v5669_v20 }
 0x198   : > { %3695 = vmatprep.mubr.bf16.mxu0 %v5732_v5 }
 0x19e   : > { %3033 = vmatmul.mubr.bf16.gmra.mrb[20].mxu1 %v5671_v21 }
 0x19f   : > { %4620 = vmatmul.mubr.msk.bf16.gmra.mrb[20].mxu0 %vm2450_vm0, %v5672_v22  ;;  %3042 = vmatprep.mubr.bf16.mxu1 %v5673_v23 }
 0x1a0   : > { %3705 = vmatprep.mubr.bf16.mxu0 %v5732_v5 }
 0x1a6   : > { %3043 = vmatmul.mubr.bf16.gmra.mrb[24].mxu1 %v5675_v24 }
 0x1a7   : > { %4621 = vmatmul.mubr.msk.bf16.gmra.mrb[24].mxu0 %vm2450_vm0, %v5676_v25  ;;  %3052 = vmatprep.mubr.bf16.mxu1 %v5677_v26 }
 0x1a8   : > { %3715 = vmatprep.mubr.bf16.mxu0 %v5732_v5 }
 0x1ae   : > { %3053 = vmatmul.mubr.bf16.gmra.mrb[28].mxu1 %v5679_v27 }
 0x1af   : > { %4622 = vmatmul.mubr.msk.bf16.gmra.mrb[28].mxu0 %vm2450_vm0, %v5680_v28  ;;  %3062 = vmatprep.mubr.bf16.mxu1 %v5681_v29 }
 0x1b0   : > { %3725 = vmatprep.mubr.bf16.mxu0 %v5732_v5 }
 0x1b6   : > { %3063 = vmatmul.mubr.bf16.gmra.mrb[32].mxu1 %v5683_v30 }
 0x1b7   : > { %4623 = vmatmul.mubr.msk.bf16.gmra.mrb[32].mxu0 %vm2450_vm0, %v5684_v31  ;;  %3072 = vmatprep.mubr.bf16.mxu1 %v5685_v32 }
 0x1b8   : > { %3735 = vmatprep.mubr.bf16.mxu0 %v5732_v5 }
 0x1be   : > { %3073 = vmatmul.mubr.bf16.gmra.mrb[36].mxu1 %v5687_v33 }
 0x1bf   : > { %4624 = vmatmul.mubr.msk.bf16.gmra.mrb[36].mxu0 %vm2450_vm0, %v5688_v34  ;;  %3082 = vmatprep.mubr.bf16.mxu1 %v5689_v35 }
 0x1c0   : > { %3745 = vmatprep.mubr.bf16.mxu0 %v5732_v5 }
 0x1c6   : > { %3083 = vmatmul.mubr.bf16.gmra.mrb[40].mxu1 %v5691_v36 }
 0x1c7   : > { %4625 = vmatmul.mubr.msk.bf16.gmra.mrb[40].mxu0 %vm2450_vm0, %v5692_v37  ;;  %3092 = vmatprep.mubr.bf16.mxu1 %v5693_v38 }
 0x1c8   : > { %3755 = vmatprep.mubr.bf16.mxu0 %v5732_v5 }
 0x1ce   : > { %3093 = vmatmul.mubr.bf16.gmra.mrb[44].mxu1 %v5695_v39 }
 0x1cf   : > { %4626 = vmatmul.mubr.msk.bf16.gmra.mrb[44].mxu0 %vm2450_vm0, %v5696_v40  ;;  %3102 = vmatprep.mubr.bf16.mxu1 %v5697_v41 }
 0x1d0   : > { %3765 = vmatprep.mubr.bf16.mxu0 %v5732_v5 }
 0x1d6   : > { %3103 = vmatmul.mubr.bf16.gmra.mrb[48].mxu1 %v5699_v42 }
 0x1d7   : > { %4627 = vmatmul.mubr.msk.bf16.gmra.mrb[48].mxu0 %vm2450_vm0, %v5700_v43  ;;  %3112 = vmatprep.mubr.bf16.mxu1 %v5701_v44 }
 0x1d8   : > { %3775 = vmatprep.mubr.bf16.mxu0 %v5732_v5 }
 0x1de   : > { %3113 = vmatmul.mubr.bf16.gmra.mrb[52].mxu1 %v5703_v45 }
 0x1df   : > { %4628 = vmatmul.mubr.msk.bf16.gmra.mrb[52].mxu0 %vm2450_vm0, %v5704_v46  ;;  %3122 = vmatprep.mubr.bf16.mxu1 %v5705_v47 }
 0x1e0   : > { %3785 = vmatprep.mubr.bf16.mxu0 %v5732_v5 }
 0x1e6   : > { %3123 = vmatmul.mubr.bf16.gmra.mrb[56].mxu1 %v5707_v48 }
 0x1e7   : > { %4629 = vmatmul.mubr.msk.bf16.gmra.mrb[56].mxu0 %vm2450_vm0, %v5708_v49  ;;  %3132 = vmatprep.mubr.bf16.mxu1 %v5709_v50 }
 0x1e8   : > { %3795 = vmatprep.mubr.bf16.mxu0 %v5732_v5 }
 0x1ee   : > { %3133 = vmatmul.mubr.bf16.gmra.mrb[60].mxu1 %v5711_v51 }
 0x1ef   : > { %4630 = vmatmul.mubr.msk.bf16.gmra.mrb[60].mxu0 %vm2450_vm0, %v5712_v52  ;;  %3142 = vmatprep.mubr.bf16.mxu1 %v5713_v53 }
 0x1f0   : > { %3805 = vmatprep.mubr.bf16.mxu0 %v5732_v5 }
 0x1f6   : > { %3143 = vmatmul.mubr.bf16.gmra.mrb[64].mxu1 %v5715_v54 }
 0x1f7   : > { %4631 = vmatmul.mubr.msk.bf16.gmra.mrb[64].mxu0 %vm2450_vm0, %v5716_v55  ;;  %3152 = vmatprep.mubr.bf16.mxu1 %v5717_v56 }
 0x1f8   : > { %3815 = vmatprep.mubr.bf16.mxu0 %v5732_v5 }
 0x1fe   : > { %3153 = vmatmul.mubr.bf16.gmra.mrb[68].mxu1 %v5719_v58 }
 0x1ff   : > { %4632 = vmatmul.mubr.msk.bf16.gmra.mrb[68].mxu0 %vm2450_vm0, %v5720_v59  ;;  %3162 = vmatprep.mubr.bf16.mxu1 %v4441_v60 }
 0x200   : > { %3825 = vmatprep.mubr.bf16.mxu0 %v5732_v5 }
 0x206   : > { %3163 = vmatmul.mubr.bf16.gmra.mrb[72].mxu1 %v4440_v61 }
 0x207   : > { %4633 = vmatmul.mubr.msk.bf16.gmra.mrb[72].mxu0 %vm2450_vm0, %v5723_v62 }
 0x249   : > { %v2984_v7 = vpop.f32.mrb[0].mxu1 }
 0x24a   : > { %v3647_v5 = vpop.f32.mrb[0].mxu0  ;;  %v4711_v8 = vadd.f32 %v2984_v7, %v6520_v4  ;;  %v2986_v9 = vpop.f32.mrb[1].mxu1 }
 0x24b   : > { %v3649_v10 = vpop.f32.mrb[1].mxu0  ;;  %v4713_v11 = vadd.f32 %v2986_v9, %v6522_v6  ;;  %v2988_v12 = vpop.f32.mrb[2].mxu1 }
 0x24c   : > { %v3651_v13 = vpop.f32.mrb[2].mxu0  ;;  %v4712_v14 = vadd.f32 %v4711_v8, %v3647_v5  ;;  %v4715_v15 = vadd.f32 %v2988_v12, %v6520_v4  ;;  %v2990_v16 = vpop.f32.mrb[3].mxu1 }
 0x24d   : > { %v3653_v17 = vpop.f32.mrb[3].mxu0  ;;  %v4714_v18 = vadd.f32 %v4713_v11, %v3649_v10  ;;  %v4717_v19 = vadd.f32 %v2990_v16, %v6522_v6 }
 0x24e   : > { %v3834_v20 = vmax.f32 %v4712_v14, 0.0  ;;  %v4716_v21 = vadd.f32 %v4715_v15, %v3651_v13 }
 0x24f   : > { %v3835_v22 = vmax.f32 %v4714_v18, 0.0  ;;  %v4718_v23 = vadd.f32 %v4717_v19, %v3653_v17 }
 0x250   : > { %v3836_v25 = vmax.f32 %v4716_v21, 0.0 }
 0x251   : > { %v4674_v26 = vpack.c.bf16 %v3835_v22, %v3834_v20  ;;  %v3837_v27 = vmax.f32 %v4718_v23, 0.0  ;;  %v2994_v28 = vpop.f32.mrb[4].mxu1 }
 0x252   : > { %v3657_v29 = vpop.f32.mrb[4].mxu0  ;;  %v4719_v30 = vadd.f32 %v2994_v28, %v6520_v4  ;;  %v2996_v31 = vpop.f32.mrb[5].mxu1 }
 0x253   : > { %v3659_v32 = vpop.f32.mrb[5].mxu0  ;;  %4135 = vst.msk [vmem:[%s6532_s18] sm:$0xff] %vm6534_vm3, %v4674_v26  ;;  %v4675_v33 = vpack.c.bf16 %v3837_v27, %v3836_v25  ;;  %v4721_v34 = vadd.f32 %v2996_v31, %v6522_v6  ;;  %v2998_v35 = vpop.f32.mrb[6].mxu1 }
 0x254   : > { %v3661_v36 = vpop.f32.mrb[6].mxu0  ;;  %v4720_v37 = vadd.f32 %v4719_v30, %v3657_v29  ;;  %v4723_v38 = vadd.f32 %v2998_v35, %v6520_v4  ;;  %v3000_v39 = vpop.f32.mrb[7].mxu1 }
 0x255   : > { %v3663_v40 = vpop.f32.mrb[7].mxu0  ;;  %4136 = vst.msk [vmem:[%s6532_s18 + $0x8] sm:$0xff] %vm6534_vm3, %v4675_v33  ;;  %v4722_v41 = vadd.f32 %v4721_v34, %v3659_v32  ;;  %v4725_v42 = vadd.f32 %v3000_v39, %v6522_v6 }
 0x256   : > { %v3838_v43 = vmax.f32 %v4720_v37, 0.0  ;;  %v4724_v44 = vadd.f32 %v4723_v38, %v3661_v36 }
 0x257   : > { %v3839_v45 = vmax.f32 %v4722_v41, 0.0  ;;  %v4726_v46 = vadd.f32 %v4725_v42, %v3663_v40 }
 0x258   : > { %v3840_v47 = vmax.f32 %v4724_v44, 0.0 }
 0x259   : > { %v4676_v48 = vpack.c.bf16 %v3839_v45, %v3838_v43  ;;  %v3841_v49 = vmax.f32 %v4726_v46, 0.0  ;;  %v3004_v50 = vpop.f32.mrb[8].mxu1 }
 0x25a   : > { %v3667_v51 = vpop.f32.mrb[8].mxu0  ;;  %v4727_v52 = vadd.f32 %v3004_v50, %v6520_v4  ;;  %v3006_v53 = vpop.f32.mrb[9].mxu1 }
 0x25b   : > { %v3669_v54 = vpop.f32.mrb[9].mxu0  ;;  %4137 = vst.msk [vmem:[%s6532_s18 + $0x10] sm:$0xff] %vm6534_vm3, %v4676_v48  ;;  %v4677_v55 = vpack.c.bf16 %v3841_v49, %v3840_v47  ;;  %v4729_v56 = vadd.f32 %v3006_v53, %v6522_v6  ;;  %v3008_v57 = vpop.f32.mrb[10].mxu1 }
 0x25c   : > { %v3671_v58 = vpop.f32.mrb[10].mxu0  ;;  %v4728_v59 = vadd.f32 %v4727_v52, %v3667_v51  ;;  %v4731_v60 = vadd.f32 %v3008_v57, %v6520_v4  ;;  %v3010_v61 = vpop.f32.mrb[11].mxu1 }
 0x25d   : > { %v3673_v62 = vpop.f32.mrb[11].mxu0  ;;  %4138 = vst.msk [vmem:[%s6532_s18 + $0x18] sm:$0xff] %vm6534_vm3, %v4677_v55  ;;  %v4730_v63 = vadd.f32 %v4729_v56, %v3669_v54  ;;  %v4733_v0 = vadd.f32 %v3010_v61, %v6522_v6 }
 0x25e   : > { %v3842_v1 = vmax.f32 %v4728_v59, 0.0  ;;  %v4732_v2 = vadd.f32 %v4731_v60, %v3671_v58 }
 0x25f   : > { %v3843_v3 = vmax.f32 %v4730_v63, 0.0  ;;  %v4734_v7 = vadd.f32 %v4733_v0, %v3673_v62 }
 0x260   : > { %v3844_v5 = vmax.f32 %v4732_v2, 0.0 }
 0x261   : > { %v4678_v8 = vpack.c.bf16 %v3843_v3, %v3842_v1  ;;  %v3845_v9 = vmax.f32 %v4734_v7, 0.0  ;;  %v3014_v10 = vpop.f32.mrb[12].mxu1 }
 0x262   : > { %v3677_v11 = vpop.f32.mrb[12].mxu0  ;;  %v4735_v12 = vadd.f32 %v3014_v10, %v6520_v4  ;;  %v3016_v13 = vpop.f32.mrb[13].mxu1 }
 0x263   : > { %v3679_v14 = vpop.f32.mrb[13].mxu0  ;;  %4139 = vst.msk [vmem:[%s6532_s18 + $0x20] sm:$0xff] %vm6534_vm3, %v4678_v8  ;;  %v4679_v15 = vpack.c.bf16 %v3845_v9, %v3844_v5  ;;  %v4737_v16 = vadd.f32 %v3016_v13, %v6522_v6  ;;  %v3018_v17 = vpop.f32.mrb[14].mxu1 }
 0x264   : > { %v3681_v18 = vpop.f32.mrb[14].mxu0  ;;  %v4736_v19 = vadd.f32 %v4735_v12, %v3677_v11  ;;  %v4739_v20 = vadd.f32 %v3018_v17, %v6520_v4  ;;  %v3020_v21 = vpop.f32.mrb[15].mxu1 }
 0x265   : > { %v3683_v22 = vpop.f32.mrb[15].mxu0  ;;  %4140 = vst.msk [vmem:[%s6532_s18 + $0x28] sm:$0xff] %vm6534_vm3, %v4679_v15  ;;  %v4738_v23 = vadd.f32 %v4737_v16, %v3679_v14  ;;  %v4741_v25 = vadd.f32 %v3020_v21, %v6522_v6 }
 0x266   : > { %v3846_v26 = vmax.f32 %v4736_v19, 0.0  ;;  %v4740_v27 = vadd.f32 %v4739_v20, %v3681_v18 }
 0x267   : > { %v3847_v28 = vmax.f32 %v4738_v23, 0.0  ;;  %v4742_v29 = vadd.f32 %v4741_v25, %v3683_v22 }
 0x268   : > { %v3848_v30 = vmax.f32 %v4740_v27, 0.0 }
 0x269   : > { %v4680_v31 = vpack.c.bf16 %v3847_v28, %v3846_v26  ;;  %v3849_v32 = vmax.f32 %v4742_v29, 0.0  ;;  %v3024_v33 = vpop.f32.mrb[16].mxu1 }
 0x26a   : > { %v3687_v34 = vpop.f32.mrb[16].mxu0  ;;  %v4743_v35 = vadd.f32 %v3024_v33, %v6520_v4  ;;  %v3026_v36 = vpop.f32.mrb[17].mxu1 }
 0x26b   : > { %v3689_v37 = vpop.f32.mrb[17].mxu0  ;;  %4141 = vst.msk [vmem:[%s6532_s18 + $0x30] sm:$0xff] %vm6534_vm3, %v4680_v31  ;;  %v4681_v38 = vpack.c.bf16 %v3849_v32, %v3848_v30  ;;  %v4745_v39 = vadd.f32 %v3026_v36, %v6522_v6  ;;  %v3028_v40 = vpop.f32.mrb[18].mxu1 }
 0x26c   : > { %v3691_v41 = vpop.f32.mrb[18].mxu0  ;;  %v4744_v42 = vadd.f32 %v4743_v35, %v3687_v34  ;;  %v4747_v43 = vadd.f32 %v3028_v40, %v6520_v4  ;;  %v3030_v44 = vpop.f32.mrb[19].mxu1 }
 0x26d   : > { %v3693_v45 = vpop.f32.mrb[19].mxu0  ;;  %4142 = vst.msk [vmem:[%s6532_s18 + $0x38] sm:$0xff] %vm6534_vm3, %v4681_v38  ;;  %v4746_v46 = vadd.f32 %v4745_v39, %v3689_v37  ;;  %v4749_v47 = vadd.f32 %v3030_v44, %v6522_v6 }
 0x26e   : > { %v3850_v48 = vmax.f32 %v4744_v42, 0.0  ;;  %v4748_v49 = vadd.f32 %v4747_v43, %v3691_v41 }
 0x26f   : > { %v3851_v50 = vmax.f32 %v4746_v46, 0.0  ;;  %v4750_v51 = vadd.f32 %v4749_v47, %v3693_v45 }
 0x270   : > { %v3852_v52 = vmax.f32 %v4748_v49, 0.0 }
 0x271   : > { %v4682_v53 = vpack.c.bf16 %v3851_v50, %v3850_v48  ;;  %v3853_v54 = vmax.f32 %v4750_v51, 0.0  ;;  %v3034_v55 = vpop.f32.mrb[20].mxu1 }
 0x272   : > { %v3697_v56 = vpop.f32.mrb[20].mxu0  ;;  %v4751_v57 = vadd.f32 %v3034_v55, %v6520_v4  ;;  %v3036_v58 = vpop.f32.mrb[21].mxu1 }
 0x273   : > { %v3699_v59 = vpop.f32.mrb[21].mxu0  ;;  %4143 = vst.msk [vmem:[%s6532_s18 + $0x40] sm:$0xff] %vm6534_vm3, %v4682_v53  ;;  %v4683_v60 = vpack.c.bf16 %v3853_v54, %v3852_v52  ;;  %v4753_v61 = vadd.f32 %v3036_v58, %v6522_v6  ;;  %v3038_v62 = vpop.f32.mrb[22].mxu1 }
 0x274   : > { %v3701_v63 = vpop.f32.mrb[22].mxu0  ;;  %v4752_v0 = vadd.f32 %v4751_v57, %v3697_v56  ;;  %v4755_v1 = vadd.f32 %v3038_v62, %v6520_v4  ;;  %v3040_v2 = vpop.f32.mrb[23].mxu1 }
 0x275   : > { %v3703_v3 = vpop.f32.mrb[23].mxu0  ;;  %4144 = vst.msk [vmem:[%s6532_s18 + $0x48] sm:$0xff] %vm6534_vm3, %v4683_v60  ;;  %v4754_v7 = vadd.f32 %v4753_v61, %v3699_v59  ;;  %v4757_v5 = vadd.f32 %v3040_v2, %v6522_v6 }
 0x276   : > { %v3854_v8 = vmax.f32 %v4752_v0, 0.0  ;;  %v4756_v9 = vadd.f32 %v4755_v1, %v3701_v63 }
 0x277   : > { %v3855_v10 = vmax.f32 %v4754_v7, 0.0  ;;  %v4758_v11 = vadd.f32 %v4757_v5, %v3703_v3 }
 0x278   : > { %v3856_v12 = vmax.f32 %v4756_v9, 0.0 }
 0x279   : > { %v4684_v13 = vpack.c.bf16 %v3855_v10, %v3854_v8  ;;  %v3857_v14 = vmax.f32 %v4758_v11, 0.0  ;;  %v3044_v15 = vpop.f32.mrb[24].mxu1 }
 0x27a   : > { %v3707_v16 = vpop.f32.mrb[24].mxu0  ;;  %v4759_v17 = vadd.f32 %v3044_v15, %v6520_v4  ;;  %v3046_v18 = vpop.f32.mrb[25].mxu1 }
 0x27b   : > { %v3709_v19 = vpop.f32.mrb[25].mxu0  ;;  %4145 = vst.msk [vmem:[%s6532_s18 + $0x50] sm:$0xff] %vm6534_vm3, %v4684_v13  ;;  %v4685_v20 = vpack.c.bf16 %v3857_v14, %v3856_v12  ;;  %v4761_v21 = vadd.f32 %v3046_v18, %v6522_v6  ;;  %v3048_v22 = vpop.f32.mrb[26].mxu1 }
 0x27c   : > { %v3711_v23 = vpop.f32.mrb[26].mxu0  ;;  %v4760_v25 = vadd.f32 %v4759_v17, %v3707_v16  ;;  %v4763_v26 = vadd.f32 %v3048_v22, %v6520_v4  ;;  %v3050_v27 = vpop.f32.mrb[27].mxu1 }
 0x27d   : > { %v3713_v28 = vpop.f32.mrb[27].mxu0  ;;  %4146 = vst.msk [vmem:[%s6532_s18 + $0x58] sm:$0xff] %vm6534_vm3, %v4685_v20  ;;  %v4762_v29 = vadd.f32 %v4761_v21, %v3709_v19  ;;  %v4765_v30 = vadd.f32 %v3050_v27, %v6522_v6 }
 0x27e   : > { %v3858_v31 = vmax.f32 %v4760_v25, 0.0  ;;  %v4764_v32 = vadd.f32 %v4763_v26, %v3711_v23 }
 0x27f   : > { %v3859_v33 = vmax.f32 %v4762_v29, 0.0  ;;  %v4766_v34 = vadd.f32 %v4765_v30, %v3713_v28 }
 0x280   : > { %v3860_v35 = vmax.f32 %v4764_v32, 0.0 }
 0x281   : > { %v4686_v36 = vpack.c.bf16 %v3859_v33, %v3858_v31  ;;  %v3861_v37 = vmax.f32 %v4766_v34, 0.0  ;;  %v3054_v38 = vpop.f32.mrb[28].mxu1 }
 0x282   : > { %v3717_v39 = vpop.f32.mrb[28].mxu0  ;;  %v4767_v40 = vadd.f32 %v3054_v38, %v6520_v4  ;;  %v3056_v41 = vpop.f32.mrb[29].mxu1 }
 0x283   : > { %v3719_v42 = vpop.f32.mrb[29].mxu0  ;;  %4147 = vst.msk [vmem:[%s6532_s18 + $0x60] sm:$0xff] %vm6534_vm3, %v4686_v36  ;;  %v4687_v43 = vpack.c.bf16 %v3861_v37, %v3860_v35  ;;  %v4769_v44 = vadd.f32 %v3056_v41, %v6522_v6  ;;  %v3058_v45 = vpop.f32.mrb[30].mxu1 }
 0x284   : > { %v3721_v46 = vpop.f32.mrb[30].mxu0  ;;  %v4768_v47 = vadd.f32 %v4767_v40, %v3717_v39  ;;  %v4771_v48 = vadd.f32 %v3058_v45, %v6520_v4  ;;  %v3060_v49 = vpop.f32.mrb[31].mxu1 }
 0x285   : > { %v3723_v50 = vpop.f32.mrb[31].mxu0  ;;  %4148 = vst.msk [vmem:[%s6532_s18 + $0x68] sm:$0xff] %vm6534_vm3, %v4687_v43  ;;  %v4770_v51 = vadd.f32 %v4769_v44, %v3719_v42  ;;  %v4773_v52 = vadd.f32 %v3060_v49, %v6522_v6 }
 0x286   : > { %v3862_v53 = vmax.f32 %v4768_v47, 0.0  ;;  %v4772_v54 = vadd.f32 %v4771_v48, %v3721_v46 }
 0x287   : > { %v3863_v55 = vmax.f32 %v4770_v51, 0.0  ;;  %v4774_v56 = vadd.f32 %v4773_v52, %v3723_v50 }
 0x288   : > { %v3864_v57 = vmax.f32 %v4772_v54, 0.0 }
 0x289   : > { %v4688_v58 = vpack.c.bf16 %v3863_v55, %v3862_v53  ;;  %v3865_v59 = vmax.f32 %v4774_v56, 0.0  ;;  %v3064_v60 = vpop.f32.mrb[32].mxu1 }
 0x28a   : > { %v3727_v61 = vpop.f32.mrb[32].mxu0  ;;  %v4775_v62 = vadd.f32 %v3064_v60, %v6520_v4  ;;  %v3066_v63 = vpop.f32.mrb[33].mxu1 }
 0x28b   : > { %v3729_v0 = vpop.f32.mrb[33].mxu0  ;;  %4149 = vst.msk [vmem:[%s6532_s18 + $0x70] sm:$0xff] %vm6534_vm3, %v4688_v58  ;;  %v4689_v1 = vpack.c.bf16 %v3865_v59, %v3864_v57  ;;  %v4777_v2 = vadd.f32 %v3066_v63, %v6522_v6  ;;  %v3068_v3 = vpop.f32.mrb[34].mxu1 }
 0x28c   : > { %v3731_v7 = vpop.f32.mrb[34].mxu0  ;;  %v4776_v5 = vadd.f32 %v4775_v62, %v3727_v61  ;;  %v4779_v8 = vadd.f32 %v3068_v3, %v6520_v4  ;;  %v3070_v9 = vpop.f32.mrb[35].mxu1 }
 0x28d   : > { %v3733_v10 = vpop.f32.mrb[35].mxu0  ;;  %4150 = vst.msk [vmem:[%s6532_s18 + $0x78] sm:$0xff] %vm6534_vm3, %v4689_v1  ;;  %v4778_v11 = vadd.f32 %v4777_v2, %v3729_v0  ;;  %v4781_v12 = vadd.f32 %v3070_v9, %v6522_v6 }
 0x28e   : > { %v3866_v13 = vmax.f32 %v4776_v5, 0.0  ;;  %v4780_v14 = vadd.f32 %v4779_v8, %v3731_v7 }
 0x28f   : > { %v3867_v15 = vmax.f32 %v4778_v11, 0.0  ;;  %v4782_v16 = vadd.f32 %v4781_v12, %v3733_v10 }
 0x290   : > { %v3868_v17 = vmax.f32 %v4780_v14, 0.0 }
 0x291   : > { %v4690_v18 = vpack.c.bf16 %v3867_v15, %v3866_v13  ;;  %v3869_v19 = vmax.f32 %v4782_v16, 0.0  ;;  %v3074_v20 = vpop.f32.mrb[36].mxu1 }
 0x292   : > { %v3737_v21 = vpop.f32.mrb[36].mxu0  ;;  %v4783_v22 = vadd.f32 %v3074_v20, %v6520_v4  ;;  %v3076_v23 = vpop.f32.mrb[37].mxu1 }
 0x293   : > { %v3739_v25 = vpop.f32.mrb[37].mxu0  ;;  %4151 = vst.msk [vmem:[%s6532_s18 + $0x80] sm:$0xff] %vm6534_vm3, %v4690_v18  ;;  %v4691_v26 = vpack.c.bf16 %v3869_v19, %v3868_v17  ;;  %v4785_v27 = vadd.f32 %v3076_v23, %v6522_v6  ;;  %v3078_v28 = vpop.f32.mrb[38].mxu1 }
 0x294   : > { %v3741_v29 = vpop.f32.mrb[38].mxu0  ;;  %v4784_v30 = vadd.f32 %v4783_v22, %v3737_v21  ;;  %v4787_v31 = vadd.f32 %v3078_v28, %v6520_v4  ;;  %v3080_v32 = vpop.f32.mrb[39].mxu1 }
 0x295   : > { %v3743_v33 = vpop.f32.mrb[39].mxu0  ;;  %4152 = vst.msk [vmem:[%s6532_s18 + $0x88] sm:$0xff] %vm6534_vm3, %v4691_v26  ;;  %v4786_v34 = vadd.f32 %v4785_v27, %v3739_v25  ;;  %v4789_v35 = vadd.f32 %v3080_v32, %v6522_v6 }
 0x296   : > { %v3870_v36 = vmax.f32 %v4784_v30, 0.0  ;;  %v4788_v37 = vadd.f32 %v4787_v31, %v3741_v29 }
 0x297   : > { %v3871_v38 = vmax.f32 %v4786_v34, 0.0  ;;  %v4790_v39 = vadd.f32 %v4789_v35, %v3743_v33 }
 0x298   : > { %v3872_v40 = vmax.f32 %v4788_v37, 0.0 }
 0x299   : > { %v4692_v41 = vpack.c.bf16 %v3871_v38, %v3870_v36  ;;  %v3873_v42 = vmax.f32 %v4790_v39, 0.0  ;;  %v3084_v43 = vpop.f32.mrb[40].mxu1 }
 0x29a   : > { %v3747_v44 = vpop.f32.mrb[40].mxu0  ;;  %v4791_v45 = vadd.f32 %v3084_v43, %v6520_v4  ;;  %v3086_v46 = vpop.f32.mrb[41].mxu1 }
 0x29b   : > { %v3749_v47 = vpop.f32.mrb[41].mxu0  ;;  %4153 = vst.msk [vmem:[%s6532_s18 + $0x90] sm:$0xff] %vm6534_vm3, %v4692_v41  ;;  %v4693_v48 = vpack.c.bf16 %v3873_v42, %v3872_v40  ;;  %v4793_v49 = vadd.f32 %v3086_v46, %v6522_v6  ;;  %v3088_v50 = vpop.f32.mrb[42].mxu1 }
 0x29c   : > { %v3751_v51 = vpop.f32.mrb[42].mxu0  ;;  %v4792_v52 = vadd.f32 %v4791_v45, %v3747_v44  ;;  %v4795_v53 = vadd.f32 %v3088_v50, %v6520_v4  ;;  %v3090_v54 = vpop.f32.mrb[43].mxu1 }
 0x29d   : > { %v3753_v55 = vpop.f32.mrb[43].mxu0  ;;  %4154 = vst.msk [vmem:[%s6532_s18 + $0x98] sm:$0xff] %vm6534_vm3, %v4693_v48  ;;  %v4794_v56 = vadd.f32 %v4793_v49, %v3749_v47  ;;  %v4797_v57 = vadd.f32 %v3090_v54, %v6522_v6 }
 0x29e   : > { %v3874_v58 = vmax.f32 %v4792_v52, 0.0  ;;  %v4796_v59 = vadd.f32 %v4795_v53, %v3751_v51 }
 0x29f   : > { %v3875_v60 = vmax.f32 %v4794_v56, 0.0  ;;  %v4798_v61 = vadd.f32 %v4797_v57, %v3753_v55 }
 0x2a0   : > { %v3876_v62 = vmax.f32 %v4796_v59, 0.0 }
 0x2a1   : > { %v4694_v63 = vpack.c.bf16 %v3875_v60, %v3874_v58  ;;  %v3877_v0 = vmax.f32 %v4798_v61, 0.0  ;;  %v3094_v1 = vpop.f32.mrb[44].mxu1 }
 0x2a2   : > { %v3757_v2 = vpop.f32.mrb[44].mxu0  ;;  %v4799_v3 = vadd.f32 %v3094_v1, %v6520_v4  ;;  %v3096_v7 = vpop.f32.mrb[45].mxu1 }
 0x2a3   : > { %v3759_v5 = vpop.f32.mrb[45].mxu0  ;;  %4155 = vst.msk [vmem:[%s6532_s18 + $0xa0] sm:$0xff] %vm6534_vm3, %v4694_v63  ;;  %v4695_v8 = vpack.c.bf16 %v3877_v0, %v3876_v62  ;;  %v4801_v9 = vadd.f32 %v3096_v7, %v6522_v6  ;;  %v3098_v10 = vpop.f32.mrb[46].mxu1 }
 0x2a4   : > { %v3761_v11 = vpop.f32.mrb[46].mxu0  ;;  %v4800_v12 = vadd.f32 %v4799_v3, %v3757_v2  ;;  %v4803_v13 = vadd.f32 %v3098_v10, %v6520_v4  ;;  %v3100_v14 = vpop.f32.mrb[47].mxu1 }
 0x2a5   : > { %v3763_v15 = vpop.f32.mrb[47].mxu0  ;;  %4156 = vst.msk [vmem:[%s6532_s18 + $0xa8] sm:$0xff] %vm6534_vm3, %v4695_v8  ;;  %v4802_v16 = vadd.f32 %v4801_v9, %v3759_v5  ;;  %v4805_v17 = vadd.f32 %v3100_v14, %v6522_v6 }
 0x2a6   : > { %v3878_v18 = vmax.f32 %v4800_v12, 0.0  ;;  %v4804_v19 = vadd.f32 %v4803_v13, %v3761_v11 }
 0x2a7   : > { %v3879_v20 = vmax.f32 %v4802_v16, 0.0  ;;  %v4806_v21 = vadd.f32 %v4805_v17, %v3763_v15 }
 0x2a8   : > { %v3880_v22 = vmax.f32 %v4804_v19, 0.0 }
 0x2a9   : > { %v4696_v23 = vpack.c.bf16 %v3879_v20, %v3878_v18  ;;  %v3881_v25 = vmax.f32 %v4806_v21, 0.0  ;;  %v3104_v26 = vpop.f32.mrb[48].mxu1 }
 0x2aa   : > { %v3767_v27 = vpop.f32.mrb[48].mxu0  ;;  %v4807_v28 = vadd.f32 %v3104_v26, %v6520_v4  ;;  %v3106_v29 = vpop.f32.mrb[49].mxu1 }
 0x2ab   : > { %v3769_v30 = vpop.f32.mrb[49].mxu0  ;;  %4157 = vst.msk [vmem:[%s6532_s18 + $0xb0] sm:$0xff] %vm6534_vm3, %v4696_v23  ;;  %v4697_v31 = vpack.c.bf16 %v3881_v25, %v3880_v22  ;;  %v4809_v32 = vadd.f32 %v3106_v29, %v6522_v6  ;;  %v3108_v33 = vpop.f32.mrb[50].mxu1 }
 0x2ac   : > { %v3771_v34 = vpop.f32.mrb[50].mxu0  ;;  %v4808_v35 = vadd.f32 %v4807_v28, %v3767_v27  ;;  %v4811_v36 = vadd.f32 %v3108_v33, %v6520_v4  ;;  %v3110_v37 = vpop.f32.mrb[51].mxu1 }
 0x2ad   : > { %v3773_v38 = vpop.f32.mrb[51].mxu0  ;;  %4158 = vst.msk [vmem:[%s6532_s18 + $0xb8] sm:$0xff] %vm6534_vm3, %v4697_v31  ;;  %v4810_v39 = vadd.f32 %v4809_v32, %v3769_v30  ;;  %v4813_v40 = vadd.f32 %v3110_v37, %v6522_v6 }
 0x2ae   : > { %v3882_v41 = vmax.f32 %v4808_v35, 0.0  ;;  %v4812_v42 = vadd.f32 %v4811_v36, %v3771_v34 }
 0x2af   : > { %v3883_v43 = vmax.f32 %v4810_v39, 0.0  ;;  %v4814_v44 = vadd.f32 %v4813_v40, %v3773_v38 }
 0x2b0   : > { %v3884_v45 = vmax.f32 %v4812_v42, 0.0 }
 0x2b1   : > { %v4698_v46 = vpack.c.bf16 %v3883_v43, %v3882_v41  ;;  %v3885_v47 = vmax.f32 %v4814_v44, 0.0  ;;  %v3114_v48 = vpop.f32.mrb[52].mxu1 }
 0x2b2   : > { %v3777_v49 = vpop.f32.mrb[52].mxu0  ;;  %v4815_v50 = vadd.f32 %v3114_v48, %v6520_v4  ;;  %v3116_v51 = vpop.f32.mrb[53].mxu1 }
 0x2b3   : > { %v3779_v52 = vpop.f32.mrb[53].mxu0  ;;  %4159 = vst.msk [vmem:[%s6532_s18 + $0xc0] sm:$0xff] %vm6534_vm3, %v4698_v46  ;;  %v4699_v53 = vpack.c.bf16 %v3885_v47, %v3884_v45  ;;  %v4817_v54 = vadd.f32 %v3116_v51, %v6522_v6  ;;  %v3118_v55 = vpop.f32.mrb[54].mxu1 }
 0x2b4   : > { %v3781_v56 = vpop.f32.mrb[54].mxu0  ;;  %v4816_v57 = vadd.f32 %v4815_v50, %v3777_v49  ;;  %v4819_v58 = vadd.f32 %v3118_v55, %v6520_v4  ;;  %v3120_v59 = vpop.f32.mrb[55].mxu1 }
 0x2b5   : > { %v3783_v60 = vpop.f32.mrb[55].mxu0  ;;  %4160 = vst.msk [vmem:[%s6532_s18 + $0xc8] sm:$0xff] %vm6534_vm3, %v4699_v53  ;;  %v4818_v61 = vadd.f32 %v4817_v54, %v3779_v52  ;;  %v4821_v62 = vadd.f32 %v3120_v59, %v6522_v6 }
 0x2b6   : > { %v3886_v63 = vmax.f32 %v4816_v57, 0.0  ;;  %v4820_v0 = vadd.f32 %v4819_v58, %v3781_v56 }
 0x2b7   : > { %v3887_v1 = vmax.f32 %v4818_v61, 0.0  ;;  %v4822_v2 = vadd.f32 %v4821_v62, %v3783_v60 }
 0x2b8   : > { %v3888_v3 = vmax.f32 %v4820_v0, 0.0 }
 0x2b9   : > { %v4700_v7 = vpack.c.bf16 %v3887_v1, %v3886_v63  ;;  %v3889_v5 = vmax.f32 %v4822_v2, 0.0  ;;  %v3124_v8 = vpop.f32.mrb[56].mxu1 }
 0x2ba   : > { %v3787_v9 = vpop.f32.mrb[56].mxu0  ;;  %v4823_v10 = vadd.f32 %v3124_v8, %v6520_v4  ;;  %v3126_v11 = vpop.f32.mrb[57].mxu1 }
 0x2bb   : > { %v3789_v12 = vpop.f32.mrb[57].mxu0  ;;  %4161 = vst.msk [vmem:[%s6532_s18 + $0xd0] sm:$0xff] %vm6534_vm3, %v4700_v7  ;;  %v4701_v13 = vpack.c.bf16 %v3889_v5, %v3888_v3  ;;  %v4825_v14 = vadd.f32 %v3126_v11, %v6522_v6  ;;  %v3128_v15 = vpop.f32.mrb[58].mxu1 }
 0x2bc   : > { %v3791_v16 = vpop.f32.mrb[58].mxu0  ;;  %v4824_v17 = vadd.f32 %v4823_v10, %v3787_v9  ;;  %v4827_v18 = vadd.f32 %v3128_v15, %v6520_v4  ;;  %v3130_v19 = vpop.f32.mrb[59].mxu1 }
 0x2bd   : > { %v3793_v20 = vpop.f32.mrb[59].mxu0  ;;  %4162 = vst.msk [vmem:[%s6532_s18 + $0xd8] sm:$0xff] %vm6534_vm3, %v4701_v13  ;;  %v4826_v21 = vadd.f32 %v4825_v14, %v3789_v12  ;;  %v4829_v22 = vadd.f32 %v3130_v19, %v6522_v6 }
 0x2be   : > { %v3890_v23 = vmax.f32 %v4824_v17, 0.0  ;;  %v4828_v25 = vadd.f32 %v4827_v18, %v3791_v16 }
 0x2bf   : > { %v3891_v26 = vmax.f32 %v4826_v21, 0.0  ;;  %v4830_v27 = vadd.f32 %v4829_v22, %v3793_v20 }
 0x2c0   : > { %v3892_v28 = vmax.f32 %v4828_v25, 0.0 }
 0x2c1   : > { %v4702_v29 = vpack.c.bf16 %v3891_v26, %v3890_v23  ;;  %v3893_v30 = vmax.f32 %v4830_v27, 0.0  ;;  %v3134_v31 = vpop.f32.mrb[60].mxu1 }
 0x2c2   : > { %v3797_v32 = vpop.f32.mrb[60].mxu0  ;;  %v4831_v33 = vadd.f32 %v3134_v31, %v6520_v4  ;;  %v3136_v34 = vpop.f32.mrb[61].mxu1 }
 0x2c3   : > { %v3799_v35 = vpop.f32.mrb[61].mxu0  ;;  %4163 = vst.msk [vmem:[%s6532_s18 + $0xe0] sm:$0xff] %vm6534_vm3, %v4702_v29  ;;  %v4703_v36 = vpack.c.bf16 %v3893_v30, %v3892_v28  ;;  %v4833_v37 = vadd.f32 %v3136_v34, %v6522_v6  ;;  %v3138_v38 = vpop.f32.mrb[62].mxu1 }
 0x2c4   : > { %v3801_v39 = vpop.f32.mrb[62].mxu0  ;;  %v4832_v40 = vadd.f32 %v4831_v33, %v3797_v32  ;;  %v4835_v41 = vadd.f32 %v3138_v38, %v6520_v4  ;;  %v3140_v42 = vpop.f32.mrb[63].mxu1 }
 0x2c5   : > { %v3803_v43 = vpop.f32.mrb[63].mxu0  ;;  %4164 = vst.msk [vmem:[%s6532_s18 + $0xe8] sm:$0xff] %vm6534_vm3, %v4703_v36  ;;  %v4834_v44 = vadd.f32 %v4833_v37, %v3799_v35  ;;  %v4837_v45 = vadd.f32 %v3140_v42, %v6522_v6 }
 0x2c6   : > { %v3894_v46 = vmax.f32 %v4832_v40, 0.0  ;;  %v4836_v47 = vadd.f32 %v4835_v41, %v3801_v39 }
 0x2c7   : > { %v3895_v48 = vmax.f32 %v4834_v44, 0.0  ;;  %v4838_v49 = vadd.f32 %v4837_v45, %v3803_v43 }
 0x2c8   : > { %v3896_v50 = vmax.f32 %v4836_v47, 0.0 }
 0x2c9   : > { %v4704_v51 = vpack.c.bf16 %v3895_v48, %v3894_v46  ;;  %v3897_v52 = vmax.f32 %v4838_v49, 0.0  ;;  %v3144_v53 = vpop.f32.mrb[64].mxu1 }
 0x2ca   : > { %v3807_v54 = vpop.f32.mrb[64].mxu0  ;;  %v4839_v55 = vadd.f32 %v3144_v53, %v6520_v4  ;;  %v3146_v56 = vpop.f32.mrb[65].mxu1 }
 0x2cb   : > { %v3809_v57 = vpop.f32.mrb[65].mxu0  ;;  %4165 = vst.msk [vmem:[%s6532_s18 + $0xf0] sm:$0xff] %vm6534_vm3, %v4704_v51  ;;  %v4705_v58 = vpack.c.bf16 %v3897_v52, %v3896_v50  ;;  %v4841_v59 = vadd.f32 %v3146_v56, %v6522_v6  ;;  %v3148_v60 = vpop.f32.mrb[66].mxu1 }
 0x2cc   : > { %v3811_v61 = vpop.f32.mrb[66].mxu0  ;;  %v4840_v62 = vadd.f32 %v4839_v55, %v3807_v54  ;;  %v4843_v63 = vadd.f32 %v3148_v60, %v6520_v4  ;;  %v3150_v0 = vpop.f32.mrb[67].mxu1 }
 0x2cd   : > { %v3813_v1 = vpop.f32.mrb[67].mxu0  ;;  %4166 = vst.msk [vmem:[%s6532_s18 + $0xf8] sm:$0xff] %vm6534_vm3, %v4705_v58  ;;  %v4842_v2 = vadd.f32 %v4841_v59, %v3809_v57  ;;  %v4845_v3 = vadd.f32 %v3150_v0, %v6522_v6 }
 0x2ce   : > { %v3898_v7 = vmax.f32 %v4840_v62, 0.0  ;;  %v4844_v5 = vadd.f32 %v4843_v63, %v3811_v61 }
 0x2cf   : > { %v3899_v8 = vmax.f32 %v4842_v2, 0.0  ;;  %v4846_v9 = vadd.f32 %v4845_v3, %v3813_v1 }
 0x2d0   : > { %v3900_v10 = vmax.f32 %v4844_v5, 0.0 }
 0x2d1   : > { %v4706_v11 = vpack.c.bf16 %v3899_v8, %v3898_v7  ;;  %v3901_v12 = vmax.f32 %v4846_v9, 0.0  ;;  %v3154_v13 = vpop.f32.mrb[68].mxu1 }
 0x2d2   : > { %v3817_v14 = vpop.f32.mrb[68].mxu0  ;;  %v4847_v15 = vadd.f32 %v3154_v13, %v6520_v4  ;;  %v3156_v16 = vpop.f32.mrb[69].mxu1 }
 0x2d3   : > { %v3819_v17 = vpop.f32.mrb[69].mxu0  ;;  %4167 = vst.msk [vmem:[%s6532_s18 + $0x100] sm:$0xff] %vm6534_vm3, %v4706_v11  ;;  %v4707_v18 = vpack.c.bf16 %v3901_v12, %v3900_v10  ;;  %v4849_v19 = vadd.f32 %v3156_v16, %v6522_v6  ;;  %v3158_v20 = vpop.f32.mrb[70].mxu1 }
 0x2d4   : > { %v3821_v21 = vpop.f32.mrb[70].mxu0  ;;  %v4848_v22 = vadd.f32 %v4847_v15, %v3817_v14  ;;  %v4851_v23 = vadd.f32 %v3158_v20, %v6520_v4  ;;  %v3160_v25 = vpop.f32.mrb[71].mxu1 }
 0x2d5   : > { %v3823_v26 = vpop.f32.mrb[71].mxu0  ;;  %4168 = vst.msk [vmem:[%s6532_s18 + $0x108] sm:$0xff] %vm6534_vm3, %v4707_v18  ;;  %v4850_v27 = vadd.f32 %v4849_v19, %v3819_v17  ;;  %v4853_v28 = vadd.f32 %v3160_v25, %v6522_v6 }
 0x2d6   : > { %v3902_v29 = vmax.f32 %v4848_v22, 0.0  ;;  %v4852_v30 = vadd.f32 %v4851_v23, %v3821_v21 }
 0x2d7   : > { %v3903_v31 = vmax.f32 %v4850_v27, 0.0  ;;  %v4854_v32 = vadd.f32 %v4853_v28, %v3823_v26 }
 0x2d8   : > { %v3904_v33 = vmax.f32 %v4852_v30, 0.0 }
 0x2d9   : > { %v4708_v34 = vpack.c.bf16 %v3903_v31, %v3902_v29  ;;  %v3905_v35 = vmax.f32 %v4854_v32, 0.0  ;;  %v3164_v36 = vpop.f32.mrb[72].mxu1 }
 0x2da   : > { %v3827_v37 = vpop.f32.mrb[72].mxu0  ;;  %v4855_v38 = vadd.f32 %v3164_v36, %v6520_v4  ;;  %v3166_v39 = vpop.f32.mrb[73].mxu1 }
 0x2db   : > { %v3829_v40 = vpop.f32.mrb[73].mxu0  ;;  %4169 = vst.msk [vmem:[%s6532_s18 + $0x110] sm:$0xff] %vm6534_vm3, %v4708_v34  ;;  %v4709_v41 = vpack.c.bf16 %v3905_v35, %v3904_v33  ;;  %v4857_v42 = vadd.f32 %v3166_v39, %v6522_v6  ;;  %v3168_v43 = vpop.f32.mrb[74].mxu1 }
 0x2dc   : > { %v3831_v44 = vpop.f32.mrb[74].mxu0  ;;  %v4856_v45 = vadd.f32 %v4855_v38, %v3827_v37  ;;  %v3169_v46 = vpop.f32.mrb[75].mxu1 }
 0x2dd   : > { %v3832_v47 = vpop.f32.mrb[75].mxu0  ;;  %4170 = vst.msk [vmem:[%s6532_s18 + $0x118] sm:$0xff] %vm6534_vm3, %v4709_v41  ;;  %v4858_v48 = vadd.f32 %v4857_v42, %v3829_v40 }
 0x2de   : > { %v3906_v49 = vmax.f32 %v4856_v45, 0.0 }
 0x2df   : > { %v3907_v4 = vmax.f32 %v4858_v48, 0.0 }
 0x2e1   : > { %v4710_v50 = vpack.c.bf16 %v3907_v4, %v3906_v49 }
 0x2e3   : > { %4171 = vst.msk [vmem:[%s6532_s18 + $0x120] sm:$0xff] %vm6534_vm3, %v4710_v50 }
 0x2e4 PF: > { %s13_s12 = sadd.s32 1, %s5730_s12  }
 0x2e5   : > { %p10_p4 = scmp.ge.s32.totalorder %s13_s12, 4  }
 0x2e7   :  { %12 = sbr.rel (!%p10_p4) target bundleno = 1 (0x1), region = 62 }

// kernel: _lambda_.11
= control target key start
LH: loop header
LB: loop body
LE: loop exit
PB: predicated region body
PF: predicated region fallthrough
CT: control target
= control target key end

     0   :  { %s3304_s12 = smov 0   ;;  %s4098_s0 = inlined_call_operand.vmem [shape: bf16[128,1728], index: 0, kind: input, shape index: {}]   ;;  %s4099_s1 = inlined_call_operand.vmem [shape: bf16[1728,192], index: 1, kind: input, shape index: {}]   ;;  %s4100_s2 = inlined_call_operand.vmem [shape: f32[1,192], index: 2, kind: input, shape index: {}]   ;;  %s4101_s3 = inlined_call_operand.vmem [shape: f32[128,192], index: 3, kind: output, shape index: {}]  }
   0x1 LB: > { %s2434_s13 = sadd.s32 4294967295, %s3282_s12   ;;  %p2438_p0 = scmp.ge.s32.totalorder %s3282_s12, 1  ;;  %s3282_s12 = sphi %s3304_s12, %s13_s12  }
   0x2   : > { %p139_p1 = scmp.lt.s32.totalorder %s3282_s12, 3 }
   0x4   : > { %p140_p2 = pnand %p2438_p0, %p139_p1 }
   0x5   : > { %v2868_v0 = vld [vmem:[%s4099_s1 + $0x4] ss:$8 sps:$4 sm:$0xff] (!%p140_p2)   ;;  %v2872_v2 = vld [vmem:[%s4099_s1] ss:$8 sps:$4 sm:$0xff] (!%p140_p2)   ;;  %v2874_v4 = vld [vmem:[%s4099_s1 + $0x14] ss:$8 sps:$4 sm:$0xff] (!%p140_p2)  }
   0x6   : > { %143 = sbr.rel (%p140_p2) target bundleno = 475 (0x1db), region = 32  ;;  %v2870_v1 = vld [vmem:[%s4099_s1 + $0x304] ss:$8 sps:$4 sm:$0xff] (!%p140_p2)   ;;  %1833 = vmatprep.subr.bf16.mxu1 (!%p140_p2), %v2868_v0  ;;  %v2873_v3 = vld [vmem:[%s4099_s1 + $0x300] ss:$8 sps:$4 sm:$0xff] (!%p140_p2)   ;;  %s2439_s24 = sshll.u32 (!%p140_p2), %s2434_s13, 3 }
   0x7   : > { %2052 = vmatprep.subr.bf16.mxu0 (!%p140_p2), %v2870_v1  ;;  %1834 = vmatpush1.bf16.msra.mxu1 (!%p140_p2), %v2872_v2  ;;  %v2876_v5 = vld [vmem:[%s4099_s1 + $0x314] ss:$8 sps:$4 sm:$0xff] (!%p140_p2)   ;;  %v2878_v6 = vld [vmem:[%s4099_s1 + $0x10] ss:$8 sps:$4 sm:$0xff] (!%p140_p2)   ;;  %v2880_v8 = vld [vmem:[%s4099_s1 + $0x24] ss:$8 sps:$4 sm:$0xff] (!%p140_p2)  }
   0x8   : > { %2053 = vmatpush1.bf16.msra.mxu0 (!%p140_p2), %v2873_v3  ;;  %1835 = vmatprep.subr.bf16.mxu1 (!%p140_p2), %v2874_v4  ;;  %v2879_v7 = vld [vmem:[%s4099_s1 + $0x310] ss:$8 sps:$4 sm:$0xff] (!%p140_p2)   ;;  %v2882_v9 = vld [vmem:[%s4099_s1 + $0x324] ss:$8 sps:$4 sm:$0xff] (!%p140_p2)   ;;  %v2884_v10 = vld [vmem:[%s4099_s1 + $0x20] ss:$8 sps:$4 sm:$0xff] (!%p140_p2)  }
   0x9   : > { %2054 = vmatprep.subr.bf16.mxu0 (!%p140_p2), %v2876_v5  ;;  %v2885_v11 = vld [vmem:[%s4099_s1 + $0x320] ss:$8 sps:$4 sm:$0xff] (!%p140_p2)   ;;  %v2886_v12 = vld [vmem:[%s4099_s1 + $0x34] ss:$8 sps:$4 sm:$0xff] (!%p140_p2)   ;;  %v2890_v14 = vld [vmem:[%s4099_s1 + $0x30] ss:$8 sps:$4 sm:$0xff] (!%p140_p2)  }
   0xa   : > { %v2888_v13 = vld [vmem:[%s4099_s1 + $0x334] ss:$8 sps:$4 sm:$0xff] (!%p140_p2)   ;;  %v2891_v15 = vld [vmem:[%s4099_s1 + $0x330] ss:$8 sps:$4 sm:$0xff] (!%p140_p2)   ;;  %v2892_v16 = vld [vmem:[%s4099_s1 + $0x44] ss:$8 sps:$4 sm:$0xff] (!%p140_p2)  }
   0xb   : > { %1836 = vmatpush1.bf16.msra.mxu1 (!%p140_p2), %v2878_v6  ;;  %v2894_v17 = vld [vmem:[%s4099_s1 + $0x344] ss:$8 sps:$4 sm:$0xff] (!%p140_p2)   ;;  %v2896_v18 = vld [vmem:[%s4099_s1 + $0x40] ss:$8 sps:$4 sm:$0xff] (!%p140_p2)   ;;  %v2898_v20 = vld [vmem:[%s4099_s1 + $0x54] ss:$8 sps:$4 sm:$0xff] (!%p140_p2)  }
   0xc   : > { %2055 = vmatpush1.bf16.msra.mxu0 (!%p140_p2), %v2879_v7  ;;  %1837 = vmatprep.subr.bf16.mxu1 (!%p140_p2), %v2880_v8  ;;  %v2897_v19 = vld [vmem:[%s4099_s1 + $0x340] ss:$8 sps:$4 sm:$0xff] (!%p140_p2)   ;;  %v2900_v21 = vld [vmem:[%s4099_s1 + $0x354] ss:$8 sps:$4 sm:$0xff] (!%p140_p2)   ;;  %v2902_v22 = vld [vmem:[%s4099_s1 + $0x50] ss:$8 sps:$4 sm:$0xff] (!%p140_p2)  }
   0xd   : > { %2056 = vmatprep.subr.bf16.mxu0 %v2882_v9  ;;  %v2903_v23 = vld [vmem:[%s4099_s1 + $0x350] ss:$8 sps:$4 sm:$0xff]   ;;  %v2904_v24 = vld [vmem:[%s4099_s1 + $0x64] ss:$8 sps:$4 sm:$0xff]   ;;  %v2908_v26 = vld [vmem:[%s4099_s1 + $0x60] ss:$8 sps:$4 sm:$0xff]  }
   0xe   : > { %v2906_v25 = vld [vmem:[%s4099_s1 + $0x364] ss:$8 sps:$4 sm:$0xff]   ;;  %v2909_v27 = vld [vmem:[%s4099_s1 + $0x360] ss:$8 sps:$4 sm:$0xff]   ;;  %v2910_v28 = vld [vmem:[%s4099_s1 + $0x74] ss:$8 sps:$4 sm:$0xff]  }
   0xf   : > { %1838 = vmatpush1.bf16.msra.mxu1 %v2884_v10  ;;  %v2912_v29 = vld [vmem:[%s4099_s1 + $0x374] ss:$8 sps:$4 sm:$0xff]   ;;  %v2914_v30 = vld [vmem:[%s4099_s1 + $0x70] ss:$8 sps:$4 sm:$0xff]   ;;  %v2916_v32 = vld [vmem:[%s4099_s1 + $0x84] ss:$8 sps:$4 sm:$0xff]  }
  0x10   : > { %2057 = vmatpush1.bf16.msra.mxu0 %v2885_v11  ;;  %1839 = vmatprep.subr.bf16.mxu1 %v2886_v12  ;;  %v2915_v31 = vld [vmem:[%s4099_s1 + $0x370] ss:$8 sps:$4 sm:$0xff]   ;;  %p166_p3 = scmp.lt.s32.totalorder %s2439_s24, 15  ;;  %v2918_v33 = vld [vmem:[%s4099_s1 + $0x384] ss:$8 sps:$4 sm:$0xff]   ;;  %vm1820_vm0 = vcmask 523264  }
  0x11   : > { %2058 = vmatprep.subr.bf16.mxu0 %v2888_v13  ;;  %v2920_v34 = vld [vmem:[%s4099_s1 + $0x80] ss:$8 sps:$4 sm:$0xff]   ;;  %v2922_v36 = vld [vmem:[%s4099_s1 + $0x94] ss:$8 sps:$4 sm:$0xff]   ;;  %v2926_v38 = vld [vmem:[%s4099_s1 + $0x90] ss:$8 sps:$4 sm:$0xff]  }
  0x12   : > { %v2921_v35 = vld [vmem:[%s4099_s1 + $0x380] ss:$8 sps:$4 sm:$0xff]   ;;  %s4103_s24 = smov (!%p166_p3, %s2439_s24), 15  ;;  %v2924_v37 = vld [vmem:[%s4099_s1 + $0x394] ss:$8 sps:$4 sm:$0xff]  }
  0x13   : > { %1840 = vmatpush1.bf16.msra.mxu1 %v2890_v14  ;;  %v2927_v39 = vld [vmem:[%s4099_s1 + $0x390] ss:$8 sps:$4 sm:$0xff]   ;;  %v2928_v40 = vld [vmem:[%s4099_s1 + $0xa4] ss:$8 sps:$4 sm:$0xff]   ;;  %s2859_s21 = smul.u32 56, %s4103_s24 }
  0x14   : > { %2059 = vmatpush1.bf16.msra.mxu0 %v2891_v15  ;;  %1841 = vmatprep.subr.bf16.mxu1 %v2892_v16  ;;  %v2930_v41 = vld [vmem:[%s4099_s1 + $0x3a4] ss:$8 sps:$4 sm:$0xff]   ;;  %v2932_v42 = vld [vmem:[%s4099_s1 + $0xa0] ss:$8 sps:$4 sm:$0xff]   ;;  %v2934_v44 = vld [vmem:[%s4099_s1 + $0xb4] ss:$8 sps:$4 sm:$0xff]  }
  0x15   : > { %2060 = vmatprep.subr.bf16.mxu0 %v2894_v17  ;;  %v2933_v43 = vld [vmem:[%s4099_s1 + $0x3a0] ss:$8 sps:$4 sm:$0xff]   ;;  %s3455_s13 = scalar_lea.vmem %s4098_s0, %s2859_s21  ;;  %v2936_v45 = vld [vmem:[%s4099_s1 + $0x3b4] ss:$8 sps:$4 sm:$0xff]   ;;  %v2938_v46 = vld [vmem:[%s4099_s1 + $0xb0] ss:$8 sps:$4 sm:$0xff]  }
  0x16   : > { %v2939_v47 = vld [vmem:[%s4099_s1 + $0x3b0] ss:$8 sps:$4 sm:$0xff]   ;;  %v2966_v48 = vld [vmem:[%s3455_s13 + $0x4] ss:$56 sps:$4 sm:$0xff]   ;;  %v2944_v52 = vld [vmem:[%s4099_s1 + $0xc0] ss:$8 sps:$4 sm:$0xff]  }
  0x17   : > { %1842 = vmatpush1.bf16.msra.mxu1 %v2896_v18  ;;  %v2940_v49 = vld [vmem:[%s4099_s1 + $0xc4] ss:$8 sps:$4 sm:$0xff]   ;;  %1865 = vmatprep.mubr.bf16.mxu1 %v2966_v48  ;;  %v2972_v51 = vld [vmem:[%s3455_s13 + $0x1c] ss:$56 sps:$4 sm:$0xff]   ;;  %v2945_v53 = vld [vmem:[%s4099_s1 + $0x3c0] ss:$8 sps:$4 sm:$0xff]  }
  0x18   : > { %2061 = vmatpush1.bf16.msra.mxu0 %v2897_v19  ;;  %1843 = vmatprep.subr.bf16.mxu1 %v2898_v20  ;;  %v2942_v50 = vld [vmem:[%s4099_s1 + $0x3c4] ss:$8 sps:$4 sm:$0xff]   ;;  %v2946_v54 = vld [vmem:[%s4099_s1 + $0xd4] ss:$8 sps:$4 sm:$0xff]   ;;  %v2950_v56 = vld [vmem:[%s4099_s1 + $0xd0] ss:$8 sps:$4 sm:$0xff]  }
  0x19   : > { %2062 = vmatprep.subr.bf16.mxu0 %v2900_v21  ;;  %v2948_v55 = vld [vmem:[%s4099_s1 + $0x3d4] ss:$8 sps:$4 sm:$0xff]   ;;  %2084 = vmatprep.mubr.bf16.mxu0 %v2972_v51  ;;  %v2951_v57 = vld [vmem:[%s4099_s1 + $0x3d0] ss:$8 sps:$4 sm:$0xff]   ;;  %v2952_v58 = vld [vmem:[%s4099_s1 + $0xe4] ss:$8 sps:$4 sm:$0xff]  }
  0x1a   : > { %v2954_v59 = vld [vmem:[%s4099_s1 + $0x3e4] ss:$8 sps:$4 sm:$0xff]   ;;  %v2956_v60 = vld [vmem:[%s4099_s1 + $0xe0] ss:$8 sps:$4 sm:$0xff]   ;;  %v2958_v62 = vld [vmem:[%s4099_s1 + $0xf4] ss:$8 sps:$4 sm:$0xff]  }
  0x1b   : > { %1844 = vmatpush1.bf16.msra.mxu1 %v2902_v22  ;;  %v2957_v61 = vld [vmem:[%s4099_s1 + $0x3e0] ss:$8 sps:$4 sm:$0xff]   ;;  %v2960_v63 = vld [vmem:[%s4099_s1 + $0x3f4] ss:$8 sps:$4 sm:$0xff]   ;;  %v2962_v0 = vld [vmem:[%s4099_s1 + $0xf0] ss:$8 sps:$4 sm:$0xff]  }
  0x1c   : > { %2063 = vmatpush1.bf16.msra.mxu0 %v2903_v23  ;;  %1845 = vmatprep.subr.bf16.mxu1 %v2904_v24  ;;  %v2963_v1 = vld [vmem:[%s4099_s1 + $0x3f0] ss:$8 sps:$4 sm:$0xff]   ;;  %v2969_v2 = vld [vmem:[%s4099_s1 + $0x104] ss:$8 sps:$4 sm:$0xff]   ;;  %v2967_v5 = vld [vmem:[%s4099_s1 + $0x100] ss:$8 sps:$4 sm:$0xff]  }
  0x1d   : > { %2064 = vmatprep.subr.bf16.mxu0 %v2906_v25  ;;  %v2975_v3 = vld [vmem:[%s4099_s1 + $0x404] ss:$8 sps:$4 sm:$0xff]   ;;  %v2964_v4 = vld [vmem:[%s3455_s13] ss:$56 sps:$4 sm:$0xff]   ;;  %v2978_v8 = vld [vmem:[%s4099_s1 + $0x114] ss:$8 sps:$4 sm:$0xff]  }
  0x1e   : > { %v2970_v6 = vld [vmem:[%s3455_s13 + $0x18] ss:$56 sps:$4 sm:$0xff]   ;;  %v2973_v7 = vld [vmem:[%s4099_s1 + $0x400] ss:$8 sps:$4 sm:$0xff]   ;;  %v2981_v9 = vld [vmem:[%s4099_s1 + $0x414] ss:$8 sps:$4 sm:$0xff]  }
  0x1f   : > { %1846 = vmatpush1.bf16.msra.mxu1 %v2908_v26  ;;  %v2976_v10 = vld [vmem:[%s4099_s1 + $0x110] ss:$8 sps:$4 sm:$0xff]   ;;  %v2984_v12 = vld [vmem:[%s4099_s1 + $0x124] ss:$8 sps:$4 sm:$0xff]   ;;  %v2982_v14 = vld [vmem:[%s4099_s1 + $0x120] ss:$8 sps:$4 sm:$0xff]  }
  0x20   : > { %2065 = vmatpush1.bf16.msra.mxu0 %v2909_v27  ;;  %1847 = vmatprep.subr.bf16.mxu1 %v2910_v28  ;;  %v2979_v11 = vld [vmem:[%s4099_s1 + $0x410] ss:$8 sps:$4 sm:$0xff]   ;;  %v2987_v13 = vld [vmem:[%s4099_s1 + $0x424] ss:$8 sps:$4 sm:$0xff]   ;;  %v2985_v15 = vld [vmem:[%s4099_s1 + $0x420] ss:$8 sps:$4 sm:$0xff]  }
  0x21   : > { %2066 = vmatprep.subr.bf16.mxu0 %v2912_v29  ;;  %v2990_v16 = vld [vmem:[%s4099_s1 + $0x134] ss:$8 sps:$4 sm:$0xff]   ;;  %v2988_v19 = vld [vmem:[%s4099_s1 + $0x130] ss:$8 sps:$4 sm:$0xff]   ;;  %v3035_v21 = vld [vmem:[%s3455_s13 + $0x8c] ss:$56 sps:$4 sm:$0xff]  }
  0x22   : > { %v3030_v17 = vld [vmem:[%s3455_s13 + $0x74] ss:$56 sps:$4 sm:$0xff]   ;;  %v2991_v20 = vld [vmem:[%s4099_s1 + $0x430] ss:$8 sps:$4 sm:$0xff]   ;;  %v3041_v25 = vld [vmem:[%s3455_s13 + $0x88] ss:$56 sps:$4 sm:$0xff]  }
  0x23   : > { %1848 = vmatpush1.bf16.msra.mxu1 %v2914_v30  ;;  %v2993_v18 = vld [vmem:[%s4099_s1 + $0x434] ss:$8 sps:$4 sm:$0xff]   ;;  %v2996_v22 = vld [vmem:[%s4099_s1 + $0x144] ss:$8 sps:$4 sm:$0xff]   ;;  %v3040_v24 = vld [vmem:[%s3455_s13 + $0x70] ss:$56 sps:$4 sm:$0xff]  }
  0x24   : > { %2067 = vmatpush1.bf16.msra.mxu0 %v2915_v31  ;;  %1849 = vmatprep.subr.bf16.mxu1 %v2916_v32  ;;  %v2999_v23 = vld [vmem:[%s4099_s1 + $0x444] ss:$8 sps:$4 sm:$0xff]   ;;  %v2994_v26 = vld [vmem:[%s4099_s1 + $0x140] ss:$8 sps:$4 sm:$0xff]   ;;  %v3002_v28 = vld [vmem:[%s4099_s1 + $0x154] ss:$8 sps:$4 sm:$0xff]  }
  0x25   : > { %2068 = vmatprep.subr.bf16.mxu0 %v2918_v33  ;;  %v2997_v27 = vld [vmem:[%s4099_s1 + $0x440] ss:$8 sps:$4 sm:$0xff]   ;;  %v3048_v29 = vld [vmem:[%s3455_s13 + $0xe4] ss:$56 sps:$4 sm:$0xff]   ;;  %v3000_v31 = vld [vmem:[%s4099_s1 + $0x150] ss:$8 sps:$4 sm:$0xff]  }
  0x26   : > { %v3005_v30 = vld [vmem:[%s4099_s1 + $0x454] ss:$8 sps:$4 sm:$0xff]   ;;  %v3003_v32 = vld [vmem:[%s4099_s1 + $0x450] ss:$8 sps:$4 sm:$0xff]   ;;  %v3021_v51 = vld [vmem:[%s4099_s1 + $0x480] ss:$8 sps:$4 sm:$0xff]  }
  0x27   : > { %1850 = vmatpush1.bf16.msra.mxu1 %v2920_v34  ;;  %v3053_v33 = vld [vmem:[%s3455_s13 + $0xfc] ss:$56 sps:$4 sm:$0xff]   ;;  %v3008_v34 = vld [vmem:[%s4099_s1 + $0x164] ss:$8 sps:$4 sm:$0xff]   ;;  %v3076_v48 = vld [vmem:[%s3455_s13 + $0x150] ss:$56 sps:$4 sm:$0xff]  }
  0x28   : > { %2069 = vmatpush1.bf16.msra.mxu0 %v2921_v35  ;;  %1851 = vmatprep.subr.bf16.mxu1 %v2922_v36  ;;  %v3011_v35 = vld [vmem:[%s4099_s1 + $0x464] ss:$8 sps:$4 sm:$0xff]   ;;  %v3058_v36 = vld [vmem:[%s3455_s13 + $0xe0] ss:$56 sps:$4 sm:$0xff]  }
  0x29   : > { %2070 = vmatprep.subr.bf16.mxu0 %v2924_v37  ;;  %v3059_v37 = vld [vmem:[%s3455_s13 + $0xf8] ss:$56 sps:$4 sm:$0xff]  }
  0x2b   : > { %1852 = vmatpush1.bf16.msra.mxu1 %v2926_v38  ;;  %v3006_v38 = vld [vmem:[%s4099_s1 + $0x160] ss:$8 sps:$4 sm:$0xff]  }
  0x2c   : > { %2071 = vmatpush1.bf16.msra.mxu0 %v2927_v39  ;;  %1853 = vmatprep.subr.bf16.mxu1 %v2928_v40  ;;  %v3009_v39 = vld [vmem:[%s4099_s1 + $0x460] ss:$8 sps:$4 sm:$0xff]   ;;  %v3014_v40 = vld [vmem:[%s4099_s1 + $0x174] ss:$8 sps:$4 sm:$0xff]  }
  0x2d   : > { %2072 = vmatprep.subr.bf16.mxu0 %v2930_v41  ;;  %v3066_v41 = vld [vmem:[%s3455_s13 + $0x154] ss:$56 sps:$4 sm:$0xff]  }
  0x2f   : > { %1854 = vmatpush1.bf16.msra.mxu1 %v2932_v42  ;;  %v3017_v42 = vld [vmem:[%s4099_s1 + $0x474] ss:$8 sps:$4 sm:$0xff]  }
  0x30   : > { %2073 = vmatpush1.bf16.msra.mxu0 %v2933_v43  ;;  %1855 = vmatprep.subr.bf16.mxu1 %v2934_v44  ;;  %v3012_v43 = vld [vmem:[%s4099_s1 + $0x170] ss:$8 sps:$4 sm:$0xff]  }
  0x31   : > { %2074 = vmatprep.subr.bf16.mxu0 %v2936_v45  ;;  %v3015_v44 = vld [vmem:[%s4099_s1 + $0x470] ss:$8 sps:$4 sm:$0xff]   ;;  %v3071_v45 = vld [vmem:[%s3455_s13 + $0x16c] ss:$56 sps:$4 sm:$0xff]  }
  0x33   : > { %1856 = vmatpush1.bf16.msra.mxu1 %v2938_v46  ;;  %v3020_v46 = vld [vmem:[%s4099_s1 + $0x184] ss:$8 sps:$4 sm:$0xff]  }
  0x34   : > { %2075 = vmatpush1.bf16.msra.mxu0 %v2939_v47  ;;  %1857 = vmatprep.subr.bf16.mxu1 %v2940_v49  ;;  %v3023_v47 = vld [vmem:[%s4099_s1 + $0x484] ss:$8 sps:$4 sm:$0xff]   ;;  %v3077_v49 = vld [vmem:[%s3455_s13 + $0x168] ss:$56 sps:$4 sm:$0xff]  }
  0x35   : > { %2076 = vmatprep.subr.bf16.mxu0 %v2942_v50  ;;  %v3018_v50 = vld [vmem:[%s4099_s1 + $0x180] ss:$8 sps:$4 sm:$0xff]  }
  0x37   : > { %1858 = vmatpush1.bf16.msra.mxu1 %v2944_v52  ;;  %v3026_v52 = vld [vmem:[%s4099_s1 + $0x194] ss:$8 sps:$4 sm:$0xff]  }
  0x38   : > { %2077 = vmatpush1.bf16.msra.mxu0 %v2945_v53  ;;  %1859 = vmatprep.subr.bf16.mxu1 %v2946_v54  ;;  %v3029_v53 = vld [vmem:[%s4099_s1 + $0x494] ss:$8 sps:$4 sm:$0xff]   ;;  %v3086_v54 = vld [vmem:[%s3455_s13 + $0xc] ss:$56 sps:$4 sm:$0xff]  }
  0x39   : > { %2078 = vmatprep.subr.bf16.mxu0 %v2948_v55  ;;  %v3024_v55 = vld [vmem:[%s4099_s1 + $0x190] ss:$8 sps:$4 sm:$0xff]  }
  0x3b   : > { %1860 = vmatpush1.bf16.msra.mxu1 %v2950_v56  ;;  %v3027_v56 = vld [vmem:[%s4099_s1 + $0x490] ss:$8 sps:$4 sm:$0xff]  }
  0x3c   : > { %2079 = vmatpush1.bf16.msra.mxu0 %v2951_v57  ;;  %1861 = vmatprep.subr.bf16.mxu1 %v2952_v58  ;;  %v3092_v57 = vld [vmem:[%s3455_s13 + $0x24] ss:$56 sps:$4 sm:$0xff]  }
  0x3d   : > { %2080 = vmatprep.subr.bf16.mxu0 %v2954_v59  ;;  %v3034_v58 = vld [vmem:[%s4099_s1 + $0x1a4] ss:$8 sps:$4 sm:$0xff]  }
  0x3e   : > { %v3039_v59 = vld [vmem:[%s4099_s1 + $0x4a4] ss:$8 sps:$4 sm:$0xff]  }
  0x3f   : > { %1862 = vmatpush1.bf16.msra.mxu1 %v2956_v60  ;;  %v3032_v60 = vld [vmem:[%s4099_s1 + $0x1a0] ss:$8 sps:$4 sm:$0xff]  }
  0x40   : > { %2081 = vmatpush1.bf16.msra.mxu0 %v2957_v61  ;;  %1863 = vmatprep.subr.bf16.mxu1 %v2958_v62  ;;  %v3037_v61 = vld [vmem:[%s4099_s1 + $0x4a0] ss:$8 sps:$4 sm:$0xff]   ;;  %v3044_v62 = vld [vmem:[%s4099_s1 + $0x1b4] ss:$8 sps:$4 sm:$0xff]  }
  0x41   : > { %2082 = vmatprep.subr.bf16.mxu0 %v2960_v63  ;;  %v3047_v63 = vld [vmem:[%s4099_s1 + $0x4b4] ss:$8 sps:$4 sm:$0xff]  }
  0x43   : > { %1864 = vmatpush1.bf16.msra.mxu1 %v2962_v0  ;;  %v3042_v0 = vld [vmem:[%s4099_s1 + $0x1b0] ss:$8 sps:$4 sm:$0xff]  }
  0x44   : > { %2083 = vmatpush1.bf16.msra.mxu0 %v2963_v1  ;;  %1906 = vmatprep.subr.bf16.mxu1 %v2969_v2  ;;  %v3045_v1 = vld [vmem:[%s4099_s1 + $0x4b0] ss:$8 sps:$4 sm:$0xff]   ;;  %v3052_v2 = vld [vmem:[%s4099_s1 + $0x1c4] ss:$8 sps:$4 sm:$0xff]  }
  0x45   : > { %2125 = vmatprep.subr.bf16.mxu0 %v2975_v3  ;;  %v3057_v3 = vld [vmem:[%s4099_s1 + $0x4c4] ss:$8 sps:$4 sm:$0xff]  }
  0x46   : > { %1866 = vmatmul.mubr.bf16.vlgmr.msra.gmra.mrb[0].mxu1 %v2964_v4  ;;  %v3050_v4 = vld [vmem:[%s4099_s1 + $0x1c0] ss:$8 sps:$4 sm:$0xff]  }
  0x47   : > { %2085 = vmatmul.mubr.bf16.vlgmr.msra.gmra.mrb[0].mxu0 %v2970_v6  ;;  %1907 = vmatpush1.bf16.msra.mxu1 %v2967_v5  ;;  %v3055_v5 = vld [vmem:[%s4099_s1 + $0x4c0] ss:$8 sps:$4 sm:$0xff]   ;;  %v3062_v6 = vld [vmem:[%s4099_s1 + $0x1d4] ss:$8 sps:$4 sm:$0xff]  }
  0x48   : > { %2126 = vmatpush1.bf16.msra.mxu0 %v2973_v7  ;;  %1908 = vmatprep.subr.bf16.mxu1 %v2978_v8  ;;  %v3065_v7 = vld [vmem:[%s4099_s1 + $0x4d4] ss:$8 sps:$4 sm:$0xff]   ;;  %v3060_v8 = vld [vmem:[%s4099_s1 + $0x1d0] ss:$8 sps:$4 sm:$0xff]  }
  0x49   : > { %2127 = vmatprep.subr.bf16.mxu0 %v2981_v9  ;;  %1875 = vmatprep.mubr.bf16.mxu1 %v3030_v17  ;;  %v3063_v9 = vld [vmem:[%s4099_s1 + $0x4d0] ss:$8 sps:$4 sm:$0xff]  }
  0x4a   : > { %2094 = vmatprep.mubr.bf16.mxu0 %v3035_v21  ;;  %v3081_v17 = vld [vmem:[%s4099_s1 + $0x4f0] ss:$8 sps:$4 sm:$0xff]   ;;  %v3087_v21 = vld [vmem:[%s4099_s1 + $0x200] ss:$8 sps:$4 sm:$0xff]  }
  0x4b   : > { %1909 = vmatpush1.bf16.msra.mxu1 %v2976_v10  ;;  %v3070_v10 = vld [vmem:[%s4099_s1 + $0x1e4] ss:$8 sps:$4 sm:$0xff]  }
  0x4c   : > { %2128 = vmatpush1.bf16.msra.mxu0 %v2979_v11  ;;  %1910 = vmatprep.subr.bf16.mxu1 %v2984_v12  ;;  %v3075_v11 = vld [vmem:[%s4099_s1 + $0x4e4] ss:$8 sps:$4 sm:$0xff]   ;;  %v3068_v12 = vld [vmem:[%s4099_s1 + $0x1e0] ss:$8 sps:$4 sm:$0xff]  }
  0x4d   : > { %2129 = vmatprep.subr.bf16.mxu0 %v2987_v13  ;;  %v3073_v13 = vld [vmem:[%s4099_s1 + $0x4e0] ss:$8 sps:$4 sm:$0xff]  }
  0x4e   : > { %1876 = vmatmul.mubr.bf16.gmra.mrb[4].mxu1 %v3040_v24  ;;  %v3098_v24 = vld [vmem:[%s4099_s1 + $0x214] ss:$8 sps:$4 sm:$0xff]  }
  0x4f   : > { %1911 = vmatpush1.bf16.msra.mxu1 %v2982_v14  ;;  %2095 = vmatmul.mubr.bf16.gmra.mrb[4].mxu0 %v3041_v25  ;;  %v3080_v14 = vld [vmem:[%s4099_s1 + $0x1f4] ss:$8 sps:$4 sm:$0xff]  }
  0x50   : > { %2130 = vmatpush1.bf16.msra.mxu0 %v2985_v15  ;;  %1912 = vmatprep.subr.bf16.mxu1 %v2990_v16  ;;  %v3083_v15 = vld [vmem:[%s4099_s1 + $0x4f4] ss:$8 sps:$4 sm:$0xff]   ;;  %v3078_v16 = vld [vmem:[%s4099_s1 + $0x1f0] ss:$8 sps:$4 sm:$0xff]  }
  0x51   : > { %2131 = vmatprep.subr.bf16.mxu0 %v2993_v18  ;;  %1885 = vmatprep.mubr.bf16.mxu1 %v3048_v29  ;;  %v3089_v18 = vld [vmem:[%s4099_s1 + $0x204] ss:$8 sps:$4 sm:$0xff]   ;;  %v3101_v25 = vld [vmem:[%s4099_s1 + $0x514] ss:$8 sps:$4 sm:$0xff]   ;;  %v3099_v29 = vld [vmem:[%s4099_s1 + $0x510] ss:$8 sps:$4 sm:$0xff]  }
  0x52   : > { %2104 = vmatprep.mubr.bf16.mxu0 %v3053_v33  ;;  %v3154_v33 = vld [vmem:[%s3455_s13 + $0x78] ss:$56 sps:$4 sm:$0xff]  }
  0x53   : > { %1913 = vmatpush1.bf16.msra.mxu1 %v2988_v19  ;;  %v3095_v19 = vld [vmem:[%s4099_s1 + $0x504] ss:$8 sps:$4 sm:$0xff]  }
  0x54   : > { %2132 = vmatpush1.bf16.msra.mxu0 %v2991_v20  ;;  %1914 = vmatprep.subr.bf16.mxu1 %v2996_v22  ;;  %v3084_v20 = vld [vmem:[%s3455_s13 + $0x8] ss:$56 sps:$4 sm:$0xff]  }
  0x55   : > { %2133 = vmatprep.subr.bf16.mxu0 %v2999_v23  ;;  %v3090_v22 = vld [vmem:[%s3455_s13 + $0x20] ss:$56 sps:$4 sm:$0xff]  }
  0x56   : > { %1886 = vmatmul.mubr.bf16.gmra.mrb[8].mxu1 %v3058_v36  ;;  %v3093_v23 = vld [vmem:[%s4099_s1 + $0x500] ss:$8 sps:$4 sm:$0xff]   ;;  %v3110_v36 = vld [vmem:[%s4099_s1 + $0x234] ss:$8 sps:$4 sm:$0xff]  }
  0x57   : > { %1915 = vmatpush1.bf16.msra.mxu1 %v2994_v26  ;;  %2105 = vmatmul.mubr.bf16.gmra.mrb[8].mxu0 %v3059_v37  ;;  %v3150_v26 = vld [vmem:[%s3455_s13 + $0x7c] ss:$56 sps:$4 sm:$0xff]  }
  0x58   : > { %2134 = vmatpush1.bf16.msra.mxu0 %v2997_v27  ;;  %1916 = vmatprep.subr.bf16.mxu1 %v3002_v28  ;;  %v3152_v27 = vld [vmem:[%s3455_s13 + $0x94] ss:$56 sps:$4 sm:$0xff]   ;;  %v3096_v28 = vld [vmem:[%s4099_s1 + $0x210] ss:$8 sps:$4 sm:$0xff]  }
  0x59   : > { %2135 = vmatprep.subr.bf16.mxu0 %v3005_v30  ;;  %1895 = vmatprep.mubr.bf16.mxu1 %v3066_v41  ;;  %v3104_v30 = vld [vmem:[%s4099_s1 + $0x224] ss:$8 sps:$4 sm:$0xff]   ;;  %v3113_v37 = vld [vmem:[%s4099_s1 + $0x534] ss:$8 sps:$4 sm:$0xff]   ;;  %v3111_v41 = vld [vmem:[%s4099_s1 + $0x530] ss:$8 sps:$4 sm:$0xff]  }
  0x5a   : > { %2114 = vmatprep.mubr.bf16.mxu0 %v3071_v45  ;;  %v3172_v45 = vld [vmem:[%s3455_s13 + $0xe8] ss:$56 sps:$4 sm:$0xff]  }
  0x5b   : > { %1917 = vmatpush1.bf16.msra.mxu1 %v3000_v31  ;;  %v3107_v31 = vld [vmem:[%s4099_s1 + $0x524] ss:$8 sps:$4 sm:$0xff]  }
  0x5c   : > { %2136 = vmatpush1.bf16.msra.mxu0 %v3003_v32  ;;  %1918 = vmatprep.subr.bf16.mxu1 %v3008_v34  ;;  %v3102_v32 = vld [vmem:[%s4099_s1 + $0x220] ss:$8 sps:$4 sm:$0xff]  }
  0x5d   : > { %2137 = vmatprep.subr.bf16.mxu0 %v3011_v35  ;;  %v3158_v34 = vld [vmem:[%s3455_s13 + $0x90] ss:$56 sps:$4 sm:$0xff]  }
  0x5e   : > { %1896 = vmatmul.mubr.bf16.gmra.mrb[12].mxu1 %v3076_v48  ;;  %v3105_v35 = vld [vmem:[%s4099_s1 + $0x520] ss:$8 sps:$4 sm:$0xff]   ;;  %v3122_v48 = vld [vmem:[%s4099_s1 + $0x254] ss:$8 sps:$4 sm:$0xff]  }
  0x5f   : > { %1919 = vmatpush1.bf16.msra.mxu1 %v3006_v38  ;;  %2115 = vmatmul.mubr.bf16.gmra.mrb[12].mxu0 %v3077_v49  ;;  %v3168_v38 = vld [vmem:[%s3455_s13 + $0xec] ss:$56 sps:$4 sm:$0xff]   ;;  %v3125_v49 = vld [vmem:[%s4099_s1 + $0x554] ss:$8 sps:$4 sm:$0xff]  }
  0x60   : > { %2138 = vmatpush1.bf16.msra.mxu0 %v3009_v39  ;;  %1920 = vmatprep.subr.bf16.mxu1 %v3014_v40  ;;  %v3170_v39 = vld [vmem:[%s3455_s13 + $0x104] ss:$56 sps:$4 sm:$0xff]   ;;  %v3108_v40 = vld [vmem:[%s4099_s1 + $0x230] ss:$8 sps:$4 sm:$0xff]  }
  0x61   : > { %2139 = vmatprep.subr.bf16.mxu0 %v3017_v42  ;;  %1938 = vmatprep.mubr.bf16.mxu1 %v3086_v54  ;;  %v3116_v42 = vld [vmem:[%s4099_s1 + $0x244] ss:$8 sps:$4 sm:$0xff]  }
  0x62   : > { %2157 = vmatprep.mubr.bf16.mxu0 %v3092_v57  ;;  %v3128_v54 = vld [vmem:[%s4099_s1 + $0x264] ss:$8 sps:$4 sm:$0xff]   ;;  %v3129_v57 = vld [vmem:[%s4099_s1 + $0x560] ss:$8 sps:$4 sm:$0xff]  }
  0x63   : > { %1921 = vmatpush1.bf16.msra.mxu1 %v3012_v43  ;;  %v3119_v43 = vld [vmem:[%s4099_s1 + $0x544] ss:$8 sps:$4 sm:$0xff]  }
  0x64   : > { %2140 = vmatpush1.bf16.msra.mxu0 %v3015_v44  ;;  %1922 = vmatprep.subr.bf16.mxu1 %v3020_v46  ;;  %v3114_v44 = vld [vmem:[%s4099_s1 + $0x240] ss:$8 sps:$4 sm:$0xff]  }
  0x65   : > { %2141 = vmatprep.subr.bf16.mxu0 %v3023_v47  ;;  %v3176_v46 = vld [vmem:[%s3455_s13 + $0x100] ss:$56 sps:$4 sm:$0xff]  }
  0x66   : > { %v3117_v47 = vld [vmem:[%s4099_s1 + $0x540] ss:$8 sps:$4 sm:$0xff]  }
  0x67   : > { %1923 = vmatpush1.bf16.msra.mxu1 %v3018_v50  ;;  %v3186_v50 = vld [vmem:[%s3455_s13 + $0x15c] ss:$56 sps:$4 sm:$0xff]  }
  0x68   : > { %2142 = vmatpush1.bf16.msra.mxu0 %v3021_v51  ;;  %1924 = vmatprep.subr.bf16.mxu1 %v3026_v52  ;;  %v3188_v51 = vld [vmem:[%s3455_s13 + $0x174] ss:$56 sps:$4 sm:$0xff]   ;;  %v3120_v52 = vld [vmem:[%s4099_s1 + $0x250] ss:$8 sps:$4 sm:$0xff]  }
  0x69   : > { %2143 = vmatprep.subr.bf16.mxu0 %v3029_v53  ;;  %v3123_v53 = vld [vmem:[%s4099_s1 + $0x550] ss:$8 sps:$4 sm:$0xff]  }
  0x6b   : > { %1925 = vmatpush1.bf16.msra.mxu1 %v3024_v55  ;;  %v3131_v55 = vld [vmem:[%s4099_s1 + $0x564] ss:$8 sps:$4 sm:$0xff]  }
  0x6c   : > { %2144 = vmatpush1.bf16.msra.mxu0 %v3027_v56  ;;  %1926 = vmatprep.subr.bf16.mxu1 %v3034_v58  ;;  %v3126_v56 = vld [vmem:[%s4099_s1 + $0x260] ss:$8 sps:$4 sm:$0xff]   ;;  %v3190_v58 = vld [vmem:[%s3455_s13 + $0x158] ss:$56 sps:$4 sm:$0xff]  }
  0x6d   : > { %2145 = vmatprep.subr.bf16.mxu0 %v3039_v59  ;;  %v3194_v59 = vld [vmem:[%s3455_s13 + $0x170] ss:$56 sps:$4 sm:$0xff]  }
  0x6f   : > { %1927 = vmatpush1.bf16.msra.mxu1 %v3032_v60  ;;  %v3134_v60 = vld [vmem:[%s4099_s1 + $0x274] ss:$8 sps:$4 sm:$0xff]  }
  0x70   : > { %2146 = vmatpush1.bf16.msra.mxu0 %v3037_v61  ;;  %1928 = vmatprep.subr.bf16.mxu1 %v3044_v62  ;;  %v3137_v61 = vld [vmem:[%s4099_s1 + $0x574] ss:$8 sps:$4 sm:$0xff]  }
  0x71   : > { %2147 = vmatprep.subr.bf16.mxu0 %v3047_v63  ;;  %v3206_v62 = vld [vmem:[%s3455_s13 + $0x14] ss:$56 sps:$4 sm:$0xff]  }
  0x72   : > { %v3209_v63 = vld [vmem:[%s3455_s13 + $0x2c] ss:$56 sps:$4 sm:$0xff]  }
  0x73   : > { %1929 = vmatpush1.bf16.msra.mxu1 %v3042_v0  ;;  %v3132_v0 = vld [vmem:[%s4099_s1 + $0x270] ss:$8 sps:$4 sm:$0xff]  }
  0x74   : > { %2148 = vmatpush1.bf16.msra.mxu0 %v3045_v1  ;;  %1930 = vmatprep.subr.bf16.mxu1 %v3052_v2  ;;  %v3135_v1 = vld [vmem:[%s4099_s1 + $0x570] ss:$8 sps:$4 sm:$0xff]   ;;  %v3140_v2 = vld [vmem:[%s4099_s1 + $0x284] ss:$8 sps:$4 sm:$0xff]  }
  0x75   : > { %2149 = vmatprep.subr.bf16.mxu0 %v3057_v3  ;;  %v3143_v3 = vld [vmem:[%s4099_s1 + $0x584] ss:$8 sps:$4 sm:$0xff]  }
  0x77   : > { %1931 = vmatpush1.bf16.msra.mxu1 %v3050_v4  ;;  %v3138_v4 = vld [vmem:[%s4099_s1 + $0x280] ss:$8 sps:$4 sm:$0xff]  }
  0x78   : > { %2150 = vmatpush1.bf16.msra.mxu0 %v3055_v5  ;;  %1932 = vmatprep.subr.bf16.mxu1 %v3062_v6  ;;  %v3141_v5 = vld [vmem:[%s4099_s1 + $0x580] ss:$8 sps:$4 sm:$0xff]   ;;  %v3146_v6 = vld [vmem:[%s4099_s1 + $0x294] ss:$8 sps:$4 sm:$0xff]  }
  0x79   : > { %2151 = vmatprep.subr.bf16.mxu0 %v3065_v7  ;;  %v3149_v7 = vld [vmem:[%s4099_s1 + $0x594] ss:$8 sps:$4 sm:$0xff]  }
  0x7b   : > { %1933 = vmatpush1.bf16.msra.mxu1 %v3060_v8  ;;  %v3144_v8 = vld [vmem:[%s4099_s1 + $0x290] ss:$8 sps:$4 sm:$0xff]  }
  0x7c   : > { %2152 = vmatpush1.bf16.msra.mxu0 %v3063_v9  ;;  %1934 = vmatprep.subr.bf16.mxu1 %v3070_v10  ;;  %v3147_v9 = vld [vmem:[%s4099_s1 + $0x590] ss:$8 sps:$4 sm:$0xff]   ;;  %v3157_v10 = vld [vmem:[%s4099_s1 + $0x2a4] ss:$8 sps:$4 sm:$0xff]  }
  0x7d   : > { %2153 = vmatprep.subr.bf16.mxu0 %v3075_v11  ;;  %v3161_v11 = vld [vmem:[%s4099_s1 + $0x5a4] ss:$8 sps:$4 sm:$0xff]  }
  0x7f   : > { %1935 = vmatpush1.bf16.msra.mxu1 %v3068_v12  ;;  %v3155_v12 = vld [vmem:[%s4099_s1 + $0x2a0] ss:$8 sps:$4 sm:$0xff]  }
  0x80   : > { %2154 = vmatpush1.bf16.msra.mxu0 %v3073_v13  ;;  %1936 = vmatprep.subr.bf16.mxu1 %v3080_v14  ;;  %v3159_v13 = vld [vmem:[%s4099_s1 + $0x5a0] ss:$8 sps:$4 sm:$0xff]   ;;  %v3164_v14 = vld [vmem:[%s4099_s1 + $0x2b4] ss:$8 sps:$4 sm:$0xff]  }
  0x81   : > { %2155 = vmatprep.subr.bf16.mxu0 %v3083_v15  ;;  %v3167_v15 = vld [vmem:[%s4099_s1 + $0x5b4] ss:$8 sps:$4 sm:$0xff]  }
  0x83   : > { %1937 = vmatpush1.bf16.msra.mxu1 %v3078_v16  ;;  %v3162_v16 = vld [vmem:[%s4099_s1 + $0x2b0] ss:$8 sps:$4 sm:$0xff]  }
  0x84   : > { %2156 = vmatpush1.bf16.msra.mxu0 %v3081_v17  ;;  %1979 = vmatprep.subr.bf16.mxu1 %v3089_v18  ;;  %v3165_v17 = vld [vmem:[%s4099_s1 + $0x5b0] ss:$8 sps:$4 sm:$0xff]   ;;  %v3175_v18 = vld [vmem:[%s4099_s1 + $0x2c4] ss:$8 sps:$4 sm:$0xff]  }
  0x85   : > { %2198 = vmatprep.subr.bf16.mxu0 %v3095_v19  ;;  %v3179_v19 = vld [vmem:[%s4099_s1 + $0x5c4] ss:$8 sps:$4 sm:$0xff]  }
  0x86   : > { %1939 = vmatmul.mubr.bf16.vlgmr.msra.gmra.mrb[0].mxu1 %v3084_v20  ;;  %v3173_v20 = vld [vmem:[%s4099_s1 + $0x2c0] ss:$8 sps:$4 sm:$0xff]  }
  0x87   : > { %2158 = vmatmul.mubr.bf16.vlgmr.msra.gmra.mrb[0].mxu0 %v3090_v22  ;;  %1980 = vmatpush1.bf16.msra.mxu1 %v3087_v21  ;;  %v3177_v21 = vld [vmem:[%s4099_s1 + $0x5c0] ss:$8 sps:$4 sm:$0xff]   ;;  %v3182_v22 = vld [vmem:[%s4099_s1 + $0x2d4] ss:$8 sps:$4 sm:$0xff]  }
  0x88   : > { %2199 = vmatpush1.bf16.msra.mxu0 %v3093_v23  ;;  %1981 = vmatprep.subr.bf16.mxu1 %v3098_v24  ;;  %v3185_v23 = vld [vmem:[%s4099_s1 + $0x5d4] ss:$8 sps:$4 sm:$0xff]   ;;  %v3180_v24 = vld [vmem:[%s4099_s1 + $0x2d0] ss:$8 sps:$4 sm:$0xff]  }
  0x89   : > { %2200 = vmatprep.subr.bf16.mxu0 %v3101_v25  ;;  %1948 = vmatprep.mubr.bf16.mxu1 %v3150_v26  ;;  %v3183_v25 = vld [vmem:[%s4099_s1 + $0x5d0] ss:$8 sps:$4 sm:$0xff]   ;;  %v3193_v26 = vld [vmem:[%s4099_s1 + $0x2e4] ss:$8 sps:$4 sm:$0xff]  }
  0x8a   : > { %2167 = vmatprep.mubr.bf16.mxu0 %v3152_v27  ;;  %v3197_v27 = vld [vmem:[%s4099_s1 + $0x5e4] ss:$8 sps:$4 sm:$0xff]  }
  0x8b   : > { %1982 = vmatpush1.bf16.msra.mxu1 %v3096_v28  ;;  %v3191_v28 = vld [vmem:[%s4099_s1 + $0x2e0] ss:$8 sps:$4 sm:$0xff]  }
  0x8c   : > { %2201 = vmatpush1.bf16.msra.mxu0 %v3099_v29  ;;  %1983 = vmatprep.subr.bf16.mxu1 %v3104_v30  ;;  %v3195_v29 = vld [vmem:[%s4099_s1 + $0x5e0] ss:$8 sps:$4 sm:$0xff]   ;;  %v3200_v30 = vld [vmem:[%s4099_s1 + $0x2f4] ss:$8 sps:$4 sm:$0xff]  }
  0x8d   : > { %2202 = vmatprep.subr.bf16.mxu0 %v3107_v31  ;;  %v3203_v31 = vld [vmem:[%s4099_s1 + $0x5f4] ss:$8 sps:$4 sm:$0xff]  }
  0x8e   : > { %1949 = vmatmul.mubr.bf16.gmra.mrb[4].mxu1 %v3154_v33  ;;  %v3201_v33 = vld [vmem:[%s4099_s1 + $0x5f0] ss:$8 sps:$4 sm:$0xff]  }
  0x8f   : > { %2168 = vmatmul.mubr.bf16.gmra.mrb[4].mxu0 %v3158_v34  ;;  %1984 = vmatpush1.bf16.msra.mxu1 %v3102_v32  ;;  %v3198_v32 = vld [vmem:[%s4099_s1 + $0x2f0] ss:$8 sps:$4 sm:$0xff]   ;;  %v3212_v34 = vld [vmem:[%s4099_s1 + $0x604] ss:$8 sps:$4 sm:$0xff]  }
  0x90   : > { %2203 = vmatpush1.bf16.msra.mxu0 %v3105_v35  ;;  %1985 = vmatprep.subr.bf16.mxu1 %v3110_v36  ;;  %v3204_v35 = vld [vmem:[%s3455_s13 + $0x10] ss:$56 sps:$4 sm:$0xff]  }
  0x91   : > { %2204 = vmatprep.subr.bf16.mxu0 %v3113_v37  ;;  %1958 = vmatprep.mubr.bf16.mxu1 %v3168_v38  ;;  %v3207_v36 = vld [vmem:[%s3455_s13 + $0x28] ss:$56 sps:$4 sm:$0xff]   ;;  %v3215_v38 = vld [vmem:[%s4099_s1 + $0x614] ss:$8 sps:$4 sm:$0xff]  }
  0x92   : > { %2177 = vmatprep.mubr.bf16.mxu0 %v3170_v39  ;;  %v3210_v37 = vld [vmem:[%s4099_s1 + $0x600] ss:$8 sps:$4 sm:$0xff]   ;;  %v3216_v39 = vld [vmem:[%s3455_s13 + $0x84] ss:$56 sps:$4 sm:$0xff]  }
  0x93   : > { %1986 = vmatpush1.bf16.msra.mxu1 %v3108_v40  ;;  %v3218_v40 = vld [vmem:[%s3455_s13 + $0x9c] ss:$56 sps:$4 sm:$0xff]  }
  0x94   : > { %2205 = vmatpush1.bf16.msra.mxu0 %v3111_v41  ;;  %1987 = vmatprep.subr.bf16.mxu1 %v3116_v42  ;;  %v3213_v41 = vld [vmem:[%s4099_s1 + $0x610] ss:$8 sps:$4 sm:$0xff]   ;;  %v3224_v42 = vld [vmem:[%s4099_s1 + $0x624] ss:$8 sps:$4 sm:$0xff]  }
  0x95   : > { %2206 = vmatprep.subr.bf16.mxu0 %v3119_v43  ;;  %v3220_v43 = vld [vmem:[%s3455_s13 + $0x80] ss:$56 sps:$4 sm:$0xff]  }
  0x96   : > { %1959 = vmatmul.mubr.bf16.gmra.mrb[8].mxu1 %v3172_v45  ;;  %v3222_v45 = vld [vmem:[%s4099_s1 + $0x620] ss:$8 sps:$4 sm:$0xff]  }
  0x97   : > { %2178 = vmatmul.mubr.bf16.gmra.mrb[8].mxu0 %v3176_v46  ;;  %1988 = vmatpush1.bf16.msra.mxu1 %v3114_v44  ;;  %v3221_v44 = vld [vmem:[%s3455_s13 + $0x98] ss:$56 sps:$4 sm:$0xff]   ;;  %v3227_v46 = vld [vmem:[%s4099_s1 + $0x634] ss:$8 sps:$4 sm:$0xff]  }
  0x98   : > { %2207 = vmatpush1.bf16.msra.mxu0 %v3117_v47  ;;  %1989 = vmatprep.subr.bf16.mxu1 %v3122_v48  ;;  %v3228_v47 = vld [vmem:[%s3455_s13 + $0xf4] ss:$56 sps:$4 sm:$0xff]  }
  0x99   : > { %2208 = vmatprep.subr.bf16.mxu0 %v3125_v49  ;;  %1968 = vmatprep.mubr.bf16.mxu1 %v3186_v50  ;;  %v3230_v48 = vld [vmem:[%s3455_s13 + $0x10c] ss:$56 sps:$4 sm:$0xff]   ;;  %v3225_v49 = vld [vmem:[%s4099_s1 + $0x630] ss:$8 sps:$4 sm:$0xff]  }
  0x9a   : > { %2187 = vmatprep.mubr.bf16.mxu0 %v3188_v51  ;;  %v3236_v50 = vld [vmem:[%s4099_s1 + $0x644] ss:$8 sps:$4 sm:$0xff]   ;;  %v3232_v51 = vld [vmem:[%s3455_s13 + $0xf0] ss:$56 sps:$4 sm:$0xff]  }
  0x9b   : > { %1990 = vmatpush1.bf16.msra.mxu1 %v3120_v52  ;;  %v3233_v52 = vld [vmem:[%s3455_s13 + $0x108] ss:$56 sps:$4 sm:$0xff]  }
  0x9c   : > { %2209 = vmatpush1.bf16.msra.mxu0 %v3123_v53  ;;  %1991 = vmatprep.subr.bf16.mxu1 %v3128_v54  ;;  %v3234_v53 = vld [vmem:[%s4099_s1 + $0x640] ss:$8 sps:$4 sm:$0xff]   ;;  %v3239_v54 = vld [vmem:[%s4099_s1 + $0x654] ss:$8 sps:$4 sm:$0xff]  }
  0x9d   : > { %2210 = vmatprep.subr.bf16.mxu0 %v3131_v55  ;;  %v3240_v55 = vld [vmem:[%s3455_s13 + $0x164] ss:$56 sps:$4 sm:$0xff]  }
  0x9e   : > { %1969 = vmatmul.mubr.bf16.gmra.mrb[12].mxu1 %v3190_v58  ;;  %v3248_v58 = vld [vmem:[%s4099_s1 + $0x664] ss:$8 sps:$4 sm:$0xff]  }
  0x9f   : > { %2188 = vmatmul.mubr.bf16.gmra.mrb[12].mxu0 %v3194_v59  ;;  %1992 = vmatpush1.bf16.msra.mxu1 %v3126_v56  ;;  %v3242_v56 = vld [vmem:[%s3455_s13 + $0x17c] ss:$56 sps:$4 sm:$0xff]   ;;  %v3244_v59 = vld [vmem:[%s3455_s13 + $0x160] ss:$56 sps:$4 sm:$0xff]  }
  0xa0   : > { %2211 = vmatpush1.bf16.msra.mxu0 %v3129_v57  ;;  %1993 = vmatprep.subr.bf16.mxu1 %v3134_v60  ;;  %v3237_v57 = vld [vmem:[%s4099_s1 + $0x650] ss:$8 sps:$4 sm:$0xff]  }
  0xa1   : > { %2212 = vmatprep.subr.bf16.mxu0 %v3137_v61  ;;  %2011 = vmatprep.mubr.bf16.mxu1 %v3206_v62  ;;  %v3245_v60 = vld [vmem:[%s3455_s13 + $0x178] ss:$56 sps:$4 sm:$0xff]   ;;  %v3246_v61 = vld [vmem:[%s4099_s1 + $0x660] ss:$8 sps:$4 sm:$0xff]   ;;  %v3251_v62 = vld [vmem:[%s4099_s1 + $0x674] ss:$8 sps:$4 sm:$0xff]  }
  0xa2   : > { %2230 = vmatprep.mubr.bf16.mxu0 %v3209_v63  ;;  %v3266_v63 = vld [vmem:[%s3455_s13 + $0x34] ss:$56 sps:$4 sm:$0xff]  }
  0xa3   : > { %1994 = vmatpush1.bf16.msra.mxu1 %v3132_v0  ;;  %v3269_v0 = vld [vmem:[%s3455_s13 + $0x114] ss:$56 sps:$4 sm:$0xff]  }
  0xa4   : > { %2213 = vmatpush1.bf16.msra.mxu0 %v3135_v1  ;;  %1995 = vmatprep.subr.bf16.mxu1 %v3140_v2  ;;  %v3249_v1 = vld [vmem:[%s4099_s1 + $0x670] ss:$8 sps:$4 sm:$0xff]   ;;  %v3254_v2 = vld [vmem:[%s4099_s1 + $0x684] ss:$8 sps:$4 sm:$0xff]  }
  0xa5   : > { %2214 = vmatprep.subr.bf16.mxu0 %v3143_v3  ;;  %v3252_v3 = vld [vmem:[%s4099_s1 + $0x680] ss:$8 sps:$4 sm:$0xff]  }
  0xa7   : > { %1996 = vmatpush1.bf16.msra.mxu1 %v3138_v4  ;;  %v3257_v4 = vld [vmem:[%s4099_s1 + $0x694] ss:$8 sps:$4 sm:$0xff]  }
  0xa8   : > { %2215 = vmatpush1.bf16.msra.mxu0 %v3141_v5  ;;  %1997 = vmatprep.subr.bf16.mxu1 %v3146_v6  ;;  %v3255_v5 = vld [vmem:[%s4099_s1 + $0x690] ss:$8 sps:$4 sm:$0xff]   ;;  %v3260_v6 = vld [vmem:[%s4099_s1 + $0x6a4] ss:$8 sps:$4 sm:$0xff]  }
  0xa9   : > { %2216 = vmatprep.subr.bf16.mxu0 %v3149_v7  ;;  %v3258_v7 = vld [vmem:[%s4099_s1 + $0x6a0] ss:$8 sps:$4 sm:$0xff]  }
  0xab   : > { %1998 = vmatpush1.bf16.msra.mxu1 %v3144_v8  ;;  %v3263_v8 = vld [vmem:[%s4099_s1 + $0x6b4] ss:$8 sps:$4 sm:$0xff]  }
  0xac   : > { %2217 = vmatpush1.bf16.msra.mxu0 %v3147_v9  ;;  %1999 = vmatprep.subr.bf16.mxu1 %v3157_v10  ;;  %v3261_v9 = vld [vmem:[%s4099_s1 + $0x6b0] ss:$8 sps:$4 sm:$0xff]  }
  0xad   : > { %2218 = vmatprep.subr.bf16.mxu0 %v3161_v11  ;;  %v3264_v10 = vld [vmem:[%s3455_s13 + $0x30] ss:$56 sps:$4 sm:$0xff]  }
  0xae   : > { %v3267_v11 = vld [vmem:[%s3455_s13 + $0x110] ss:$56 sps:$4 sm:$0xff]  }
  0xaf   : > { %2000 = vmatpush1.bf16.msra.mxu1 %v3155_v12  ;;  %v3270_v12 = vld [vmem:[%s3455_s13 + $0xa4] ss:$56 sps:$4 sm:$0xff]  }
  0xb0   : > { %2219 = vmatpush1.bf16.msra.mxu0 %v3159_v13  ;;  %2001 = vmatprep.subr.bf16.mxu1 %v3164_v14  ;;  %v3272_v13 = vld [vmem:[%s3455_s13 + $0x184] ss:$56 sps:$4 sm:$0xff]   ;;  %v3274_v14 = vld [vmem:[%s3455_s13 + $0xa0] ss:$56 sps:$4 sm:$0xff]  }
  0xb1   : > { %2220 = vmatprep.subr.bf16.mxu0 %v3167_v15  ;;  %v3275_v15 = vld [vmem:[%s3455_s13 + $0x180] ss:$56 sps:$4 sm:$0xff]   ;;  %s2722_s13 = sshll.u32 %s4103_s24, 4 }
  0xb2   : > { %s4061_s18 = scalar_lea.vmem %s4101_s3, %s2722_s13 }
  0xb3   : > { %2002 = vmatpush1.bf16.msra.mxu1 %v3162_v16 }
  0xb4   : > { %2221 = vmatpush1.bf16.msra.mxu0 %v3165_v17  ;;  %2003 = vmatprep.subr.bf16.mxu1 %v3175_v18 }
  0xb5   : > { %2222 = vmatprep.subr.bf16.mxu0 %v3179_v19  ;;  %v454_v19 = vlaneseq }
  0xb7   : > { %2004 = vmatpush1.bf16.msra.mxu1 %v3173_v20 }
  0xb8   : > { %2223 = vmatpush1.bf16.msra.mxu0 %v3177_v21  ;;  %2005 = vmatprep.subr.bf16.mxu1 %v3182_v22  ;;  %v455_v21 = vshrl.u32 %v454_v19, 7 }
  0xb9   : > { %2224 = vmatprep.subr.bf16.mxu0 %v3185_v23 }
  0xbb   : > { %2006 = vmatpush1.bf16.msra.mxu1 %v3180_v24 }
  0xbc   : > { %2225 = vmatpush1.bf16.msra.mxu0 %v3183_v25  ;;  %2007 = vmatprep.subr.bf16.mxu1 %v3193_v26  ;;  %v456_v25 = vsub.s32 0, %v455_v21 }
  0xbd   : > { %2226 = vmatprep.subr.bf16.mxu0 %v3197_v27  ;;  %v452_v27 = vld [vmem:[%s4100_s2] sm:$0x3] }
  0xbf   : > { %2008 = vmatpush1.bf16.msra.mxu1 %v3191_v28  ;;  %v460_v28 = vsub.s32 1, %v455_v21 }
  0xc0   : > { %2227 = vmatpush1.bf16.msra.mxu0 %v3195_v29  ;;  %2009 = vmatprep.subr.bf16.mxu1 %v3200_v30  ;;  %v4041_v29 = vrot.slane %v452_v27, %v456_v25 }
  0xc1   : > { %2228 = vmatprep.subr.bf16.mxu0 %v3203_v31  ;;  %v4043_v30 = vrot.slane %v452_v27, %v460_v28 }
  0xc3   : > { %2010 = vmatpush1.bf16.msra.mxu1 %v3198_v32 }
  0xc4   : > { %2229 = vmatpush1.bf16.msra.mxu0 %v3201_v33  ;;  %2723 = vmatprep.subr.bf16.mxu1 %v3212_v34 }
  0xc5   : > { %2271 = vmatprep.subr.bf16.mxu0 %v3212_v34 }
  0xc6   : > { %2012 = vmatmul.mubr.bf16.vlgmr.msra.gmra.mrb[0].mxu1 %v3204_v35 }
  0xc7   : > { %2231 = vmatmul.mubr.bf16.vlgmr.msra.gmra.mrb[0].mxu0 %v3207_v36  ;;  %2735 = vmatpush1.bf16.msra.mxu1 %v3210_v37 }
  0xc8   : > { %2272 = vmatpush1.bf16.msra.mxu0 %v3210_v37  ;;  %2724 = vmatprep.subr.bf16.mxu1 %v3215_v38 }
  0xc9   : > { %2273 = vmatprep.subr.bf16.mxu0 %v3215_v38  ;;  %2021 = vmatprep.mubr.bf16.mxu1 %v3216_v39 }
  0xca   : > { %2240 = vmatprep.mubr.bf16.mxu0 %v3218_v40 }
  0xcb   : > { %2736 = vmatpush1.bf16.msra.mxu1 %v3213_v41 }
  0xcc   : > { %2274 = vmatpush1.bf16.msra.mxu0 %v3213_v41  ;;  %2725 = vmatprep.subr.bf16.mxu1 %v3224_v42 }
  0xcd   : > { %2275 = vmatprep.subr.bf16.mxu0 %v3224_v42 }
  0xce   : > { %2022 = vmatmul.mubr.bf16.gmra.mrb[4].mxu1 %v3220_v43 }
  0xcf   : > { %2241 = vmatmul.mubr.bf16.gmra.mrb[4].mxu0 %v3221_v44  ;;  %2737 = vmatpush1.bf16.msra.mxu1 %v3222_v45 }
  0xd0   : > { %2276 = vmatpush1.bf16.msra.mxu0 %v3222_v45  ;;  %2726 = vmatprep.subr.bf16.mxu1 %v3227_v46 }
  0xd1   : > { %2277 = vmatprep.subr.bf16.mxu0 %v3227_v46  ;;  %2031 = vmatprep.mubr.bf16.mxu1 %v3228_v47 }
  0xd2   : > { %2250 = vmatprep.mubr.bf16.mxu0 %v3230_v48 }
  0xd3   : > { %2738 = vmatpush1.bf16.msra.mxu1 %v3225_v49 }
  0xd4   : > { %2278 = vmatpush1.bf16.msra.mxu0 %v3225_v49  ;;  %2727 = vmatprep.subr.bf16.mxu1 %v3236_v50 }
  0xd5   : > { %2279 = vmatprep.subr.bf16.mxu0 %v3236_v50 }
  0xd6   : > { %2032 = vmatmul.mubr.bf16.gmra.mrb[8].mxu1 %v3232_v51 }
  0xd7   : > { %2251 = vmatmul.mubr.bf16.gmra.mrb[8].mxu0 %v3233_v52  ;;  %2739 = vmatpush1.bf16.msra.mxu1 %v3234_v53 }
  0xd8   : > { %2280 = vmatpush1.bf16.msra.mxu0 %v3234_v53  ;;  %2728 = vmatprep.subr.bf16.mxu1 %v3239_v54 }
  0xd9   : > { %2281 = vmatprep.subr.bf16.mxu0 %v3239_v54  ;;  %2041 = vmatprep.mubr.bf16.mxu1 %v3240_v55 }
  0xda   : > { %2260 = vmatprep.mubr.bf16.mxu0 %v3242_v56 }
  0xdb   : > { %2740 = vmatpush1.bf16.msra.mxu1 %v3237_v57 }
  0xdc   : > { %2282 = vmatpush1.bf16.msra.mxu0 %v3237_v57  ;;  %2729 = vmatprep.subr.bf16.mxu1 %v3248_v58 }
  0xdd   : > { %2283 = vmatprep.subr.bf16.mxu0 %v3248_v58 }
  0xde   : > { %2042 = vmatmul.mubr.bf16.gmra.mrb[12].mxu1 %v3244_v59 }
  0xdf   : > { %2261 = vmatmul.mubr.bf16.gmra.mrb[12].mxu0 %v3245_v60  ;;  %2741 = vmatpush1.bf16.msra.mxu1 %v3246_v61 }
  0xe0   : > { %2284 = vmatpush1.bf16.msra.mxu0 %v3246_v61  ;;  %2730 = vmatprep.subr.bf16.mxu1 %v3251_v62 }
  0xe1   : > { %2285 = vmatprep.subr.bf16.mxu0 %v3251_v62  ;;  %2716 = vmatprep.mubr.msk.bf16.mxu0 %vm1820_vm0, %v3266_v63 }
  0xe2   : > { %2718 = vmatprep.mubr.msk.bf16.mxu1 %vm1820_vm0, %v3269_v0 }
  0xe3   : > { %2742 = vmatpush1.bf16.msra.mxu1 %v3249_v1 }
  0xe4   : > { %2286 = vmatpush1.bf16.msra.mxu0 %v3249_v1  ;;  %2731 = vmatprep.subr.bf16.mxu1 %v3254_v2 }
  0xe5   : > { %2287 = vmatprep.subr.bf16.mxu0 %v3254_v2 }
  0xe7   : > { %2743 = vmatpush1.bf16.msra.mxu1 %v3252_v3 }
  0xe8   : > { %2288 = vmatpush1.bf16.msra.mxu0 %v3252_v3  ;;  %2732 = vmatprep.subr.bf16.mxu1 %v3257_v4 }
  0xe9   : > { %2289 = vmatprep.subr.bf16.mxu0 %v3257_v4 }
  0xeb   : > { %2744 = vmatpush1.bf16.msra.mxu1 %v3255_v5 }
  0xec   : > { %2290 = vmatpush1.bf16.msra.mxu0 %v3255_v5  ;;  %2733 = vmatprep.subr.bf16.mxu1 %v3260_v6 }
  0xed   : > { %2291 = vmatprep.subr.bf16.mxu0 %v3260_v6 }
  0xef   : > { %2745 = vmatpush1.bf16.msra.mxu1 %v3258_v7 }
  0xf0   : > { %2292 = vmatpush1.bf16.msra.mxu0 %v3258_v7  ;;  %2734 = vmatprep.subr.bf16.mxu1 %v3263_v8 }
  0xf1   : > { %2293 = vmatprep.subr.bf16.mxu0 %v3263_v8 }
  0xf3   : > { %2746 = vmatpush1.bf16.msra.mxu1 %v3261_v9 }
  0xf4   : > { %2294 = vmatpush1.bf16.msra.mxu0 %v3261_v9 }
  0xf6   : > { %2324 = vmatmul.mubr.bf16.vlgmr.msra.gmra.mrb[16].mxu1 %v3267_v11 }
  0xf7   : > { %2304 = vmatmul.mubr.bf16.vlgmr.msra.gmra.mrb[0].mxu0 %v3264_v10  ;;  %2719 = vmatprep.mubr.msk.bf16.mxu1 %vm1820_vm0, %v3272_v13 }
  0xf8   : > { %2717 = vmatprep.mubr.msk.bf16.mxu0 %vm1820_vm0, %v3270_v12 }
  0xfe   : > { %2334 = vmatmul.mubr.bf16.gmra.mrb[20].mxu1 %v3275_v15 }
  0xff   : > { %2314 = vmatmul.mubr.bf16.gmra.mrb[4].mxu0 %v3274_v14 }
 0x199   : > { %v2013_v16 = vpop.f32.mrb[0].mxu1 }
 0x19a   : > { %v2015_v17 = vpop.f32.mrb[1].mxu1  ;;  %v2747_v63 = vadd.f32 %v2013_v16, %v4041_v29 }
 0x19b   : > { %v2017_v18 = vpop.f32.mrb[2].mxu1  ;;  %v2749_v0 = vadd.f32 %v2015_v17, %v4043_v30 }
 0x19c   : > { %v2019_v20 = vpop.f32.mrb[3].mxu1  ;;  %v2751_v3 = vadd.f32 %v2017_v18, %v4041_v29 }
 0x19d   : > { %v2753_v8 = vadd.f32 %v2019_v20, %v4043_v30 }
 0x1a1   : > { %v4030_v22 = vpop.f32.mrb[4].mxu1 }
 0x1a2   : > { %v4032_v23 = vpop.f32.mrb[5].mxu1 }
 0x1a3   : > { %v4034_v24 = vpop.f32.mrb[6].mxu1 }
 0x1a4   : > { %v4036_v26 = vpop.f32.mrb[7].mxu1 }
 0x1a9   : > { %v2033_v31 = vpop.f32.mrb[8].mxu1 }
 0x1aa   : > { %v2252_v32 = vpop.f32.mrb[8].mxu0  ;;  %v2763_v33 = vadd.f32 %v2033_v31, %v4041_v29  ;;  %v2035_v34 = vpop.f32.mrb[9].mxu1 }
 0x1ab   : > { %v2254_v35 = vpop.f32.mrb[9].mxu0  ;;  %v2766_v36 = vadd.f32 %v2035_v34, %v4043_v30  ;;  %v2037_v37 = vpop.f32.mrb[10].mxu1  ;;  %v2757_v34 = vadd.f32 %v4032_v23, %v4043_v30 }
 0x1ac   : > { %v2256_v38 = vpop.f32.mrb[10].mxu0  ;;  %v2764_v39 = vadd.f32 %v2763_v33, %v2252_v32  ;;  %v2769_v40 = vadd.f32 %v2037_v37, %v4041_v29  ;;  %v2039_v41 = vpop.f32.mrb[11].mxu1  ;;  %v2755_v33 = vadd.f32 %v4030_v22, %v4041_v29  ;;  %v2759_v37 = vadd.f32 %v4034_v24, %v4041_v29 }
 0x1ad   : > { %v2258_v42 = vpop.f32.mrb[11].mxu0  ;;  %v2767_v43 = vadd.f32 %v2766_v36, %v2254_v35  ;;  %v2772_v44 = vadd.f32 %v2039_v41, %v4043_v30  ;;  %v2761_v22 = vadd.f32 %v4036_v26, %v4043_v30 }
 0x1ae   : > { %v2770_v45 = vadd.f32 %v2769_v40, %v2256_v38 }
 0x1af   : > { %v2773_v46 = vadd.f32 %v2772_v44, %v2258_v42 }
 0x1b1   : > { %v2043_v47 = vpop.f32.mrb[12].mxu1 }
 0x1b2   : > { %v2262_v48 = vpop.f32.mrb[12].mxu0  ;;  %v2775_v49 = vadd.f32 %v2043_v47, %v4041_v29  ;;  %v2045_v50 = vpop.f32.mrb[13].mxu1 }
 0x1b3   : > { %v2264_v51 = vpop.f32.mrb[13].mxu0  ;;  %v2778_v52 = vadd.f32 %v2045_v50, %v4043_v30  ;;  %v2047_v53 = vpop.f32.mrb[14].mxu1 }
 0x1b4   : > { %v2266_v54 = vpop.f32.mrb[14].mxu0  ;;  %v2776_v55 = vadd.f32 %v2775_v49, %v2262_v48  ;;  %v2781_v56 = vadd.f32 %v2047_v53, %v4041_v29  ;;  %v2049_v57 = vpop.f32.mrb[15].mxu1 }
 0x1b5   : > { %v2268_v58 = vpop.f32.mrb[15].mxu0  ;;  %v2779_v59 = vadd.f32 %v2778_v52, %v2264_v51  ;;  %v2784_v60 = vadd.f32 %v2049_v57, %v4043_v30 }
 0x1b6   : > { %v2782_v61 = vadd.f32 %v2781_v56, %v2266_v54 }
 0x1b7   : > { %v2785_v62 = vadd.f32 %v2784_v60, %v2268_v58 }
 0x1c9   : > { %v2325_v2 = vpop.f32.mrb[16].mxu1 }
 0x1ca   : > { %v2305_v1 = vpop.f32.mrb[0].mxu0  ;;  %v2765_v5 = vadd.f32 %v2764_v39, %v2325_v2  ;;  %v2327_v7 = vpop.f32.mrb[17].mxu1 }
 0x1cb   : > { %v2748_v4 = vadd.f32 %v2747_v63, %v2305_v1  ;;  %v2307_v6 = vpop.f32.mrb[1].mxu0  ;;  %v2768_v10 = vadd.f32 %v2767_v43, %v2327_v7  ;;  %v2329_v12 = vpop.f32.mrb[18].mxu1 }
 0x1cc   : > { %v2750_v9 = vadd.f32 %v2749_v0, %v2307_v6  ;;  %v2309_v11 = vpop.f32.mrb[2].mxu0  ;;  %v2352_v14 = vmax.f32 %v2765_v5, 0.0  ;;  %v2771_v16 = vadd.f32 %v2770_v45, %v2329_v12  ;;  %v2331_v18 = vpop.f32.mrb[19].mxu1 }
 0x1cd   : > { %v2344_v13 = vmax.f32 %v2748_v4, 0.0  ;;  %v2752_v15 = vadd.f32 %v2751_v3, %v2309_v11  ;;  %v2311_v17 = vpop.f32.mrb[3].mxu0  ;;  %v2353_v20 = vmax.f32 %v2768_v10, 0.0  ;;  %v2774_v25 = vadd.f32 %v2773_v46, %v2331_v18 }
 0x1ce   : > { %v2345_v19 = vmax.f32 %v2750_v9, 0.0  ;;  %v2754_v21 = vadd.f32 %v2753_v8, %v2311_v17  ;;  %2368 = vst [vmem:[%s4061_s18 + $0x40] sm:$0xff] %v2352_v14  ;;  %v2354_v28 = vmax.f32 %v2771_v16, 0.0 }
 0x1cf   : > { %2360 = vst [vmem:[%s4061_s18] sm:$0xff] %v2344_v13  ;;  %v2346_v27 = vmax.f32 %v2752_v15, 0.0  ;;  %2369 = vst.msk [vmem:[%s4061_s18 + $0x48] sm:$0xff] %vm1820_vm0, %v2353_v20  ;;  %v2355_v32 = vmax.f32 %v2774_v25, 0.0 }
 0x1d0   : > { %2361 = vst.msk [vmem:[%s4061_s18 + $0x8] sm:$0xff] %vm1820_vm0, %v2345_v19  ;;  %v2347_v31 = vmax.f32 %v2754_v21, 0.0  ;;  %2370 = vst [vmem:[%s4061_s18 + $0x50] sm:$0xff] %v2354_v28 }
 0x1d1   : > { %2362 = vst [vmem:[%s4061_s18 + $0x10] sm:$0xff] %v2346_v27  ;;  %2371 = vst.msk [vmem:[%s4061_s18 + $0x58] sm:$0xff] %vm1820_vm0, %v2355_v32  ;;  %v2335_v36 = vpop.f32.mrb[20].mxu1 }
 0x1d2   : > { %2363 = vst.msk [vmem:[%s4061_s18 + $0x18] sm:$0xff] %vm1820_vm0, %v2347_v31  ;;  %v2315_v35 = vpop.f32.mrb[4].mxu0  ;;  %v2777_v39 = vadd.f32 %v2776_v55, %v2335_v36  ;;  %v2337_v41 = vpop.f32.mrb[21].mxu1 }
 0x1d3   : > { %v2756_v38 = vadd.f32 %v2755_v33, %v2315_v35  ;;  %v2317_v40 = vpop.f32.mrb[5].mxu0  ;;  %v2780_v23 = vadd.f32 %v2779_v59, %v2337_v41  ;;  %v2339_v44 = vpop.f32.mrb[22].mxu1 }
 0x1d4   : > { %v2758_v42 = vadd.f32 %v2757_v34, %v2317_v40  ;;  %v2319_v43 = vpop.f32.mrb[6].mxu0  ;;  %v2356_v46 = vmax.f32 %v2777_v39, 0.0  ;;  %v2783_v24 = vadd.f32 %v2782_v61, %v2339_v44  ;;  %v2341_v48 = vpop.f32.mrb[23].mxu1 }
 0x1d5   : > { %v2348_v45 = vmax.f32 %v2756_v38, 0.0  ;;  %v2760_v47 = vadd.f32 %v2759_v37, %v2319_v43  ;;  %v2321_v29 = vpop.f32.mrb[7].mxu0  ;;  %v2357_v50 = vmax.f32 %v2780_v23, 0.0  ;;  %v2786_v30 = vadd.f32 %v2785_v62, %v2341_v48 }
 0x1d6   : > { %v2349_v49 = vmax.f32 %v2758_v42, 0.0  ;;  %v2762_v26 = vadd.f32 %v2761_v22, %v2321_v29  ;;  %2372 = vst [vmem:[%s4061_s18 + $0x60] sm:$0xff] %v2356_v46  ;;  %v2358_v52 = vmax.f32 %v2783_v24, 0.0 }
 0x1d7   : > { %2364 = vst [vmem:[%s4061_s18 + $0x20] sm:$0xff] %v2348_v45  ;;  %v2350_v51 = vmax.f32 %v2760_v47, 0.0  ;;  %2373 = vst.msk [vmem:[%s4061_s18 + $0x68] sm:$0xff] %vm1820_vm0, %v2357_v50  ;;  %v2359_v54 = vmax.f32 %v2786_v30, 0.0 }
 0x1d8   : > { %2365 = vst.msk [vmem:[%s4061_s18 + $0x28] sm:$0xff] %vm1820_vm0, %v2349_v49  ;;  %v2351_v53 = vmax.f32 %v2762_v26, 0.0  ;;  %2374 = vst [vmem:[%s4061_s18 + $0x70] sm:$0xff] %v2358_v52 }
 0x1d9   : > { %2366 = vst [vmem:[%s4061_s18 + $0x30] sm:$0xff] %v2350_v51  ;;  %2375 = vst.msk [vmem:[%s4061_s18 + $0x78] sm:$0xff] %vm1820_vm0, %v2359_v54 }
 0x1da   : > { %2367 = vst.msk [vmem:[%s4061_s18 + $0x38] sm:$0xff] %vm1820_vm0, %v2351_v53 }
 0x1db PF: > { %s13_s12 = sadd.s32 1, %s3282_s12  }
 0x1dc   : > { %p10_p4 = scmp.ge.s32.totalorder %s13_s12, 4  }
 0x1de   :  { %12 = sbr.rel (!%p10_p4) target bundleno = 1 (0x1), region = 62 }

// kernel: _lambda_.7
= control target key start
LH: loop header
LB: loop body
LE: loop exit
PB: predicated region body
PF: predicated region fallthrough
CT: control target
= control target key end

     0   :  { %s5114_s12 = smov 0   ;;  %s6529_s0 = inlined_call_operand.vmem [shape: bf16[128,1728], index: 0, kind: input, shape index: {}]   ;;  %s6530_s1 = inlined_call_operand.vmem [shape: bf16[1728,320], index: 1, kind: input, shape index: {}]   ;;  %s6531_s2 = inlined_call_operand.vmem [shape: f32[1,320], index: 2, kind: input, shape index: {}]   ;;  %s6532_s3 = inlined_call_operand.vmem [shape: f32[128,320], index: 3, kind: output, shape index: {}]  }
   0x1 LB: > { %s3774_s13 = sadd.s32 4294967295, %s5091_s12   ;;  %p3778_p0 = scmp.ge.s32.totalorder %s5091_s12, 1  ;;  %s5091_s12 = sphi %s5114_s12, %s13_s12  }
   0x2   : > { %p139_p1 = scmp.lt.s32.totalorder %s5091_s12, 3 }
   0x4   : > { %p140_p2 = pnand %p3778_p0, %p139_p1 }
   0x6   : > { %143 = sbr.rel (%p140_p2) target bundleno = 602 (0x25a), region = 32 }
   0xd   : > { %v4560_v0 = vld [vmem:[%s6530_s1 + $0x4] ss:$12 sps:$4 sm:$0xff]   ;;  %v4564_v2 = vld [vmem:[%s6530_s1] ss:$12 sps:$4 sm:$0xff]   ;;  %v4566_v4 = vld [vmem:[%s6530_s1 + $0x1c] ss:$12 sps:$4 sm:$0xff]  }
   0xe   : > { %v4562_v1 = vld [vmem:[%s6530_s1 + $0x184] ss:$12 sps:$4 sm:$0xff]   ;;  %2702 = vmatprep.subr.bf16.mxu1 %v4560_v0  ;;  %v4565_v3 = vld [vmem:[%s6530_s1 + $0x180] ss:$12 sps:$4 sm:$0xff]   ;;  %v4568_v5 = vld [vmem:[%s6530_s1 + $0x19c] ss:$12 sps:$4 sm:$0xff]  }
   0xf   : > { %2775 = vmatprep.subr.bf16.mxu0 %v4562_v1  ;;  %2703 = vmatpush1.bf16.msra.mxu1 %v4564_v2  ;;  %v4570_v6 = vld [vmem:[%s6530_s1 + $0x18] ss:$12 sps:$4 sm:$0xff]   ;;  %v4572_v8 = vld [vmem:[%s6530_s1 + $0x34] ss:$12 sps:$4 sm:$0xff]   ;;  %v4576_v10 = vld [vmem:[%s6530_s1 + $0x30] ss:$12 sps:$4 sm:$0xff]  }
  0x10   : > { %2776 = vmatpush1.bf16.msra.mxu0 %v4565_v3  ;;  %2704 = vmatprep.subr.bf16.mxu1 %v4566_v4  ;;  %v4571_v7 = vld [vmem:[%s6530_s1 + $0x198] ss:$12 sps:$4 sm:$0xff]   ;;  %v4574_v9 = vld [vmem:[%s6530_s1 + $0x1b4] ss:$12 sps:$4 sm:$0xff]   ;;  %v4577_v11 = vld [vmem:[%s6530_s1 + $0x1b0] ss:$12 sps:$4 sm:$0xff]  }
  0x11   : > { %2777 = vmatprep.subr.bf16.mxu0 %v4568_v5  ;;  %v4578_v12 = vld [vmem:[%s6530_s1 + $0x4c] ss:$12 sps:$4 sm:$0xff]   ;;  %v4582_v14 = vld [vmem:[%s6530_s1 + $0x48] ss:$12 sps:$4 sm:$0xff]   ;;  %v4584_v16 = vld [vmem:[%s6530_s1 + $0x64] ss:$12 sps:$4 sm:$0xff]  }
  0x12   : > { %v4580_v13 = vld [vmem:[%s6530_s1 + $0x1cc] ss:$12 sps:$4 sm:$0xff]   ;;  %v4583_v15 = vld [vmem:[%s6530_s1 + $0x1c8] ss:$12 sps:$4 sm:$0xff]   ;;  %v4586_v17 = vld [vmem:[%s6530_s1 + $0x1e4] ss:$12 sps:$4 sm:$0xff]  }
  0x13   : > { %2705 = vmatpush1.bf16.msra.mxu1 %v4570_v6  ;;  %v4588_v18 = vld [vmem:[%s6530_s1 + $0x60] ss:$12 sps:$4 sm:$0xff]   ;;  %v4590_v20 = vld [vmem:[%s6530_s1 + $0x7c] ss:$12 sps:$4 sm:$0xff]   ;;  %v4594_v22 = vld [vmem:[%s6530_s1 + $0x78] ss:$12 sps:$4 sm:$0xff]  }
  0x14   : > { %2778 = vmatpush1.bf16.msra.mxu0 %v4571_v7  ;;  %2706 = vmatprep.subr.bf16.mxu1 %v4572_v8  ;;  %v4589_v19 = vld [vmem:[%s6530_s1 + $0x1e0] ss:$12 sps:$4 sm:$0xff]   ;;  %v4592_v21 = vld [vmem:[%s6530_s1 + $0x1fc] ss:$12 sps:$4 sm:$0xff]   ;;  %v4595_v23 = vld [vmem:[%s6530_s1 + $0x1f8] ss:$12 sps:$4 sm:$0xff]  }
  0x15   : > { %2779 = vmatprep.subr.bf16.mxu0 %v4574_v9  ;;  %v4596_v24 = vld [vmem:[%s6530_s1 + $0x94] ss:$12 sps:$4 sm:$0xff]   ;;  %v4600_v26 = vld [vmem:[%s6530_s1 + $0x90] ss:$12 sps:$4 sm:$0xff]   ;;  %v4602_v28 = vld [vmem:[%s6530_s1 + $0xac] ss:$12 sps:$4 sm:$0xff]  }
  0x16   : > { %v4598_v25 = vld [vmem:[%s6530_s1 + $0x214] ss:$12 sps:$4 sm:$0xff]   ;;  %v4601_v27 = vld [vmem:[%s6530_s1 + $0x210] ss:$12 sps:$4 sm:$0xff]   ;;  %v4604_v29 = vld [vmem:[%s6530_s1 + $0x22c] ss:$12 sps:$4 sm:$0xff]  }
  0x17   : > { %2707 = vmatpush1.bf16.msra.mxu1 %v4576_v10  ;;  %s3779_s24 = sshll.u32 %s3774_s13, 3  ;;  %v4606_v30 = vld [vmem:[%s6530_s1 + $0xa8] ss:$12 sps:$4 sm:$0xff]   ;;  %v4608_v32 = vld [vmem:[%s6530_s1 + $0xc4] ss:$12 sps:$4 sm:$0xff]   ;;  %vm2689_vm0 = vcmask 523264  }
  0x18   : > { %2780 = vmatpush1.bf16.msra.mxu0 %v4577_v11  ;;  %2708 = vmatprep.subr.bf16.mxu1 %v4578_v12  ;;  %v4607_v31 = vld [vmem:[%s6530_s1 + $0x228] ss:$12 sps:$4 sm:$0xff]   ;;  %p166_p3 = scmp.lt.s32.totalorder %s3779_s24, 15  ;;  %v4610_v33 = vld [vmem:[%s6530_s1 + $0x244] ss:$12 sps:$4 sm:$0xff]  }
  0x19   : > { %2781 = vmatprep.subr.bf16.mxu0 %v4580_v13  ;;  %v4612_v34 = vld [vmem:[%s6530_s1 + $0xc0] ss:$12 sps:$4 sm:$0xff]   ;;  %v4614_v36 = vld [vmem:[%s6530_s1 + $0xdc] ss:$12 sps:$4 sm:$0xff]   ;;  %v4618_v38 = vld [vmem:[%s6530_s1 + $0xd8] ss:$12 sps:$4 sm:$0xff]  }
  0x1a   : > { %v4613_v35 = vld [vmem:[%s6530_s1 + $0x240] ss:$12 sps:$4 sm:$0xff]   ;;  %s6538_s24 = smov (!%p166_p3, %s3779_s24), 15  ;;  %v4616_v37 = vld [vmem:[%s6530_s1 + $0x25c] ss:$12 sps:$4 sm:$0xff]  }
  0x1b   : > { %2709 = vmatpush1.bf16.msra.mxu1 %v4582_v14  ;;  %v4619_v39 = vld [vmem:[%s6530_s1 + $0x258] ss:$12 sps:$4 sm:$0xff]   ;;  %v4620_v40 = vld [vmem:[%s6530_s1 + $0xf4] ss:$12 sps:$4 sm:$0xff]   ;;  %s4549_s21 = smul.u32 56, %s6538_s24 }
  0x1c   : > { %2782 = vmatpush1.bf16.msra.mxu0 %v4583_v15  ;;  %2710 = vmatprep.subr.bf16.mxu1 %v4584_v16  ;;  %v4622_v41 = vld [vmem:[%s6530_s1 + $0x274] ss:$12 sps:$4 sm:$0xff]   ;;  %v4624_v42 = vld [vmem:[%s6530_s1 + $0xf0] ss:$12 sps:$4 sm:$0xff]   ;;  %v4626_v44 = vld [vmem:[%s6530_s1 + $0x10c] ss:$12 sps:$4 sm:$0xff]  }
  0x1d   : > { %2783 = vmatprep.subr.bf16.mxu0 %v4586_v17  ;;  %v4625_v43 = vld [vmem:[%s6530_s1 + $0x270] ss:$12 sps:$4 sm:$0xff]   ;;  %s5265_s13 = scalar_lea.vmem %s6529_s0, %s4549_s21  ;;  %v4628_v45 = vld [vmem:[%s6530_s1 + $0x28c] ss:$12 sps:$4 sm:$0xff]   ;;  %v4630_v46 = vld [vmem:[%s6530_s1 + $0x108] ss:$12 sps:$4 sm:$0xff]  }
  0x1e   : > { %v4631_v47 = vld [vmem:[%s6530_s1 + $0x288] ss:$12 sps:$4 sm:$0xff]   ;;  %v4632_v48 = vld [vmem:[%s6530_s1 + $0x124] ss:$12 sps:$4 sm:$0xff]   ;;  %v4636_v52 = vld [vmem:[%s6530_s1 + $0x120] ss:$12 sps:$4 sm:$0xff]  }
  0x1f   : > { %2711 = vmatpush1.bf16.msra.mxu1 %v4588_v18  ;;  %v5280_v49 = vld [vmem:[%s5265_s13 + $0x4] ss:$56 sps:$4 sm:$0xff]   ;;  %v4637_v53 = vld [vmem:[%s6530_s1 + $0x2a0] ss:$12 sps:$4 sm:$0xff]   ;;  %v4654_v0 = vld [vmem:[%s6530_s1 + $0x168] ss:$12 sps:$4 sm:$0xff]  }
  0x20   : > { %2784 = vmatpush1.bf16.msra.mxu0 %v4589_v19  ;;  %2712 = vmatprep.subr.bf16.mxu1 %v4590_v20  ;;  %v4634_v50 = vld [vmem:[%s6530_s1 + $0x2a4] ss:$12 sps:$4 sm:$0xff]   ;;  %v4638_v54 = vld [vmem:[%s6530_s1 + $0x13c] ss:$12 sps:$4 sm:$0xff]   ;;  %v4644_v58 = vld [vmem:[%s6530_s1 + $0x154] ss:$12 sps:$4 sm:$0xff]  }
  0x21   : > { %2785 = vmatprep.subr.bf16.mxu0 %v4592_v21  ;;  %v4661_v51 = vld [vmem:[%s5265_s13 + $0xc] ss:$56 sps:$4 sm:$0xff]   ;;  %2734 = vmatprep.mubr.bf16.mxu1 %v5280_v49  ;;  %v4640_v55 = vld [vmem:[%s6530_s1 + $0x2bc] ss:$12 sps:$4 sm:$0xff]   ;;  %v4646_v59 = vld [vmem:[%s6530_s1 + $0x2d4] ss:$12 sps:$4 sm:$0xff]  }
  0x22   : > { %2807 = vmatprep.mubr.bf16.mxu0 %v4661_v51  ;;  %v4642_v56 = vld [vmem:[%s6530_s1 + $0x138] ss:$12 sps:$4 sm:$0xff]   ;;  %v4648_v60 = vld [vmem:[%s6530_s1 + $0x150] ss:$12 sps:$4 sm:$0xff]   ;;  %v4655_v1 = vld [vmem:[%s6530_s1 + $0x2e8] ss:$12 sps:$4 sm:$0xff]  }
  0x23   : > { %2713 = vmatpush1.bf16.msra.mxu1 %v4594_v22  ;;  %v4643_v57 = vld [vmem:[%s6530_s1 + $0x2b8] ss:$12 sps:$4 sm:$0xff]   ;;  %v4649_v61 = vld [vmem:[%s6530_s1 + $0x2d0] ss:$12 sps:$4 sm:$0xff]   ;;  %v5339_v5 = vld [vmem:[%s5265_s13 + $0x8] ss:$56 sps:$4 sm:$0xff]  }
  0x24   : > { %2786 = vmatpush1.bf16.msra.mxu0 %v4595_v23  ;;  %2714 = vmatprep.subr.bf16.mxu1 %v4596_v24  ;;  %v4650_v62 = vld [vmem:[%s6530_s1 + $0x16c] ss:$12 sps:$4 sm:$0xff]   ;;  %v4664_v2 = vld [vmem:[%s6530_s1 + $0x304] ss:$12 sps:$4 sm:$0xff]   ;;  %v4670_v8 = vld [vmem:[%s6530_s1 + $0x31c] ss:$12 sps:$4 sm:$0xff]  }
  0x25   : > { %2787 = vmatprep.subr.bf16.mxu0 %v4598_v25  ;;  %v4652_v63 = vld [vmem:[%s6530_s1 + $0x2ec] ss:$12 sps:$4 sm:$0xff]   ;;  %v4667_v3 = vld [vmem:[%s6530_s1 + $0x904] ss:$12 sps:$4 sm:$0xff]   ;;  %v4673_v9 = vld [vmem:[%s6530_s1 + $0x91c] ss:$12 sps:$4 sm:$0xff]  }
  0x26   : > { %v5336_v4 = vld [vmem:[%s5265_s13] ss:$56 sps:$4 sm:$0xff]   ;;  %v5354_v10 = vld [vmem:[%s5265_s13 + $0x74] ss:$56 sps:$4 sm:$0xff]   ;;  %v4674_v15 = vld [vmem:[%s6530_s1 + $0x330] ss:$12 sps:$4 sm:$0xff]  }
  0x27   : > { %2715 = vmatpush1.bf16.msra.mxu1 %v4600_v26  ;;  %v4662_v6 = vld [vmem:[%s6530_s1 + $0x300] ss:$12 sps:$4 sm:$0xff]   ;;  %v4668_v11 = vld [vmem:[%s6530_s1 + $0x318] ss:$12 sps:$4 sm:$0xff]   ;;  %v4677_v16 = vld [vmem:[%s6530_s1 + $0x930] ss:$12 sps:$4 sm:$0xff]  }
  0x28   : > { %2788 = vmatpush1.bf16.msra.mxu0 %v4601_v27  ;;  %2716 = vmatprep.subr.bf16.mxu1 %v4602_v28  ;;  %v4665_v7 = vld [vmem:[%s6530_s1 + $0x900] ss:$12 sps:$4 sm:$0xff]   ;;  %v4671_v12 = vld [vmem:[%s6530_s1 + $0x918] ss:$12 sps:$4 sm:$0xff]   ;;  %v5378_v17 = vld [vmem:[%s5265_s13 + $0x70] ss:$56 sps:$4 sm:$0xff]  }
  0x29   : > { %2789 = vmatprep.subr.bf16.mxu0 %v4604_v29  ;;  %v4676_v13 = vld [vmem:[%s6530_s1 + $0x334] ss:$12 sps:$4 sm:$0xff]   ;;  %v4682_v18 = vld [vmem:[%s6530_s1 + $0x34c] ss:$12 sps:$4 sm:$0xff]   ;;  %v5390_v21 = vld [vmem:[%s5265_s13 + $0xe4] ss:$56 sps:$4 sm:$0xff]  }
  0x2a   : > { %v4679_v14 = vld [vmem:[%s6530_s1 + $0x934] ss:$12 sps:$4 sm:$0xff]   ;;  %v4685_v19 = vld [vmem:[%s6530_s1 + $0x94c] ss:$12 sps:$4 sm:$0xff]   ;;  %v4688_v23 = vld [vmem:[%s6530_s1 + $0x364] ss:$12 sps:$4 sm:$0xff]  }
  0x2b   : > { %2717 = vmatpush1.bf16.msra.mxu1 %v4606_v30  ;;  %v4680_v20 = vld [vmem:[%s6530_s1 + $0x348] ss:$12 sps:$4 sm:$0xff]   ;;  %v4691_v25 = vld [vmem:[%s6530_s1 + $0x964] ss:$12 sps:$4 sm:$0xff]   ;;  %v4686_v26 = vld [vmem:[%s6530_s1 + $0x360] ss:$12 sps:$4 sm:$0xff]  }
  0x2c   : > { %2790 = vmatpush1.bf16.msra.mxu0 %v4607_v31  ;;  %2718 = vmatprep.subr.bf16.mxu1 %v4608_v32  ;;  %v4683_v22 = vld [vmem:[%s6530_s1 + $0x948] ss:$12 sps:$4 sm:$0xff]   ;;  %v4689_v27 = vld [vmem:[%s6530_s1 + $0x960] ss:$12 sps:$4 sm:$0xff]   ;;  %v5417_v29 = vld [vmem:[%s5265_s13 + $0x78] ss:$56 sps:$4 sm:$0xff]  }
  0x2d   : > { %2791 = vmatprep.subr.bf16.mxu0 %v4610_v33  ;;  %v5400_v24 = vld [vmem:[%s5265_s13 + $0x7c] ss:$56 sps:$4 sm:$0xff]   ;;  %v5414_v28 = vld [vmem:[%s5265_s13 + $0xe0] ss:$56 sps:$4 sm:$0xff]   ;;  %s4550_s15 = smul.u32 24, %s6538_s24 }
  0x2e   : > { %v4694_v30 = vld [vmem:[%s6530_s1 + $0x37c] ss:$12 sps:$4 sm:$0xff]   ;;  %v4692_v32 = vld [vmem:[%s6530_s1 + $0x378] ss:$12 sps:$4 sm:$0xff]   ;;  %v5429_v33 = vld [vmem:[%s5265_s13 + $0x154] ss:$56 sps:$4 sm:$0xff]  }
  0x2f   : > { %2719 = vmatpush1.bf16.msra.mxu1 %v4612_v34  ;;  %v4697_v31 = vld [vmem:[%s6530_s1 + $0x97c] ss:$12 sps:$4 sm:$0xff]   ;;  %v4695_v34 = vld [vmem:[%s6530_s1 + $0x978] ss:$12 sps:$4 sm:$0xff]   ;;  %v4716_v51 = vld [vmem:[%s6530_s1 + $0x3c0] ss:$12 sps:$4 sm:$0xff]   ;;  %s6435_s17 = scalar_lea.vmem %s6532_s3, %s4550_s15 }
  0x30   : > { %2792 = vmatpush1.bf16.msra.mxu0 %v4613_v35  ;;  %2720 = vmatprep.subr.bf16.mxu1 %v4614_v36  ;;  %v4703_v35 = vld [vmem:[%s6530_s1 + $0x394] ss:$12 sps:$4 sm:$0xff]   ;;  %v5440_v36 = vld [vmem:[%s5265_s13 + $0xec] ss:$56 sps:$4 sm:$0xff]  }
  0x31   : > { %2793 = vmatprep.subr.bf16.mxu0 %v4616_v37  ;;  %v4706_v37 = vld [vmem:[%s6530_s1 + $0x994] ss:$12 sps:$4 sm:$0xff]  }
  0x33   : > { %2721 = vmatpush1.bf16.msra.mxu1 %v4618_v38  ;;  %v4701_v38 = vld [vmem:[%s6530_s1 + $0x390] ss:$12 sps:$4 sm:$0xff]  }
  0x34   : > { %2794 = vmatpush1.bf16.msra.mxu0 %v4619_v39  ;;  %2722 = vmatprep.subr.bf16.mxu1 %v4620_v40  ;;  %v5451_v39 = vld [vmem:[%s5265_s13 + $0x150] ss:$56 sps:$4 sm:$0xff]  }
  0x35   : > { %2795 = vmatprep.subr.bf16.mxu0 %v4622_v41  ;;  %v5454_v40 = vld [vmem:[%s5265_s13 + $0xe8] ss:$56 sps:$4 sm:$0xff]   ;;  %v4704_v41 = vld [vmem:[%s6530_s1 + $0x990] ss:$12 sps:$4 sm:$0xff]  }
  0x37   : > { %2723 = vmatpush1.bf16.msra.mxu1 %v4624_v42  ;;  %v4709_v42 = vld [vmem:[%s6530_s1 + $0x3ac] ss:$12 sps:$4 sm:$0xff]  }
  0x38   : > { %2796 = vmatpush1.bf16.msra.mxu0 %v4625_v43  ;;  %2724 = vmatprep.subr.bf16.mxu1 %v4626_v44  ;;  %v4712_v43 = vld [vmem:[%s6530_s1 + $0x9ac] ss:$12 sps:$4 sm:$0xff]   ;;  %v4707_v44 = vld [vmem:[%s6530_s1 + $0x3a8] ss:$12 sps:$4 sm:$0xff]  }
  0x39   : > { %2797 = vmatprep.subr.bf16.mxu0 %v4628_v45  ;;  %v4710_v45 = vld [vmem:[%s6530_s1 + $0x9a8] ss:$12 sps:$4 sm:$0xff]  }
  0x3b   : > { %2725 = vmatpush1.bf16.msra.mxu1 %v4630_v46  ;;  %v4748_v46 = vld [vmem:[%s5265_s13 + $0x34] ss:$56 sps:$4 sm:$0xff]  }
  0x3c   : > { %2798 = vmatpush1.bf16.msra.mxu0 %v4631_v47  ;;  %2726 = vmatprep.subr.bf16.mxu1 %v4632_v48  ;;  %v4718_v47 = vld [vmem:[%s6530_s1 + $0x3c4] ss:$12 sps:$4 sm:$0xff]  }
  0x3d   : > { %2799 = vmatprep.subr.bf16.mxu0 %v4634_v50  ;;  %v4721_v48 = vld [vmem:[%s6530_s1 + $0x9c4] ss:$12 sps:$4 sm:$0xff]   ;;  %v5481_v50 = vld [vmem:[%s5265_s13 + $0x15c] ss:$56 sps:$4 sm:$0xff]  }
  0x3f   : > { %2727 = vmatpush1.bf16.msra.mxu1 %v4636_v52  ;;  %v4719_v52 = vld [vmem:[%s6530_s1 + $0x9c0] ss:$12 sps:$4 sm:$0xff]  }
  0x40   : > { %2800 = vmatpush1.bf16.msra.mxu0 %v4637_v53  ;;  %2728 = vmatprep.subr.bf16.mxu1 %v4638_v54  ;;  %v4724_v53 = vld [vmem:[%s6530_s1 + $0x3dc] ss:$12 sps:$4 sm:$0xff]   ;;  %v5495_v54 = vld [vmem:[%s5265_s13 + $0x158] ss:$56 sps:$4 sm:$0xff]  }
  0x41   : > { %2801 = vmatprep.subr.bf16.mxu0 %v4640_v55  ;;  %v4727_v55 = vld [vmem:[%s6530_s1 + $0x9dc] ss:$12 sps:$4 sm:$0xff]  }
  0x43   : > { %2729 = vmatpush1.bf16.msra.mxu1 %v4642_v56  ;;  %v4722_v56 = vld [vmem:[%s6530_s1 + $0x3d8] ss:$12 sps:$4 sm:$0xff]  }
  0x44   : > { %2802 = vmatpush1.bf16.msra.mxu0 %v4643_v57  ;;  %2730 = vmatprep.subr.bf16.mxu1 %v4644_v58  ;;  %v4725_v57 = vld [vmem:[%s6530_s1 + $0x9d8] ss:$12 sps:$4 sm:$0xff]   ;;  %v4735_v58 = vld [vmem:[%s6530_s1 + $0x3f4] ss:$12 sps:$4 sm:$0xff]  }
  0x45   : > { %2803 = vmatprep.subr.bf16.mxu0 %v4646_v59  ;;  %v4738_v59 = vld [vmem:[%s6530_s1 + $0x9f4] ss:$12 sps:$4 sm:$0xff]  }
  0x47   : > { %2731 = vmatpush1.bf16.msra.mxu1 %v4648_v60  ;;  %v4733_v60 = vld [vmem:[%s6530_s1 + $0x3f0] ss:$12 sps:$4 sm:$0xff]  }
  0x48   : > { %2804 = vmatpush1.bf16.msra.mxu0 %v4649_v61  ;;  %2732 = vmatprep.subr.bf16.mxu1 %v4650_v62  ;;  %v5517_v61 = vld [vmem:[%s5265_s13 + $0x14] ss:$56 sps:$4 sm:$0xff]   ;;  %v4736_v62 = vld [vmem:[%s6530_s1 + $0x9f0] ss:$12 sps:$4 sm:$0xff]  }
  0x49   : > { %2805 = vmatprep.subr.bf16.mxu0 %v4652_v63  ;;  %v4742_v63 = vld [vmem:[%s6530_s1 + $0x40c] ss:$12 sps:$4 sm:$0xff]  }
  0x4b   : > { %2733 = vmatpush1.bf16.msra.mxu1 %v4654_v0  ;;  %v4745_v0 = vld [vmem:[%s6530_s1 + $0xa0c] ss:$12 sps:$4 sm:$0xff]  }
  0x4c   : > { %2806 = vmatpush1.bf16.msra.mxu0 %v4655_v1  ;;  %3140 = vmatprep.subr.bf16.mxu1 %v4667_v3  ;;  %v4740_v1 = vld [vmem:[%s6530_s1 + $0x408] ss:$12 sps:$4 sm:$0xff]   ;;  %v4753_v3 = vld [vmem:[%s6530_s1 + $0x424] ss:$12 sps:$4 sm:$0xff]  }
  0x4d   : > { %2848 = vmatprep.subr.bf16.mxu0 %v4664_v2  ;;  %v4743_v2 = vld [vmem:[%s6530_s1 + $0xa08] ss:$12 sps:$4 sm:$0xff]  }
  0x4e   : > { %2735 = vmatmul.mubr.bf16.vlgmr.msra.gmra.mrb[0].mxu1 %v5336_v4 }
  0x4f   : > { %2808 = vmatmul.mubr.bf16.vlgmr.msra.gmra.mrb[0].mxu0 %v5339_v5  ;;  %3141 = vmatpush1.bf16.msra.mxu1 %v4665_v7  ;;  %v4746_v7 = vld [vmem:[%s5265_s13 + $0x30] ss:$56 sps:$4 sm:$0xff]  }
  0x50   : > { %2849 = vmatpush1.bf16.msra.mxu0 %v4662_v6  ;;  %3142 = vmatprep.subr.bf16.mxu1 %v4673_v9  ;;  %v4754_v6 = vld [vmem:[%s6530_s1 + $0xc8] ss:$12 sps:$4 sm:$0xff]  }
  0x51   : > { %2850 = vmatprep.subr.bf16.mxu0 %v4670_v8  ;;  %2744 = vmatprep.mubr.bf16.mxu1 %v5354_v10  ;;  %v4751_v8 = vld [vmem:[%s6530_s1 + $0x420] ss:$12 sps:$4 sm:$0xff]   ;;  %v4756_v9 = vld [vmem:[%s6530_s1 + $0x8] ss:$12 sps:$4 sm:$0xff]  }
  0x52   : > { %2817 = vmatprep.mubr.bf16.mxu0 %v5400_v24 }
  0x53   : > { %3143 = vmatpush1.bf16.msra.mxu1 %v4671_v12  ;;  %v4760_v12 = vld [vmem:[%s6530_s1 + $0xe0] ss:$12 sps:$4 sm:$0xff]  }
  0x54   : > { %2851 = vmatpush1.bf16.msra.mxu0 %v4668_v11  ;;  %3144 = vmatprep.subr.bf16.mxu1 %v4679_v14  ;;  %v4759_v11 = vld [vmem:[%s6530_s1 + $0x43c] ss:$12 sps:$4 sm:$0xff]   ;;  %v4757_v14 = vld [vmem:[%s6530_s1 + $0x438] ss:$12 sps:$4 sm:$0xff]  }
  0x55   : > { %2852 = vmatprep.subr.bf16.mxu0 %v4676_v13  ;;  %v4762_v13 = vld [vmem:[%s5265_s13 + $0xa4] ss:$56 sps:$4 sm:$0xff]  }
  0x56   : > { %2745 = vmatmul.mubr.bf16.gmra.mrb[4].mxu1 %v5378_v17 }
  0x57   : > { %3145 = vmatpush1.bf16.msra.mxu1 %v4677_v16  ;;  %2754 = vmatprep.mubr.bf16.mxu1 %v5390_v21  ;;  %v4768_v16 = vld [vmem:[%s6530_s1 + $0x454] ss:$12 sps:$4 sm:$0xff]  }
  0x58   : > { %2853 = vmatpush1.bf16.msra.mxu0 %v4674_v15  ;;  %3146 = vmatprep.subr.bf16.mxu1 %v4685_v19  ;;  %v4761_v15 = vld [vmem:[%s6530_s1 + $0x20] ss:$12 sps:$4 sm:$0xff]   ;;  %v4766_v19 = vld [vmem:[%s6530_s1 + $0x450] ss:$12 sps:$4 sm:$0xff]  }
  0x59   : > { %2854 = vmatprep.subr.bf16.mxu0 %v4682_v18  ;;  %2818 = vmatmul.mubr.bf16.gmra.mrb[4].mxu0 %v5417_v29  ;;  %v4770_v18 = vld [vmem:[%s6530_s1 + $0xf8] ss:$12 sps:$4 sm:$0xff]  }
  0x5a   : > { %2827 = vmatprep.mubr.bf16.mxu0 %v5440_v36 }
  0x5b   : > { %3147 = vmatpush1.bf16.msra.mxu1 %v4683_v22  ;;  %v4772_v22 = vld [vmem:[%s6530_s1 + $0x38] ss:$12 sps:$4 sm:$0xff]  }
  0x5c   : > { %2855 = vmatpush1.bf16.msra.mxu0 %v4680_v20  ;;  %3148 = vmatprep.subr.bf16.mxu1 %v4691_v25  ;;  %v4769_v20 = vld [vmem:[%s5265_s13 + $0xa0] ss:$56 sps:$4 sm:$0xff]   ;;  %v4776_v25 = vld [vmem:[%s6530_s1 + $0x110] ss:$12 sps:$4 sm:$0xff]  }
  0x5d   : > { %2856 = vmatprep.subr.bf16.mxu0 %v4688_v23  ;;  %v4775_v23 = vld [vmem:[%s6530_s1 + $0x46c] ss:$12 sps:$4 sm:$0xff]  }
  0x5e   : > { %2755 = vmatmul.mubr.bf16.gmra.mrb[8].mxu1 %v5414_v28 }
  0x5f   : > { %3149 = vmatpush1.bf16.msra.mxu1 %v4689_v27  ;;  %2764 = vmatprep.mubr.bf16.mxu1 %v5429_v33  ;;  %v4778_v27 = vld [vmem:[%s5265_s13 + $0x114] ss:$56 sps:$4 sm:$0xff]  }
  0x60   : > { %2857 = vmatpush1.bf16.msra.mxu0 %v4686_v26  ;;  %3150 = vmatprep.subr.bf16.mxu1 %v4697_v31  ;;  %v4773_v26 = vld [vmem:[%s6530_s1 + $0x468] ss:$12 sps:$4 sm:$0xff]   ;;  %v4785_v31 = vld [vmem:[%s6530_s1 + $0x484] ss:$12 sps:$4 sm:$0xff]  }
  0x61   : > { %2858 = vmatprep.subr.bf16.mxu0 %v4694_v30  ;;  %2828 = vmatmul.mubr.bf16.gmra.mrb[8].mxu0 %v5454_v40  ;;  %v4777_v30 = vld [vmem:[%s6530_s1 + $0x50] ss:$12 sps:$4 sm:$0xff]  }
  0x62   : > { %2837 = vmatprep.mubr.bf16.mxu0 %v5481_v50 }
  0x63   : > { %3151 = vmatpush1.bf16.msra.mxu1 %v4695_v34  ;;  %v5596_v34 = vld [vmem:[%s5265_s13 + $0x10] ss:$56 sps:$4 sm:$0xff]  }
  0x64   : > { %2859 = vmatpush1.bf16.msra.mxu0 %v4692_v32  ;;  %3152 = vmatprep.subr.bf16.mxu1 %v4706_v37  ;;  %v4787_v32 = vld [vmem:[%s6530_s1 + $0x128] ss:$12 sps:$4 sm:$0xff]  }
  0x65   : > { %2860 = vmatprep.subr.bf16.mxu0 %v4703_v35  ;;  %v4783_v35 = vld [vmem:[%s6530_s1 + $0x480] ss:$12 sps:$4 sm:$0xff]   ;;  %v4786_v37 = vld [vmem:[%s5265_s13 + $0x110] ss:$56 sps:$4 sm:$0xff]  }
  0x66   : > { %2765 = vmatmul.mubr.bf16.gmra.mrb[12].mxu1 %v5451_v39 }
  0x67   : > { %3153 = vmatpush1.bf16.msra.mxu1 %v4704_v41  ;;  %4163 = vmatprep.mubr.msk.bf16.mxu1 %vm2689_vm0, %v4748_v46  ;;  %v4791_v41 = vld [vmem:[%s6530_s1 + $0x49c] ss:$12 sps:$4 sm:$0xff]   ;;  %v4798_v46 = vld [vmem:[%s6530_s1 + $0x4b4] ss:$12 sps:$4 sm:$0xff]  }
  0x68   : > { %2861 = vmatpush1.bf16.msra.mxu0 %v4701_v38  ;;  %3154 = vmatprep.subr.bf16.mxu1 %v4712_v43  ;;  %v4788_v38 = vld [vmem:[%s6530_s1 + $0x68] ss:$12 sps:$4 sm:$0xff]   ;;  %v4789_v43 = vld [vmem:[%s6530_s1 + $0x498] ss:$12 sps:$4 sm:$0xff]  }
  0x69   : > { %2862 = vmatprep.subr.bf16.mxu0 %v4709_v42  ;;  %2838 = vmatmul.mubr.bf16.gmra.mrb[12].mxu0 %v5495_v54  ;;  %v4792_v42 = vld [vmem:[%s6530_s1 + $0x140] ss:$12 sps:$4 sm:$0xff]  }
  0x6a   : > { %2880 = vmatprep.mubr.bf16.mxu0 %v5517_v61 }
  0x6b   : > { %3155 = vmatpush1.bf16.msra.mxu1 %v4710_v45  ;;  %v4793_v45 = vld [vmem:[%s6530_s1 + $0x80] ss:$12 sps:$4 sm:$0xff]  }
  0x6c   : > { %2863 = vmatpush1.bf16.msra.mxu0 %v4707_v44  ;;  %3156 = vmatprep.subr.bf16.mxu1 %v4721_v48  ;;  %v4794_v44 = vld [vmem:[%s5265_s13 + $0x184] ss:$56 sps:$4 sm:$0xff]  }
  0x6d   : > { %2864 = vmatprep.subr.bf16.mxu0 %v4718_v47  ;;  %v4800_v47 = vld [vmem:[%s6530_s1 + $0x158] ss:$12 sps:$4 sm:$0xff]   ;;  %v4796_v48 = vld [vmem:[%s6530_s1 + $0x4b0] ss:$12 sps:$4 sm:$0xff]  }
  0x6f   : > { %3157 = vmatpush1.bf16.msra.mxu1 %v4719_v52  ;;  %v4801_v52 = vld [vmem:[%s6530_s1 + $0x98] ss:$12 sps:$4 sm:$0xff]  }
  0x70   : > { %2865 = vmatpush1.bf16.msra.mxu0 %v4716_v51  ;;  %3158 = vmatprep.subr.bf16.mxu1 %v4727_v55  ;;  %v4799_v51 = vld [vmem:[%s5265_s13 + $0x180] ss:$56 sps:$4 sm:$0xff]   ;;  %v4805_v55 = vld [vmem:[%s6530_s1 + $0x170] ss:$12 sps:$4 sm:$0xff]  }
  0x71   : > { %2866 = vmatprep.subr.bf16.mxu0 %v4724_v53  ;;  %v4804_v53 = vld [vmem:[%s6530_s1 + $0x4cc] ss:$12 sps:$4 sm:$0xff]  }
  0x73   : > { %3159 = vmatpush1.bf16.msra.mxu1 %v4725_v57  ;;  %v5643_v57 = vld [vmem:[%s5265_s13 + $0x84] ss:$56 sps:$4 sm:$0xff]  }
  0x74   : > { %2867 = vmatpush1.bf16.msra.mxu0 %v4722_v56  ;;  %3160 = vmatprep.subr.bf16.mxu1 %v4738_v59  ;;  %v4802_v56 = vld [vmem:[%s6530_s1 + $0x4c8] ss:$12 sps:$4 sm:$0xff]   ;;  %v4809_v59 = vld [vmem:[%s6530_s1 + $0x4e4] ss:$12 sps:$4 sm:$0xff]  }
  0x75   : > { %2868 = vmatprep.subr.bf16.mxu0 %v4735_v58  ;;  %v4806_v58 = vld [vmem:[%s6530_s1 + $0xb0] ss:$12 sps:$4 sm:$0xff]  }
  0x77   : > { %3161 = vmatpush1.bf16.msra.mxu1 %v4736_v62  ;;  %v5657_v62 = vld [vmem:[%s5265_s13 + $0x80] ss:$56 sps:$4 sm:$0xff]  }
  0x78   : > { %2869 = vmatpush1.bf16.msra.mxu0 %v4733_v60  ;;  %3162 = vmatprep.subr.bf16.mxu1 %v4745_v0  ;;  %v4810_v60 = vld [vmem:[%s6530_s1 + $0x248] ss:$12 sps:$4 sm:$0xff]  }
  0x79   : > { %2870 = vmatprep.subr.bf16.mxu0 %v4742_v63  ;;  %v4807_v63 = vld [vmem:[%s6530_s1 + $0x4e0] ss:$12 sps:$4 sm:$0xff]   ;;  %v4811_v0 = vld [vmem:[%s6530_s1 + $0x188] ss:$12 sps:$4 sm:$0xff]  }
  0x7b   : > { %3163 = vmatpush1.bf16.msra.mxu1 %v4743_v2  ;;  %v4812_v2 = vld [vmem:[%s6530_s1 + $0x4f8] ss:$12 sps:$4 sm:$0xff]  }
  0x7c   : > { %2871 = vmatpush1.bf16.msra.mxu0 %v4740_v1  ;;  %4173 = vmatprep.subr.bf16.mxu1 %v4754_v6  ;;  %v4814_v1 = vld [vmem:[%s6530_s1 + $0x4fc] ss:$12 sps:$4 sm:$0xff]   ;;  %v4816_v6 = vld [vmem:[%s6530_s1 + $0x1a0] ss:$12 sps:$4 sm:$0xff]  }
  0x7d   : > { %2872 = vmatprep.subr.bf16.mxu0 %v4753_v3  ;;  %v5677_v3 = vld [vmem:[%s5265_s13 + $0xf4] ss:$56 sps:$4 sm:$0xff]  }
  0x7e   : > { %3173 = vmatmul.mubr.bf16.vlgmr.msra.gmra.mrb[16].mxu1 %v4746_v7  ;;  %v4819_v7 = vld [vmem:[%s6530_s1 + $0x514] ss:$12 sps:$4 sm:$0xff]  }
  0x7f   : > { %4174 = vmatpush3.bf16.msra.mxu1 %v4756_v9  ;;  %4164 = vmatprep.mubr.msk.bf16.mxu1 %vm2689_vm0, %v4762_v13  ;;  %v4817_v9 = vld [vmem:[%s6530_s1 + $0x510] ss:$12 sps:$4 sm:$0xff]   ;;  %v4822_v13 = vld [vmem:[%s6530_s1 + $0x528] ss:$12 sps:$4 sm:$0xff]  }
  0x80   : > { %2873 = vmatpush1.bf16.msra.mxu0 %v4751_v8  ;;  %4175 = vmatprep.subr.bf16.mxu1 %v4760_v12  ;;  %v4820_v8 = vld [vmem:[%s6530_s1 + $0x278] ss:$12 sps:$4 sm:$0xff]  }
  0x81   : > { %2874 = vmatprep.subr.bf16.mxu0 %v4759_v11  ;;  %v4821_v11 = vld [vmem:[%s6530_s1 + $0x1b8] ss:$12 sps:$4 sm:$0xff]  }
  0x82   : > { %v4824_v12 = vld [vmem:[%s6530_s1 + $0x52c] ss:$12 sps:$4 sm:$0xff]  }
  0x83   : > { %4176 = vmatpush3.bf16.msra.mxu1 %v4761_v15  ;;  %v4826_v15 = vld [vmem:[%s6530_s1 + $0x1d0] ss:$12 sps:$4 sm:$0xff]  }
  0x84   : > { %2875 = vmatpush1.bf16.msra.mxu0 %v4757_v14  ;;  %4177 = vmatprep.subr.bf16.mxu1 %v4770_v18  ;;  %v5711_v14 = vld [vmem:[%s5265_s13 + $0x164] ss:$56 sps:$4 sm:$0xff]   ;;  %v4830_v18 = vld [vmem:[%s6530_s1 + $0x2a8] ss:$12 sps:$4 sm:$0xff]  }
  0x85   : > { %2876 = vmatprep.subr.bf16.mxu0 %v4768_v16  ;;  %v4829_v16 = vld [vmem:[%s6530_s1 + $0x544] ss:$12 sps:$4 sm:$0xff]  }
  0x86   : > { %3183 = vmatmul.mubr.bf16.gmra.mrb[20].mxu1 %v4769_v20  ;;  %v4831_v20 = vld [vmem:[%s6530_s1 + $0x1e8] ss:$12 sps:$4 sm:$0xff]  }
  0x87   : > { %4178 = vmatpush3.bf16.msra.mxu1 %v4772_v22  ;;  %4165 = vmatprep.mubr.msk.bf16.mxu1 %vm2689_vm0, %v4778_v27  ;;  %v4834_v22 = vld [vmem:[%s6530_s1 + $0x55c] ss:$12 sps:$4 sm:$0xff]   ;;  %v4841_v27 = vld [vmem:[%s6530_s1 + $0x574] ss:$12 sps:$4 sm:$0xff]  }
  0x88   : > { %2877 = vmatpush1.bf16.msra.mxu0 %v4766_v19  ;;  %4179 = vmatprep.subr.bf16.mxu1 %v4776_v25  ;;  %v4827_v19 = vld [vmem:[%s6530_s1 + $0x540] ss:$12 sps:$4 sm:$0xff]  }
  0x89   : > { %2878 = vmatprep.subr.bf16.mxu0 %v4775_v23  ;;  %v4832_v23 = vld [vmem:[%s6530_s1 + $0x558] ss:$12 sps:$4 sm:$0xff]   ;;  %v4836_v25 = vld [vmem:[%s6530_s1 + $0x200] ss:$12 sps:$4 sm:$0xff]  }
  0x8b   : > { %4180 = vmatpush3.bf16.msra.mxu1 %v4777_v30  ;;  %v4842_v30 = vld [vmem:[%s6530_s1 + $0x2d8] ss:$12 sps:$4 sm:$0xff]  }
  0x8c   : > { %2879 = vmatpush1.bf16.msra.mxu0 %v4773_v26  ;;  %4181 = vmatprep.subr.bf16.mxu1 %v4787_v32  ;;  %v5748_v26 = vld [vmem:[%s5265_s13 + $0x1c] ss:$56 sps:$4 sm:$0xff]   ;;  %v4847_v32 = vld [vmem:[%s6530_s1 + $0x58c] ss:$12 sps:$4 sm:$0xff]  }
  0x8d   : > { %2921 = vmatprep.subr.bf16.mxu0 %v4785_v31  ;;  %v4844_v31 = vld [vmem:[%s6530_s1 + $0x218] ss:$12 sps:$4 sm:$0xff]  }
  0x8e   : > { %3193 = vmatmul.mubr.bf16.gmra.mrb[24].mxu1 %v4786_v37  ;;  %v4849_v37 = vld [vmem:[%s6530_s1 + $0x230] ss:$12 sps:$4 sm:$0xff]  }
  0x8f   : > { %2881 = vmatmul.mubr.bf16.vlgmr.msra.gmra.mrb[0].mxu0 %v5596_v34  ;;  %4182 = vmatpush3.bf16.msra.mxu1 %v4788_v38  ;;  %v4854_v38 = vld [vmem:[%s6530_s1 + $0x5a4] ss:$12 sps:$4 sm:$0xff]  }
  0x90   : > { %2922 = vmatpush1.bf16.msra.mxu0 %v4783_v35  ;;  %4183 = vmatprep.subr.bf16.mxu1 %v4792_v42  ;;  %v4845_v35 = vld [vmem:[%s6530_s1 + $0x588] ss:$12 sps:$4 sm:$0xff]   ;;  %v4852_v42 = vld [vmem:[%s6530_s1 + $0x5a0] ss:$12 sps:$4 sm:$0xff]  }
  0x91   : > { %2923 = vmatprep.subr.bf16.mxu0 %v4791_v41  ;;  %4166 = vmatprep.mubr.msk.bf16.mxu1 %vm2689_vm0, %v4794_v44  ;;  %v5076_v41 = vld [vmem:[%s5265_s13 + $0xc] ss:$56 sps:$4 sm:$0xff]   ;;  %v4860_v44 = vld [vmem:[%s6530_s1 + $0x5bc] ss:$12 sps:$4 sm:$0xff]  }
  0x92   : > { %2890 = vmatprep.mubr.bf16.mxu0 %v5643_v57 }
  0x93   : > { %4184 = vmatpush3.bf16.msra.mxu1 %v4793_v45  ;;  %v4861_v45 = vld [vmem:[%s6530_s1 + $0x3e0] ss:$12 sps:$4 sm:$0xff]  }
  0x94   : > { %2924 = vmatpush1.bf16.msra.mxu0 %v4789_v43  ;;  %4185 = vmatprep.subr.bf16.mxu1 %v4800_v47  ;;  %v4857_v43 = vld [vmem:[%s6530_s1 + $0x308] ss:$12 sps:$4 sm:$0xff]   ;;  %v4862_v47 = vld [vmem:[%s6530_s1 + $0x320] ss:$12 sps:$4 sm:$0xff]  }
  0x95   : > { %2925 = vmatprep.subr.bf16.mxu0 %v4798_v46  ;;  %v4858_v46 = vld [vmem:[%s6530_s1 + $0x5b8] ss:$12 sps:$4 sm:$0xff]  }
  0x96   : > { %3203 = vmatmul.mubr.bf16.gmra.mrb[28].mxu1 %v4799_v51  ;;  %v4865_v51 = vld [vmem:[%s6530_s1 + $0x5d0] ss:$12 sps:$4 sm:$0xff]  }
  0x97   : > { %4186 = vmatpush3.bf16.msra.mxu1 %v4801_v52  ;;  %3245 = vmatprep.mubr.bf16.mxu1 %v5280_v49  ;;  %v4815_v49 = vld [vmem:[%s6530_s1 + $0x260] ss:$12 sps:$4 sm:$0xff]   ;;  %v4870_v52 = vld [vmem:[%s6530_s1 + $0x338] ss:$12 sps:$4 sm:$0xff]  }
  0x98   : > { %2926 = vmatpush1.bf16.msra.mxu0 %v4796_v48  ;;  %4187 = vmatprep.subr.bf16.mxu1 %v4805_v55  ;;  %v4867_v48 = vld [vmem:[%s6530_s1 + $0x5d4] ss:$12 sps:$4 sm:$0xff]  }
  0x99   : > { %2927 = vmatprep.subr.bf16.mxu0 %v4804_v53  ;;  %2891 = vmatmul.mubr.bf16.gmra.mrb[4].mxu0 %v5657_v62  ;;  %v4873_v53 = vld [vmem:[%s6530_s1 + $0x5ec] ss:$12 sps:$4 sm:$0xff]   ;;  %v4871_v55 = vld [vmem:[%s6530_s1 + $0x5e8] ss:$12 sps:$4 sm:$0xff]  }
  0x9a   : > { %2900 = vmatprep.mubr.bf16.mxu0 %v5677_v3 }
  0x9b   : > { %4188 = vmatpush3.bf16.msra.mxu1 %v4806_v58  ;;  %v4881_v58 = vld [vmem:[%s6530_s1 + $0x604] ss:$12 sps:$4 sm:$0xff]  }
  0x9c   : > { %2928 = vmatpush1.bf16.msra.mxu0 %v4802_v56  ;;  %4213 = vmatprep.subr.bf16.mxu1 %v4810_v60  ;;  %v4875_v56 = vld [vmem:[%s6530_s1 + $0x350] ss:$12 sps:$4 sm:$0xff]   ;;  %v4879_v60 = vld [vmem:[%s6530_s1 + $0x600] ss:$12 sps:$4 sm:$0xff]  }
  0x9d   : > { %2929 = vmatprep.subr.bf16.mxu0 %v4809_v59  ;;  %v5837_v59 = vld [vmem:[%s5265_s13 + $0x18] ss:$56 sps:$4 sm:$0xff]  }
  0x9e   : > { %3246 = vmatmul.mubr.bf16.vlgmr.msra.gmra.mrb[32].mxu1 %v5336_v4  ;;  %v5691_v4 = vld [vmem:[%s5265_s13 + $0xf0] ss:$56 sps:$4 sm:$0xff]  }
  0x9f   : > { %4214 = vmatpush3.bf16.msra.mxu1 %v4811_v0  ;;  %3253 = vmatprep.mubr.bf16.mxu1 %v5354_v10  ;;  %v4825_v10 = vld [vmem:[%s6530_s1 + $0x290] ss:$12 sps:$4 sm:$0xff]  }
  0xa0   : > { %2930 = vmatpush1.bf16.msra.mxu0 %v4807_v63  ;;  %4215 = vmatprep.subr.bf16.mxu1 %v4815_v49  ;;  %v4883_v63 = vld [vmem:[%s6530_s1 + $0x368] ss:$12 sps:$4 sm:$0xff]   ;;  %v4888_v49 = vld [vmem:[%s6530_s1 + $0x380] ss:$12 sps:$4 sm:$0xff]  }
  0xa1   : > { %2931 = vmatprep.subr.bf16.mxu0 %v4814_v1  ;;  %2901 = vmatmul.mubr.bf16.gmra.mrb[8].mxu0 %v5691_v4  ;;  %v4886_v0 = vld [vmem:[%s6530_s1 + $0x61c] ss:$12 sps:$4 sm:$0xff]   ;;  %v4884_v1 = vld [vmem:[%s6530_s1 + $0x618] ss:$12 sps:$4 sm:$0xff]  }
  0xa2   : > { %2910 = vmatprep.mubr.bf16.mxu0 %v5711_v14 }
  0xa3   : > { %4216 = vmatpush3.bf16.msra.mxu1 %v4816_v6  ;;  %v4892_v6 = vld [vmem:[%s6530_s1 + $0x458] ss:$12 sps:$4 sm:$0xff]  }
  0xa4   : > { %2932 = vmatpush1.bf16.msra.mxu0 %v4812_v2  ;;  %4217 = vmatprep.subr.bf16.mxu1 %v4820_v8  ;;  %v4891_v2 = vld [vmem:[%s6530_s1 + $0x634] ss:$12 sps:$4 sm:$0xff]   ;;  %v4893_v8 = vld [vmem:[%s6530_s1 + $0x398] ss:$12 sps:$4 sm:$0xff]  }
  0xa5   : > { %2933 = vmatprep.subr.bf16.mxu0 %v4819_v7  ;;  %v4889_v7 = vld [vmem:[%s6530_s1 + $0x630] ss:$12 sps:$4 sm:$0xff]  }
  0xa6   : > { %3254 = vmatmul.mubr.bf16.gmra.mrb[36].mxu1 %v5378_v17  ;;  %v5725_v17 = vld [vmem:[%s5265_s13 + $0x160] ss:$56 sps:$4 sm:$0xff]  }
  0xa7   : > { %4218 = vmatpush3.bf16.msra.mxu1 %v4821_v11  ;;  %3261 = vmatprep.mubr.bf16.mxu1 %v5390_v21  ;;  %v4835_v21 = vld [vmem:[%s6530_s1 + $0x2c0] ss:$12 sps:$4 sm:$0xff]  }
  0xa8   : > { %2934 = vmatpush1.bf16.msra.mxu0 %v4817_v9  ;;  %4219 = vmatprep.subr.bf16.mxu1 %v4825_v10  ;;  %v4896_v9 = vld [vmem:[%s6530_s1 + $0x64c] ss:$12 sps:$4 sm:$0xff]   ;;  %v5879_v11 = vld [vmem:[%s5265_s13 + $0x88] ss:$56 sps:$4 sm:$0xff]   ;;  %v4898_v10 = vld [vmem:[%s6530_s1 + $0x3b0] ss:$12 sps:$4 sm:$0xff]  }
  0xa9   : > { %2935 = vmatprep.subr.bf16.mxu0 %v4824_v12  ;;  %2911 = vmatmul.mubr.bf16.gmra.mrb[12].mxu0 %v5725_v17  ;;  %v4894_v12 = vld [vmem:[%s6530_s1 + $0x648] ss:$12 sps:$4 sm:$0xff]  }
  0xaa   : > { %2953 = vmatprep.mubr.bf16.mxu0 %v5748_v26 }
  0xab   : > { %4220 = vmatpush3.bf16.msra.mxu1 %v4826_v15  ;;  %v4902_v15 = vld [vmem:[%s6530_s1 + $0x548] ss:$12 sps:$4 sm:$0xff]  }
  0xac   : > { %2936 = vmatpush1.bf16.msra.mxu0 %v4822_v13  ;;  %4221 = vmatprep.subr.bf16.mxu1 %v4830_v18  ;;  %v4901_v13 = vld [vmem:[%s6530_s1 + $0x664] ss:$12 sps:$4 sm:$0xff]   ;;  %v4903_v18 = vld [vmem:[%s6530_s1 + $0x488] ss:$12 sps:$4 sm:$0xff]  }
  0xad   : > { %2937 = vmatprep.subr.bf16.mxu0 %v4829_v16  ;;  %v4899_v16 = vld [vmem:[%s6530_s1 + $0x660] ss:$12 sps:$4 sm:$0xff]  }
  0xae   : > { %3262 = vmatmul.mubr.bf16.gmra.mrb[40].mxu1 %v5414_v28  ;;  %v4839_v28 = vld [vmem:[%s6530_s1 + $0x570] ss:$12 sps:$4 sm:$0xff]  }
  0xaf   : > { %4222 = vmatpush3.bf16.msra.mxu1 %v4831_v20  ;;  %3269 = vmatprep.mubr.bf16.mxu1 %v5429_v33  ;;  %v4848_v33 = vld [vmem:[%s6530_s1 + $0x2f0] ss:$12 sps:$4 sm:$0xff]  }
  0xb0   : > { %2938 = vmatpush1.bf16.msra.mxu0 %v4827_v19  ;;  %4223 = vmatprep.subr.bf16.mxu1 %v4835_v21  ;;  %v4906_v19 = vld [vmem:[%s6530_s1 + $0x67c] ss:$12 sps:$4 sm:$0xff]   ;;  %v5913_v20 = vld [vmem:[%s5265_s13 + $0xf8] ss:$56 sps:$4 sm:$0xff]   ;;  %v4908_v21 = vld [vmem:[%s6530_s1 + $0x4a0] ss:$12 sps:$4 sm:$0xff]  }
  0xb1   : > { %2939 = vmatprep.subr.bf16.mxu0 %v4834_v22  ;;  %v4904_v22 = vld [vmem:[%s6530_s1 + $0x678] ss:$12 sps:$4 sm:$0xff]  }
  0xb3   : > { %4224 = vmatpush3.bf16.msra.mxu1 %v4836_v25  ;;  %v4912_v25 = vld [vmem:[%s6530_s1 + $0x578] ss:$12 sps:$4 sm:$0xff]  }
  0xb4   : > { %2940 = vmatpush1.bf16.msra.mxu0 %v4832_v23  ;;  %4225 = vmatprep.subr.bf16.mxu1 %v4842_v30  ;;  %v4911_v23 = vld [vmem:[%s6530_s1 + $0x694] ss:$12 sps:$4 sm:$0xff]   ;;  %v4913_v30 = vld [vmem:[%s6530_s1 + $0x4b8] ss:$12 sps:$4 sm:$0xff]  }
  0xb5   : > { %2941 = vmatprep.subr.bf16.mxu0 %v4841_v27  ;;  %v4909_v27 = vld [vmem:[%s6530_s1 + $0x690] ss:$12 sps:$4 sm:$0xff]  }
  0xb6   : > { %3270 = vmatmul.mubr.bf16.gmra.mrb[44].mxu1 %v5451_v39  ;;  %v4855_v39 = vld [vmem:[%s6530_s1 + $0x3c8] ss:$12 sps:$4 sm:$0xff]  }
  0xb7   : > { %4226 = vmatpush3.bf16.msra.mxu1 %v4844_v31  ;;  %3310 = vmatprep.mubr.bf16.mxu1 %v5076_v41  ;;  %v5947_v31 = vld [vmem:[%s5265_s13 + $0x168] ss:$56 sps:$4 sm:$0xff]  }
  0xb8   : > { %2942 = vmatpush1.bf16.msra.mxu0 %v4839_v28  ;;  %4227 = vmatprep.subr.bf16.mxu1 %v4848_v33  ;;  %v4916_v28 = vld [vmem:[%s6530_s1 + $0x6ac] ss:$12 sps:$4 sm:$0xff]   ;;  %v4918_v33 = vld [vmem:[%s6530_s1 + $0x4d0] ss:$12 sps:$4 sm:$0xff]  }
  0xb9   : > { %2943 = vmatprep.subr.bf16.mxu0 %v4847_v32  ;;  %v4914_v32 = vld [vmem:[%s6530_s1 + $0x6a8] ss:$12 sps:$4 sm:$0xff]  }
  0xba   : > { %v4926_v41 = vld [vmem:[%s6530_s1 + $0x6dc] ss:$12 sps:$4 sm:$0xff]  }
  0xbb   : > { %4228 = vmatpush3.bf16.msra.mxu1 %v4849_v37  ;;  %v4922_v37 = vld [vmem:[%s6530_s1 + $0x5a8] ss:$12 sps:$4 sm:$0xff]  }
  0xbc   : > { %2944 = vmatpush1.bf16.msra.mxu0 %v4845_v35  ;;  %4253 = vmatprep.subr.bf16.mxu1 %v4855_v39  ;;  %v4921_v35 = vld [vmem:[%s6530_s1 + $0x6c4] ss:$12 sps:$4 sm:$0xff]   ;;  %v4923_v39 = vld [vmem:[%s6530_s1 + $0x4e8] ss:$12 sps:$4 sm:$0xff]  }
  0xbd   : > { %2945 = vmatprep.subr.bf16.mxu0 %v4854_v38  ;;  %v4919_v38 = vld [vmem:[%s6530_s1 + $0x6c0] ss:$12 sps:$4 sm:$0xff]  }
  0xbe   : > { %3311 = vmatmul.mubr.bf16.vlgmr.msra.gmra.mrb[48].mxu1 %v5339_v5  ;;  %v4868_v5 = vld [vmem:[%s6530_s1 + $0x3f8] ss:$12 sps:$4 sm:$0xff]  }
  0xbf   : > { %4254 = vmatpush3.bf16.msra.mxu1 %v4857_v43  ;;  %3318 = vmatprep.mubr.bf16.mxu1 %v5400_v24  ;;  %v4874_v24 = vld [vmem:[%s6530_s1 + $0x410] ss:$12 sps:$4 sm:$0xff]   ;;  %v4928_v43 = vld [vmem:[%s6530_s1 + $0x500] ss:$12 sps:$4 sm:$0xff]  }
  0xc0   : > { %2946 = vmatpush1.bf16.msra.mxu0 %v4852_v42  ;;  %4255 = vmatprep.subr.bf16.mxu1 %v4861_v45  ;;  %v4924_v42 = vld [vmem:[%s6530_s1 + $0x6d8] ss:$12 sps:$4 sm:$0xff]  }
  0xc1   : > { %2947 = vmatprep.subr.bf16.mxu0 %v4860_v44  ;;  %v4933_v44 = vld [vmem:[%s6530_s1 + $0x6f4] ss:$12 sps:$4 sm:$0xff]   ;;  %v4934_v45 = vld [vmem:[%s6530_s1 + $0x5d8] ss:$12 sps:$4 sm:$0xff]  }
  0xc3   : > { %4256 = vmatpush3.bf16.msra.mxu1 %v4862_v47  ;;  %v4939_v47 = vld [vmem:[%s6530_s1 + $0x70c] ss:$12 sps:$4 sm:$0xff]  }
  0xc4   : > { %2948 = vmatpush1.bf16.msra.mxu0 %v4858_v46  ;;  %4257 = vmatprep.subr.bf16.mxu1 %v4868_v5  ;;  %v4936_v46 = vld [vmem:[%s6530_s1 + $0x518] ss:$12 sps:$4 sm:$0xff]   ;;  %v4941_v5 = vld [vmem:[%s6530_s1 + $0x530] ss:$12 sps:$4 sm:$0xff]  }
  0xc5   : > { %2949 = vmatprep.subr.bf16.mxu0 %v4867_v48  ;;  %v4937_v48 = vld [vmem:[%s6530_s1 + $0x708] ss:$12 sps:$4 sm:$0xff]  }
  0xc6   : > { %3319 = vmatmul.mubr.bf16.gmra.mrb[52].mxu1 %v5417_v29  ;;  %v4882_v29 = vld [vmem:[%s6530_s1 + $0x428] ss:$12 sps:$4 sm:$0xff]  }
  0xc7   : > { %4258 = vmatpush3.bf16.msra.mxu1 %v4870_v52  ;;  %3326 = vmatprep.mubr.bf16.mxu1 %v5440_v36  ;;  %v4887_v36 = vld [vmem:[%s6530_s1 + $0x440] ss:$12 sps:$4 sm:$0xff]   ;;  %v4947_v52 = vld [vmem:[%s6530_s1 + $0x6c8] ss:$12 sps:$4 sm:$0xff]  }
  0xc8   : > { %2950 = vmatpush1.bf16.msra.mxu0 %v4865_v51  ;;  %4259 = vmatprep.subr.bf16.mxu1 %v4874_v24  ;;  %v4946_v51 = vld [vmem:[%s6530_s1 + $0x724] ss:$12 sps:$4 sm:$0xff]   ;;  %v4952_v24 = vld [vmem:[%s6530_s1 + $0x73c] ss:$12 sps:$4 sm:$0xff]  }
  0xc9   : > { %2951 = vmatprep.subr.bf16.mxu0 %v4873_v53  ;;  %v4949_v53 = vld [vmem:[%s6530_s1 + $0x608] ss:$12 sps:$4 sm:$0xff]  }
  0xcb   : > { %4260 = vmatpush3.bf16.msra.mxu1 %v4875_v56  ;;  %v4954_v56 = vld [vmem:[%s6530_s1 + $0x620] ss:$12 sps:$4 sm:$0xff]  }
  0xcc   : > { %2952 = vmatpush1.bf16.msra.mxu0 %v4871_v55  ;;  %4261 = vmatprep.subr.bf16.mxu1 %v4882_v29  ;;  %v4950_v55 = vld [vmem:[%s6530_s1 + $0x738] ss:$12 sps:$4 sm:$0xff]  }
  0xcd   : > { %2994 = vmatprep.subr.bf16.mxu0 %v4881_v58  ;;  %v4959_v58 = vld [vmem:[%s6530_s1 + $0x754] ss:$12 sps:$4 sm:$0xff]   ;;  %v4960_v29 = vld [vmem:[%s6530_s1 + $0x6f8] ss:$12 sps:$4 sm:$0xff]  }
  0xce   : > { %3327 = vmatmul.mubr.bf16.gmra.mrb[56].mxu1 %v5454_v40  ;;  %v5867_v40 = vld [vmem:[%s5265_s13 + $0x8c] ss:$56 sps:$4 sm:$0xff]  }
  0xcf   : > { %2954 = vmatmul.mubr.bf16.vlgmr.msra.gmra.mrb[0].mxu0 %v5837_v59  ;;  %4262 = vmatpush3.bf16.msra.mxu1 %v4883_v63  ;;  %v4965_v63 = vld [vmem:[%s6530_s1 + $0x76c] ss:$12 sps:$4 sm:$0xff]  }
  0xd0   : > { %2995 = vmatpush1.bf16.msra.mxu0 %v4879_v60  ;;  %4263 = vmatprep.subr.bf16.mxu1 %v4887_v36  ;;  %v4962_v60 = vld [vmem:[%s6530_s1 + $0x638] ss:$12 sps:$4 sm:$0xff]   ;;  %v4963_v36 = vld [vmem:[%s6530_s1 + $0x768] ss:$12 sps:$4 sm:$0xff]  }
  0xd1   : > { %2996 = vmatprep.subr.bf16.mxu0 %v4886_v0  ;;  %3334 = vmatprep.mubr.bf16.mxu1 %v5481_v50  ;;  %v4897_v50 = vld [vmem:[%s6530_s1 + $0x470] ss:$12 sps:$4 sm:$0xff]  }
  0xd2   : > { %2963 = vmatprep.mubr.bf16.mxu0 %v5867_v40  ;;  %v4966_v0 = vld [vmem:[%s6530_s1 + $0x710] ss:$12 sps:$4 sm:$0xff]  }
  0xd3   : > { %4264 = vmatpush3.bf16.msra.mxu1 %v4888_v49  ;;  %v4973_v49 = vld [vmem:[%s6530_s1 + $0x784] ss:$12 sps:$4 sm:$0xff]  }
  0xd4   : > { %2997 = vmatpush1.bf16.msra.mxu0 %v4884_v1  ;;  %4265 = vmatprep.subr.bf16.mxu1 %v4892_v6  ;;  %v4967_v1 = vld [vmem:[%s6530_s1 + $0x650] ss:$12 sps:$4 sm:$0xff]   ;;  %v4968_v6 = vld [vmem:[%s5265_s13 + $0x20] ss:$56 sps:$4 sm:$0xff]  }
  0xd5   : > { %2998 = vmatprep.subr.bf16.mxu0 %v4891_v2  ;;  %v4974_v2 = vld [vmem:[%s6530_s1 + $0x728] ss:$12 sps:$4 sm:$0xff]  }
  0xd6   : > { %3335 = vmatmul.mubr.bf16.gmra.mrb[60].mxu1 %v5495_v54  ;;  %v5901_v54 = vld [vmem:[%s5265_s13 + $0xfc] ss:$56 sps:$4 sm:$0xff]  }
  0xd7   : > { %2964 = vmatmul.mubr.bf16.gmra.mrb[4].mxu0 %v5879_v11  ;;  %4266 = vmatpush3.bf16.msra.mxu1 %v4893_v8  ;;  %v4978_v8 = vld [vmem:[%s6530_s1 + $0x79c] ss:$12 sps:$4 sm:$0xff]  }
  0xd8   : > { %2999 = vmatpush1.bf16.msra.mxu0 %v4889_v7  ;;  %4267 = vmatprep.subr.bf16.mxu1 %v4897_v50  ;;  %v4975_v7 = vld [vmem:[%s6530_s1 + $0x668] ss:$12 sps:$4 sm:$0xff]   ;;  %v4980_v50 = vld [vmem:[%s6530_s1 + $0x680] ss:$12 sps:$4 sm:$0xff]  }
  0xd9   : > { %3000 = vmatprep.subr.bf16.mxu0 %v4896_v9  ;;  %3375 = vmatprep.mubr.bf16.mxu1 %v5517_v61  ;;  %v4907_v61 = vld [vmem:[%s6530_s1 + $0x560] ss:$12 sps:$4 sm:$0xff]  }
  0xda   : > { %2973 = vmatprep.mubr.bf16.mxu0 %v5901_v54  ;;  %v4979_v9 = vld [vmem:[%s6530_s1 + $0x740] ss:$12 sps:$4 sm:$0xff]  }
  0xdb   : > { %4268 = vmatpush3.bf16.msra.mxu1 %v4898_v10  ;;  %v4983_v10 = vld [vmem:[%s6530_s1 + $0x7b4] ss:$12 sps:$4 sm:$0xff]  }
  0xdc   : > { %3001 = vmatpush1.bf16.msra.mxu0 %v4894_v12  ;;  %4293 = vmatprep.subr.bf16.mxu1 %v4902_v15  ;;  %v5001_v12 = vld [vmem:[%s5265_s13 + $0x94] ss:$56 sps:$4 sm:$0xff]   ;;  %v4981_v15 = vld [vmem:[%s6530_s1 + $0x7b0] ss:$12 sps:$4 sm:$0xff]  }
  0xdd   : > { %3002 = vmatprep.subr.bf16.mxu0 %v4901_v13  ;;  %v4984_v13 = vld [vmem:[%s6530_s1 + $0x758] ss:$12 sps:$4 sm:$0xff]  }
  0xde   : > { %3376 = vmatmul.mubr.bf16.vlgmr.msra.gmra.mrb[64].mxu1 %v5596_v34  ;;  %v5935_v34 = vld [vmem:[%s5265_s13 + $0x16c] ss:$56 sps:$4 sm:$0xff]  }
  0xdf   : > { %2974 = vmatmul.mubr.bf16.gmra.mrb[8].mxu0 %v5913_v20  ;;  %4294 = vmatpush3.bf16.msra.mxu1 %v4903_v18  ;;  %v4989_v18 = vld [vmem:[%s6530_s1 + $0x770] ss:$12 sps:$4 sm:$0xff]  }
  0xe0   : > { %3003 = vmatpush1.bf16.msra.mxu0 %v4899_v16  ;;  %4295 = vmatprep.subr.bf16.mxu1 %v4907_v61  ;;  %v4988_v16 = vld [vmem:[%s6530_s1 + $0x7cc] ss:$12 sps:$4 sm:$0xff]   ;;  %v4990_v61 = vld [vmem:[%s6530_s1 + $0x6b0] ss:$12 sps:$4 sm:$0xff]  }
  0xe1   : > { %3004 = vmatprep.subr.bf16.mxu0 %v4906_v19  ;;  %3383 = vmatprep.mubr.bf16.mxu1 %v5643_v57  ;;  %v4917_v57 = vld [vmem:[%s6530_s1 + $0x590] ss:$12 sps:$4 sm:$0xff]  }
  0xe2   : > { %2983 = vmatprep.mubr.bf16.mxu0 %v5935_v34  ;;  %v5006_v19 = vld [vmem:[%s5265_s13 + $0x90] ss:$56 sps:$4 sm:$0xff]  }
  0xe3   : > { %4296 = vmatpush3.bf16.msra.mxu1 %v4908_v21  ;;  %v4993_v21 = vld [vmem:[%s6530_s1 + $0x7e4] ss:$12 sps:$4 sm:$0xff]  }
  0xe4   : > { %3005 = vmatpush1.bf16.msra.mxu0 %v4904_v22  ;;  %4297 = vmatprep.subr.bf16.mxu1 %v4912_v25  ;;  %v5014_v22 = vld [vmem:[%s5265_s13 + $0x104] ss:$56 sps:$4 sm:$0xff]   ;;  %v4991_v25 = vld [vmem:[%s6530_s1 + $0x7e0] ss:$12 sps:$4 sm:$0xff]  }
  0xe5   : > { %3006 = vmatprep.subr.bf16.mxu0 %v4911_v23  ;;  %v4994_v23 = vld [vmem:[%s6530_s1 + $0x848] ss:$12 sps:$4 sm:$0xff]  }
  0xe6   : > { %3384 = vmatmul.mubr.bf16.gmra.mrb[68].mxu1 %v5657_v62  ;;  %v5969_v62 = vld [vmem:[%s5265_s13 + $0x24] ss:$56 sps:$4 sm:$0xff]  }
  0xe7   : > { %2984 = vmatmul.mubr.bf16.gmra.mrb[12].mxu0 %v5947_v31  ;;  %4298 = vmatpush3.bf16.msra.mxu1 %v4913_v30  ;;  %v4999_v30 = vld [vmem:[%s6530_s1 + $0x860] ss:$12 sps:$4 sm:$0xff]  }
  0xe8   : > { %3007 = vmatpush1.bf16.msra.mxu0 %v4909_v27  ;;  %4299 = vmatprep.subr.bf16.mxu1 %v4917_v57  ;;  %v4998_v27 = vld [vmem:[%s6530_s1 + $0x7fc] ss:$12 sps:$4 sm:$0xff]   ;;  %v5000_v57 = vld [vmem:[%s6530_s1 + $0x7a0] ss:$12 sps:$4 sm:$0xff]  }
  0xe9   : > { %3008 = vmatprep.subr.bf16.mxu0 %v4916_v28  ;;  %3391 = vmatprep.mubr.bf16.mxu1 %v5677_v3  ;;  %v4927_v3 = vld [vmem:[%s6530_s1 + $0x5c0] ss:$12 sps:$4 sm:$0xff]  }
  0xea   : > { %3026 = vmatprep.mubr.bf16.mxu0 %v5969_v62  ;;  %v5019_v28 = vld [vmem:[%s5265_s13 + $0x100] ss:$56 sps:$4 sm:$0xff]  }
  0xeb   : > { %4300 = vmatpush3.bf16.msra.mxu1 %v4918_v33  ;;  %v5005_v33 = vld [vmem:[%s6530_s1 + $0x814] ss:$12 sps:$4 sm:$0xff]  }
  0xec   : > { %3009 = vmatpush1.bf16.msra.mxu0 %v4914_v32  ;;  %4301 = vmatprep.subr.bf16.mxu1 %v4922_v37  ;;  %v5027_v32 = vld [vmem:[%s5265_s13 + $0x174] ss:$56 sps:$4 sm:$0xff]  }
  0xed   : > { %3010 = vmatprep.subr.bf16.mxu0 %v4921_v35  ;;  %v5007_v35 = vld [vmem:[%s6530_s1 + $0x878] ss:$12 sps:$4 sm:$0xff]  }
  0xee   : > { %3392 = vmatmul.mubr.bf16.gmra.mrb[72].mxu1 %v5691_v4  ;;  %v4931_v4 = vld [vmem:[%s6530_s1 + $0x6f0] ss:$12 sps:$4 sm:$0xff]  }
  0xef   : > { %4302 = vmatpush3.bf16.msra.mxu1 %v4923_v39  ;;  %3399 = vmatprep.mubr.bf16.mxu1 %v5711_v14  ;;  %v4940_v14 = vld [vmem:[%s6530_s1 + $0x5f0] ss:$12 sps:$4 sm:$0xff]   ;;  %v5008_v39 = vld [vmem:[%s6530_s1 + $0x7b8] ss:$12 sps:$4 sm:$0xff]  }
  0xf0   : > { %3011 = vmatpush1.bf16.msra.mxu0 %v4919_v38  ;;  %4303 = vmatprep.subr.bf16.mxu1 %v4927_v3 }
  0xf1   : > { %3012 = vmatprep.subr.bf16.mxu0 %v4926_v41  ;;  %v5011_v41 = vld [vmem:[%s6530_s1 + $0x82c] ss:$12 sps:$4 sm:$0xff]  }
  0xf3   : > { %4304 = vmatpush3.bf16.msra.mxu1 %v4928_v43 }
  0xf4   : > { %3013 = vmatpush1.bf16.msra.mxu0 %v4924_v42  ;;  %4305 = vmatprep.subr.bf16.mxu1 %v4934_v45  ;;  %v5012_v42 = vld [vmem:[%s6530_s1 + $0x890] ss:$12 sps:$4 sm:$0xff]   ;;  %v5009_v45 = vld [vmem:[%s6530_s1 + $0x828] ss:$12 sps:$4 sm:$0xff]  }
  0xf5   : > { %3014 = vmatprep.subr.bf16.mxu0 %v4933_v44  ;;  %v5032_v44 = vld [vmem:[%s5265_s13 + $0x170] ss:$56 sps:$4 sm:$0xff]  }
  0xf6   : > { %3400 = vmatmul.mubr.bf16.gmra.mrb[76].mxu1 %v5725_v17  ;;  %v4944_v17 = vld [vmem:[%s6530_s1 + $0x720] ss:$12 sps:$4 sm:$0xff]  }
  0xf7   : > { %4306 = vmatpush3.bf16.msra.mxu1 %v4936_v46  ;;  %3440 = vmatprep.mubr.bf16.mxu1 %v5748_v26  ;;  %v4953_v26 = vld [vmem:[%s6530_s1 + $0x6e0] ss:$12 sps:$4 sm:$0xff]   ;;  %v5018_v46 = vld [vmem:[%s6530_s1 + $0x844] ss:$12 sps:$4 sm:$0xff]  }
  0xf8   : > { %3015 = vmatpush1.bf16.msra.mxu0 %v4931_v4  ;;  %4307 = vmatprep.subr.bf16.mxu1 %v4940_v14  ;;  %v5013_v4 = vld [vmem:[%s6530_s1 + $0x7d0] ss:$12 sps:$4 sm:$0xff]   ;;  %v5020_v14 = vld [vmem:[%s6530_s1 + $0x8a8] ss:$12 sps:$4 sm:$0xff]  }
  0xf9   : > { %3016 = vmatprep.subr.bf16.mxu0 %v4939_v47  ;;  %v5042_v47 = vld [vmem:[%s5265_s13 + $0x2c] ss:$56 sps:$4 sm:$0xff]  }
  0xfb   : > { %4308 = vmatpush3.bf16.msra.mxu1 %v4941_v5  ;;  %v5021_v5 = vld [vmem:[%s6530_s1 + $0x7e8] ss:$12 sps:$4 sm:$0xff]  }
  0xfc   : > { %3017 = vmatpush1.bf16.msra.mxu0 %v4937_v48  ;;  %4333 = vmatprep.subr.bf16.mxu1 %v4947_v52  ;;  %v5016_v48 = vld [vmem:[%s6530_s1 + $0x840] ss:$12 sps:$4 sm:$0xff]  }
  0xfd   : > { %3018 = vmatprep.subr.bf16.mxu0 %v4946_v51 }
  0xfe   : > { %3441 = vmatmul.mubr.bf16.vlgmr.msra.gmra.mrb[80].mxu1 %v5837_v59  ;;  %v4957_v59 = vld [vmem:[%s6530_s1 + $0x750] ss:$12 sps:$4 sm:$0xff]  }
  0xff   : > { %4334 = vmatpush3.bf16.msra.mxu1 %v4949_v53  ;;  %3448 = vmatprep.mubr.bf16.mxu1 %v5867_v40  ;;  %v4971_v40 = vld [vmem:[%s6530_s1 + $0x780] ss:$12 sps:$4 sm:$0xff]  }
 0x100   : > { %3019 = vmatpush1.bf16.msra.mxu0 %v4944_v17  ;;  %4335 = vmatprep.subr.bf16.mxu1 %v4953_v26  ;;  %v5024_v17 = vld [vmem:[%s6530_s1 + $0x85c] ss:$12 sps:$4 sm:$0xff]  }
 0x101   : > { %3020 = vmatprep.subr.bf16.mxu0 %v4952_v24  ;;  %v5025_v24 = vld [vmem:[%s6530_s1 + $0x8c0] ss:$12 sps:$4 sm:$0xff]  }
 0x103   : > { %4336 = vmatpush3.bf16.msra.mxu1 %v4954_v56  ;;  %v5026_v56 = vld [vmem:[%s6530_s1 + $0x800] ss:$12 sps:$4 sm:$0xff]  }
 0x104   : > { %3021 = vmatpush1.bf16.msra.mxu0 %v4950_v55  ;;  %4337 = vmatprep.subr.bf16.mxu1 %v4960_v29  ;;  %v5022_v55 = vld [vmem:[%s6530_s1 + $0x858] ss:$12 sps:$4 sm:$0xff]  }
 0x105   : > { %3022 = vmatprep.subr.bf16.mxu0 %v4959_v58  ;;  %v5031_v58 = vld [vmem:[%s6530_s1 + $0x874] ss:$12 sps:$4 sm:$0xff]   ;;  %v5033_v29 = vld [vmem:[%s6530_s1 + $0x8d8] ss:$12 sps:$4 sm:$0xff]  }
 0x106   : > { %3449 = vmatmul.mubr.bf16.gmra.mrb[84].mxu1 %v5879_v11  ;;  %v4976_v11 = vld [vmem:[%s6530_s1 + $0x798] ss:$12 sps:$4 sm:$0xff]  }
 0x107   : > { %4338 = vmatpush3.bf16.msra.mxu1 %v4962_v60  ;;  %3456 = vmatprep.mubr.bf16.mxu1 %v5901_v54  ;;  %v4985_v54 = vld [vmem:[%s6530_s1 + $0x698] ss:$12 sps:$4 sm:$0xff]  }
 0x108   : > { %3023 = vmatpush1.bf16.msra.mxu0 %v4957_v59  ;;  %4339 = vmatprep.subr.bf16.mxu1 %v4966_v0  ;;  %v5034_v0 = vld [vmem:[%s6530_s1 + $0x818] ss:$12 sps:$4 sm:$0xff]  }
 0x109   : > { %3024 = vmatprep.subr.bf16.mxu0 %v4965_v63  ;;  %v5029_v63 = vld [vmem:[%s6530_s1 + $0x870] ss:$12 sps:$4 sm:$0xff]  }
 0x10b   : > { %4340 = vmatpush3.bf16.msra.mxu1 %v4967_v1  ;;  %v5037_v1 = vld [vmem:[%s6530_s1 + $0x88c] ss:$12 sps:$4 sm:$0xff]  }
 0x10c   : > { %3025 = vmatpush1.bf16.msra.mxu0 %v4963_v36  ;;  %4341 = vmatprep.subr.bf16.mxu1 %v4974_v2 }
 0x10d   : > { %3067 = vmatprep.subr.bf16.mxu0 %v4973_v49  ;;  %v5038_v49 = vld [vmem:[%s6530_s1 + $0x8f0] ss:$12 sps:$4 sm:$0xff]  }
 0x10e   : > { %3457 = vmatmul.mubr.bf16.gmra.mrb[88].mxu1 %v5913_v20  ;;  %v4986_v20 = vld [vmem:[%s6530_s1 + $0x7c8] ss:$12 sps:$4 sm:$0xff]  }
 0x10f   : > { %3027 = vmatmul.mubr.bf16.vlgmr.msra.gmra.mrb[0].mxu0 %v4968_v6  ;;  %4342 = vmatpush3.bf16.msra.mxu1 %v4975_v7  ;;  %v5045_v7 = vld [vmem:[%s6530_s1 + $0x8a4] ss:$12 sps:$4 sm:$0xff]  }
 0x110   : > { %3068 = vmatpush1.bf16.msra.mxu0 %v4971_v40  ;;  %4343 = vmatprep.subr.bf16.mxu1 %v4979_v9  ;;  %v5039_v40 = vld [vmem:[%s6530_s1 + $0x830] ss:$12 sps:$4 sm:$0xff]   ;;  %v5040_v9 = vld [vmem:[%s5265_s13 + $0x28] ss:$56 sps:$4 sm:$0xff]  }
 0x111   : > { %3069 = vmatprep.subr.bf16.mxu0 %v4978_v8  ;;  %3464 = vmatprep.mubr.bf16.mxu1 %v5935_v34  ;;  %v4995_v34 = vld [vmem:[%s6530_s1 + $0x788] ss:$12 sps:$4 sm:$0xff]  }
 0x112   : > { %3036 = vmatprep.mubr.bf16.mxu0 %v5001_v12 }
 0x113   : > { %4344 = vmatpush3.bf16.msra.mxu1 %v4980_v50  ;;  %v5043_v50 = vld [vmem:[%s6530_s1 + $0x8a0] ss:$12 sps:$4 sm:$0xff]  }
 0x114   : > { %3070 = vmatpush1.bf16.msra.mxu0 %v4976_v11  ;;  %4345 = vmatprep.subr.bf16.mxu1 %v4984_v13  ;;  %v5093_v13 = vmov 0  }
 0x115   : > { %3071 = vmatprep.subr.bf16.mxu0 %v4983_v10 }
 0x116   : > { %3465 = vmatmul.mubr.bf16.gmra.mrb[92].mxu1 %v5947_v31  ;;  %v4996_v31 = vld [vmem:[%s6530_s1 + $0x7f8] ss:$12 sps:$4 sm:$0xff]  }
 0x117   : > { %3037 = vmatmul.mubr.bf16.gmra.mrb[4].mxu0 %v5006_v19  ;;  %4346 = vmatpush3.bf16.msra.mxu1 %v4985_v54 }
 0x118   : > { %3072 = vmatpush1.bf16.msra.mxu0 %v4981_v15  ;;  %4347 = vmatprep.subr.bf16.mxu1 %v4989_v18  ;;  %v5049_v15 = vld [vmem:[%s6530_s1 + $0x8bc] ss:$12 sps:$4 sm:$0xff]   ;;  %v5047_v18 = vld [vmem:[%s6530_s1 + $0x8b8] ss:$12 sps:$4 sm:$0xff]  }
 0x119   : > { %3073 = vmatprep.subr.bf16.mxu0 %v4988_v16  ;;  %3505 = vmatprep.mubr.bf16.mxu1 %v5969_v62  ;;  %v5003_v62 = vld [vmem:[%s6530_s1 + $0x810] ss:$12 sps:$4 sm:$0xff]  }
 0x11a   : > { %3046 = vmatprep.mubr.bf16.mxu0 %v5014_v22  ;;  %v5051_v16 = vld [vmem:[%s5265_s13 + $0x9c] ss:$56 sps:$4 sm:$0xff]  }
 0x11b   : > { %4348 = vmatpush3.bf16.msra.mxu1 %v4990_v61  ;;  %v5056_v61 = vld [vmem:[%s5265_s13 + $0x98] ss:$56 sps:$4 sm:$0xff]  }
 0x11c   : > { %3074 = vmatpush1.bf16.msra.mxu0 %v4986_v20  ;;  %4373 = vmatprep.subr.bf16.mxu1 %v4994_v23  ;;  %v5055_v20 = vld [vmem:[%s6530_s1 + $0x8d4] ss:$12 sps:$4 sm:$0xff]   ;;  %v5060_v23 = vld [vmem:[%s6530_s1 + $0x8ec] ss:$12 sps:$4 sm:$0xff]  }
 0x11d   : > { %3075 = vmatprep.subr.bf16.mxu0 %v4993_v21  ;;  %v5057_v21 = vld [vmem:[%s6530_s1 + $0x938] ss:$12 sps:$4 sm:$0xff]  }
 0x11e   : > { %3506 = vmatmul.mubr.bf16.vlgmr.msra.gmra.mrb[96].mxu1 %v4968_v6  ;;  %v5035_v6 = vld [vmem:[%s6530_s1 + $0x888] ss:$12 sps:$4 sm:$0xff]  }
 0x11f   : > { %3047 = vmatmul.mubr.bf16.gmra.mrb[8].mxu0 %v5019_v28  ;;  %4374 = vmatpush3.bf16.msra.mxu1 %v4995_v34  ;;  %v5058_v34 = vld [vmem:[%s6530_s1 + $0x8e8] ss:$12 sps:$4 sm:$0xff]  }
 0x120   : > { %3076 = vmatpush1.bf16.msra.mxu0 %v4991_v25  ;;  %4375 = vmatprep.subr.bf16.mxu1 %v4999_v30  ;;  %v5062_v25 = vld [vmem:[%s5265_s13 + $0x10c] ss:$56 sps:$4 sm:$0xff]   ;;  %v5064_v30 = vld [vmem:[%s5265_s13 + $0x108] ss:$56 sps:$4 sm:$0xff]  }
 0x121   : > { %3077 = vmatprep.subr.bf16.mxu0 %v4998_v27  ;;  %v6158_v37 = vpop.f32.mrb[0].mxu1  ;;  %3513 = vmatprep.mubr.bf16.mxu1 %v5001_v12  ;;  %v5046_v12 = vld [vmem:[%s6530_s1 + $0x908] ss:$12 sps:$4 sm:$0xff]   ;;  %v5061_v27 = vld [vmem:[%s6530_s1 + $0x950] ss:$12 sps:$4 sm:$0xff]  }
 0x122   : > { %3056 = vmatprep.mubr.bf16.mxu0 %v5027_v32  ;;  %v6163_v38 = vpop.f32.mrb[1].mxu1 }
 0x123   : > { %v6171_v3 = vpop.f32.mrb[2].mxu1  ;;  %4376 = vmatpush3.bf16.msra.mxu1 %v5000_v57  ;;  %v5066_v57 = vld [vmem:[%s6530_s1 + $0x980] ss:$12 sps:$4 sm:$0xff]  }
 0x124   : > { %3078 = vmatpush1.bf16.msra.mxu0 %v4996_v31  ;;  %v6176_v43 = vpop.f32.mrb[3].mxu1  ;;  %4377 = vmatprep.subr.bf16.mxu1 %v5007_v35  ;;  %v5067_v31 = vld [vmem:[%s5265_s13 + $0x17c] ss:$56 sps:$4 sm:$0xff]   ;;  %v5069_v35 = vld [vmem:[%s5265_s13 + $0x178] ss:$56 sps:$4 sm:$0xff]  }
 0x125   : > { %3079 = vmatprep.subr.bf16.mxu0 %v5005_v33 }
 0x126   : > { %3514 = vmatmul.mubr.bf16.gmra.mrb[100].mxu1 %v5006_v19  ;;  %v5050_v19 = vld [vmem:[%s6530_s1 + $0x920] ss:$12 sps:$4 sm:$0xff]  }
 0x127   : > { %3057 = vmatmul.mubr.bf16.gmra.mrb[12].mxu0 %v5032_v44  ;;  %4378 = vmatpush3.bf16.msra.mxu1 %v5008_v39  ;;  %v5070_v39 = vld [vmem:[%s6530_s1 + $0x998] ss:$12 sps:$4 sm:$0xff]  }
 0x128   : > { %3080 = vmatpush1.bf16.msra.mxu0 %v5003_v62  ;;  %4379 = vmatprep.subr.bf16.mxu1 %v5012_v42  ;;  %v5071_v42 = vld [vmem:[%s6530_s1 + $0x9b0] ss:$12 sps:$4 sm:$0xff]  }
 0x129   : > { %3081 = vmatprep.subr.bf16.mxu0 %v5011_v41  ;;  %3521 = vmatprep.mubr.bf16.mxu1 %v5014_v22  ;;  %v6198_v51 = vpop.f32.mrb[4].mxu1  ;;  %v5053_v22 = vld [vmem:[%s6530_s1 + $0x8d0] ss:$12 sps:$4 sm:$0xff]  }
 0x12a   : > { %3099 = vmatprep.mubr.bf16.mxu0 %v5042_v47  ;;  %v6200_v52 = vpop.f32.mrb[5].mxu1 }
 0x12b   : > { %4380 = vmatpush3.bf16.msra.mxu1 %v5013_v4  ;;  %v6205_v53 = vpop.f32.mrb[6].mxu1 }
 0x12c   : > { %3082 = vmatpush1.bf16.msra.mxu0 %v5009_v45  ;;  %4381 = vmatprep.subr.bf16.mxu1 %v5020_v14  ;;  %v6210_v26 = vpop.f32.mrb[7].mxu1  ;;  %v5077_v45 = vld [vmem:[%s5265_s13 + $0xa4] ss:$56 sps:$4 sm:$0xff]  }
 0x12d   : > { %3083 = vmatprep.subr.bf16.mxu0 %v5018_v46 }
 0x12e   : > { %3522 = vmatmul.mubr.bf16.gmra.mrb[104].mxu1 %v5019_v28  ;;  %v5065_v28 = vld [vmem:[%s6530_s1 + $0x968] ss:$12 sps:$4 sm:$0xff]  }
 0x12f   : > { %4382 = vmatpush3.bf16.msra.mxu1 %v5021_v5  ;;  %3529 = vmatprep.mubr.bf16.mxu1 %v5027_v32 }
 0x130   : > { %3084 = vmatpush1.bf16.msra.mxu0 %v5016_v48  ;;  %4383 = vmatprep.subr.bf16.mxu1 %v5025_v24  ;;  %v5073_v48 = vld [vmem:[%s6530_s1 + $0x9e0] ss:$12 sps:$4 sm:$0xff]  }
 0x131   : > { %3085 = vmatprep.subr.bf16.mxu0 %v5024_v17  ;;  %v6224_v59 = vpop.f32.mrb[8].mxu1 }
 0x132   : > { %v6226_v60 = vpop.f32.mrb[9].mxu1 }
 0x133   : > { %4384 = vmatpush3.bf16.msra.mxu1 %v5026_v56  ;;  %v6234_v36 = vpop.f32.mrb[10].mxu1 }
 0x134   : > { %3086 = vmatpush1.bf16.msra.mxu0 %v5022_v55  ;;  %4385 = vmatprep.subr.bf16.mxu1 %v5033_v29  ;;  %v6242_v2 = vpop.f32.mrb[11].mxu1  ;;  %v5074_v55 = vld [vmem:[%s6530_s1 + $0x9f8] ss:$12 sps:$4 sm:$0xff]  }
 0x135   : > { %3087 = vmatprep.subr.bf16.mxu0 %v5031_v58  ;;  %v5075_v58 = vld [vmem:[%s6530_s1 + $0xa10] ss:$12 sps:$4 sm:$0xff]  }
 0x136   : > { %3530 = vmatmul.mubr.bf16.gmra.mrb[108].mxu1 %v5032_v44 }
 0x137   : > { %4386 = vmatpush3.bf16.msra.mxu1 %v5034_v0  ;;  %3570 = vmatprep.mubr.bf16.mxu1 %v5042_v47  ;;  %v5072_v47 = vld [vmem:[%s6530_s1 + $0x9c8] ss:$12 sps:$4 sm:$0xff]  }
 0x138   : > { %3088 = vmatpush1.bf16.msra.mxu0 %v5029_v63  ;;  %4387 = vmatprep.subr.bf16.mxu1 %v5038_v49  ;;  %v5078_v63 = vld [vmem:[%s5265_s13 + $0x34] ss:$56 sps:$4 sm:$0xff]  }
 0x139   : > { %3089 = vmatprep.subr.bf16.mxu0 %v5037_v1  ;;  %v6253_v8 = vpop.f32.mrb[12].mxu1 }
 0x13a   : > { %v6256_v11 = vpop.f32.mrb[13].mxu1 }
 0x13b   : > { %4388 = vmatpush3.bf16.msra.mxu1 %v5039_v40  ;;  %v6264_v10 = vpop.f32.mrb[14].mxu1  ;;  %v5080_v40 = vld [vmem:[%s5265_s13 + $0x114] ss:$56 sps:$4 sm:$0xff]  }
 0x13c   : > { %3090 = vmatpush1.bf16.msra.mxu0 %v5035_v6  ;;  %4413 = vmatprep.subr.bf16.mxu1 %v5093_v13  ;;  %v6270_v54 = vpop.f32.mrb[15].mxu1  ;;  %v5079_v6 = vld [vmem:[%s5265_s13 + $0xa0] ss:$56 sps:$4 sm:$0xff]  }
 0x13d   : > { %3091 = vmatprep.subr.bf16.mxu0 %v5045_v7 }
 0x13e   : > { %3571 = vmatmul.mubr.bf16.vlgmr.msra.gmra.mrb[112].mxu1 %v5040_v9 }
 0x13f   : > { %4425 = vmatpush1.bf16.msra.mxu1 %v5046_v12  ;;  %3578 = vmatprep.mubr.bf16.mxu1 %v5051_v16 }
 0x140   : > { %3092 = vmatpush1.bf16.msra.mxu0 %v5043_v50  ;;  %4414 = vmatprep.subr.bf16.mxu1 %v5093_v13 }
 0x141   : > { %3093 = vmatprep.subr.bf16.mxu0 %v5049_v15 }
 0x143   : > { %4426 = vmatpush1.bf16.msra.mxu1 %v5050_v19 }
 0x144   : > { %3094 = vmatpush1.bf16.msra.mxu0 %v5047_v18  ;;  %4415 = vmatprep.subr.bf16.mxu1 %v5093_v13  ;;  %v5081_v18 = vld [vmem:[%s5265_s13 + $0x110] ss:$56 sps:$4 sm:$0xff]  }
 0x145   : > { %3095 = vmatprep.subr.bf16.mxu0 %v5055_v20 }
 0x146   : > { %3579 = vmatmul.mubr.bf16.gmra.mrb[116].mxu1 %v5056_v61 }
 0x147   : > { %4427 = vmatpush1.bf16.msra.mxu1 %v5057_v21  ;;  %3586 = vmatprep.mubr.bf16.mxu1 %v5062_v25 }
 0x148   : > { %3096 = vmatpush1.bf16.msra.mxu0 %v5053_v22  ;;  %4416 = vmatprep.subr.bf16.mxu1 %v5093_v13 }
 0x149   : > { %3097 = vmatprep.subr.bf16.mxu0 %v5060_v23 }
 0x14b   : > { %4428 = vmatpush1.bf16.msra.mxu1 %v5061_v27 }
 0x14c   : > { %3098 = vmatpush1.bf16.msra.mxu0 %v5058_v34  ;;  %4417 = vmatprep.subr.bf16.mxu1 %v5093_v13  ;;  %v5083_v34 = vld [vmem:[%s5265_s13 + $0x30] ss:$56 sps:$4 sm:$0xff]  }
 0x14d   : > { %3603 = vmatprep.subr.bf16.mxu0 %v5093_v13 }
 0x14e   : > { %3587 = vmatmul.mubr.bf16.gmra.mrb[120].mxu1 %v5064_v30 }
 0x14f   : > { %3100 = vmatmul.mubr.bf16.vlgmr.msra.gmra.mrb[0].mxu0 %v5040_v9  ;;  %4429 = vmatpush1.bf16.msra.mxu1 %v5065_v28 }
 0x150   : > { %3604 = vmatpush1.bf16.msra.mxu0 %v5046_v12  ;;  %4418 = vmatprep.subr.bf16.mxu1 %v5093_v13 }
 0x151   : > { %3605 = vmatprep.subr.bf16.mxu0 %v5093_v13  ;;  %v6314_v32 = vpop.f32.mrb[16].mxu1  ;;  %3109 = vmatprep.mubr.bf16.mxu0 %v5051_v16 }
 0x152   : > { %3594 = vmatprep.mubr.bf16.mxu1 %v5067_v31  ;;  %v6316_v33 = vpop.f32.mrb[17].mxu1 }
 0x153   : > { %v6319_v62 = vpop.f32.mrb[18].mxu1  ;;  %4430 = vmatpush1.bf16.msra.mxu1 %v5066_v57 }
 0x154   : > { %3606 = vmatpush1.bf16.msra.mxu0 %v5050_v19  ;;  %v6324_v41 = vpop.f32.mrb[19].mxu1  ;;  %4419 = vmatprep.subr.bf16.mxu1 %v5093_v13  ;;  %v5082_v19 = vld [vmem:[%s5265_s13 + $0x184] ss:$56 sps:$4 sm:$0xff]  }
 0x155   : > { %3607 = vmatprep.subr.bf16.mxu0 %v5093_v13 }
 0x156   : > { %3595 = vmatmul.mubr.bf16.gmra.mrb[124].mxu1 %v5069_v35 }
 0x157   : > { %3110 = vmatmul.mubr.bf16.gmra.mrb[4].mxu0 %v5056_v61  ;;  %4431 = vmatpush1.bf16.msra.mxu1 %v5070_v39 }
 0x158   : > { %3608 = vmatpush1.bf16.msra.mxu0 %v5057_v21  ;;  %4420 = vmatprep.subr.bf16.mxu1 %v5093_v13 }
 0x159   : > { %3609 = vmatprep.subr.bf16.mxu0 %v5093_v13  ;;  %v6333_v44 = vpop.f32.mrb[20].mxu1  ;;  %3119 = vmatprep.mubr.bf16.mxu0 %v5062_v25 }
 0x15a   : > { %4168 = vmatprep.mubr.msk.bf16.mxu1 %vm2689_vm0, %v5077_v45  ;;  %v6337_v4 = vpop.f32.mrb[21].mxu1 }
 0x15b   : > { %v6339_v46 = vpop.f32.mrb[22].mxu1  ;;  %4432 = vmatpush1.bf16.msra.mxu1 %v5071_v42 }
 0x15c   : > { %3610 = vmatpush1.bf16.msra.mxu0 %v5061_v27  ;;  %v6344_v14 = vpop.f32.mrb[23].mxu1  ;;  %4421 = vmatprep.subr.bf16.mxu1 %v5093_v13  ;;  %v5084_v27 = vld [vmem:[%s5265_s13 + $0x180] ss:$56 sps:$4 sm:$0xff]  }
 0x15d   : > { %3611 = vmatprep.subr.bf16.mxu0 %v5093_v13 }
 0x15f   : > { %3120 = vmatmul.mubr.bf16.gmra.mrb[8].mxu0 %v5064_v30  ;;  %4433 = vmatpush1.bf16.msra.mxu1 %v5072_v47 }
 0x160   : > { %3612 = vmatpush1.bf16.msra.mxu0 %v5065_v28  ;;  %4422 = vmatprep.subr.bf16.mxu1 %v5093_v13 }
 0x161   : > { %3613 = vmatprep.subr.bf16.mxu0 %v5093_v13  ;;  %v6353_v5 = vpop.f32.mrb[24].mxu1  ;;  %3129 = vmatprep.mubr.bf16.mxu0 %v5067_v31 }
 0x162   : > { %v6355_v17 = vpop.f32.mrb[25].mxu1 }
 0x163   : > { %v6357_v24 = vpop.f32.mrb[26].mxu1  ;;  %4434 = vmatpush1.bf16.msra.mxu1 %v5073_v48 }
 0x164   : > { %3614 = vmatpush1.bf16.msra.mxu0 %v5066_v57  ;;  %v6362_v56 = vpop.f32.mrb[27].mxu1  ;;  %4423 = vmatprep.subr.bf16.mxu1 %v5093_v13 }
 0x165   : > { %3615 = vmatprep.subr.bf16.mxu0 %v5093_v13 }
 0x167   : > { %3130 = vmatmul.mubr.bf16.gmra.mrb[12].mxu0 %v5069_v35  ;;  %4435 = vmatpush1.bf16.msra.mxu1 %v5074_v55 }
 0x168   : > { %3616 = vmatpush1.bf16.msra.mxu0 %v5070_v39  ;;  %4424 = vmatprep.subr.bf16.mxu1 %v5093_v13  ;;  %v670_v39 = vlaneseq }
 0x169   : > { %3617 = vmatprep.subr.bf16.mxu0 %v5093_v13  ;;  %v6371_v29 = vpop.f32.mrb[28].mxu1  ;;  %4167 = vmatprep.mubr.msk.bf16.mxu0 %vm2689_vm0, %v5078_v63 }
 0x16a   : > { %v6375_v0 = vpop.f32.mrb[29].mxu1  ;;  %v6393_v45 = vshrl.u32 %v670_v39, 7 }
 0x16b   : > { %v6377_v1 = vpop.f32.mrb[30].mxu1  ;;  %4436 = vmatpush1.bf16.msra.mxu1 %v5075_v58 }
 0x16c   : > { %6533 = vst [vmem:[#allocation2_spill] sm:$0xff] %v6377_v1  ;;  %3618 = vmatpush1.bf16.msra.mxu0 %v5071_v42  ;;  %v6379_v49 = vpop.f32.mrb[31].mxu1 }
 0x16d   : > { %6534 = vst [vmem:[#allocation3_spill] sm:$0xff] %v6379_v49  ;;  %3619 = vmatprep.subr.bf16.mxu0 %v5093_v13 }
 0x16e   : > { %3644 = vmatmul.mubr.bf16.vlgmr.msra.gmra.mrb[128].mxu1 %v5079_v6 }
 0x16f   : > { %4169 = vmatprep.mubr.msk.bf16.mxu1 %vm2689_vm0, %v5080_v40  ;;  %v6399_v40 = vld [vmem:[%s6531_s2] sm:$0x7] }
 0x170   : > { %3620 = vmatpush1.bf16.msra.mxu0 %v5072_v47 }
 0x171   : > { %3621 = vmatprep.subr.bf16.mxu0 %v5093_v13  ;;  %v4189_v7 = vpop.f32.mrb[32].mxu1 }
 0x172   : > { %v4190_v9 = vpop.f32.mrb[33].mxu1 }
 0x173   : > { %v4191_v50 = vadd.f32 %v4190_v9, %v4189_v7  ;;  %v4192_v12 = vpop.f32.mrb[34].mxu1 }
 0x174   : > { %3622 = vmatpush1.bf16.msra.mxu0 %v5073_v48  ;;  %v4193_v15 = vpop.f32.mrb[35].mxu1  ;;  %v680_v48 = vsub.s32 2, %v6393_v45 }
 0x175   : > { %3623 = vmatprep.subr.bf16.mxu0 %v5093_v13  ;;  %v4194_v16 = vadd.f32 %v4193_v15, %v4192_v12 }
 0x176   : > { %3652 = vmatmul.mubr.bf16.gmra.mrb[132].mxu1 %v5081_v18  ;;  %v681_v7 = vrot.slane %v6399_v40, %v680_v48 }
 0x177   : > { %4170 = vmatprep.mubr.msk.bf16.mxu1 %vm2689_vm0, %v5082_v19 }
 0x178   : > { %3624 = vmatpush1.bf16.msra.mxu0 %v5074_v55  ;;  %v3248_v15 = vadd.f32 %v4191_v50, %v681_v7 }
 0x179   : > { %3625 = vmatprep.subr.bf16.mxu0 %v5093_v13  ;;  %v4195_v20 = vpop.f32.mrb[36].mxu1 }
 0x17a   : > { %v4196_v61 = vpop.f32.mrb[37].mxu1 }
 0x17b   : > { %v4197_v22 = vadd.f32 %v4196_v61, %v4195_v20  ;;  %v4198_v21 = vpop.f32.mrb[38].mxu1  ;;  %v3251_v61 = vadd.f32 %v4194_v16, %v681_v7 }
 0x17c   : > { %3626 = vmatpush1.bf16.msra.mxu0 %v5075_v58  ;;  %v4199_v23 = vpop.f32.mrb[39].mxu1 }
 0x17d   : > { %v4200_v25 = vadd.f32 %v4199_v23, %v4198_v21 }
 0x17e   : > { %3660 = vmatmul.mubr.bf16.gmra.mrb[136].mxu1 %v5084_v27 }
 0x17f   : > { %3636 = vmatmul.mubr.bf16.vlgmr.msra.gmra.mrb[16].mxu0 %v5083_v34 }
 0x181   : > { %v4201_v30 = vpop.f32.mrb[40].mxu1 }
 0x182   : > { %v4202_v28 = vpop.f32.mrb[41].mxu1 }
 0x183   : > { %v4203_v31 = vadd.f32 %v4202_v28, %v4201_v30  ;;  %v4204_v57 = vpop.f32.mrb[42].mxu1  ;;  %v3256_v28 = vadd.f32 %v4197_v22, %v681_v7 }
 0x184   : > { %v4205_v35 = vpop.f32.mrb[43].mxu1 }
 0x185   : > { %v4206_v42 = vadd.f32 %v4205_v35, %v4204_v57  ;;  %v3264_v50 = vadd.f32 %v4203_v31, %v681_v7 }
 0x187   : > { %v3267_v16 = vadd.f32 %v4206_v42, %v681_v7 }
 0x189   : > { %v4207_v13 = vpop.f32.mrb[44].mxu1 }
 0x18a   : > { %v4208_v47 = vpop.f32.mrb[45].mxu1 }
 0x18b   : > { %v4209_v55 = vadd.f32 %v4208_v47, %v4207_v13  ;;  %v4210_v58 = vpop.f32.mrb[46].mxu1  ;;  %v3259_v13 = vadd.f32 %v4200_v25, %v681_v7 }
 0x18c   : > { %v4211_v63 = vpop.f32.mrb[47].mxu1 }
 0x18d   : > { %v4212_v6 = vadd.f32 %v4211_v63, %v4210_v58  ;;  %v3272_v22 = vadd.f32 %v4209_v55, %v681_v7 }
 0x18f   : > { %v3275_v25 = vadd.f32 %v4212_v6, %v681_v7 }
 0x191   : > { %v4229_v9 = vpop.f32.mrb[48].mxu1 }
 0x192   : > { %v4230_v12 = vpop.f32.mrb[49].mxu1 }
 0x193   : > { %v4231_v18 = vadd.f32 %v4230_v12, %v4229_v9  ;;  %v4232_v19 = vpop.f32.mrb[50].mxu1 }
 0x194   : > { %v4233_v20 = vpop.f32.mrb[51].mxu1 }
 0x195   : > { %v3313_v21 = vadd.f32 %v4231_v18, %v3248_v15  ;;  %v4234_v23 = vadd.f32 %v4233_v20, %v4232_v19 }
 0x197   : > { %v3316_v34 = vadd.f32 %v4234_v23, %v3251_v61 }
 0x199   : > { %v4235_v27 = vpop.f32.mrb[52].mxu1 }
 0x19a   : > { %v4236_v30 = vpop.f32.mrb[53].mxu1 }
 0x19b   : > { %v4237_v57 = vadd.f32 %v4236_v30, %v4235_v27  ;;  %v4238_v35 = vpop.f32.mrb[54].mxu1 }
 0x19c   : > { %v4239_v39 = vpop.f32.mrb[55].mxu1 }
 0x19d   : > { %v3321_v47 = vadd.f32 %v4237_v57, %v3256_v28  ;;  %v4240_v58 = vadd.f32 %v4239_v39, %v4238_v35 }
 0x19f   : > { %v3324_v48 = vadd.f32 %v4240_v58, %v3259_v13 }
 0x1a1   : > { %v4241_v63 = vpop.f32.mrb[56].mxu1 }
 0x1a2   : > { %v4242_v49 = vpop.f32.mrb[57].mxu1 }
 0x1a3   : > { %v4243_v9 = vadd.f32 %v4242_v49, %v4241_v63  ;;  %v4244_v12 = vpop.f32.mrb[58].mxu1 }
 0x1a4   : > { %v4245_v1 = vpop.f32.mrb[59].mxu1 }
 0x1a5   : > { %v3329_v15 = vadd.f32 %v4243_v9, %v3264_v50  ;;  %v4246_v18 = vadd.f32 %v4245_v1, %v4244_v12 }
 0x1a7   : > { %v3332_v19 = vadd.f32 %v4246_v18, %v3267_v16 }
 0x1a9   : > { %v4247_v20 = vpop.f32.mrb[60].mxu1 }
 0x1aa   : > { %v4248_v61 = vpop.f32.mrb[61].mxu1 }
 0x1ab   : > { %v4249_v23 = vadd.f32 %v4248_v61, %v4247_v20  ;;  %v4250_v27 = vpop.f32.mrb[62].mxu1 }
 0x1ac   : > { %v4251_v30 = vpop.f32.mrb[63].mxu1 }
 0x1ad   : > { %v3337_v28 = vadd.f32 %v4249_v23, %v3272_v22  ;;  %v4252_v57 = vadd.f32 %v4251_v30, %v4250_v27 }
 0x1af   : > { %v3340_v35 = vadd.f32 %v4252_v57, %v3275_v25 }
 0x1b1   : > { %v4269_v39 = vpop.f32.mrb[64].mxu1 }
 0x1b2   : > { %v4270_v13 = vpop.f32.mrb[65].mxu1 }
 0x1b3   : > { %v4271_v31 = vadd.f32 %v4270_v13, %v4269_v39  ;;  %v4272_v49 = vpop.f32.mrb[66].mxu1 }
 0x1b4   : > { %v4273_v58 = vpop.f32.mrb[67].mxu1 }
 0x1b5   : > { %v3378_v63 = vadd.f32 %v4271_v31, %v3313_v21  ;;  %v4274_v42 = vadd.f32 %v4273_v58, %v4272_v49 }
 0x1b7   : > { %v3381_v50 = vadd.f32 %v4274_v42, %v3316_v34 }
 0x1b9   : > { %v4275_v1 = vpop.f32.mrb[68].mxu1 }
 0x1ba   : > { %v4276_v9 = vpop.f32.mrb[69].mxu1 }
 0x1bb   : > { %v4277_v12 = vadd.f32 %v4276_v9, %v4275_v1  ;;  %v4278_v16 = vpop.f32.mrb[70].mxu1 }
 0x1bc   : > { %v4279_v55 = vpop.f32.mrb[71].mxu1 }
 0x1bd   : > { %v3386_v18 = vadd.f32 %v4277_v12, %v3321_v47  ;;  %v4280_v20 = vadd.f32 %v4279_v55, %v4278_v16 }
 0x1bf   : > { %v3389_v61 = vadd.f32 %v4280_v20, %v3324_v48 }
 0x1c1   : > { %v4281_v6 = vpop.f32.mrb[72].mxu1 }
 0x1c2   : > { %v4282_v7 = vpop.f32.mrb[73].mxu1 }
 0x1c3   : > { %v4283_v22 = vadd.f32 %v4282_v7, %v4281_v6  ;;  %v4284_v23 = vpop.f32.mrb[74].mxu1 }
 0x1c4   : > { %v4285_v27 = vpop.f32.mrb[75].mxu1 }
 0x1c5   : > { %v3394_v30 = vadd.f32 %v4283_v22, %v3329_v15  ;;  %v4286_v25 = vadd.f32 %v4285_v27, %v4284_v23 }
 0x1c7   : > { %v3397_v57 = vadd.f32 %v4286_v25, %v3332_v19 }
 0x1c9   : > { %v4287_v39 = vpop.f32.mrb[76].mxu1 }
 0x1ca   : > { %v4288_v21 = vpop.f32.mrb[77].mxu1 }
 0x1cb   : > { %v4289_v13 = vadd.f32 %v4288_v21, %v4287_v39  ;;  %v4290_v34 = vpop.f32.mrb[78].mxu1 }
 0x1cc   : > { %v4291_v31 = vpop.f32.mrb[79].mxu1 }
 0x1cd   : > { %v3402_v49 = vadd.f32 %v4289_v13, %v3337_v28  ;;  %v4292_v58 = vadd.f32 %v4291_v31, %v4290_v34 }
 0x1cf   : > { %v3405_v42 = vadd.f32 %v4292_v58, %v3340_v35 }
 0x1d1   : > { %v4309_v1 = vpop.f32.mrb[80].mxu1 }
 0x1d2   : > { %v4310_v47 = vpop.f32.mrb[81].mxu1 }
 0x1d3   : > { %v4311_v9 = vadd.f32 %v4310_v47, %v4309_v1  ;;  %v4312_v48 = vpop.f32.mrb[82].mxu1 }
 0x1d4   : > { %v4313_v12 = vpop.f32.mrb[83].mxu1 }
 0x1d5   : > { %v3443_v16 = vadd.f32 %v4311_v9, %v3378_v63  ;;  %v4314_v55 = vadd.f32 %v4313_v12, %v4312_v48 }
 0x1d7   : > { %v3446_v20 = vadd.f32 %v4314_v55, %v3381_v50 }
 0x1d9   : > { %v4315_v6 = vpop.f32.mrb[84].mxu1 }
 0x1da   : > { %v4316_v15 = vpop.f32.mrb[85].mxu1 }
 0x1db   : > { %v4317_v7 = vadd.f32 %v4316_v15, %v4315_v6  ;;  %v4318_v19 = vpop.f32.mrb[86].mxu1 }
 0x1dc   : > { %v4319_v22 = vpop.f32.mrb[87].mxu1 }
 0x1dd   : > { %v3451_v23 = vadd.f32 %v4317_v7, %v3386_v18  ;;  %v4320_v27 = vadd.f32 %v4319_v22, %v4318_v19 }
 0x1df   : > { %v3454_v25 = vadd.f32 %v4320_v27, %v3389_v61 }
 0x1e1   : > { %v4321_v39 = vpop.f32.mrb[88].mxu1 }
 0x1e2   : > { %v4322_v28 = vpop.f32.mrb[89].mxu1 }
 0x1e3   : > { %v4323_v21 = vadd.f32 %v4322_v28, %v4321_v39  ;;  %v4324_v35 = vpop.f32.mrb[90].mxu1 }
 0x1e4   : > { %v4325_v13 = vpop.f32.mrb[91].mxu1 }
 0x1e5   : > { %v3459_v34 = vadd.f32 %v4323_v21, %v3394_v30  ;;  %v4326_v31 = vadd.f32 %v4325_v13, %v4324_v35 }
 0x1e7   : > { %v3462_v58 = vadd.f32 %v4326_v31, %v3397_v57 }
 0x1e9   : > { %v4327_v1 = vpop.f32.mrb[92].mxu1 }
 0x1ea   : > { %v4328_v63 = vpop.f32.mrb[93].mxu1 }
 0x1eb   : > { %v4329_v47 = vadd.f32 %v4328_v63, %v4327_v1  ;;  %v4330_v50 = vpop.f32.mrb[94].mxu1 }
 0x1ec   : > { %v4331_v9 = vpop.f32.mrb[95].mxu1 }
 0x1ed   : > { %v3467_v48 = vadd.f32 %v4329_v47, %v3402_v49  ;;  %v4332_v12 = vadd.f32 %v4331_v9, %v4330_v50 }
 0x1ef   : > { %v3470_v55 = vadd.f32 %v4332_v12, %v3405_v42 }
 0x1f1   : > { %v4349_v6 = vpop.f32.mrb[96].mxu1 }
 0x1f2   : > { %v4350_v18 = vpop.f32.mrb[97].mxu1 }
 0x1f3   : > { %v4351_v15 = vadd.f32 %v4350_v18, %v4349_v6  ;;  %v4352_v61 = vpop.f32.mrb[98].mxu1 }
 0x1f4   : > { %v4353_v7 = vpop.f32.mrb[99].mxu1 }
 0x1f5   : > { %v3508_v19 = vadd.f32 %v4351_v15, %v3443_v16  ;;  %v4354_v22 = vadd.f32 %v4353_v7, %v4352_v61 }
 0x1f7   : > { %v3511_v27 = vadd.f32 %v4354_v22, %v3446_v20 }
 0x1f9   : > { %v4355_v39 = vpop.f32.mrb[100].mxu1 }
 0x1fa   : > { %v4356_v30 = vpop.f32.mrb[101].mxu1 }
 0x1fb   : > { %v4357_v28 = vadd.f32 %v4356_v30, %v4355_v39  ;;  %v4358_v57 = vpop.f32.mrb[102].mxu1 }
 0x1fc   : > { %v4359_v21 = vpop.f32.mrb[103].mxu1 }
 0x1fd   : > { %v3516_v35 = vadd.f32 %v4357_v28, %v3451_v23  ;;  %v4360_v13 = vadd.f32 %v4359_v21, %v4358_v57 }
 0x1ff   : > { %v3519_v31 = vadd.f32 %v4360_v13, %v3454_v25  ;;  %v676_v13 = vsub.s32 1, %v6393_v45 }
 0x201   : > { %v4361_v1 = vpop.f32.mrb[104].mxu1 }
 0x202   : > { %v4362_v49 = vpop.f32.mrb[105].mxu1 }
 0x203   : > { %v4363_v63 = vadd.f32 %v4362_v49, %v4361_v1  ;;  %v4364_v42 = vpop.f32.mrb[106].mxu1 }
 0x204   : > { %v4365_v47 = vpop.f32.mrb[107].mxu1 }
 0x205   : > { %v3524_v50 = vadd.f32 %v4363_v63, %v3459_v34  ;;  %v4366_v9 = vadd.f32 %v4365_v47, %v4364_v42  ;;  %v6416_v47 = vrot.slane %v6399_v40, %v676_v13 }
 0x207   : > { %v3527_v12 = vadd.f32 %v4366_v9, %v3462_v58  ;;  %v672_v58 = vsub.s32 0, %v6393_v45  ;;  %v2739_v45 = vadd.f32 %v6163_v38, %v6416_v47 }
 0x209   : > { %v4367_v6 = vpop.f32.mrb[108].mxu1  ;;  %v6413_v63 = vrot.slane %v6399_v40, %v672_v58 }
 0x20a   : > { %v4368_v16 = vpop.f32.mrb[109].mxu1 }
 0x20b   : > { %v4369_v18 = vadd.f32 %v4368_v16, %v4367_v6  ;;  %v4370_v20 = vpop.f32.mrb[110].mxu1  ;;  %v2737_v6 = vadd.f32 %v6158_v37, %v6413_v63 }
 0x20c   : > { %v4371_v15 = vpop.f32.mrb[111].mxu1 }
 0x20d   : > { %v6402_v61 = vadd.f32 %v4369_v18, %v3467_v48  ;;  %v4372_v7 = vadd.f32 %v4371_v15, %v4370_v20  ;;  %v2741_v20 = vadd.f32 %v6171_v3, %v6413_v63 }
 0x20f   : > { %v6404_v22 = vadd.f32 %v4372_v7, %v3470_v55 }
 0x211   : > { %v4389_v23 = vpop.f32.mrb[112].mxu1 }
 0x212   : > { %v4390_v25 = vpop.f32.mrb[113].mxu1 }
 0x213   : > { %v4391_v39 = vadd.f32 %v4390_v25, %v4389_v23  ;;  %v4392_v30 = vpop.f32.mrb[114].mxu1 }
 0x214   : > { %v4393_v28 = vpop.f32.mrb[115].mxu1 }
 0x215   : > { %v4394_v57 = vadd.f32 %v4393_v28, %v4392_v30  ;;  %v6406_v21 = vadd.f32 %v4391_v39, %v3508_v19 }
 0x217   : > { %v6408_v34 = vadd.f32 %v4394_v57, %v3511_v27 }
 0x219   : > { %v4395_v48 = vpop.f32.mrb[116].mxu1 }
 0x21a   : > { %v4396_v1 = vpop.f32.mrb[117].mxu1 }
 0x21b   : > { %v4397_v49 = vadd.f32 %v4396_v1, %v4395_v48  ;;  %v4398_v55 = vpop.f32.mrb[118].mxu1 }
 0x21c   : > { %v4399_v42 = vpop.f32.mrb[119].mxu1 }
 0x21d   : > { %v4400_v19 = vadd.f32 %v4399_v42, %v4398_v55  ;;  %v6418_v9 = vadd.f32 %v4397_v49, %v3516_v35  ;;  %v2743_v35 = vadd.f32 %v6176_v43, %v6416_v47  ;;  %v2747_v55 = vadd.f32 %v6198_v51, %v6413_v63 }
 0x21f   : > { %v6420_v27 = vadd.f32 %v4400_v19, %v3519_v31 }
 0x221   : > { %v4401_v18 = vpop.f32.mrb[120].mxu1 }
 0x222   : > { %v3101_v16 = vpop.f32.mrb[0].mxu0  ;;  %v4402_v7 = vpop.f32.mrb[121].mxu1 }
 0x223   : > { %v4438_v15 = vadd.f32 %v3101_v16, %v2737_v6  ;;  %v3103_v40 = vpop.f32.mrb[1].mxu0  ;;  %v4403_v23 = vadd.f32 %v4402_v7, %v4401_v18  ;;  %v4404_v39 = vpop.f32.mrb[122].mxu1  ;;  %v2753_v16 = vadd.f32 %v6210_v26, %v6416_v47 }
 0x224   : > { %v4441_v31 = vadd.f32 %v3103_v40, %v2739_v45  ;;  %v3105_v25 = vpop.f32.mrb[2].mxu0  ;;  %v4405_v28 = vpop.f32.mrb[123].mxu1 }
 0x225   : > { %v4439_v37 = vadd.f32 %v4438_v15, %v6314_v32  ;;  %v4444_v30 = vadd.f32 %v3105_v25, %v2741_v20  ;;  %v3107_v38 = vpop.f32.mrb[3].mxu0  ;;  %v4406_v43 = vadd.f32 %v4405_v28, %v4404_v39  ;;  %v6438_v58 = vadd.f32 %v4403_v23, %v3524_v50 }
 0x226   : > { %v4442_v3 = vadd.f32 %v4441_v31, %v6316_v33  ;;  %v4447_v57 = vadd.f32 %v3107_v38, %v2743_v35  ;;  %v2749_v33 = vadd.f32 %v6200_v52, %v6416_v47  ;;  %v2757_v38 = vadd.f32 %v6224_v59, %v6413_v63 }
 0x227   : > { %v3668_v13 = vmax.f32 %v4439_v37, 0.0  ;;  %v4445_v32 = vadd.f32 %v4444_v30, %v6319_v62  ;;  %v6442_v49 = vadd.f32 %v4406_v43, %v3527_v12  ;;  %v2751_v62 = vadd.f32 %v6205_v53, %v6413_v63 }
 0x228   : > { %v3669_v48 = vmax.f32 %v4442_v3, 0.0  ;;  %v4448_v1 = vadd.f32 %v4447_v57, %v6324_v41  ;;  %v2759_v28 = vadd.f32 %v6226_v60, %v6416_v47 }
 0x229   : > { %3692 = vst [vmem:[%s6435_s17] sm:$0xff] %v3668_v13  ;;  %v3671_v42 = vmax.f32 %v4445_v32, 0.0  ;;  %v4407_v6 = vpop.f32.mrb[124].mxu1 }
 0x22a   : > { %3693 = vst [vmem:[%s6435_s17 + $0x8] sm:$0xff] %v3669_v48  ;;  %v3672_v50 = vmax.f32 %v4448_v1, 0.0  ;;  %v3111_v19 = vpop.f32.mrb[4].mxu0  ;;  %v4408_v12 = vpop.f32.mrb[125].mxu1 }
 0x22b   : > { %3695 = vst [vmem:[%s6435_s17 + $0x18] sm:$0xff] %v3671_v42  ;;  %v4450_v41 = vadd.f32 %v3111_v19, %v2747_v55  ;;  %v3113_v45 = vpop.f32.mrb[5].mxu0  ;;  %v4409_v18 = vadd.f32 %v4408_v12, %v4407_v6  ;;  %v4410_v52 = vpop.f32.mrb[126].mxu1 }
 0x22c   : > { %3696 = vst [vmem:[%s6435_s17 + $0x20] sm:$0xff] %v3672_v50  ;;  %v4453_v51 = vadd.f32 %v3113_v45, %v2749_v33  ;;  %v3115_v20 = vpop.f32.mrb[6].mxu0  ;;  %v4411_v35 = vpop.f32.mrb[127].mxu1 }
 0x22d   : > { %v4451_v15 = vadd.f32 %v4450_v41, %v6333_v44  ;;  %v4456_v40 = vadd.f32 %v3115_v20, %v2751_v62  ;;  %v3117_v7 = vpop.f32.mrb[7].mxu0  ;;  %v4412_v23 = vadd.f32 %v4411_v35, %v4410_v52  ;;  %v6459_v25 = vadd.f32 %v4409_v18, %v6402_v61  ;;  %v6536_v52 = vld [vmem:[#allocation3_spill] sm:$0xff] }
 0x22e   : > { %v4454_v53 = vadd.f32 %v4453_v51, %v6337_v4  ;;  %v4459_v31 = vadd.f32 %v3117_v7, %v2753_v16  ;;  %v6535_v51 = vld [vmem:[#allocation2_spill] sm:$0xff] }
 0x22f   : > { %v3674_v26 = vmax.f32 %v4451_v15, 0.0  ;;  %v4457_v39 = vadd.f32 %v4456_v40, %v6339_v46  ;;  %v6464_v44 = vadd.f32 %v4412_v23, %v6404_v22  ;;  %v2761_v46 = vadd.f32 %v6234_v36, %v6413_v63 }
 0x230   : > { %v3675_v37 = vmax.f32 %v4454_v53, 0.0  ;;  %v4460_v30 = vadd.f32 %v4459_v31, %v6344_v14  ;;  %v2763_v22 = vadd.f32 %v6242_v2, %v6416_v47  ;;  %v2767_v2 = vadd.f32 %v6253_v8, %v6413_v63 }
 0x231   : > { %3698 = vst [vmem:[%s6435_s17 + $0x30] sm:$0xff] %v3674_v26  ;;  %v3677_v4 = vmax.f32 %v4457_v39, 0.0 }
 0x232   : > { %3699 = vst [vmem:[%s6435_s17 + $0x38] sm:$0xff] %v3675_v37  ;;  %v3678_v61 = vmax.f32 %v4460_v30, 0.0  ;;  %v3121_v3 = vpop.f32.mrb[8].mxu0 }
 0x233   : > { %3701 = vst [vmem:[%s6435_s17 + $0x48] sm:$0xff] %v3677_v4  ;;  %v4462_v57 = vadd.f32 %v3121_v3, %v2757_v38  ;;  %v3123_v14 = vpop.f32.mrb[9].mxu0 }
 0x234   : > { %3702 = vst [vmem:[%s6435_s17 + $0x50] sm:$0xff] %v3678_v61  ;;  %v4465_v59 = vadd.f32 %v3123_v14, %v2759_v28  ;;  %v3125_v43 = vpop.f32.mrb[10].mxu0 }
 0x235   : > { %v4463_v13 = vadd.f32 %v4462_v57, %v6353_v5  ;;  %v4468_v60 = vadd.f32 %v3125_v43, %v2761_v46  ;;  %v3127_v32 = vpop.f32.mrb[11].mxu0  ;;  %v2769_v5 = vadd.f32 %v6256_v11, %v6416_v47 }
 0x236   : > { %v4466_v48 = vadd.f32 %v4465_v59, %v6355_v17  ;;  %v4471_v1 = vadd.f32 %v3127_v32, %v2763_v22  ;;  %v2771_v17 = vadd.f32 %v6264_v10, %v6413_v63 }
 0x237   : > { %v3680_v36 = vmax.f32 %v4463_v13, 0.0  ;;  %v4469_v55 = vadd.f32 %v4468_v60, %v6357_v24 }
 0x238   : > { %v3681_v42 = vmax.f32 %v4466_v48, 0.0  ;;  %v4472_v33 = vadd.f32 %v4471_v1, %v6362_v56  ;;  %v2773_v56 = vadd.f32 %v6270_v54, %v6416_v47 }
 0x239   : > { %3704 = vst [vmem:[%s6435_s17 + $0x60] sm:$0xff] %v3680_v36  ;;  %v3683_v50 = vmax.f32 %v4469_v55, 0.0 }
 0x23a   : > { %3705 = vst [vmem:[%s6435_s17 + $0x68] sm:$0xff] %v3681_v42  ;;  %v3684_v19 = vmax.f32 %v4472_v33, 0.0  ;;  %v3131_v6 = vpop.f32.mrb[12].mxu0 }
 0x23b   : > { %3707 = vst [vmem:[%s6435_s17 + $0x78] sm:$0xff] %v3683_v50  ;;  %v4474_v24 = vadd.f32 %v3131_v6, %v2767_v2  ;;  %v3133_v62 = vpop.f32.mrb[13].mxu0 }
 0x23c   : > { %3708 = vst [vmem:[%s6435_s17 + $0x80] sm:$0xff] %v3684_v19  ;;  %v4477_v8 = vadd.f32 %v3133_v62, %v2769_v5  ;;  %v3135_v41 = vpop.f32.mrb[14].mxu0 }
 0x23d   : > { %v4475_v11 = vadd.f32 %v4474_v24, %v6371_v29  ;;  %v4480_v45 = vadd.f32 %v3135_v41, %v2771_v17  ;;  %v3137_v12 = vpop.f32.mrb[15].mxu0 }
 0x23e   : > { %v4478_v16 = vadd.f32 %v4477_v8, %v6375_v0  ;;  %v4483_v10 = vadd.f32 %v3137_v12, %v2773_v56 }
 0x23f   : > { %v3686_v63 = vmax.f32 %v4475_v11, 0.0  ;;  %v4481_v18 = vadd.f32 %v4480_v45, %v6535_v51 }
 0x240   : > { %v3687_v20 = vmax.f32 %v4478_v16, 0.0  ;;  %v4484_v15 = vadd.f32 %v4483_v10, %v6536_v52 }
 0x241   : > { %3710 = vst [vmem:[%s6435_s17 + $0x90] sm:$0xff] %v3686_v63  ;;  %v3689_v54 = vmax.f32 %v4481_v18, 0.0  ;;  %v3645_v40 = vpop.f32.mrb[128].mxu1 }
 0x242   : > { %3711 = vst [vmem:[%s6435_s17 + $0x98] sm:$0xff] %v3687_v20  ;;  %v3690_v47 = vmax.f32 %v4484_v15, 0.0  ;;  %v3646_v29 = vadd.f32 %v3645_v40, %v6418_v9  ;;  %v3647_v7 = vpop.f32.mrb[129].mxu1 }
 0x243   : > { %3713 = vst [vmem:[%s6435_s17 + $0xa8] sm:$0xff] %v3689_v54  ;;  %v3648_v0 = vpop.f32.mrb[130].mxu1 }
 0x244   : > { %3714 = vst [vmem:[%s6435_s17 + $0xb0] sm:$0xff] %v3690_v47  ;;  %v3676_v35 = vmax.f32 %v3646_v29, 0.0  ;;  %v3649_v53 = vadd.f32 %v3648_v0, %v6420_v27  ;;  %v3650_v31 = vpop.f32.mrb[131].mxu1 }
 0x246   : > { %3700 = vst.msk [vmem:[%s6435_s17 + $0x40] sm:$0xff] %vm2689_vm0, %v3676_v35  ;;  %v3679_v23 = vmax.f32 %v3649_v53, 0.0 }
 0x248   : > { %3703 = vst.msk [vmem:[%s6435_s17 + $0x58] sm:$0xff] %vm2689_vm0, %v3679_v23 }
 0x249   : > { %v3653_v26 = vpop.f32.mrb[132].mxu1 }
 0x24a   : > { %v3654_v39 = vadd.f32 %v3653_v26, %v6438_v58  ;;  %v3655_v37 = vpop.f32.mrb[133].mxu1 }
 0x24b   : > { %v3656_v30 = vpop.f32.mrb[134].mxu1 }
 0x24c   : > { %v3682_v9 = vmax.f32 %v3654_v39, 0.0  ;;  %v3657_v38 = vadd.f32 %v3656_v30, %v6442_v49  ;;  %v3658_v4 = vpop.f32.mrb[135].mxu1 }
 0x24e   : > { %3706 = vst.msk [vmem:[%s6435_s17 + $0x70] sm:$0xff] %vm2689_vm0, %v3682_v9  ;;  %v3685_v28 = vmax.f32 %v3657_v38, 0.0 }
 0x250   : > { %3709 = vst.msk [vmem:[%s6435_s17 + $0x88] sm:$0xff] %vm2689_vm0, %v3685_v28 }
 0x251   : > { %v3661_v61 = vpop.f32.mrb[136].mxu1 }
 0x252   : > { %v3637_v27 = vpop.f32.mrb[16].mxu0  ;;  %v3662_v58 = vadd.f32 %v3661_v61, %v6459_v25  ;;  %v3663_v57 = vpop.f32.mrb[137].mxu1 }
 0x253   : > { %v3638_v3 = vadd.f32 %v3637_v27, %v6406_v21  ;;  %v3639_v46 = vpop.f32.mrb[17].mxu0  ;;  %v3664_v49 = vpop.f32.mrb[138].mxu1 }
 0x254   : > { %v3640_v14 = vpop.f32.mrb[18].mxu0  ;;  %v3688_v59 = vmax.f32 %v3662_v58, 0.0  ;;  %v3665_v13 = vadd.f32 %v3664_v49, %v6464_v44  ;;  %v3666_v32 = vpop.f32.mrb[139].mxu1 }
 0x255   : > { %v3670_v22 = vmax.f32 %v3638_v3, 0.0  ;;  %v3641_v43 = vadd.f32 %v3640_v14, %v6408_v34  ;;  %v3642_v60 = vpop.f32.mrb[19].mxu0 }
 0x256   : > { %3712 = vst.msk [vmem:[%s6435_s17 + $0xa0] sm:$0xff] %vm2689_vm0, %v3688_v59  ;;  %v3691_v48 = vmax.f32 %v3665_v13, 0.0 }
 0x257   : > { %3694 = vst.msk [vmem:[%s6435_s17 + $0x10] sm:$0xff] %vm2689_vm0, %v3670_v22  ;;  %v3673_v21 = vmax.f32 %v3641_v43, 0.0 }
 0x258   : > { %3715 = vst.msk [vmem:[%s6435_s17 + $0xb8] sm:$0xff] %vm2689_vm0, %v3691_v48 }
 0x259   : > { %3697 = vst.msk [vmem:[%s6435_s17 + $0x28] sm:$0xff] %vm2689_vm0, %v3673_v21 }
 0x25a PF: > { %s13_s12 = sadd.s32 1, %s5091_s12  }
 0x25b   : > { %p10_p4 = scmp.ge.s32.totalorder %s13_s12, 4  }
 0x25d   :  { %12 = sbr.rel (!%p10_p4) target bundleno = 1 (0x1), region = 62 }

</bundles_post_ra>
